<compile_context>
chip_gen: v7x
topology: tpu7x:2x2x1
jax: 0.10.0
libtpu: 0.0.40
codegen_flags: <defaults>
</compile_context>

<pallas_src>
import functools

import jax
import jax.numpy as jnp
from jax.experimental import pallas as pl
from jax.experimental.pallas import tpu as pltpu

MODES1 = 5
MODES2 = 5
WIDTH = 128          # FNO(5, 5, 128)
PROJ_HIDDEN = 256
FEAT_DIM = 512       # feeds Critic.fc = Linear(512, 100)
FC_OUT = 100
FC_OUT_PAD = 128     # lane-dense padding of fc (cols 100:128 zero, t1 rows 100:128 zero)

try:
    # v7x has 2 TensorCores per chip -> keep >=2 grid steps so
    # dimension_semantics=("parallel",) can shard them.
    _DUAL_TC = "v7" in jax.devices()[0].device_kind.lower()
except Exception:  # pragma: no cover
    _DUAL_TC = False


# --------------------------------------------------------------------------
# Pallas kernels
# --------------------------------------------------------------------------
def _apply_act(x, activation):
    if activation == "relu":
        return jnp.maximum(x, 0.0)
    if activation == "tanh":
        return jnp.tanh(x)
    return x


def _linear_kernel(x_ref, w_ref, b_ref, o_ref, *, activation):
    # bf16 operands, f32 MXU accumulation; bias add + activation in f32.
    acc = jnp.dot(x_ref[...], w_ref[...], preferred_element_type=jnp.float32)
    acc = acc + b_ref[...]
    o_ref[...] = _apply_act(acc, activation).astype(o_ref.dtype)


def _linear_res_kernel(x_ref, w_ref, b_ref, r_ref, o_ref, *, activation):
    # fused FNO layer: act(x @ w + b + spectral_residual); residual is f32.
    acc = jnp.dot(x_ref[...], w_ref[...], preferred_element_type=jnp.float32)
    acc = acc + b_ref[...] + r_ref[...]
    o_ref[...] = _apply_act(acc, activation).astype(o_ref.dtype)


def _pool_proj_kernel(p_ref, x_ref, w_ref, b_ref, o_ref):
    # pooled = P @ x  (mean pool as an MXU matmul), then proj2 on the tiny
    # (B, C1) pooled features.  Both matmuls accumulate in f32.
    pooled = jnp.dot(p_ref[...], x_ref[...], preferred_element_type=jnp.float32)
    acc = jnp.dot(pooled.astype(jnp.bfloat16), w_ref[...],
                  preferred_element_type=jnp.float32)
    o_ref[...] = (acc + b_ref[...]).astype(o_ref.dtype)


def _head_kernel(x_ref, wf_ref, bf_ref, w1_ref, b1_ref,
                 w2_ref, b2_ref, w3_ref, b3_ref, o_ref):
    # Fused value head: tanh(fc) -> relu(t1) -> relu(t2) -> t3.
    h = jnp.dot(x_ref[...], wf_ref[...], preferred_element_type=jnp.float32)
    h = jnp.tanh(h + bf_ref[...])
    h = jnp.dot(h.astype(jnp.bfloat16), w1_ref[...],
                preferred_element_type=jnp.float32)
    h = jnp.maximum(h + b1_ref[...], 0.0)
    h = jnp.dot(h.astype(jnp.bfloat16), w2_ref[...],
                preferred_element_type=jnp.float32)
    h = jnp.maximum(h + b2_ref[...], 0.0)
    v = jnp.dot(h.astype(jnp.bfloat16), w3_ref[...],
                preferred_element_type=jnp.float32)
    o_ref[...] = (v + b3_ref[...]).astype(o_ref.dtype)


# --------------------------------------------------------------------------
# Pallas wrappers
# --------------------------------------------------------------------------
def _pick_bm(M):
    if _DUAL_TC:
        # keep >=2 grid steps so both v7x TensorCores get a block
        return 256 if M >= 512 else M
    # single TensorCore (v5e/v6e): biggest block that trivially fits VMEM
    if M <= 1024:
        return M
    return 512


def pallas_linear(x, w, b, activation=None, residual=None):
    """y = act(x @ w + b [+ residual]); x:(M,K) bf16, w:(K,N) bf16, b:(1,N) f32."""
    M, K = x.shape
    N = w.shape[1]
    bm = _pick_bm(M)
    Mp = pl.cdiv(M, bm) * bm
    if Mp != M:
        # pad rows so the grid tiles evenly (avoids a single oversized block)
        x = jnp.pad(x, ((0, Mp - M), (0, 0)))
        if residual is not None:
            residual = jnp.pad(residual, ((0, Mp - M), (0, 0)))
    grid = (Mp // bm,)

    x_spec = pl.BlockSpec((bm, K), lambda i: (i, 0))
    w_spec = pl.BlockSpec((K, N), lambda i: (0, 0))
    b_spec = pl.BlockSpec((1, N), lambda i: (0, 0))
    o_spec = pl.BlockSpec((bm, N), lambda i: (i, 0))

    if residual is None:
        kernel = functools.partial(_linear_kernel, activation=activation)
        in_specs = [x_spec, w_spec, b_spec]
        args = (x, w, b)
    else:
        kernel = functools.partial(_linear_res_kernel, activation=activation)
        r_spec = pl.BlockSpec((bm, N), lambda i: (i, 0))
        in_specs = [x_spec, w_spec, b_spec, r_spec]
        args = (x, w, b, residual)

    out = pl.pallas_call(
        kernel,
        out_shape=jax.ShapeDtypeStruct((Mp, N), x.dtype),
        grid_spec=pltpu.PrefetchScalarGridSpec(
            num_scalar_prefetch=0,
            grid=grid,
            in_specs=in_specs,
            out_specs=o_spec,
        ),
        compiler_params=pltpu.CompilerParams(dimension_semantics=("parallel",)),
    )(*args)
    return out[:M] if Mp != M else out


def pallas_pool_proj(pool_mat, x, w, b):
    """feat = (P @ x) @ w + b;  P:(B, B*L) bf16, x:(B*L, C1) bf16 -> (B, C2) bf16."""
    B, M = pool_mat.shape
    C1 = x.shape[1]
    C2 = w.shape[1]
    # TODO(synk): if H*W grows large, tile the P@x reduction over L with an
    # accumulator + pl.when instead of one full block.
    full = lambda shape: pl.BlockSpec(shape, lambda i: (0, 0))
    return pl.pallas_call(
        _pool_proj_kernel,
        out_shape=jax.ShapeDtypeStruct((B, C2), jnp.bfloat16),
        grid_spec=pltpu.PrefetchScalarGridSpec(
            num_scalar_prefetch=0,
            grid=(1,),
            in_specs=[full((B, M)), full((M, C1)), full((C1, C2)), full((1, C2))],
            out_specs=full((B, C2)),
        ),
        compiler_params=pltpu.CompilerParams(dimension_semantics=("arbitrary",)),
    )(pool_mat, x, w, b)


def pallas_head(feat, params):
    """Fused value head on (B, 512) features -> (B, 1) f32."""
    B = feat.shape[0]
    args = (feat,
            params["fc_w"], params["fc_b"],
            params["t1_w"], params["t1_b"],
            params["t2_w"], params["t2_b"],
            params["t3_w"], params["t3_b"])
    full = lambda shape: pl.BlockSpec(shape, lambda i: (0, 0))
    in_specs = [full(a.shape) for a in args]
    return pl.pallas_call(
        _head_kernel,
        out_shape=jax.ShapeDtypeStruct((B, 1), jnp.float32),
        grid_spec=pltpu.PrefetchScalarGridSpec(
            num_scalar_prefetch=0,
            grid=(1,),
            in_specs=in_specs,
            out_specs=full((B, 1)),
        ),
        compiler_params=pltpu.CompilerParams(dimension_semantics=("arbitrary",)),
    )(*args)


# --------------------------------------------------------------------------
# FNO spectral convolution (FFT + per-mode mixing stay in plain JAX glue)
# --------------------------------------------------------------------------
def spectral_conv2d_nhwc(x, wr, wi, modes1, modes2):
    # TODO(synk): rfft2/irfft2 have no Pallas primitive; kept in XLA. The
    # per-mode complex mixing is decomposed into 4 real batched einsums
    # (MXU-friendly dot_generals), combining both Fourier corners.
    # x: (B, H, W, C) f32 ; wr/wi: (2, m1, m2, C, C) f32 (corner 0 = low rows).
    B, H, W, C = x.shape
    x_ft = jnp.fft.rfft2(x, axes=(1, 2))                      # (B, H, W//2+1, C)
    xs = jnp.stack([x_ft[:, :modes1, :modes2, :],
                    x_ft[:, H - modes1:, :modes2, :]], axis=0)  # (2,B,m1,m2,C)
    xr, xi = jnp.real(xs), jnp.imag(xs)

    def mm(a, w):  # per-(corner, mode) channel mixing
        return jnp.einsum("kbxyi,kxyio->kbxyo", a, w,
                          preferred_element_type=jnp.float32)

    out_r = mm(xr, wr) - mm(xi, wi)
    out_i = mm(xr, wi) + mm(xi, wr)
    out = jax.lax.complex(out_r, out_i)                       # (2,B,m1,m2,C)

    out_ft = jnp.zeros((B, H, W // 2 + 1, C), dtype=jnp.complex64)
    out_ft = out_ft.at[:, :modes1, :modes2, :].set(out[0])
    out_ft = out_ft.at[:, H - modes1:, :modes2, :].set(out[1])
    return jnp.fft.irfft2(out_ft, s=(H, W), axes=(1, 2))      # (B,H,W,C) f32


# --------------------------------------------------------------------------
# Parameter construction (deterministic, synthetic)
# --------------------------------------------------------------------------
def init_params(key, c_in):
    keys = iter(jax.random.split(key, 64))
    p = {}

    def sample_linear(fin, fout):
        bound = float(fin) ** -0.5
        w = jax.random.uniform(next(keys), (fin, fout), jnp.float32, -bound, bound)
        b = jax.random.uniform(next(keys), (1, fout), jnp.float32, -bound, bound)
        return w, b

    def linear(name, fin, fout):
        w, b = sample_linear(fin, fout)
        p[name + "_w"] = w.astype(jnp.bfloat16)   # bf16 MXU operand
        p[name + "_b"] = b                        # bias stays f32

    # FNO encoder
    linear("fc0", c_in, WIDTH)                    # per-pixel lift
    scale = 1.0 / (WIDTH * WIDTH)
    for l in range(2):                            # 2 Fourier layers
        wr_parts, wi_parts = [], []
        for _ in range(2):                        # the two spectral corners
            re = scale * jax.random.uniform(next(keys), (WIDTH, WIDTH, MODES1, MODES2))
            im = scale * jax.random.uniform(next(keys), (WIDTH, WIDTH, MODES1, MODES2))
            # (Cin, Cout, m1, m2) -> (m1, m2, Cin, Cout) for batched matmuls
            wr_parts.append(jnp.transpose(re, (2, 3, 0, 1)))
            wi_parts.append(jnp.transpose(im, (2, 3, 0, 1)))
        p[f"sc{l}_wr"] = jnp.stack(wr_parts, 0).astype(jnp.float32)
        p[f"sc{l}_wi"] = jnp.stack(wi_parts, 0).astype(jnp.float32)
        linear(f"w{l}", WIDTH, WIDTH)             # 1x1 conv as per-pixel linear
    linear("proj1", WIDTH, PROJ_HIDDEN)
    linear("proj2", PROJ_HIDDEN, FEAT_DIM)

    # Critic head (Linear(512,100) padded to 128 lanes; math is identical
    # because padded fc cols/bias are 0 -> tanh(0)=0 -> zero t1 rows).
    fc_w, fc_b = sample_linear(FEAT_DIM, FC_OUT)
    p["fc_w"] = jnp.pad(fc_w, ((0, 0), (0, FC_OUT_PAD - FC_OUT))).astype(jnp.bfloat16)
    p["fc_b"] = jnp.pad(fc_b, ((0, 0), (0, FC_OUT_PAD - FC_OUT)))
    t1_w, t1_b = sample_linear(FC_OUT, 1024)
    p["t1_w"] = jnp.pad(t1_w, ((0, FC_OUT_PAD - FC_OUT), (0, 0))).astype(jnp.bfloat16)
    p["t1_b"] = t1_b
    linear("t2", 1024, 1024)
    linear("t3", 1024, 1)
    return p


# --------------------------------------------------------------------------
# Forward pass
# --------------------------------------------------------------------------
def critic_forward(params, s):
    # s: (B, C_in, H, W) float32  (NCHW, matching PyTorch)
    B, Cin, H, W = s.shape
    L = H * W

    # single layout change: NCHW -> NHWC, then per-pixel rows (bf16 operands)
    x = jnp.transpose(s, (0, 2, 3, 1)).reshape(B * L, Cin).astype(jnp.bfloat16)

    # ---- FNO encoder ----
    x = pallas_linear(x, params["fc0_w"], params["fc0_b"])        # (BHW, 128)
    for l in range(2):
        xs = spectral_conv2d_nhwc(
            x.reshape(B, H, W, WIDTH).astype(jnp.float32),
            params[f"sc{l}_wr"], params[f"sc{l}_wi"], MODES1, MODES2)
        xs = xs.reshape(B * L, WIDTH)                             # f32 residual
        # fused in Pallas: relu(x @ w_l + b_l + spectral)
        x = pallas_linear(x, params[f"w{l}_w"], params[f"w{l}_b"],
                          activation="relu", residual=xs)
    x = pallas_linear(x, params["proj1_w"], params["proj1_b"],
                      activation="relu")                          # (BHW, 256)

    # mean pool commuted before proj2 (proj2 is affine) and fused with it;
    # the pool runs on the MXU as a (B, B*L) @ (B*L, 256) matmul.
    pool_mat = (jnp.repeat(jnp.eye(B, dtype=jnp.float32), L, axis=1)
                / float(L)).astype(jnp.bfloat16)                  # (B, B*L)
    feat = pallas_pool_proj(pool_mat, x,
                            params["proj2_w"], params["proj2_b"]) # (B, 512)

    # ---- Critic head: one fused kernel: tanh(fc) -> relu(t1) -> relu(t2) -> t3
    return pallas_head(feat, params)                              # (B, 1) f32


# --------------------------------------------------------------------------
if __name__ == "__main__":
    key = jax.random.PRNGKey(0)
    pkey, xkey = jax.random.split(key)

    B, C_IN, H, W = 2, 4, 16, 16
    params = init_params(pkey, C_IN)
    s = jax.random.normal(xkey, (B, C_IN, H, W), jnp.float32)

    fwd = jax.jit(critic_forward)
    v = fwd(params, s)
    jax.block_until_ready(v)

    assert v.shape == (B, 1), v.shape
    assert v.dtype == jnp.float32
    print("KERNEL_OK")
</pallas_src>

<mosaic_0001>
module attributes {stable_mosaic.version = 11 : i64} {
  func.func @_linear_kernel(%arg0: i32, %arg1: memref<512x4xbf16, #tpu.memory_space<vmem>>, %arg2: memref<4x128xbf16, #tpu.memory_space<vmem>>, %arg3: memref<1x128xf32, #tpu.memory_space<vmem>>, %arg4: memref<512x128xbf16, #tpu.memory_space<vmem>>) attributes {dimension_semantics = [#tpu.dimension_semantics<parallel>], iteration_bounds = array<i64: 1>, scalar_prefetch = 0 : i64, scratch_operands = 0 : i64, tpu.core_type = #tpu.core_type<tc>, window_params = [{transform_indices = @transform_0, window_bounds = array<i64: 512, 4>}, {pipeline_mode = #tpu.pipeline_mode<synchronous>, transform_indices = @transform_1, window_bounds = array<i64: 4, 128>}, {pipeline_mode = #tpu.pipeline_mode<synchronous>, transform_indices = @transform_2, window_bounds = array<i64: 1, 128>}, {transform_indices = @transform_3, window_bounds = array<i64: 512, 128>}]} {
    %c0 = arith.constant 0 : index
    %c0_0 = arith.constant 0 : index
    %0 = vector.load %arg1[%c0, %c0_0] : memref<512x4xbf16, #tpu.memory_space<vmem>>, vector<512x4xbf16>
    %c0_1 = arith.constant 0 : index
    %c0_2 = arith.constant 0 : index
    %1 = vector.load %arg2[%c0_1, %c0_2] : memref<4x128xbf16, #tpu.memory_space<vmem>>, vector<4x128xbf16>
    %cst = arith.constant dense<0.000000e+00> : vector<512x128xf32>
    %2 = tpu.matmul %0, %1, %cst {dimension_numbers = #tpu.dot_dimension_numbers<[1], [0], [0], [1], [0, 0, 1, 1], [], []>} : vector<512x4xbf16>, vector<4x128xbf16>, vector<512x128xf32> -> vector<512x128xf32>
    %c0_3 = arith.constant 0 : index
    %c0_4 = arith.constant 0 : index
    %3 = vector.load %arg3[%c0_3, %c0_4] : memref<1x128xf32, #tpu.memory_space<vmem>>, vector<1x128xf32>
    %4 = vector.broadcast %3 : vector<1x128xf32> to vector<512x128xf32>
    %5 = arith.addf %2, %4 : vector<512x128xf32>
    %6 = arith.truncf %5 : vector<512x128xf32> to vector<512x128xbf16>
    %c0_5 = arith.constant 0 : index
    %c0_6 = arith.constant 0 : index
    %7 = vector.load %arg4[%c0_5, %c0_6] : memref<512x128xbf16, #tpu.memory_space<vmem>>, vector<512x128xbf16>
    tpu.vector_store %arg4[%c0_5, %c0_6], %6 {strides = array<i32>} : memref<512x128xbf16, #tpu.memory_space<vmem>>, vector<512x128xbf16>,
    return
  }
  func.func @transform_0(%arg0: i32) -> (i32, i32) {
    %c0_i32 = arith.constant 0 : i32
    %c0_i32_0 = arith.constant 0 : i32
    return %arg0, %c0_i32 : i32, i32
  }
  func.func @transform_1(%arg0: i32) -> (i32, i32) {
    %c0_i32 = arith.constant 0 : i32
    %c0_i32_0 = arith.constant 0 : i32
    %c0_i32_1 = arith.constant 0 : i32
    return %c0_i32, %c0_i32_0 : i32, i32
  }
  func.func @transform_2(%arg0: i32) -> (i32, i32) {
    %c0_i32 = arith.constant 0 : i32
    %c0_i32_0 = arith.constant 0 : i32
    %c0_i32_1 = arith.constant 0 : i32
    return %c0_i32, %c0_i32_0 : i32, i32
  }
  func.func @transform_3(%arg0: i32) -> (i32, i32) {
    %c0_i32 = arith.constant 0 : i32
    %c0_i32_0 = arith.constant 0 : i32
    return %arg0, %c0_i32 : i32, i32
  }
}

module attributes {stable_mosaic.version = 11 : i64} {
  func.func @_linear_res_kernel(%arg0: i32, %arg1: memref<512x128xbf16, #tpu.memory_space<vmem>>, %arg2: memref<128x128xbf16, #tpu.memory_space<vmem>>, %arg3: memref<1x128xf32, #tpu.memory_space<vmem>>, %arg4: memref<512x128xf32, #tpu.memory_space<vmem>>, %arg5: memref<512x128xbf16, #tpu.memory_space<vmem>>) attributes {dimension_semantics = [#tpu.dimension_semantics<parallel>], iteration_bounds = array<i64: 1>, scalar_prefetch = 0 : i64, scratch_operands = 0 : i64, tpu.core_type = #tpu.core_type<tc>, window_params = [{transform_indices = @transform_0, window_bounds = array<i64: 512, 128>}, {pipeline_mode = #tpu.pipeline_mode<synchronous>, transform_indices = @transform_1, window_bounds = array<i64: 128, 128>}, {pipeline_mode = #tpu.pipeline_mode<synchronous>, transform_indices = @transform_2, window_bounds = array<i64: 1, 128>}, {transform_indices = @transform_3, window_bounds = array<i64: 512, 128>}, {transform_indices = @transform_4, window_bounds = array<i64: 512, 128>}]} {
    %c0 = arith.constant 0 : index
    %c0_0 = arith.constant 0 : index
    %0 = vector.load %arg1[%c0, %c0_0] : memref<512x128xbf16, #tpu.memory_space<vmem>>, vector<512x128xbf16>
    %c0_1 = arith.constant 0 : index
    %c0_2 = arith.constant 0 : index
    %1 = vector.load %arg2[%c0_1, %c0_2] : memref<128x128xbf16, #tpu.memory_space<vmem>>, vector<128x128xbf16>
    %cst = arith.constant dense<0.000000e+00> : vector<512x128xf32>
    %2 = tpu.matmul %0, %1, %cst {dimension_numbers = #tpu.dot_dimension_numbers<[1], [0], [0], [1], [0, 0, 1, 1], [], []>} : vector<512x128xbf16>, vector<128x128xbf16>, vector<512x128xf32> -> vector<512x128xf32>
    %c0_3 = arith.constant 0 : index
    %c0_4 = arith.constant 0 : index
    %3 = vector.load %arg3[%c0_3, %c0_4] : memref<1x128xf32, #tpu.memory_space<vmem>>, vector<1x128xf32>
    %4 = vector.broadcast %3 : vector<1x128xf32> to vector<512x128xf32>
    %5 = arith.addf %2, %4 : vector<512x128xf32>
    %c0_5 = arith.constant 0 : index
    %c0_6 = arith.constant 0 : index
    %6 = vector.load %arg4[%c0_5, %c0_6] : memref<512x128xf32, #tpu.memory_space<vmem>>, vector<512x128xf32>
    %7 = arith.addf %5, %6 : vector<512x128xf32>
    %cst_7 = arith.constant 0.000000e+00 : f32
    %8 = vector.broadcast %cst_7 : f32 to vector<512x128xf32>
    %9 = arith.maximumf %7, %8 : vector<512x128xf32>
    %10 = arith.truncf %9 : vector<512x128xf32> to vector<512x128xbf16>
    %c0_8 = arith.constant 0 : index
    %c0_9 = arith.constant 0 : index
    %11 = vector.load %arg5[%c0_8, %c0_9] : memref<512x128xbf16, #tpu.memory_space<vmem>>, vector<512x128xbf16>
    tpu.vector_store %arg5[%c0_8, %c0_9], %10 {strides = array<i32>} : memref<512x128xbf16, #tpu.memory_space<vmem>>, vector<512x128xbf16>,
    return
  }
  func.func @transform_0(%arg0: i32) -> (i32, i32) {
    %c0_i32 = arith.constant 0 : i32
    %c0_i32_0 = arith.constant 0 : i32
    return %arg0, %c0_i32 : i32, i32
  }
  func.func @transform_1(%arg0: i32) -> (i32, i32) {
    %c0_i32 = arith.constant 0 : i32
    %c0_i32_0 = arith.constant 0 : i32
    %c0_i32_1 = arith.constant 0 : i32
    return %c0_i32, %c0_i32_0 : i32, i32
  }
  func.func @transform_2(%arg0: i32) -> (i32, i32) {
    %c0_i32 = arith.constant 0 : i32
    %c0_i32_0 = arith.constant 0 : i32
    %c0_i32_1 = arith.constant 0 : i32
    return %c0_i32, %c0_i32_0 : i32, i32
  }
  func.func @transform_3(%arg0: i32) -> (i32, i32) {
    %c0_i32 = arith.constant 0 : i32
    %c0_i32_0 = arith.constant 0 : i32
    return %arg0, %c0_i32 : i32, i32
  }
  func.func @transform_4(%arg0: i32) -> (i32, i32) {
    %c0_i32 = arith.constant 0 : i32
    %c0_i32_0 = arith.constant 0 : i32
    return %arg0, %c0_i32 : i32, i32
  }
}

module attributes {stable_mosaic.version = 11 : i64} {
  func.func @_linear_kernel(%arg0: i32, %arg1: memref<512x128xbf16, #tpu.memory_space<vmem>>, %arg2: memref<128x256xbf16, #tpu.memory_space<vmem>>, %arg3: memref<1x256xf32, #tpu.memory_space<vmem>>, %arg4: memref<512x256xbf16, #tpu.memory_space<vmem>>) attributes {dimension_semantics = [#tpu.dimension_semantics<parallel>], iteration_bounds = array<i64: 1>, scalar_prefetch = 0 : i64, scratch_operands = 0 : i64, tpu.core_type = #tpu.core_type<tc>, window_params = [{transform_indices = @transform_0, window_bounds = array<i64: 512, 128>}, {pipeline_mode = #tpu.pipeline_mode<synchronous>, transform_indices = @transform_1, window_bounds = array<i64: 128, 256>}, {pipeline_mode = #tpu.pipeline_mode<synchronous>, transform_indices = @transform_2, window_bounds = array<i64: 1, 256>}, {transform_indices = @transform_3, window_bounds = array<i64: 512, 256>}]} {
    %c0 = arith.constant 0 : index
    %c0_0 = arith.constant 0 : index
    %0 = vector.load %arg1[%c0, %c0_0] : memref<512x128xbf16, #tpu.memory_space<vmem>>, vector<512x128xbf16>
    %c0_1 = arith.constant 0 : index
    %c0_2 = arith.constant 0 : index
    %1 = vector.load %arg2[%c0_1, %c0_2] : memref<128x256xbf16, #tpu.memory_space<vmem>>, vector<128x256xbf16>
    %cst = arith.constant dense<0.000000e+00> : vector<512x256xf32>
    %2 = tpu.matmul %0, %1, %cst {dimension_numbers = #tpu.dot_dimension_numbers<[1], [0], [0], [1], [0, 0, 1, 1], [], []>} : vector<512x128xbf16>, vector<128x256xbf16>, vector<512x256xf32> -> vector<512x256xf32>
    %c0_3 = arith.constant 0 : index
    %c0_4 = arith.constant 0 : index
    %3 = vector.load %arg3[%c0_3, %c0_4] : memref<1x256xf32, #tpu.memory_space<vmem>>, vector<1x256xf32>
    %4 = vector.broadcast %3 : vector<1x256xf32> to vector<512x256xf32>
    %5 = arith.addf %2, %4 : vector<512x256xf32>
    %cst_5 = arith.constant 0.000000e+00 : f32
    %6 = vector.broadcast %cst_5 : f32 to vector<512x256xf32>
    %7 = arith.maximumf %5, %6 : vector<512x256xf32>
    %8 = arith.truncf %7 : vector<512x256xf32> to vector<512x256xbf16>
    %c0_6 = arith.constant 0 : index
    %c0_7 = arith.constant 0 : index
    %9 = vector.load %arg4[%c0_6, %c0_7] : memref<512x256xbf16, #tpu.memory_space<vmem>>, vector<512x256xbf16>
    tpu.vector_store %arg4[%c0_6, %c0_7], %8 {strides = array<i32>} : memref<512x256xbf16, #tpu.memory_space<vmem>>, vector<512x256xbf16>,
    return
  }
  func.func @transform_0(%arg0: i32) -> (i32, i32) {
    %c0_i32 = arith.constant 0 : i32
    %c0_i32_0 = arith.constant 0 : i32
    return %arg0, %c0_i32 : i32, i32
  }
  func.func @transform_1(%arg0: i32) -> (i32, i32) {
    %c0_i32 = arith.constant 0 : i32
    %c0_i32_0 = arith.constant 0 : i32
    %c0_i32_1 = arith.constant 0 : i32
    return %c0_i32, %c0_i32_0 : i32, i32
  }
  func.func @transform_2(%arg0: i32) -> (i32, i32) {
    %c0_i32 = arith.constant 0 : i32
    %c0_i32_0 = arith.constant 0 : i32
    %c0_i32_1 = arith.constant 0 : i32
    return %c0_i32, %c0_i32_0 : i32, i32
  }
  func.func @transform_3(%arg0: i32) -> (i32, i32) {
    %c0_i32 = arith.constant 0 : i32
    %c0_i32_0 = arith.constant 0 : i32
    return %arg0, %c0_i32 : i32, i32
  }
}

module attributes {stable_mosaic.version = 11 : i64} {
  func.func @_pool_proj_kernel(%arg0: i32, %arg1: memref<2x512xbf16, #tpu.memory_space<vmem>>, %arg2: memref<512x256xbf16, #tpu.memory_space<vmem>>, %arg3: memref<256x512xbf16, #tpu.memory_space<vmem>>, %arg4: memref<1x512xf32, #tpu.memory_space<vmem>>, %arg5: memref<2x512xbf16, #tpu.memory_space<vmem>>) attributes {dimension_semantics = [#tpu.dimension_semantics<arbitrary>], iteration_bounds = array<i64: 1>, scalar_prefetch = 0 : i64, scratch_operands = 0 : i64, tpu.core_type = #tpu.core_type<tc>, window_params = [{pipeline_mode = #tpu.pipeline_mode<synchronous>, transform_indices = @transform_0, window_bounds = array<i64: 2, 512>}, {pipeline_mode = #tpu.pipeline_mode<synchronous>, transform_indices = @transform_1, window_bounds = array<i64: 512, 256>}, {pipeline_mode = #tpu.pipeline_mode<synchronous>, transform_indices = @transform_2, window_bounds = array<i64: 256, 512>}, {pipeline_mode = #tpu.pipeline_mode<synchronous>, transform_indices = @transform_3, window_bounds = array<i64: 1, 512>}, {pipeline_mode = #tpu.pipeline_mode<synchronous>, transform_indices = @transform_4, window_bounds = array<i64: 2, 512>}]} {
    %c0 = arith.constant 0 : index
    %c0_0 = arith.constant 0 : index
    %0 = vector.load %arg1[%c0, %c0_0] : memref<2x512xbf16, #tpu.memory_space<vmem>>, vector<2x512xbf16>
    %c0_1 = arith.constant 0 : index
    %c0_2 = arith.constant 0 : index
    %1 = vector.load %arg2[%c0_1, %c0_2] : memref<512x256xbf16, #tpu.memory_space<vmem>>, vector<512x256xbf16>
    %cst = arith.constant dense<0.000000e+00> : vector<2x256xf32>
    %2 = tpu.matmul %0, %1, %cst {dimension_numbers = #tpu.dot_dimension_numbers<[1], [0], [0], [1], [0, 0, 1, 1], [], []>} : vector<2x512xbf16>, vector<512x256xbf16>, vector<2x256xf32> -> vector<2x256xf32>
    %3 = arith.truncf %2 : vector<2x256xf32> to vector<2x256xbf16>
    %c0_3 = arith.constant 0 : index
    %c0_4 = arith.constant 0 : index
    %4 = vector.load %arg3[%c0_3, %c0_4] : memref<256x512xbf16, #tpu.memory_space<vmem>>, vector<256x512xbf16>
    %cst_5 = arith.constant dense<0.000000e+00> : vector<2x512xf32>
    %5 = tpu.matmul %3, %4, %cst_5 {dimension_numbers = #tpu.dot_dimension_numbers<[1], [0], [0], [1], [0, 0, 1, 1], [], []>} : vector<2x256xbf16>, vector<256x512xbf16>, vector<2x512xf32> -> vector<2x512xf32>
    %c0_6 = arith.constant 0 : index
    %c0_7 = arith.constant 0 : index
    %6 = vector.load %arg4[%c0_6, %c0_7] : memref<1x512xf32, #tpu.memory_space<vmem>>, vector<1x512xf32>
    %7 = vector.broadcast %6 : vector<1x512xf32> to vector<2x512xf32>
    %8 = arith.addf %5, %7 : vector<2x512xf32>
    %9 = arith.truncf %8 : vector<2x512xf32> to vector<2x512xbf16>
    %c0_8 = arith.constant 0 : index
    %c0_9 = arith.constant 0 : index
    %10 = vector.load %arg5[%c0_8, %c0_9] : memref<2x512xbf16, #tpu.memory_space<vmem>>, vector<2x512xbf16>
    tpu.vector_store %arg5[%c0_8, %c0_9], %9 {strides = array<i32>} : memref<2x512xbf16, #tpu.memory_space<vmem>>, vector<2x512xbf16>,
    return
  }
  func.func @transform_0(%arg0: i32) -> (i32, i32) {
    %c0_i32 = arith.constant 0 : i32
    %c0_i32_0 = arith.constant 0 : i32
    %c0_i32_1 = arith.constant 0 : i32
    return %c0_i32, %c0_i32_0 : i32, i32
  }
  func.func @transform_1(%arg0: i32) -> (i32, i32) {
    %c0_i32 = arith.constant 0 : i32
    %c0_i32_0 = arith.constant 0 : i32
    %c0_i32_1 = arith.constant 0 : i32
    return %c0_i32, %c0_i32_0 : i32, i32
  }
  func.func @transform_2(%arg0: i32) -> (i32, i32) {
    %c0_i32 = arith.constant 0 : i32
    %c0_i32_0 = arith.constant 0 : i32
    %c0_i32_1 = arith.constant 0 : i32
    return %c0_i32, %c0_i32_0 : i32, i32
  }
  func.func @transform_3(%arg0: i32) -> (i32, i32) {
    %c0_i32 = arith.constant 0 : i32
    %c0_i32_0 = arith.constant 0 : i32
    %c0_i32_1 = arith.constant 0 : i32
    return %c0_i32, %c0_i32_0 : i32, i32
  }
  func.func @transform_4(%arg0: i32) -> (i32, i32) {
    %c0_i32 = arith.constant 0 : i32
    %c0_i32_0 = arith.constant 0 : i32
    %c0_i32_1 = arith.constant 0 : i32
    return %c0_i32, %c0_i32_0 : i32, i32
  }
}

module attributes {stable_mosaic.version = 11 : i64} {
  func.func @_head_kernel(%arg0: i32, %arg1: memref<2x512xbf16, #tpu.memory_space<vmem>>, %arg2: memref<512x128xbf16, #tpu.memory_space<vmem>>, %arg3: memref<1x128xf32, #tpu.memory_space<vmem>>, %arg4: memref<128x1024xbf16, #tpu.memory_space<vmem>>, %arg5: memref<1x1024xf32, #tpu.memory_space<vmem>>, %arg6: memref<1024x1024xbf16, #tpu.memory_space<vmem>>, %arg7: memref<1x1024xf32, #tpu.memory_space<vmem>>, %arg8: memref<1024x1xbf16, #tpu.memory_space<vmem>>, %arg9: memref<1x1xf32, #tpu.memory_space<vmem>>, %arg10: memref<2x1xf32, #tpu.memory_space<vmem>>) attributes {dimension_semantics = [#tpu.dimension_semantics<arbitrary>], iteration_bounds = array<i64: 1>, scalar_prefetch = 0 : i64, scratch_operands = 0 : i64, tpu.core_type = #tpu.core_type<tc>, window_params = [{pipeline_mode = #tpu.pipeline_mode<synchronous>, transform_indices = @transform_0, window_bounds = array<i64: 2, 512>}, {pipeline_mode = #tpu.pipeline_mode<synchronous>, transform_indices = @transform_1, window_bounds = array<i64: 512, 128>}, {pipeline_mode = #tpu.pipeline_mode<synchronous>, transform_indices = @transform_2, window_bounds = array<i64: 1, 128>}, {pipeline_mode = #tpu.pipeline_mode<synchronous>, transform_indices = @transform_3, window_bounds = array<i64: 128, 1024>}, {pipeline_mode = #tpu.pipeline_mode<synchronous>, transform_indices = @transform_4, window_bounds = array<i64: 1, 1024>}, {pipeline_mode = #tpu.pipeline_mode<synchronous>, transform_indices = @transform_5, window_bounds = array<i64: 1024, 1024>}, {pipeline_mode = #tpu.pipeline_mode<synchronous>, transform_indices = @transform_6, window_bounds = array<i64: 1, 1024>}, {pipeline_mode = #tpu.pipeline_mode<synchronous>, transform_indices = @transform_7, window_bounds = array<i64: 1024, 1>}, {pipeline_mode = #tpu.pipeline_mode<synchronous>, transform_indices = @transform_8, window_bounds = array<i64: 1, 1>}, {pipeline_mode = #tpu.pipeline_mode<synchronous>, transform_indices = @transform_9, window_bounds = array<i64: 2, 1>}]} {
    %c0 = arith.constant 0 : index
    %c0_0 = arith.constant 0 : index
    %0 = vector.load %arg1[%c0, %c0_0] : memref<2x512xbf16, #tpu.memory_space<vmem>>, vector<2x512xbf16>
    %c0_1 = arith.constant 0 : index
    %c0_2 = arith.constant 0 : index
    %1 = vector.load %arg2[%c0_1, %c0_2] : memref<512x128xbf16, #tpu.memory_space<vmem>>, vector<512x128xbf16>
    %cst = arith.constant dense<0.000000e+00> : vector<2x128xf32>
    %2 = tpu.matmul %0, %1, %cst {dimension_numbers = #tpu.dot_dimension_numbers<[1], [0], [0], [1], [0, 0, 1, 1], [], []>} : vector<2x512xbf16>, vector<512x128xbf16>, vector<2x128xf32> -> vector<2x128xf32>
    %c0_3 = arith.constant 0 : index
    %c0_4 = arith.constant 0 : index
    %3 = vector.load %arg3[%c0_3, %c0_4] : memref<1x128xf32, #tpu.memory_space<vmem>>, vector<1x128xf32>
    %4 = vector.broadcast %3 : vector<1x128xf32> to vector<2x128xf32>
    %5 = arith.addf %2, %4 : vector<2x128xf32>
    %6 = math.tanh %5 : vector<2x128xf32>
    %7 = arith.truncf %6 : vector<2x128xf32> to vector<2x128xbf16>
    %c0_5 = arith.constant 0 : index
    %c0_6 = arith.constant 0 : index
    %8 = vector.load %arg4[%c0_5, %c0_6] : memref<128x1024xbf16, #tpu.memory_space<vmem>>, vector<128x1024xbf16>
    %cst_7 = arith.constant dense<0.000000e+00> : vector<2x1024xf32>
    %9 = tpu.matmul %7, %8, %cst_7 {dimension_numbers = #tpu.dot_dimension_numbers<[1], [0], [0], [1], [0, 0, 1, 1], [], []>} : vector<2x128xbf16>, vector<128x1024xbf16>, vector<2x1024xf32> -> vector<2x1024xf32>
    %c0_8 = arith.constant 0 : index
    %c0_9 = arith.constant 0 : index
    %10 = vector.load %arg5[%c0_8, %c0_9] : memref<1x1024xf32, #tpu.memory_space<vmem>>, vector<1x1024xf32>
    %11 = vector.broadcast %10 : vector<1x1024xf32> to vector<2x1024xf32>
    %12 = arith.addf %9, %11 : vector<2x1024xf32>
    %cst_10 = arith.constant 0.000000e+00 : f32
    %13 = vector.broadcast %cst_10 : f32 to vector<2x1024xf32>
    %14 = arith.maximumf %12, %13 : vector<2x1024xf32>
    %15 = arith.truncf %14 : vector<2x1024xf32> to vector<2x1024xbf16>
    %c0_11 = arith.constant 0 : index
    %c0_12 = arith.constant 0 : index
    %16 = vector.load %arg6[%c0_11, %c0_12] : memref<1024x1024xbf16, #tpu.memory_space<vmem>>, vector<1024x1024xbf16>
    %cst_13 = arith.constant dense<0.000000e+00> : vector<2x1024xf32>
    %17 = tpu.matmul %15, %16, %cst_13 {dimension_numbers = #tpu.dot_dimension_numbers<[1], [0], [0], [1], [0, 0, 1, 1], [], []>} : vector<2x1024xbf16>, vector<1024x1024xbf16>, vector<2x1024xf32> -> vector<2x1024xf32>
    %c0_14 = arith.constant 0 : index
    %c0_15 = arith.constant 0 : index
    %18 = vector.load %arg7[%c0_14, %c0_15] : memref<1x1024xf32, #tpu.memory_space<vmem>>, vector<1x1024xf32>
    %19 = vector.broadcast %18 : vector<1x1024xf32> to vector<2x1024xf32>
    %20 = arith.addf %17, %19 : vector<2x1024xf32>
    %cst_16 = arith.constant 0.000000e+00 : f32
    %21 = vector.broadcast %cst_16 : f32 to vector<2x1024xf32>
    %22 = arith.maximumf %20, %21 : vector<2x1024xf32>
    %23 = arith.truncf %22 : vector<2x1024xf32> to vector<2x1024xbf16>
    %c0_17 = arith.constant 0 : index
    %c0_18 = arith.constant 0 : index
    %24 = vector.load %arg8[%c0_17, %c0_18] : memref<1024x1xbf16, #tpu.memory_space<vmem>>, vector<1024x1xbf16>
    %cst_19 = arith.constant dense<0.000000e+00> : vector<2x1xf32>
    %25 = tpu.matmul %23, %24, %cst_19 {dimension_numbers = #tpu.dot_dimension_numbers<[1], [0], [0], [1], [0, 0, 1, 1], [], []>} : vector<2x1024xbf16>, vector<1024x1xbf16>, vector<2x1xf32> -> vector<2x1xf32>
    %c0_20 = arith.constant 0 : index
    %c0_21 = arith.constant 0 : index
    %26 = vector.load %arg9[%c0_20, %c0_21] : memref<1x1xf32, #tpu.memory_space<vmem>>, vector<1x1xf32>
    %27 = vector.broadcast %26 : vector<1x1xf32> to vector<2x1xf32>
    %28 = arith.addf %25, %27 : vector<2x1xf32>
    %c0_22 = arith.constant 0 : index
    %c0_23 = arith.constant 0 : index
    %29 = vector.load %arg10[%c0_22, %c0_23] : memref<2x1xf32, #tpu.memory_space<vmem>>, vector<2x1xf32>
    tpu.vector_store %arg10[%c0_22, %c0_23], %28 {strides = array<i32>} : memref<2x1xf32, #tpu.memory_space<vmem>>, vector<2x1xf32>,
    return
  }
  func.func @transform_0(%arg0: i32) -> (i32, i32) {
    %c0_i32 = arith.constant 0 : i32
    %c0_i32_0 = arith.constant 0 : i32
    %c0_i32_1 = arith.constant 0 : i32
    return %c0_i32, %c0_i32_0 : i32, i32
  }
  func.func @transform_1(%arg0: i32) -> (i32, i32) {
    %c0_i32 = arith.constant 0 : i32
    %c0_i32_0 = arith.constant 0 : i32
    %c0_i32_1 = arith.constant 0 : i32
    return %c0_i32, %c0_i32_0 : i32, i32
  }
  func.func @transform_2(%arg0: i32) -> (i32, i32) {
    %c0_i32 = arith.constant 0 : i32
    %c0_i32_0 = arith.constant 0 : i32
    %c0_i32_1 = arith.constant 0 : i32
    return %c0_i32, %c0_i32_0 : i32, i32
  }
  func.func @transform_3(%arg0: i32) -> (i32, i32) {
    %c0_i32 = arith.constant 0 : i32
    %c0_i32_0 = arith.constant 0 : i32
    %c0_i32_1 = arith.constant 0 : i32
    return %c0_i32, %c0_i32_0 : i32, i32
  }
  func.func @transform_4(%arg0: i32) -> (i32, i32) {
    %c0_i32 = arith.constant 0 : i32
    %c0_i32_0 = arith.constant 0 : i32
    %c0_i32_1 = arith.constant 0 : i32
    return %c0_i32, %c0_i32_0 : i32, i32
  }
  func.func @transform_5(%arg0: i32) -> (i32, i32) {
    %c0_i32 = arith.constant 0 : i32
    %c0_i32_0 = arith.constant 0 : i32
    %c0_i32_1 = arith.constant 0 : i32
    return %c0_i32, %c0_i32_0 : i32, i32
  }
  func.func @transform_6(%arg0: i32) -> (i32, i32) {
    %c0_i32 = arith.constant 0 : i32
    %c0_i32_0 = arith.constant 0 : i32
    %c0_i32_1 = arith.constant 0 : i32
    return %c0_i32, %c0_i32_0 : i32, i32
  }
  func.func @transform_7(%arg0: i32) -> (i32, i32) {
    %c0_i32 = arith.constant 0 : i32
    %c0_i32_0 = arith.constant 0 : i32
    %c0_i32_1 = arith.constant 0 : i32
    return %c0_i32, %c0_i32_0 : i32, i32
  }
  func.func @transform_8(%arg0: i32) -> (i32, i32) {
    %c0_i32 = arith.constant 0 : i32
    %c0_i32_0 = arith.constant 0 : i32
    %c0_i32_1 = arith.constant 0 : i32
    return %c0_i32, %c0_i32_0 : i32, i32
  }
  func.func @transform_9(%arg0: i32) -> (i32, i32) {
    %c0_i32 = arith.constant 0 : i32
    %c0_i32_0 = arith.constant 0 : i32
    %c0_i32_1 = arith.constant 0 : i32
    return %c0_i32, %c0_i32_0 : i32, i32
  }
}

</mosaic_0001>

<bundles_post_ra>
// kernel: critic_forward.6
= control target key start
LH: loop header
LB: loop body
LE: loop exit
PB: predicated region body
PF: predicated region fallthrough
CT: control target
= control target key end

     0   :  { %8 = vsyncpa [#allocation3], 0  ;;  %s1892_s0 = inlined_call_operand.vmem [shape: bf16[512,4], index: 0, kind: input, shape index: {}]   ;;  %s1893_s1 = inlined_call_operand.hbm [shape: bf16[4,128], index: 1, kind: input, shape index: {}]   ;;  %s1894_s2 = inlined_call_operand.hbm [shape: f32[1,128], index: 2, kind: input, shape index: {}]   ;;  %s1895_s3 = inlined_call_operand.vmem [shape: bf16[512,128], index: 3, kind: output, shape index: {}]  }
   0x1   :  { %9 = vsyncpa [#allocation5], 0  ;;  %s1556_s12 = smov [#allocation2]   ;;  %s1557_s14 = smov [#allocation4]  }
   0x2   :  { %s18_s13 = sshll.u32 %s1556_s12, 4  ;;  %s28_s15 = sshll.u32 %s1557_s14, 4  ;;  %s19_s13 = int_to_ptr.vmem [resolvable:$true] %s18_s13  ;;  %s29_s15 = int_to_ptr.vmem [resolvable:$true] %s28_s15 }
   0x3   :  { %s1508_s18 = scalar_lea.hbm %s1893_s1, 32 }
   0x4   :  { %p1509_p0 = scmp.ne.s32.totalorder %s1893_s1, %s1508_s18  ;;  %p1512_p1 = scmp.lt.u32.totalorder %s1508_s18, %s1893_s1 }
   0x6   :  { %p1514_p2 = pnand %p1512_p1, %p1509_p0 }
   0x8   :  { %1517 = shalt.err (!%p1514_p2)
}
   0x9   :  { %s1518_s23 = scalar_lea.vmem %s19_s13, 32  ;;  %p1523_p4 = scmp.lt.s32.totalorder %s19_s13, %s19_s13 }
   0xa   :  { %p1519_p3 = scmp.ne.s32.totalorder %s19_s13, %s1518_s23  ;;  %p1524_p5 = scmp.lt.s32.totalorder %s1518_s23, %s1518_s23 }
   0xc   :  { %p1525_p6 = por %p1524_p5, %p1523_p4 }
   0xe   :  { %p1526_p7 = pnand %p1525_p6, %p1519_p3 }
  0x10   :  { %1529 = shalt.err (!%p1526_p7)
}
  0x11   :  { %21 = dma.hbm_to_vmem [thread:$0]  %s1893_s1, 32, %s19_s13, [#allocation3]  }
  0x12   :  { %s1530_s28 = scalar_lea.hbm %s1894_s2, 16 }
  0x13   :  { %p1531_p8 = scmp.ne.s32.totalorder %s1894_s2, %s1530_s28  ;;  %p1534_p9 = scmp.lt.u32.totalorder %s1530_s28, %s1894_s2 }
  0x15   :  { %p1536_p10 = pnand %p1534_p9, %p1531_p8 }
  0x17   :  { %1539 = shalt.err (!%p1536_p10)
}
  0x18   :  { %s1540_s6 = scalar_lea.vmem %s29_s15, 16  ;;  %s1544_s7 = scalar_lea.vmem %s29_s15, 32 }
  0x19   :  { %p1541_p11 = scmp.ne.s32.totalorder %s29_s15, %s1540_s6  ;;  %p1545_p12 = scmp.lt.s32.totalorder %s29_s15, %s29_s15 }
  0x1a   :  { %p1546_p13 = scmp.lt.s32.totalorder %s1544_s7, %s1540_s6 }
  0x1c   :  { %p1547_p0 = por %p1546_p13, %p1545_p12 }
  0x1e   :  { %p1548_p1 = pnand %p1547_p0, %p1541_p11 }
  0x20   :  { %1551 = shalt.err (!%p1548_p1)
}
  0x21   :  { %31 = dma.hbm_to_vmem [thread:$0]  %s1894_s2, 16, %s29_s15, [#allocation5]  }
  0x22   :  { %1552 = dma.done.wait [#allocation3], 32  }
  0x23   :  { %1553 = vsyncadd [#allocation3], 4294967264 }
  0x24   :  { %1554 = dma.done.wait [#allocation5], 16  }
  0x25   :  { %1555 = vsyncadd [#allocation5], 4294967280  ;;  %vm368_vm0 = vcmask 1041408   ;;  %vm271_vm1 = vcmask 31744   ;;  %v103_v0 = vld [vmem:[#allocation2] sm:$0x3] }
  0x26   :  { %1472 = vmatprep.subr.msk.bf16.mxu0 %vm368_vm0, %v103_v0  ;;  %1473 = vmatprep.subr.msk.bf16.mxu1 %vm368_vm0, %v103_v0  ;;  %v370_v1 = vsel %vm368_vm0, %v103_v0, 0  ;;  %v1476_v2 = vld [vmem:[%s1892_s0] sm:$0xff]   ;;  %v1478_v4 = vld [vmem:[%s1892_s0 + $0x8] sm:$0xff]   ;;  %v1480_v6 = vld [vmem:[%s1892_s0 + $0x10] sm:$0xff]  }
  0x27   :  { %1405 = vmatpush3.bf16.msra.mxu0 %v370_v1  ;;  %1471 = vmatpush3.bf16.msra.mxu1 %v370_v1  ;;  %v1477_v3 = vld [vmem:[%s1892_s0 + $0x80] sm:$0xff]   ;;  %v1479_v5 = vld [vmem:[%s1892_s0 + $0x88] sm:$0xff]   ;;  %v1481_v7 = vld [vmem:[%s1892_s0 + $0x90] sm:$0xff]  }
  0x28   :  { %1406 = vmatprep.mubr.msk.bf16.mxu0 %vm271_vm1, %v1476_v2  ;;  %1438 = vmatprep.mubr.msk.bf16.mxu1 %vm271_vm1, %v1477_v3  ;;  %v1482_v8 = vld [vmem:[%s1892_s0 + $0x18] sm:$0xff]   ;;  %v1484_v10 = vld [vmem:[%s1892_s0 + $0x20] sm:$0xff]   ;;  %v1486_v12 = vld [vmem:[%s1892_s0 + $0x28] sm:$0xff]  }
  0x29   :  { %v1483_v9 = vld [vmem:[%s1892_s0 + $0x98] sm:$0xff]   ;;  %v1485_v11 = vld [vmem:[%s1892_s0 + $0xa0] sm:$0xff]   ;;  %v1487_v13 = vld [vmem:[%s1892_s0 + $0xa8] sm:$0xff]  }
  0x2a   :  { %1407 = vmatmul.mubr.msk.bf16.vlgmr.msra.gmra.mrb[0].mxu0 %vm271_vm1, %v1478_v4  ;;  %1439 = vmatmul.mubr.msk.bf16.vlgmr.msra.gmra.mrb[0].mxu1 %vm271_vm1, %v1479_v5  ;;  %v1488_v14 = vld [vmem:[%s1892_s0 + $0x30] sm:$0xff]   ;;  %v1490_v16 = vld [vmem:[%s1892_s0 + $0x38] sm:$0xff]   ;;  %v1492_v18 = vld [vmem:[%s1892_s0 + $0x40] sm:$0xff]  }
  0x2b   :  { %1410 = vmatprep.mubr.msk.bf16.mxu0 %vm271_vm1, %v1480_v6  ;;  %1442 = vmatprep.mubr.msk.bf16.mxu1 %vm271_vm1, %v1481_v7  ;;  %v1489_v15 = vld [vmem:[%s1892_s0 + $0xb0] sm:$0xff]   ;;  %v1491_v17 = vld [vmem:[%s1892_s0 + $0xb8] sm:$0xff]   ;;  %v1493_v19 = vld [vmem:[%s1892_s0 + $0xc0] sm:$0xff]  }
  0x2c   :  { %v1494_v20 = vld [vmem:[%s1892_s0 + $0x48] sm:$0xff]   ;;  %v1496_v22 = vld [vmem:[%s1892_s0 + $0x50] sm:$0xff]   ;;  %v1498_v24 = vld [vmem:[%s1892_s0 + $0x58] sm:$0xff]  }
  0x2d   :  { %v1495_v21 = vld [vmem:[%s1892_s0 + $0xc8] sm:$0xff]   ;;  %v1497_v23 = vld [vmem:[%s1892_s0 + $0xd0] sm:$0xff]   ;;  %v1499_v25 = vld [vmem:[%s1892_s0 + $0xd8] sm:$0xff]  }
  0x2e   :  { %v1500_v26 = vld [vmem:[%s1892_s0 + $0x60] sm:$0xff]   ;;  %v1502_v28 = vld [vmem:[%s1892_s0 + $0x68] sm:$0xff]   ;;  %v1504_v30 = vld [vmem:[%s1892_s0 + $0x70] sm:$0xff]  }
  0x2f   :  { %v1501_v27 = vld [vmem:[%s1892_s0 + $0xe0] sm:$0xff]   ;;  %v1503_v29 = vld [vmem:[%s1892_s0 + $0xe8] sm:$0xff]   ;;  %v1505_v31 = vld [vmem:[%s1892_s0 + $0xf0] sm:$0xff]  }
  0x30   :  { %v1506_v32 = vld [vmem:[%s1892_s0 + $0x78] sm:$0xff]   ;;  %v1730_v35 = vld [vmem:[#allocation4] ss:$0 sm:$0xff] }
  0x31   :  { %v1507_v33 = vld [vmem:[%s1892_s0 + $0xf8] sm:$0xff]  }
  0x32   :  { %1411 = vmatmul.mubr.msk.bf16.gmra.mrb[4].mxu0 %vm271_vm1, %v1482_v8  ;;  %1443 = vmatmul.mubr.msk.bf16.gmra.mrb[4].mxu1 %vm271_vm1, %v1483_v9 }
  0x33   :  { %1414 = vmatprep.mubr.msk.bf16.mxu0 %vm271_vm1, %v1484_v10  ;;  %1446 = vmatprep.mubr.msk.bf16.mxu1 %vm271_vm1, %v1485_v11 }
  0x3a   :  { %1415 = vmatmul.mubr.msk.bf16.gmra.mrb[8].mxu0 %vm271_vm1, %v1486_v12  ;;  %1447 = vmatmul.mubr.msk.bf16.gmra.mrb[8].mxu1 %vm271_vm1, %v1487_v13 }
  0x3b   :  { %1418 = vmatprep.mubr.msk.bf16.mxu0 %vm271_vm1, %v1488_v14  ;;  %1450 = vmatprep.mubr.msk.bf16.mxu1 %vm271_vm1, %v1489_v15 }
  0x42   :  { %1419 = vmatmul.mubr.msk.bf16.gmra.mrb[12].mxu0 %vm271_vm1, %v1490_v16  ;;  %1451 = vmatmul.mubr.msk.bf16.gmra.mrb[12].mxu1 %vm271_vm1, %v1491_v17 }
  0x43   :  { %1422 = vmatprep.mubr.msk.bf16.mxu0 %vm271_vm1, %v1492_v18  ;;  %1454 = vmatprep.mubr.msk.bf16.mxu1 %vm271_vm1, %v1493_v19 }
  0x4a   :  { %1423 = vmatmul.mubr.msk.bf16.gmra.mrb[16].mxu0 %vm271_vm1, %v1494_v20  ;;  %1455 = vmatmul.mubr.msk.bf16.gmra.mrb[16].mxu1 %vm271_vm1, %v1495_v21 }
  0x4b   :  { %1426 = vmatprep.mubr.msk.bf16.mxu0 %vm271_vm1, %v1496_v22  ;;  %1458 = vmatprep.mubr.msk.bf16.mxu1 %vm271_vm1, %v1497_v23 }
  0x52   :  { %1427 = vmatmul.mubr.msk.bf16.gmra.mrb[20].mxu0 %vm271_vm1, %v1498_v24  ;;  %1459 = vmatmul.mubr.msk.bf16.gmra.mrb[20].mxu1 %vm271_vm1, %v1499_v25 }
  0x53   :  { %1430 = vmatprep.mubr.msk.bf16.mxu0 %vm271_vm1, %v1500_v26  ;;  %1462 = vmatprep.mubr.msk.bf16.mxu1 %vm271_vm1, %v1501_v27 }
  0x5a   :  { %1431 = vmatmul.mubr.msk.bf16.gmra.mrb[24].mxu0 %vm271_vm1, %v1502_v28  ;;  %1463 = vmatmul.mubr.msk.bf16.gmra.mrb[24].mxu1 %vm271_vm1, %v1503_v29 }
  0x5b   :  { %1434 = vmatprep.mubr.msk.bf16.mxu0 %vm271_vm1, %v1504_v30  ;;  %1466 = vmatprep.mubr.msk.bf16.mxu1 %vm271_vm1, %v1505_v31 }
  0x62   :  { %1435 = vmatmul.mubr.msk.bf16.gmra.mrb[28].mxu0 %vm271_vm1, %v1506_v32  ;;  %1467 = vmatmul.mubr.msk.bf16.gmra.mrb[28].mxu1 %vm271_vm1, %v1507_v33 }
  0xfd   :  { %v1408_v34 = vpop.f32.mrb[0].mxu0  ;;  %v1440_v36 = vpop.f32.mrb[0].mxu1 }
  0xfe   :  { %v406_v37 = vpop.f32.mrb[1].mxu0  ;;  %v534_v38 = vpop.f32.mrb[1].mxu1  ;;  %v415_v40 = vadd.f32 %v1408_v34, %v1730_v35  ;;  %v543_v44 = vadd.f32 %v1440_v36, %v1730_v35 }
  0xff   :  { %v1409_v39 = vpop.f32.mrb[2].mxu0  ;;  %v1441_v42 = vpop.f32.mrb[2].mxu1  ;;  %v407_v45 = vadd.f32 %v1730_v35, %v406_v37  ;;  %v535_v49 = vadd.f32 %v1730_v35, %v534_v38 }
 0x100   :  { %v418_v41 = vadd.f32 %v1409_v39, %v1730_v35  ;;  %v409_v43 = vpop.f32.mrb[3].mxu0  ;;  %v546_v46 = vadd.f32 %v1441_v42, %v1730_v35  ;;  %v537_v48 = vpop.f32.mrb[3].mxu1 }
 0x101   :  { %v410_v47 = vadd.f32 %v1730_v35, %v409_v43  ;;  %v538_v51 = vadd.f32 %v1730_v35, %v537_v48 }
 0x102   :  { %v1188_v50 = vpack.c.bf16 %v418_v41, %v415_v40  ;;  %v1268_v52 = vpack.c.bf16 %v546_v46, %v543_v44 }
 0x103   :  { %v1183_v53 = vpack.c.bf16 %v410_v47, %v407_v45  ;;  %v1263_v54 = vpack.c.bf16 %v538_v51, %v535_v49 }
 0x104   :  { %1340 = vst [vmem:[%s1895_s3 + $0x8] sm:$0xff] %v1188_v50   ;;  %1356 = vst [vmem:[%s1895_s3 + $0x88] sm:$0xff] %v1268_v52  }
 0x105   :  { %1184 = vst [vmem:[%s1895_s3] sm:$0xff] %v1183_v53   ;;  %v1412_v55 = vpop.f32.mrb[4].mxu0  ;;  %1355 = vst [vmem:[%s1895_s3 + $0x80] sm:$0xff] %v1263_v54   ;;  %v1444_v56 = vpop.f32.mrb[4].mxu1 }
 0x106   :  { %v422_v57 = vpop.f32.mrb[5].mxu0  ;;  %v550_v58 = vpop.f32.mrb[5].mxu1  ;;  %v431_v60 = vadd.f32 %v1412_v55, %v1730_v35  ;;  %v559_v0 = vadd.f32 %v1444_v56, %v1730_v35 }
 0x107   :  { %v1413_v59 = vpop.f32.mrb[6].mxu0  ;;  %v1445_v62 = vpop.f32.mrb[6].mxu1  ;;  %v423_v1 = vadd.f32 %v1730_v35, %v422_v57  ;;  %v551_v5 = vadd.f32 %v1730_v35, %v550_v58 }
 0x108   :  { %v434_v61 = vadd.f32 %v1413_v59, %v1730_v35  ;;  %v425_v63 = vpop.f32.mrb[7].mxu0  ;;  %v562_v2 = vadd.f32 %v1445_v62, %v1730_v35  ;;  %v553_v4 = vpop.f32.mrb[7].mxu1 }
 0x109   :  { %v426_v3 = vadd.f32 %v1730_v35, %v425_v63  ;;  %v554_v7 = vadd.f32 %v1730_v35, %v553_v4 }
 0x10a   :  { %v1198_v6 = vpack.c.bf16 %v434_v61, %v431_v60  ;;  %v1278_v8 = vpack.c.bf16 %v562_v2, %v559_v0 }
 0x10b   :  { %v1193_v9 = vpack.c.bf16 %v426_v3, %v423_v1  ;;  %v1273_v10 = vpack.c.bf16 %v554_v7, %v551_v5 }
 0x10c   :  { %1342 = vst [vmem:[%s1895_s3 + $0x18] sm:$0xff] %v1198_v6   ;;  %1358 = vst [vmem:[%s1895_s3 + $0x98] sm:$0xff] %v1278_v8  }
 0x10d   :  { %1341 = vst [vmem:[%s1895_s3 + $0x10] sm:$0xff] %v1193_v9   ;;  %v1416_v11 = vpop.f32.mrb[8].mxu0  ;;  %1357 = vst [vmem:[%s1895_s3 + $0x90] sm:$0xff] %v1273_v10   ;;  %v1448_v12 = vpop.f32.mrb[8].mxu1 }
 0x10e   :  { %v438_v13 = vpop.f32.mrb[9].mxu0  ;;  %v566_v14 = vpop.f32.mrb[9].mxu1  ;;  %v447_v16 = vadd.f32 %v1416_v11, %v1730_v35  ;;  %v575_v20 = vadd.f32 %v1448_v12, %v1730_v35 }
 0x10f   :  { %v1417_v15 = vpop.f32.mrb[10].mxu0  ;;  %v1449_v18 = vpop.f32.mrb[10].mxu1  ;;  %v439_v21 = vadd.f32 %v1730_v35, %v438_v13  ;;  %v567_v25 = vadd.f32 %v1730_v35, %v566_v14 }
 0x110   :  { %v450_v17 = vadd.f32 %v1417_v15, %v1730_v35  ;;  %v441_v19 = vpop.f32.mrb[11].mxu0  ;;  %v578_v22 = vadd.f32 %v1449_v18, %v1730_v35  ;;  %v569_v24 = vpop.f32.mrb[11].mxu1 }
 0x111   :  { %v442_v23 = vadd.f32 %v1730_v35, %v441_v19  ;;  %v570_v27 = vadd.f32 %v1730_v35, %v569_v24 }
 0x112   :  { %v1208_v26 = vpack.c.bf16 %v450_v17, %v447_v16  ;;  %v1288_v28 = vpack.c.bf16 %v578_v22, %v575_v20 }
 0x113   :  { %v1203_v29 = vpack.c.bf16 %v442_v23, %v439_v21  ;;  %v1283_v30 = vpack.c.bf16 %v570_v27, %v567_v25 }
 0x114   :  { %1344 = vst [vmem:[%s1895_s3 + $0x28] sm:$0xff] %v1208_v26   ;;  %1360 = vst [vmem:[%s1895_s3 + $0xa8] sm:$0xff] %v1288_v28  }
 0x115   :  { %1343 = vst [vmem:[%s1895_s3 + $0x20] sm:$0xff] %v1203_v29   ;;  %v1420_v31 = vpop.f32.mrb[12].mxu0  ;;  %1359 = vst [vmem:[%s1895_s3 + $0xa0] sm:$0xff] %v1283_v30   ;;  %v1452_v32 = vpop.f32.mrb[12].mxu1 }
 0x116   :  { %v454_v33 = vpop.f32.mrb[13].mxu0  ;;  %v582_v34 = vpop.f32.mrb[13].mxu1  ;;  %v463_v37 = vadd.f32 %v1420_v31, %v1730_v35  ;;  %v591_v41 = vadd.f32 %v1452_v32, %v1730_v35 }
 0x117   :  { %v1421_v36 = vpop.f32.mrb[14].mxu0  ;;  %v1453_v39 = vpop.f32.mrb[14].mxu1  ;;  %v455_v42 = vadd.f32 %v1730_v35, %v454_v33  ;;  %v583_v46 = vadd.f32 %v1730_v35, %v582_v34 }
 0x118   :  { %v466_v38 = vadd.f32 %v1421_v36, %v1730_v35  ;;  %v457_v40 = vpop.f32.mrb[15].mxu0  ;;  %v594_v43 = vadd.f32 %v1453_v39, %v1730_v35  ;;  %v585_v45 = vpop.f32.mrb[15].mxu1 }
 0x119   :  { %v458_v44 = vadd.f32 %v1730_v35, %v457_v40  ;;  %v586_v48 = vadd.f32 %v1730_v35, %v585_v45 }
 0x11a   :  { %v1218_v47 = vpack.c.bf16 %v466_v38, %v463_v37  ;;  %v1298_v49 = vpack.c.bf16 %v594_v43, %v591_v41 }
 0x11b   :  { %v1213_v50 = vpack.c.bf16 %v458_v44, %v455_v42  ;;  %v1293_v51 = vpack.c.bf16 %v586_v48, %v583_v46 }
 0x11c   :  { %1346 = vst [vmem:[%s1895_s3 + $0x38] sm:$0xff] %v1218_v47   ;;  %1362 = vst [vmem:[%s1895_s3 + $0xb8] sm:$0xff] %v1298_v49  }
 0x11d   :  { %1345 = vst [vmem:[%s1895_s3 + $0x30] sm:$0xff] %v1213_v50   ;;  %v1424_v52 = vpop.f32.mrb[16].mxu0  ;;  %1361 = vst [vmem:[%s1895_s3 + $0xb0] sm:$0xff] %v1293_v51   ;;  %v1456_v53 = vpop.f32.mrb[16].mxu1 }
 0x11e   :  { %v470_v54 = vpop.f32.mrb[17].mxu0  ;;  %v598_v55 = vpop.f32.mrb[17].mxu1  ;;  %v479_v57 = vadd.f32 %v1424_v52, %v1730_v35  ;;  %v607_v61 = vadd.f32 %v1456_v53, %v1730_v35 }
 0x11f   :  { %v1425_v56 = vpop.f32.mrb[18].mxu0  ;;  %v1457_v59 = vpop.f32.mrb[18].mxu1  ;;  %v471_v62 = vadd.f32 %v1730_v35, %v470_v54  ;;  %v599_v2 = vadd.f32 %v1730_v35, %v598_v55 }
 0x120   :  { %v482_v58 = vadd.f32 %v1425_v56, %v1730_v35  ;;  %v473_v60 = vpop.f32.mrb[19].mxu0  ;;  %v610_v63 = vadd.f32 %v1457_v59, %v1730_v35  ;;  %v601_v1 = vpop.f32.mrb[19].mxu1 }
 0x121   :  { %v474_v0 = vadd.f32 %v1730_v35, %v473_v60  ;;  %v602_v4 = vadd.f32 %v1730_v35, %v601_v1 }
 0x122   :  { %v1228_v3 = vpack.c.bf16 %v482_v58, %v479_v57  ;;  %v1308_v5 = vpack.c.bf16 %v610_v63, %v607_v61 }
 0x123   :  { %v1223_v6 = vpack.c.bf16 %v474_v0, %v471_v62  ;;  %v1303_v7 = vpack.c.bf16 %v602_v4, %v599_v2 }
 0x124   :  { %1348 = vst [vmem:[%s1895_s3 + $0x48] sm:$0xff] %v1228_v3   ;;  %1364 = vst [vmem:[%s1895_s3 + $0xc8] sm:$0xff] %v1308_v5  }
 0x125   :  { %1347 = vst [vmem:[%s1895_s3 + $0x40] sm:$0xff] %v1223_v6   ;;  %v1428_v8 = vpop.f32.mrb[20].mxu0  ;;  %1363 = vst [vmem:[%s1895_s3 + $0xc0] sm:$0xff] %v1303_v7   ;;  %v1460_v9 = vpop.f32.mrb[20].mxu1 }
 0x126   :  { %v486_v10 = vpop.f32.mrb[21].mxu0  ;;  %v614_v11 = vpop.f32.mrb[21].mxu1  ;;  %v495_v13 = vadd.f32 %v1428_v8, %v1730_v35  ;;  %v623_v17 = vadd.f32 %v1460_v9, %v1730_v35 }
 0x127   :  { %v1429_v12 = vpop.f32.mrb[22].mxu0  ;;  %v1461_v15 = vpop.f32.mrb[22].mxu1  ;;  %v487_v18 = vadd.f32 %v1730_v35, %v486_v10  ;;  %v615_v22 = vadd.f32 %v1730_v35, %v614_v11 }
 0x128   :  { %v498_v14 = vadd.f32 %v1429_v12, %v1730_v35  ;;  %v489_v16 = vpop.f32.mrb[23].mxu0  ;;  %v626_v19 = vadd.f32 %v1461_v15, %v1730_v35  ;;  %v617_v21 = vpop.f32.mrb[23].mxu1 }
 0x129   :  { %v490_v20 = vadd.f32 %v1730_v35, %v489_v16  ;;  %v618_v24 = vadd.f32 %v1730_v35, %v617_v21 }
 0x12a   :  { %v1238_v23 = vpack.c.bf16 %v498_v14, %v495_v13  ;;  %v1318_v25 = vpack.c.bf16 %v626_v19, %v623_v17 }
 0x12b   :  { %v1233_v26 = vpack.c.bf16 %v490_v20, %v487_v18  ;;  %v1313_v27 = vpack.c.bf16 %v618_v24, %v615_v22 }
 0x12c   :  { %1350 = vst [vmem:[%s1895_s3 + $0x58] sm:$0xff] %v1238_v23   ;;  %1366 = vst [vmem:[%s1895_s3 + $0xd8] sm:$0xff] %v1318_v25  }
 0x12d   :  { %1349 = vst [vmem:[%s1895_s3 + $0x50] sm:$0xff] %v1233_v26   ;;  %v1432_v28 = vpop.f32.mrb[24].mxu0  ;;  %1365 = vst [vmem:[%s1895_s3 + $0xd0] sm:$0xff] %v1313_v27   ;;  %v1464_v29 = vpop.f32.mrb[24].mxu1 }
 0x12e   :  { %v502_v30 = vpop.f32.mrb[25].mxu0  ;;  %v630_v31 = vpop.f32.mrb[25].mxu1  ;;  %v511_v33 = vadd.f32 %v1432_v28, %v1730_v35  ;;  %v639_v38 = vadd.f32 %v1464_v29, %v1730_v35 }
 0x12f   :  { %v1433_v32 = vpop.f32.mrb[26].mxu0  ;;  %v1465_v36 = vpop.f32.mrb[26].mxu1  ;;  %v503_v39 = vadd.f32 %v1730_v35, %v502_v30  ;;  %v631_v43 = vadd.f32 %v1730_v35, %v630_v31 }
 0x130   :  { %v514_v34 = vadd.f32 %v1433_v32, %v1730_v35  ;;  %v505_v37 = vpop.f32.mrb[27].mxu0  ;;  %v642_v40 = vadd.f32 %v1465_v36, %v1730_v35  ;;  %v633_v42 = vpop.f32.mrb[27].mxu1 }
 0x131   :  { %v506_v41 = vadd.f32 %v1730_v35, %v505_v37  ;;  %v634_v45 = vadd.f32 %v1730_v35, %v633_v42 }
 0x132   :  { %v1248_v44 = vpack.c.bf16 %v514_v34, %v511_v33  ;;  %v1328_v46 = vpack.c.bf16 %v642_v40, %v639_v38 }
 0x133   :  { %v1243_v47 = vpack.c.bf16 %v506_v41, %v503_v39  ;;  %v1323_v48 = vpack.c.bf16 %v634_v45, %v631_v43 }
 0x134   :  { %1352 = vst [vmem:[%s1895_s3 + $0x68] sm:$0xff] %v1248_v44   ;;  %1368 = vst [vmem:[%s1895_s3 + $0xe8] sm:$0xff] %v1328_v46  }
 0x135   :  { %1351 = vst [vmem:[%s1895_s3 + $0x60] sm:$0xff] %v1243_v47   ;;  %v1436_v49 = vpop.f32.mrb[28].mxu0  ;;  %1367 = vst [vmem:[%s1895_s3 + $0xe0] sm:$0xff] %v1323_v48   ;;  %v1468_v50 = vpop.f32.mrb[28].mxu1 }
 0x136   :  { %v518_v51 = vpop.f32.mrb[29].mxu0  ;;  %v646_v52 = vpop.f32.mrb[29].mxu1  ;;  %v527_v54 = vadd.f32 %v1436_v49, %v1730_v35  ;;  %v655_v58 = vadd.f32 %v1468_v50, %v1730_v35 }
 0x137   :  { %v1437_v53 = vpop.f32.mrb[30].mxu0  ;;  %v1469_v56 = vpop.f32.mrb[30].mxu1  ;;  %v519_v59 = vadd.f32 %v1730_v35, %v518_v51  ;;  %v647_v63 = vadd.f32 %v1730_v35, %v646_v52 }
 0x138   :  { %v530_v55 = vadd.f32 %v1437_v53, %v1730_v35  ;;  %v521_v57 = vpop.f32.mrb[31].mxu0  ;;  %v658_v60 = vadd.f32 %v1469_v56, %v1730_v35  ;;  %v649_v62 = vpop.f32.mrb[31].mxu1 }
 0x139   :  { %v522_v61 = vadd.f32 %v1730_v35, %v521_v57  ;;  %v650_v1 = vadd.f32 %v1730_v35, %v649_v62 }
 0x13a   :  { %v1258_v0 = vpack.c.bf16 %v530_v55, %v527_v54  ;;  %v1338_v2 = vpack.c.bf16 %v658_v60, %v655_v58 }
 0x13b   :  { %v1253_v3 = vpack.c.bf16 %v522_v61, %v519_v59  ;;  %v1333_v4 = vpack.c.bf16 %v650_v1, %v647_v63 }
 0x13c   :  { %1354 = vst [vmem:[%s1895_s3 + $0x78] sm:$0xff] %v1258_v0   ;;  %1370 = vst [vmem:[%s1895_s3 + $0xf8] sm:$0xff] %v1338_v2  }
 0x13d   :  { %1353 = vst [vmem:[%s1895_s3 + $0x70] sm:$0xff] %v1253_v3   ;;  %1369 = vst [vmem:[%s1895_s3 + $0xf0] sm:$0xff] %v1333_v4  }
 0x13e   :  { %985 = vsyncpa [#allocation3], 1 }
 0x13f   :  { %986 = vsyncpa [#allocation5], 1 }

// kernel: reverse.4
= control target key start
LH: loop header
LB: loop body
LE: loop exit
PB: predicated region body
PF: predicated region fallthrough
CT: control target
= control target key end

     0   :  { %s344_s0 = inlined_call_operand.vmem [shape: f32[2,128,16,7], index: 0, kind: input, shape index: {}]   ;;  %s345_s1 = inlined_call_operand.vmem [shape: f32[2,128,16,7], index: 1, kind: output, shape index: {}]  }
   0x1   :  { %v112_v0 = vld [vmem:[%s344_s0 + $0x60] sm:$0xff]  ;;  %v113_v1 = vld [vmem:[%s344_s0 + $0xd0] sm:$0xff]  ;;  %v138_v14 = vld [vmem:[%s344_s0 + $0x68] sm:$0xff] }
   0x2   :  { %v115_v2 = vld [vmem:[%s344_s0 + $0x50] sm:$0xff]  ;;  %4 = vst [vmem:[%s345_s1] sm:$0xff] %v112_v0  ;;  %114 = vst [vmem:[%s345_s1 + $0x70] sm:$0xff] %v113_v1  ;;  %v117_v3 = vld [vmem:[%s344_s0 + $0xc0] sm:$0xff] }
   0x3   :  { %116 = vst [vmem:[%s345_s1 + $0x10] sm:$0xff] %v115_v2  ;;  %v119_v4 = vld [vmem:[%s344_s0 + $0x40] sm:$0xff]  ;;  %v121_v5 = vld [vmem:[%s344_s0 + $0xb0] sm:$0xff]  ;;  %118 = vst [vmem:[%s345_s1 + $0x80] sm:$0xff] %v117_v3 }
   0x4   :  { %120 = vst [vmem:[%s345_s1 + $0x20] sm:$0xff] %v119_v4  ;;  %122 = vst [vmem:[%s345_s1 + $0x90] sm:$0xff] %v121_v5  ;;  %v123_v6 = vld [vmem:[%s344_s0 + $0x30] sm:$0xff]  ;;  %v125_v7 = vld [vmem:[%s344_s0 + $0xa0] sm:$0xff] }
   0x5   :  { %v127_v8 = vld [vmem:[%s344_s0 + $0x20] sm:$0xff]  ;;  %124 = vst [vmem:[%s345_s1 + $0x30] sm:$0xff] %v123_v6  ;;  %126 = vst [vmem:[%s345_s1 + $0xa0] sm:$0xff] %v125_v7  ;;  %v129_v9 = vld [vmem:[%s344_s0 + $0x90] sm:$0xff] }
   0x6   :  { %128 = vst [vmem:[%s345_s1 + $0x40] sm:$0xff] %v127_v8  ;;  %v131_v10 = vld [vmem:[%s344_s0 + $0x10] sm:$0xff]  ;;  %v133_v11 = vld [vmem:[%s344_s0 + $0x80] sm:$0xff]  ;;  %130 = vst [vmem:[%s345_s1 + $0xb0] sm:$0xff] %v129_v9 }
   0x7   :  { %132 = vst [vmem:[%s345_s1 + $0x50] sm:$0xff] %v131_v10  ;;  %134 = vst [vmem:[%s345_s1 + $0xc0] sm:$0xff] %v133_v11  ;;  %v49_v12 = vld [vmem:[%s344_s0] sm:$0xff]  ;;  %v136_v13 = vld [vmem:[%s344_s0 + $0x70] sm:$0xff] }
   0x8   :  { %135 = vst [vmem:[%s345_s1 + $0x60] sm:$0xff] %v49_v12  ;;  %137 = vst [vmem:[%s345_s1 + $0xd0] sm:$0xff] %v136_v13  ;;  %v140_v15 = vld [vmem:[%s344_s0 + $0xd8] sm:$0xff]  ;;  %v144_v17 = vld [vmem:[%s344_s0 + $0xc8] sm:$0xff] }
   0x9   :  { %139 = vst [vmem:[%s345_s1 + $0x8] sm:$0xff] %v138_v14  ;;  %v142_v16 = vld [vmem:[%s344_s0 + $0x58] sm:$0xff]  ;;  %141 = vst [vmem:[%s345_s1 + $0x78] sm:$0xff] %v140_v15  ;;  %v146_v18 = vld [vmem:[%s344_s0 + $0x48] sm:$0xff] }
   0xa   :  { %143 = vst [vmem:[%s345_s1 + $0x18] sm:$0xff] %v142_v16  ;;  %145 = vst [vmem:[%s345_s1 + $0x88] sm:$0xff] %v144_v17  ;;  %v148_v19 = vld [vmem:[%s344_s0 + $0xb8] sm:$0xff]  ;;  %v152_v21 = vld [vmem:[%s344_s0 + $0xa8] sm:$0xff] }
   0xb   :  { %v150_v20 = vld [vmem:[%s344_s0 + $0x38] sm:$0xff]  ;;  %147 = vst [vmem:[%s345_s1 + $0x28] sm:$0xff] %v146_v18  ;;  %149 = vst [vmem:[%s345_s1 + $0x98] sm:$0xff] %v148_v19  ;;  %v154_v22 = vld [vmem:[%s344_s0 + $0x28] sm:$0xff] }
   0xc   :  { %151 = vst [vmem:[%s345_s1 + $0x38] sm:$0xff] %v150_v20  ;;  %v156_v23 = vld [vmem:[%s344_s0 + $0x98] sm:$0xff]  ;;  %153 = vst [vmem:[%s345_s1 + $0xa8] sm:$0xff] %v152_v21  ;;  %v160_v25 = vld [vmem:[%s344_s0 + $0x88] sm:$0xff] }
   0xd   :  { %155 = vst [vmem:[%s345_s1 + $0x48] sm:$0xff] %v154_v22  ;;  %157 = vst [vmem:[%s345_s1 + $0xb8] sm:$0xff] %v156_v23  ;;  %v158_v24 = vld [vmem:[%s344_s0 + $0x18] sm:$0xff]  ;;  %v162_v26 = vld [vmem:[%s344_s0 + $0x8] sm:$0xff] }
   0xe   :  { %159 = vst [vmem:[%s345_s1 + $0x58] sm:$0xff] %v158_v24  ;;  %161 = vst [vmem:[%s345_s1 + $0xc8] sm:$0xff] %v160_v25  ;;  %v164_v27 = vld [vmem:[%s344_s0 + $0x78] sm:$0xff] }
   0xf   :  { %163 = vst [vmem:[%s345_s1 + $0x68] sm:$0xff] %v162_v26  ;;  %165 = vst [vmem:[%s345_s1 + $0xd8] sm:$0xff] %v164_v27 }

// kernel: critic_forward.7
= control target key start
LH: loop header
LB: loop body
LE: loop exit
PB: predicated region body
PF: predicated region fallthrough
CT: control target
= control target key end

     0   :  { %s2188_s1 = inlined_call_operand.vmem [shape: bf16[128,128], index: 1, kind: input, shape index: {}]   ;;  %s2189_s0 = inlined_call_operand.vmem [shape: bf16[512,128], index: 0, kind: input, shape index: {}]   ;;  %s2190_s2 = inlined_call_operand.vmem [shape: f32[1,128], index: 2, kind: input, shape index: {}]   ;;  %s2191_s3 = inlined_call_operand.vmem [shape: f32[512,128], index: 3, kind: input, shape index: {}]   ;;  %s2192_s4 = inlined_call_operand.vmem [shape: bf16[512,128], index: 4, kind: output, shape index: {}]  }
   0x1   :  { %v1646_v0 = vld [vmem:[%s2188_s1] sm:$0xff]   ;;  %v1647_v1 = vld [vmem:[%s2188_s1 + $0x8] sm:$0xff]   ;;  %v1648_v2 = vld [vmem:[%s2188_s1 + $0x10] sm:$0xff]  }
   0x2   :  { %1550 = vmatprep.subr.bf16.mxu0 %v1646_v0  ;;  %1630 = vmatprep.subr.bf16.mxu1 %v1646_v0  ;;  %v1649_v3 = vld [vmem:[%s2188_s1 + $0x18] sm:$0xff]   ;;  %v1654_v4 = vld [vmem:[%s2189_s0] sm:$0xff]   ;;  %v1651_v7 = vld [vmem:[%s2188_s1 + $0x28] sm:$0xff]  }
   0x3   :  { %1551 = vmatpush3.bf16.msra.mxu0 %v1646_v0  ;;  %1638 = vmatpush3.bf16.msra.mxu1 %v1646_v0  ;;  %v1655_v5 = vld [vmem:[%s2189_s0 + $0x80] sm:$0xff]   ;;  %v1652_v8 = vld [vmem:[%s2188_s1 + $0x30] sm:$0xff]   ;;  %v1653_v9 = vld [vmem:[%s2188_s1 + $0x38] sm:$0xff]  }
   0x4   :  { %1552 = vmatprep.subr.bf16.mxu0 %v1647_v1  ;;  %1631 = vmatprep.subr.bf16.mxu1 %v1647_v1  ;;  %v1650_v6 = vld [vmem:[%s2188_s1 + $0x20] sm:$0xff]   ;;  %v1656_v10 = vld [vmem:[%s2189_s0 + $0x8] sm:$0xff]   ;;  %v1658_v12 = vld [vmem:[%s2189_s0 + $0x10] sm:$0xff]  }
   0x5   :  { %1566 = vmatprep.mubr.bf16.mxu0 %v1654_v4  ;;  %1598 = vmatprep.mubr.bf16.mxu1 %v1655_v5  ;;  %v1657_v11 = vld [vmem:[%s2189_s0 + $0x88] sm:$0xff]   ;;  %v1659_v13 = vld [vmem:[%s2189_s0 + $0x90] sm:$0xff]   ;;  %v1660_v14 = vld [vmem:[%s2189_s0 + $0x18] sm:$0xff]  }
   0x6   :  { %v1661_v15 = vld [vmem:[%s2189_s0 + $0x98] sm:$0xff]   ;;  %v1662_v16 = vld [vmem:[%s2189_s0 + $0x20] sm:$0xff]   ;;  %v1664_v18 = vld [vmem:[%s2189_s0 + $0x28] sm:$0xff]  }
   0x7   :  { %1553 = vmatpush3.bf16.msra.mxu0 %v1647_v1  ;;  %1639 = vmatpush3.bf16.msra.mxu1 %v1647_v1  ;;  %v1663_v17 = vld [vmem:[%s2189_s0 + $0xa0] sm:$0xff]   ;;  %v1665_v19 = vld [vmem:[%s2189_s0 + $0xa8] sm:$0xff]   ;;  %v1666_v20 = vld [vmem:[%s2189_s0 + $0x30] sm:$0xff]  }
   0x8   :  { %1554 = vmatprep.subr.bf16.mxu0 %v1648_v2  ;;  %1632 = vmatprep.subr.bf16.mxu1 %v1648_v2  ;;  %v1667_v21 = vld [vmem:[%s2189_s0 + $0xb0] sm:$0xff]   ;;  %v1668_v22 = vld [vmem:[%s2189_s0 + $0x38] sm:$0xff]   ;;  %v1670_v24 = vld [vmem:[%s2189_s0 + $0x40] sm:$0xff]  }
   0x9   :  { %v1669_v23 = vld [vmem:[%s2189_s0 + $0xb8] sm:$0xff]   ;;  %v1671_v25 = vld [vmem:[%s2189_s0 + $0xc0] sm:$0xff]   ;;  %v1672_v26 = vld [vmem:[%s2189_s0 + $0x48] sm:$0xff]  }
   0xa   :  { %v1673_v27 = vld [vmem:[%s2189_s0 + $0xc8] sm:$0xff]   ;;  %v1674_v28 = vld [vmem:[%s2189_s0 + $0x50] sm:$0xff]   ;;  %v1676_v30 = vld [vmem:[%s2189_s0 + $0x58] sm:$0xff]  }
   0xb   :  { %1555 = vmatpush3.bf16.msra.mxu0 %v1648_v2  ;;  %1640 = vmatpush3.bf16.msra.mxu1 %v1648_v2  ;;  %v1675_v29 = vld [vmem:[%s2189_s0 + $0xd0] sm:$0xff]   ;;  %v1677_v31 = vld [vmem:[%s2189_s0 + $0xd8] sm:$0xff]   ;;  %v1678_v32 = vld [vmem:[%s2189_s0 + $0x60] sm:$0xff]  }
   0xc   :  { %1556 = vmatprep.subr.bf16.mxu0 %v1649_v3  ;;  %1633 = vmatprep.subr.bf16.mxu1 %v1649_v3  ;;  %v1679_v33 = vld [vmem:[%s2189_s0 + $0xe0] sm:$0xff]   ;;  %v1680_v34 = vld [vmem:[%s2189_s0 + $0x68] sm:$0xff]   ;;  %v1682_v36 = vld [vmem:[%s2189_s0 + $0x70] sm:$0xff]  }
   0xd   :  { %v1681_v35 = vld [vmem:[%s2189_s0 + $0xe8] sm:$0xff]   ;;  %v1683_v37 = vld [vmem:[%s2189_s0 + $0xf0] sm:$0xff]   ;;  %v1684_v38 = vld [vmem:[%s2189_s0 + $0x78] sm:$0xff]  }
   0xe   :  { %v1685_v39 = vld [vmem:[%s2189_s0 + $0xf8] sm:$0xff]   ;;  %v1834_v40 = vld [vmem:[%s2190_s2] ss:$0 sm:$0xff]  ;;  %v636_v42 = vld [vmem:[%s2191_s3 + $0x10] sm:$0xff] }
   0xf   :  { %1557 = vmatpush3.bf16.msra.mxu0 %v1649_v3  ;;  %1641 = vmatpush3.bf16.msra.mxu1 %v1649_v3  ;;  %v668_v44 = vld [vmem:[%s2191_s3 + $0x110] sm:$0xff]  ;;  %v634_v48 = vld [vmem:[%s2191_s3] sm:$0xff]  ;;  %v637_v54 = vld [vmem:[%s2191_s3 + $0x18] sm:$0xff] }
  0x10   :  { %1558 = vmatprep.subr.bf16.mxu0 %v1650_v6  ;;  %1634 = vmatprep.subr.bf16.mxu1 %v1650_v6  ;;  %v666_v50 = vld [vmem:[%s2191_s3 + $0x100] sm:$0xff]  ;;  %v669_v56 = vld [vmem:[%s2191_s3 + $0x118] sm:$0xff]  ;;  %v635_v62 = vld [vmem:[%s2191_s3 + $0x8] sm:$0xff] }
  0x11   :  { %v667_v0 = vld [vmem:[%s2191_s3 + $0x108] sm:$0xff] }
  0x13   :  { %1559 = vmatpush3.bf16.msra.mxu0 %v1650_v6  ;;  %1642 = vmatpush3.bf16.msra.mxu1 %v1650_v6 }
  0x14   :  { %1560 = vmatprep.subr.bf16.mxu0 %v1651_v7  ;;  %1635 = vmatprep.subr.bf16.mxu1 %v1651_v7 }
  0x17   :  { %1561 = vmatpush3.bf16.msra.mxu0 %v1651_v7  ;;  %1643 = vmatpush3.bf16.msra.mxu1 %v1651_v7 }
  0x18   :  { %1562 = vmatprep.subr.bf16.mxu0 %v1652_v8  ;;  %1636 = vmatprep.subr.bf16.mxu1 %v1652_v8 }
  0x1b   :  { %1563 = vmatpush3.bf16.msra.mxu0 %v1652_v8  ;;  %1644 = vmatpush3.bf16.msra.mxu1 %v1652_v8 }
  0x1c   :  { %1564 = vmatprep.subr.bf16.mxu0 %v1653_v9  ;;  %1637 = vmatprep.subr.bf16.mxu1 %v1653_v9 }
  0x1f   :  { %1565 = vmatpush3.bf16.msra.mxu0 %v1653_v9  ;;  %1645 = vmatpush3.bf16.msra.mxu1 %v1653_v9 }
  0x22   :  { %1567 = vmatmul.mubr.bf16.vlgmr.msra.gmra.mrb[0].mxu0 %v1656_v10  ;;  %1599 = vmatmul.mubr.bf16.vlgmr.msra.gmra.mrb[0].mxu1 %v1657_v11 }
  0x23   :  { %1570 = vmatprep.mubr.bf16.mxu0 %v1658_v12  ;;  %1602 = vmatprep.mubr.bf16.mxu1 %v1659_v13  ;;  %v640_v13 = vld [vmem:[%s2191_s3 + $0x30] sm:$0xff] }
  0x2a   :  { %1571 = vmatmul.mubr.bf16.gmra.mrb[4].mxu0 %v1660_v14  ;;  %1603 = vmatmul.mubr.bf16.gmra.mrb[4].mxu1 %v1661_v15  ;;  %v672_v14 = vld [vmem:[%s2191_s3 + $0x130] sm:$0xff] }
  0x2b   :  { %1574 = vmatprep.mubr.bf16.mxu0 %v1662_v16  ;;  %1606 = vmatprep.mubr.bf16.mxu1 %v1663_v17 }
  0x32   :  { %1575 = vmatmul.mubr.bf16.gmra.mrb[8].mxu0 %v1664_v18  ;;  %1607 = vmatmul.mubr.bf16.gmra.mrb[8].mxu1 %v1665_v19 }
  0x33   :  { %1578 = vmatprep.mubr.bf16.mxu0 %v1666_v20  ;;  %1610 = vmatprep.mubr.bf16.mxu1 %v1667_v21 }
  0x3a   :  { %1579 = vmatmul.mubr.bf16.gmra.mrb[12].mxu0 %v1668_v22  ;;  %1611 = vmatmul.mubr.bf16.gmra.mrb[12].mxu1 %v1669_v23 }
  0x3b   :  { %1582 = vmatprep.mubr.bf16.mxu0 %v1670_v24  ;;  %1614 = vmatprep.mubr.bf16.mxu1 %v1671_v25 }
  0x42   :  { %1583 = vmatmul.mubr.bf16.gmra.mrb[16].mxu0 %v1672_v26  ;;  %1615 = vmatmul.mubr.bf16.gmra.mrb[16].mxu1 %v1673_v27  ;;  %v638_v26 = vld [vmem:[%s2191_s3 + $0x20] sm:$0xff] }
  0x43   :  { %1586 = vmatprep.mubr.bf16.mxu0 %v1674_v28  ;;  %1618 = vmatprep.mubr.bf16.mxu1 %v1675_v29  ;;  %v670_v28 = vld [vmem:[%s2191_s3 + $0x120] sm:$0xff] }
  0x4a   :  { %1587 = vmatmul.mubr.bf16.gmra.mrb[20].mxu0 %v1676_v30  ;;  %1619 = vmatmul.mubr.bf16.gmra.mrb[20].mxu1 %v1677_v31 }
  0x4b   :  { %1590 = vmatprep.mubr.bf16.mxu0 %v1678_v32  ;;  %1622 = vmatprep.mubr.bf16.mxu1 %v1679_v33 }
  0x52   :  { %1591 = vmatmul.mubr.bf16.gmra.mrb[24].mxu0 %v1680_v34  ;;  %1623 = vmatmul.mubr.bf16.gmra.mrb[24].mxu1 %v1681_v35  ;;  %v641_v34 = vld [vmem:[%s2191_s3 + $0x38] sm:$0xff] }
  0x53   :  { %1594 = vmatprep.mubr.bf16.mxu0 %v1682_v36  ;;  %1626 = vmatprep.mubr.bf16.mxu1 %v1683_v37  ;;  %v673_v36 = vld [vmem:[%s2191_s3 + $0x138] sm:$0xff] }
  0x5a   :  { %1595 = vmatmul.mubr.bf16.gmra.mrb[28].mxu0 %v1684_v38  ;;  %1627 = vmatmul.mubr.bf16.gmra.mrb[28].mxu1 %v1685_v39 }
  0xf5   :  { %v1568_v41 = vpop.f32.mrb[0].mxu0  ;;  %v1600_v43 = vpop.f32.mrb[0].mxu1 }
  0xf6   :  { %v388_v45 = vadd.f32 %v1568_v41, %v1834_v40  ;;  %v516_v46 = vadd.f32 %v1600_v43, %v1834_v40  ;;  %v379_v47 = vpop.f32.mrb[1].mxu0  ;;  %v507_v49 = vpop.f32.mrb[1].mxu1  ;;  %v639_v43 = vld [vmem:[%s2191_s3 + $0x28] sm:$0xff] }
  0xf7   :  { %v380_v51 = vadd.f32 %v1834_v40, %v379_v47  ;;  %v508_v52 = vadd.f32 %v1834_v40, %v507_v49  ;;  %v1569_v53 = vpop.f32.mrb[2].mxu0  ;;  %v1601_v55 = vpop.f32.mrb[2].mxu1 }
  0xf8   :  { %v700_v57 = vadd.f32 %v636_v42, %v388_v45  ;;  %v732_v58 = vadd.f32 %v668_v44, %v516_v46  ;;  %v391_v59 = vadd.f32 %v1569_v53, %v1834_v40  ;;  %v519_v60 = vadd.f32 %v1601_v55, %v1834_v40  ;;  %v382_v61 = vpop.f32.mrb[3].mxu0  ;;  %v510_v63 = vpop.f32.mrb[3].mxu1  ;;  %v671_v45 = vld [vmem:[%s2191_s3 + $0x128] sm:$0xff] }
  0xf9   :  { %v698_v1 = vadd.f32 %v634_v48, %v380_v51  ;;  %v730_v2 = vadd.f32 %v666_v50, %v508_v52  ;;  %v383_v3 = vadd.f32 %v1834_v40, %v382_v61  ;;  %v511_v4 = vadd.f32 %v1834_v40, %v510_v63 }
  0xfa   :  { %v701_v5 = vadd.f32 %v637_v54, %v391_v59  ;;  %v733_v6 = vadd.f32 %v669_v56, %v519_v60  ;;  %v764_v9 = vmax.f32 %v700_v57, 0.0  ;;  %v796_v10 = vmax.f32 %v732_v58, 0.0  ;;  %v644_v58 = vld [vmem:[%s2191_s3 + $0x50] sm:$0xff] }
  0xfb   :  { %v699_v7 = vadd.f32 %v635_v62, %v383_v3  ;;  %v731_v8 = vadd.f32 %v667_v0, %v511_v4  ;;  %v762_v15 = vmax.f32 %v698_v1, 0.0  ;;  %v794_v16 = vmax.f32 %v730_v2, 0.0  ;;  %v676_v59 = vld [vmem:[%s2191_s3 + $0x150] sm:$0xff] }
  0xfc   :  { %v765_v11 = vmax.f32 %v701_v5, 0.0  ;;  %v797_v12 = vmax.f32 %v733_v6, 0.0 }
  0xfd   :  { %v763_v17 = vmax.f32 %v699_v7, 0.0  ;;  %v795_v18 = vmax.f32 %v731_v8, 0.0  ;;  %v1572_v19 = vpop.f32.mrb[4].mxu0  ;;  %v1604_v20 = vpop.f32.mrb[4].mxu1  ;;  %v642_v7 = vld [vmem:[%s2191_s3 + $0x40] sm:$0xff] }
  0xfe   :  { %v1327_v21 = vpack.c.bf16 %v765_v11, %v764_v9  ;;  %v1407_v22 = vpack.c.bf16 %v797_v12, %v796_v10  ;;  %v404_v23 = vadd.f32 %v1572_v19, %v1834_v40  ;;  %v532_v24 = vadd.f32 %v1604_v20, %v1834_v40  ;;  %v395_v25 = vpop.f32.mrb[5].mxu0  ;;  %v523_v27 = vpop.f32.mrb[5].mxu1  ;;  %v674_v9 = vld [vmem:[%s2191_s3 + $0x140] sm:$0xff] }
  0xff   :  { %v1322_v29 = vpack.c.bf16 %v763_v17, %v762_v15  ;;  %v1402_v30 = vpack.c.bf16 %v795_v18, %v794_v16  ;;  %v396_v31 = vadd.f32 %v1834_v40, %v395_v25  ;;  %v524_v32 = vadd.f32 %v1834_v40, %v523_v27  ;;  %v1573_v33 = vpop.f32.mrb[6].mxu0  ;;  %v1605_v35 = vpop.f32.mrb[6].mxu1  ;;  %v645_v15 = vld [vmem:[%s2191_s3 + $0x58] sm:$0xff]  ;;  %v675_v25 = vld [vmem:[%s2191_s3 + $0x148] sm:$0xff] }
 0x100   :  { %1479 = vst [vmem:[%s2192_s4 + $0x8] sm:$0xff] %v1327_v21   ;;  %1495 = vst [vmem:[%s2192_s4 + $0x88] sm:$0xff] %v1407_v22   ;;  %v704_v37 = vadd.f32 %v640_v13, %v404_v23  ;;  %v736_v38 = vadd.f32 %v672_v14, %v532_v24  ;;  %v407_v39 = vadd.f32 %v1573_v33, %v1834_v40  ;;  %v398_v42 = vpop.f32.mrb[7].mxu0  ;;  %v526_v44 = vpop.f32.mrb[7].mxu1  ;;  %v677_v17 = vld [vmem:[%s2191_s3 + $0x158] sm:$0xff]  ;;  %v643_v23 = vld [vmem:[%s2191_s3 + $0x48] sm:$0xff] }
 0x101   :  { %v535_v41 = vadd.f32 %v1605_v35, %v1834_v40  ;;  %1323 = vst [vmem:[%s2192_s4] sm:$0xff] %v1322_v29   ;;  %1494 = vst [vmem:[%s2192_s4 + $0x80] sm:$0xff] %v1402_v30   ;;  %v702_v46 = vadd.f32 %v638_v26, %v396_v31  ;;  %v734_v47 = vadd.f32 %v670_v28, %v524_v32 }
 0x102   :  { %v399_v48 = vadd.f32 %v1834_v40, %v398_v42  ;;  %v527_v49 = vadd.f32 %v1834_v40, %v526_v44  ;;  %v705_v50 = vadd.f32 %v641_v34, %v407_v39  ;;  %v768_v54 = vmax.f32 %v704_v37, 0.0  ;;  %v680_v39 = vld [vmem:[%s2191_s3 + $0x170] sm:$0xff] }
 0x103   :  { %v737_v51 = vadd.f32 %v673_v36, %v535_v41  ;;  %v800_v55 = vmax.f32 %v736_v38, 0.0  ;;  %v766_v60 = vmax.f32 %v702_v46, 0.0  ;;  %v798_v61 = vmax.f32 %v734_v47, 0.0  ;;  %v648_v38 = vld [vmem:[%s2191_s3 + $0x70] sm:$0xff] }
 0x104   :  { %v703_v52 = vadd.f32 %v639_v43, %v399_v48  ;;  %v735_v53 = vadd.f32 %v671_v45, %v527_v49  ;;  %v769_v56 = vmax.f32 %v705_v50, 0.0 }
 0x105   :  { %v801_v57 = vmax.f32 %v737_v51, 0.0  ;;  %v1576_v0 = vpop.f32.mrb[8].mxu0  ;;  %v1608_v1 = vpop.f32.mrb[8].mxu1 }
 0x106   :  { %v767_v62 = vmax.f32 %v703_v52, 0.0  ;;  %v799_v63 = vmax.f32 %v735_v53, 0.0  ;;  %v1337_v2 = vpack.c.bf16 %v769_v56, %v768_v54  ;;  %v420_v4 = vadd.f32 %v1576_v0, %v1834_v40  ;;  %v411_v6 = vpop.f32.mrb[9].mxu0  ;;  %v539_v8 = vpop.f32.mrb[9].mxu1  ;;  %v646_v52 = vld [vmem:[%s2191_s3 + $0x60] sm:$0xff] }
 0x107   :  { %v1417_v3 = vpack.c.bf16 %v801_v57, %v800_v55  ;;  %v548_v5 = vadd.f32 %v1608_v1, %v1834_v40  ;;  %v412_v12 = vadd.f32 %v1834_v40, %v411_v6  ;;  %v540_v13 = vadd.f32 %v1834_v40, %v539_v8  ;;  %v1577_v14 = vpop.f32.mrb[10].mxu0  ;;  %v1609_v16 = vpop.f32.mrb[10].mxu1  ;;  %v678_v54 = vld [vmem:[%s2191_s3 + $0x160] sm:$0xff]  ;;  %v679_v6 = vld [vmem:[%s2191_s3 + $0x168] sm:$0xff] }
 0x108   :  { %v1332_v10 = vpack.c.bf16 %v767_v62, %v766_v60  ;;  %v1412_v11 = vpack.c.bf16 %v799_v63, %v798_v61  ;;  %1481 = vst [vmem:[%s2192_s4 + $0x18] sm:$0xff] %v1337_v2   ;;  %v708_v18 = vadd.f32 %v644_v58, %v420_v4  ;;  %v423_v20 = vadd.f32 %v1577_v14, %v1834_v40  ;;  %v414_v22 = vpop.f32.mrb[11].mxu0  ;;  %v542_v24 = vpop.f32.mrb[11].mxu1  ;;  %v649_v60 = vld [vmem:[%s2191_s3 + $0x78] sm:$0xff]  ;;  %v647_v4 = vld [vmem:[%s2191_s3 + $0x68] sm:$0xff] }
 0x109   :  { %1497 = vst [vmem:[%s2192_s4 + $0x98] sm:$0xff] %v1417_v3   ;;  %v740_v19 = vadd.f32 %v676_v59, %v548_v5  ;;  %v551_v21 = vadd.f32 %v1609_v16, %v1834_v40  ;;  %v706_v26 = vadd.f32 %v642_v7, %v412_v12  ;;  %v738_v27 = vadd.f32 %v674_v9, %v540_v13  ;;  %v681_v62 = vld [vmem:[%s2191_s3 + $0x178] sm:$0xff] }
 0x10a   :  { %1480 = vst [vmem:[%s2192_s4 + $0x10] sm:$0xff] %v1332_v10   ;;  %1496 = vst [vmem:[%s2192_s4 + $0x90] sm:$0xff] %v1412_v11   ;;  %v415_v28 = vadd.f32 %v1834_v40, %v414_v22  ;;  %v543_v29 = vadd.f32 %v1834_v40, %v542_v24  ;;  %v709_v30 = vadd.f32 %v645_v15, %v423_v20  ;;  %v772_v34 = vmax.f32 %v708_v18, 0.0  ;;  %v684_v20 = vld [vmem:[%s2191_s3 + $0x190] sm:$0xff] }
 0x10b   :  { %v741_v31 = vadd.f32 %v677_v17, %v551_v21  ;;  %v804_v35 = vmax.f32 %v740_v19, 0.0  ;;  %v770_v41 = vmax.f32 %v706_v26, 0.0  ;;  %v802_v42 = vmax.f32 %v738_v27, 0.0  ;;  %v652_v19 = vld [vmem:[%s2191_s3 + $0x90] sm:$0xff] }
 0x10c   :  { %v707_v32 = vadd.f32 %v643_v23, %v415_v28  ;;  %v739_v33 = vadd.f32 %v675_v25, %v543_v29  ;;  %v773_v36 = vmax.f32 %v709_v30, 0.0 }
 0x10d   :  { %v805_v37 = vmax.f32 %v741_v31, 0.0  ;;  %v1580_v45 = vpop.f32.mrb[12].mxu0  ;;  %v1612_v46 = vpop.f32.mrb[12].mxu1 }
 0x10e   :  { %v771_v43 = vmax.f32 %v707_v32, 0.0  ;;  %v803_v44 = vmax.f32 %v739_v33, 0.0  ;;  %v1347_v47 = vpack.c.bf16 %v773_v36, %v772_v34  ;;  %v436_v49 = vadd.f32 %v1580_v45, %v1834_v40  ;;  %v427_v51 = vpop.f32.mrb[13].mxu0  ;;  %v555_v53 = vpop.f32.mrb[13].mxu1  ;;  %v650_v32 = vld [vmem:[%s2191_s3 + $0x80] sm:$0xff] }
 0x10f   :  { %v1427_v48 = vpack.c.bf16 %v805_v37, %v804_v35  ;;  %v564_v50 = vadd.f32 %v1612_v46, %v1834_v40  ;;  %v428_v57 = vadd.f32 %v1834_v40, %v427_v51  ;;  %v556_v58 = vadd.f32 %v1834_v40, %v555_v53  ;;  %v1581_v59 = vpop.f32.mrb[14].mxu0  ;;  %v1613_v61 = vpop.f32.mrb[14].mxu1  ;;  %v682_v34 = vld [vmem:[%s2191_s3 + $0x180] sm:$0xff]  ;;  %v683_v51 = vld [vmem:[%s2191_s3 + $0x188] sm:$0xff] }
 0x110   :  { %v1342_v55 = vpack.c.bf16 %v771_v43, %v770_v41  ;;  %v1422_v56 = vpack.c.bf16 %v803_v44, %v802_v42  ;;  %1483 = vst [vmem:[%s2192_s4 + $0x28] sm:$0xff] %v1347_v47   ;;  %v712_v63 = vadd.f32 %v648_v38, %v436_v49  ;;  %v439_v1 = vadd.f32 %v1581_v59, %v1834_v40  ;;  %v430_v3 = vpop.f32.mrb[15].mxu0  ;;  %v558_v5 = vpop.f32.mrb[15].mxu1  ;;  %v653_v41 = vld [vmem:[%s2191_s3 + $0x98] sm:$0xff]  ;;  %v651_v49 = vld [vmem:[%s2191_s3 + $0x88] sm:$0xff] }
 0x111   :  { %1499 = vst [vmem:[%s2192_s4 + $0xa8] sm:$0xff] %v1427_v48   ;;  %v744_v0 = vadd.f32 %v680_v39, %v564_v50  ;;  %v567_v2 = vadd.f32 %v1613_v61, %v1834_v40  ;;  %v710_v7 = vadd.f32 %v646_v52, %v428_v57  ;;  %v742_v8 = vadd.f32 %v678_v54, %v556_v58  ;;  %v685_v43 = vld [vmem:[%s2191_s3 + $0x198] sm:$0xff] }
 0x112   :  { %1482 = vst [vmem:[%s2192_s4 + $0x20] sm:$0xff] %v1342_v55   ;;  %1498 = vst [vmem:[%s2192_s4 + $0xa0] sm:$0xff] %v1422_v56   ;;  %v431_v9 = vadd.f32 %v1834_v40, %v430_v3  ;;  %v559_v10 = vadd.f32 %v1834_v40, %v558_v5  ;;  %v713_v11 = vadd.f32 %v649_v60, %v439_v1  ;;  %v776_v15 = vmax.f32 %v712_v63, 0.0  ;;  %v688_v1 = vld [vmem:[%s2191_s3 + $0x1b0] sm:$0xff] }
 0x113   :  { %v745_v12 = vadd.f32 %v681_v62, %v567_v2  ;;  %v808_v16 = vmax.f32 %v744_v0, 0.0  ;;  %v774_v21 = vmax.f32 %v710_v7, 0.0  ;;  %v806_v22 = vmax.f32 %v742_v8, 0.0  ;;  %v656_v0 = vld [vmem:[%s2191_s3 + $0xb0] sm:$0xff] }
 0x114   :  { %v711_v13 = vadd.f32 %v647_v4, %v431_v9  ;;  %v743_v14 = vadd.f32 %v679_v6, %v559_v10  ;;  %v777_v17 = vmax.f32 %v713_v11, 0.0 }
 0x115   :  { %v809_v18 = vmax.f32 %v745_v12, 0.0  ;;  %v1584_v25 = vpop.f32.mrb[16].mxu0  ;;  %v1616_v26 = vpop.f32.mrb[16].mxu1 }
 0x116   :  { %v775_v23 = vmax.f32 %v711_v13, 0.0  ;;  %v807_v24 = vmax.f32 %v743_v14, 0.0  ;;  %v1357_v27 = vpack.c.bf16 %v777_v17, %v776_v15  ;;  %v452_v29 = vadd.f32 %v1584_v25, %v1834_v40  ;;  %v443_v31 = vpop.f32.mrb[17].mxu0  ;;  %v571_v33 = vpop.f32.mrb[17].mxu1  ;;  %v654_v13 = vld [vmem:[%s2191_s3 + $0xa0] sm:$0xff] }
 0x117   :  { %v1437_v28 = vpack.c.bf16 %v809_v18, %v808_v16  ;;  %v580_v30 = vadd.f32 %v1616_v26, %v1834_v40  ;;  %v444_v37 = vadd.f32 %v1834_v40, %v443_v31  ;;  %v572_v38 = vadd.f32 %v1834_v40, %v571_v33  ;;  %v1585_v39 = vpop.f32.mrb[18].mxu0  ;;  %v1617_v42 = vpop.f32.mrb[18].mxu1  ;;  %v686_v15 = vld [vmem:[%s2191_s3 + $0x1a0] sm:$0xff]  ;;  %v687_v31 = vld [vmem:[%s2191_s3 + $0x1a8] sm:$0xff] }
 0x118   :  { %v1352_v35 = vpack.c.bf16 %v775_v23, %v774_v21  ;;  %v1432_v36 = vpack.c.bf16 %v807_v24, %v806_v22  ;;  %1485 = vst [vmem:[%s2192_s4 + $0x38] sm:$0xff] %v1357_v27   ;;  %v716_v44 = vadd.f32 %v652_v19, %v452_v29  ;;  %v455_v46 = vadd.f32 %v1585_v39, %v1834_v40  ;;  %v446_v48 = vpop.f32.mrb[19].mxu0  ;;  %v574_v50 = vpop.f32.mrb[19].mxu1  ;;  %v657_v21 = vld [vmem:[%s2191_s3 + $0xb8] sm:$0xff]  ;;  %v655_v29 = vld [vmem:[%s2191_s3 + $0xa8] sm:$0xff] }
 0x119   :  { %1501 = vst [vmem:[%s2192_s4 + $0xb8] sm:$0xff] %v1437_v28   ;;  %v748_v45 = vadd.f32 %v684_v20, %v580_v30  ;;  %v583_v47 = vadd.f32 %v1617_v42, %v1834_v40  ;;  %v714_v52 = vadd.f32 %v650_v32, %v444_v37  ;;  %v746_v53 = vadd.f32 %v682_v34, %v572_v38  ;;  %v689_v23 = vld [vmem:[%s2191_s3 + $0x1b8] sm:$0xff] }
 0x11a   :  { %1484 = vst [vmem:[%s2192_s4 + $0x30] sm:$0xff] %v1352_v35   ;;  %1500 = vst [vmem:[%s2192_s4 + $0xb0] sm:$0xff] %v1432_v36   ;;  %v447_v54 = vadd.f32 %v1834_v40, %v446_v48  ;;  %v575_v55 = vadd.f32 %v1834_v40, %v574_v50  ;;  %v717_v56 = vadd.f32 %v653_v41, %v455_v46  ;;  %v780_v60 = vmax.f32 %v716_v44, 0.0  ;;  %v692_v46 = vld [vmem:[%s2191_s3 + $0x1d0] sm:$0xff] }
 0x11b   :  { %v749_v57 = vadd.f32 %v685_v43, %v583_v47  ;;  %v812_v61 = vmax.f32 %v748_v45, 0.0  ;;  %v778_v2 = vmax.f32 %v714_v52, 0.0  ;;  %v810_v3 = vmax.f32 %v746_v53, 0.0  ;;  %v660_v45 = vld [vmem:[%s2191_s3 + $0xd0] sm:$0xff] }
 0x11c   :  { %v715_v58 = vadd.f32 %v651_v49, %v447_v54  ;;  %v747_v59 = vadd.f32 %v683_v51, %v575_v55  ;;  %v781_v62 = vmax.f32 %v717_v56, 0.0 }
 0x11d   :  { %v813_v63 = vmax.f32 %v749_v57, 0.0  ;;  %v1588_v6 = vpop.f32.mrb[20].mxu0  ;;  %v1620_v7 = vpop.f32.mrb[20].mxu1 }
 0x11e   :  { %v779_v4 = vmax.f32 %v715_v58, 0.0  ;;  %v811_v5 = vmax.f32 %v747_v59, 0.0  ;;  %v1367_v8 = vpack.c.bf16 %v781_v62, %v780_v60  ;;  %v468_v10 = vadd.f32 %v1588_v6, %v1834_v40  ;;  %v459_v12 = vpop.f32.mrb[21].mxu0  ;;  %v587_v14 = vpop.f32.mrb[21].mxu1  ;;  %v658_v58 = vld [vmem:[%s2191_s3 + $0xc0] sm:$0xff] }
 0x11f   :  { %v1447_v9 = vpack.c.bf16 %v813_v63, %v812_v61  ;;  %v596_v11 = vadd.f32 %v1620_v7, %v1834_v40  ;;  %v460_v18 = vadd.f32 %v1834_v40, %v459_v12  ;;  %v588_v19 = vadd.f32 %v1834_v40, %v587_v14  ;;  %v1589_v20 = vpop.f32.mrb[22].mxu0  ;;  %v1621_v22 = vpop.f32.mrb[22].mxu1  ;;  %v690_v60 = vld [vmem:[%s2191_s3 + $0x1c0] sm:$0xff]  ;;  %v691_v12 = vld [vmem:[%s2191_s3 + $0x1c8] sm:$0xff] }
 0x120   :  { %v1362_v16 = vpack.c.bf16 %v779_v4, %v778_v2  ;;  %v1442_v17 = vpack.c.bf16 %v811_v5, %v810_v3  ;;  %1487 = vst [vmem:[%s2192_s4 + $0x48] sm:$0xff] %v1367_v8   ;;  %v720_v24 = vadd.f32 %v656_v0, %v468_v10  ;;  %v471_v26 = vadd.f32 %v1589_v20, %v1834_v40  ;;  %v462_v28 = vpop.f32.mrb[23].mxu0  ;;  %v590_v30 = vpop.f32.mrb[23].mxu1  ;;  %v661_v2 = vld [vmem:[%s2191_s3 + $0xd8] sm:$0xff]  ;;  %v659_v10 = vld [vmem:[%s2191_s3 + $0xc8] sm:$0xff] }
 0x121   :  { %1503 = vst [vmem:[%s2192_s4 + $0xc8] sm:$0xff] %v1447_v9   ;;  %v752_v25 = vadd.f32 %v688_v1, %v596_v11  ;;  %v599_v27 = vadd.f32 %v1621_v22, %v1834_v40  ;;  %v718_v32 = vadd.f32 %v654_v13, %v460_v18  ;;  %v750_v33 = vadd.f32 %v686_v15, %v588_v19  ;;  %v693_v4 = vld [vmem:[%s2191_s3 + $0x1d8] sm:$0xff] }
 0x122   :  { %1486 = vst [vmem:[%s2192_s4 + $0x40] sm:$0xff] %v1362_v16   ;;  %1502 = vst [vmem:[%s2192_s4 + $0xc0] sm:$0xff] %v1442_v17   ;;  %v463_v34 = vadd.f32 %v1834_v40, %v462_v28  ;;  %v591_v35 = vadd.f32 %v1834_v40, %v590_v30  ;;  %v721_v36 = vadd.f32 %v657_v21, %v471_v26  ;;  %v784_v41 = vmax.f32 %v720_v24, 0.0  ;;  %v696_v26 = vld [vmem:[%s2191_s3 + $0x1f0] sm:$0xff] }
 0x123   :  { %v753_v37 = vadd.f32 %v689_v23, %v599_v27  ;;  %v816_v42 = vmax.f32 %v752_v25, 0.0  ;;  %v782_v47 = vmax.f32 %v718_v32, 0.0  ;;  %v814_v48 = vmax.f32 %v750_v33, 0.0  ;;  %v664_v25 = vld [vmem:[%s2191_s3 + $0xf0] sm:$0xff] }
 0x124   :  { %v719_v38 = vadd.f32 %v655_v29, %v463_v34  ;;  %v751_v39 = vadd.f32 %v687_v31, %v591_v35  ;;  %v785_v43 = vmax.f32 %v721_v36, 0.0 }
 0x125   :  { %v817_v44 = vmax.f32 %v753_v37, 0.0  ;;  %v1592_v51 = vpop.f32.mrb[24].mxu0  ;;  %v1624_v52 = vpop.f32.mrb[24].mxu1 }
 0x126   :  { %v783_v49 = vmax.f32 %v719_v38, 0.0  ;;  %v815_v50 = vmax.f32 %v751_v39, 0.0  ;;  %v1377_v53 = vpack.c.bf16 %v785_v43, %v784_v41  ;;  %v484_v55 = vadd.f32 %v1592_v51, %v1834_v40  ;;  %v475_v57 = vpop.f32.mrb[25].mxu0  ;;  %v603_v59 = vpop.f32.mrb[25].mxu1  ;;  %v662_v38 = vld [vmem:[%s2191_s3 + $0xe0] sm:$0xff] }
 0x127   :  { %v1457_v54 = vpack.c.bf16 %v817_v44, %v816_v42  ;;  %v612_v56 = vadd.f32 %v1624_v52, %v1834_v40  ;;  %v476_v63 = vadd.f32 %v1834_v40, %v475_v57  ;;  %v604_v0 = vadd.f32 %v1834_v40, %v603_v59  ;;  %v1593_v1 = vpop.f32.mrb[26].mxu0  ;;  %v1625_v3 = vpop.f32.mrb[26].mxu1  ;;  %v694_v41 = vld [vmem:[%s2191_s3 + $0x1e0] sm:$0xff]  ;;  %v695_v57 = vld [vmem:[%s2191_s3 + $0x1e8] sm:$0xff] }
 0x128   :  { %v1372_v61 = vpack.c.bf16 %v783_v49, %v782_v47  ;;  %v1452_v62 = vpack.c.bf16 %v815_v50, %v814_v48  ;;  %1489 = vst [vmem:[%s2192_s4 + $0x58] sm:$0xff] %v1377_v53   ;;  %v724_v5 = vadd.f32 %v660_v45, %v484_v55  ;;  %v487_v7 = vadd.f32 %v1593_v1, %v1834_v40  ;;  %v478_v9 = vpop.f32.mrb[27].mxu0  ;;  %v606_v11 = vpop.f32.mrb[27].mxu1  ;;  %v665_v47 = vld [vmem:[%s2191_s3 + $0xf8] sm:$0xff]  ;;  %v663_v55 = vld [vmem:[%s2191_s3 + $0xe8] sm:$0xff] }
 0x129   :  { %1505 = vst [vmem:[%s2192_s4 + $0xd8] sm:$0xff] %v1457_v54   ;;  %v756_v6 = vadd.f32 %v692_v46, %v612_v56  ;;  %v615_v8 = vadd.f32 %v1625_v3, %v1834_v40  ;;  %v722_v13 = vadd.f32 %v658_v58, %v476_v63  ;;  %v754_v14 = vadd.f32 %v690_v60, %v604_v0  ;;  %v697_v49 = vld [vmem:[%s2191_s3 + $0x1f8] sm:$0xff] }
 0x12a   :  { %1488 = vst [vmem:[%s2192_s4 + $0x50] sm:$0xff] %v1372_v61   ;;  %1504 = vst [vmem:[%s2192_s4 + $0xd0] sm:$0xff] %v1452_v62   ;;  %v479_v15 = vadd.f32 %v1834_v40, %v478_v9  ;;  %v607_v16 = vadd.f32 %v1834_v40, %v606_v11  ;;  %v725_v17 = vadd.f32 %v661_v2, %v487_v7  ;;  %v788_v21 = vmax.f32 %v724_v5, 0.0 }
 0x12b   :  { %v757_v18 = vadd.f32 %v693_v4, %v615_v8  ;;  %v820_v22 = vmax.f32 %v756_v6, 0.0  ;;  %v786_v27 = vmax.f32 %v722_v13, 0.0  ;;  %v818_v28 = vmax.f32 %v754_v14, 0.0 }
 0x12c   :  { %v723_v19 = vadd.f32 %v659_v10, %v479_v15  ;;  %v755_v20 = vadd.f32 %v691_v12, %v607_v16  ;;  %v789_v23 = vmax.f32 %v725_v17, 0.0 }
 0x12d   :  { %v821_v24 = vmax.f32 %v757_v18, 0.0  ;;  %v1596_v31 = vpop.f32.mrb[28].mxu0  ;;  %v1628_v32 = vpop.f32.mrb[28].mxu1 }
 0x12e   :  { %v787_v29 = vmax.f32 %v723_v19, 0.0  ;;  %v819_v30 = vmax.f32 %v755_v20, 0.0  ;;  %v1387_v33 = vpack.c.bf16 %v789_v23, %v788_v21  ;;  %v500_v35 = vadd.f32 %v1596_v31, %v1834_v40  ;;  %v491_v37 = vpop.f32.mrb[29].mxu0  ;;  %v619_v39 = vpop.f32.mrb[29].mxu1 }
 0x12f   :  { %v1467_v34 = vpack.c.bf16 %v821_v24, %v820_v22  ;;  %v628_v36 = vadd.f32 %v1628_v32, %v1834_v40  ;;  %v492_v44 = vadd.f32 %v1834_v40, %v491_v37  ;;  %v620_v45 = vadd.f32 %v1834_v40, %v619_v39  ;;  %v1597_v46 = vpop.f32.mrb[30].mxu0  ;;  %v1629_v48 = vpop.f32.mrb[30].mxu1 }
 0x130   :  { %v1382_v42 = vpack.c.bf16 %v787_v29, %v786_v27  ;;  %v1462_v43 = vpack.c.bf16 %v819_v30, %v818_v28  ;;  %1491 = vst [vmem:[%s2192_s4 + $0x68] sm:$0xff] %v1387_v33   ;;  %v728_v50 = vadd.f32 %v664_v25, %v500_v35  ;;  %v503_v52 = vadd.f32 %v1597_v46, %v1834_v40  ;;  %v494_v54 = vpop.f32.mrb[31].mxu0  ;;  %v622_v56 = vpop.f32.mrb[31].mxu1 }
 0x131   :  { %1507 = vst [vmem:[%s2192_s4 + $0xe8] sm:$0xff] %v1467_v34   ;;  %v760_v51 = vadd.f32 %v696_v26, %v628_v36  ;;  %v631_v53 = vadd.f32 %v1629_v48, %v1834_v40  ;;  %v726_v58 = vadd.f32 %v662_v38, %v492_v44  ;;  %v758_v59 = vadd.f32 %v694_v41, %v620_v45 }
 0x132   :  { %1490 = vst [vmem:[%s2192_s4 + $0x60] sm:$0xff] %v1382_v42   ;;  %1506 = vst [vmem:[%s2192_s4 + $0xe0] sm:$0xff] %v1462_v43   ;;  %v495_v60 = vadd.f32 %v1834_v40, %v494_v54  ;;  %v623_v61 = vadd.f32 %v1834_v40, %v622_v56  ;;  %v729_v62 = vadd.f32 %v665_v47, %v503_v52  ;;  %v792_v2 = vmax.f32 %v728_v50, 0.0 }
 0x133   :  { %v761_v63 = vadd.f32 %v697_v49, %v631_v53  ;;  %v824_v3 = vmax.f32 %v760_v51, 0.0  ;;  %v790_v6 = vmax.f32 %v726_v58, 0.0  ;;  %v822_v7 = vmax.f32 %v758_v59, 0.0 }
 0x134   :  { %v727_v0 = vadd.f32 %v663_v55, %v495_v60  ;;  %v759_v1 = vadd.f32 %v695_v57, %v623_v61  ;;  %v793_v4 = vmax.f32 %v729_v62, 0.0 }
 0x135   :  { %v825_v5 = vmax.f32 %v761_v63, 0.0 }
 0x136   :  { %v791_v8 = vmax.f32 %v727_v0, 0.0  ;;  %v823_v9 = vmax.f32 %v759_v1, 0.0  ;;  %v1397_v10 = vpack.c.bf16 %v793_v4, %v792_v2 }
 0x137   :  { %v1477_v11 = vpack.c.bf16 %v825_v5, %v824_v3 }
 0x138   :  { %v1392_v12 = vpack.c.bf16 %v791_v8, %v790_v6  ;;  %v1472_v13 = vpack.c.bf16 %v823_v9, %v822_v7  ;;  %1493 = vst [vmem:[%s2192_s4 + $0x78] sm:$0xff] %v1397_v10  }
 0x139   :  { %1509 = vst [vmem:[%s2192_s4 + $0xf8] sm:$0xff] %v1477_v11  }
 0x13a   :  { %1492 = vst [vmem:[%s2192_s4 + $0x70] sm:$0xff] %v1392_v12   ;;  %1508 = vst [vmem:[%s2192_s4 + $0xf0] sm:$0xff] %v1472_v13  }

// kernel: critic_forward.9
= control target key start
LH: loop header
LB: loop body
LE: loop exit
PB: predicated region body
PF: predicated region fallthrough
CT: control target
= control target key end

     0   :  { %v1561_v1 = vmov 0   ;;  %v97_v49 = vlaneseq  ;;  %s2085_s1 = inlined_call_operand.vmem [shape: bf16[128,256], index: 1, kind: input, shape index: {}]   ;;  %s2086_s0 = inlined_call_operand.vmem [shape: bf16[512,128], index: 0, kind: input, shape index: {}]   ;;  %s2087_s2 = inlined_call_operand.vmem [shape: f32[1,256], index: 2, kind: input, shape index: {}]   ;;  %s2088_s3 = inlined_call_operand.vmem [shape: bf16[512,256], index: 3, kind: output, shape index: {}]  }
   0x1   :  { %v1505_v0 = vld [vmem:[%s2085_s1 + $0x4] ss:$8 sps:$4 sm:$0xff]   ;;  %411 = vmatprep.mubr.bf16.mxu0 %v1561_v1  ;;  %571 = vmatprep.mubr.bf16.mxu1 %v1561_v1  ;;  %v1507_v2 = vld [vmem:[%s2085_s1] ss:$8 sps:$4 sm:$0xff]   ;;  %v1508_v3 = vld [vmem:[%s2085_s1 + $0x14] ss:$8 sps:$4 sm:$0xff]  }
   0x2   :  { %379 = vmatprep.subr.bf16.mxu0 %v1505_v0  ;;  %1488 = vmatprep.subr.bf16.mxu1 %v1505_v0  ;;  %v1510_v4 = vld [vmem:[%s2085_s1 + $0x10] ss:$8 sps:$4 sm:$0xff]   ;;  %v1511_v5 = vld [vmem:[%s2085_s1 + $0x24] ss:$8 sps:$4 sm:$0xff]   ;;  %v1513_v6 = vld [vmem:[%s2085_s1 + $0x20] ss:$8 sps:$4 sm:$0xff]  }
   0x3   :  { %380 = vmatpush1.bf16.msra.mxu0 %v1507_v2  ;;  %1496 = vmatpush1.bf16.msra.mxu1 %v1507_v2  ;;  %v1514_v7 = vld [vmem:[%s2085_s1 + $0x34] ss:$8 sps:$4 sm:$0xff]   ;;  %v1516_v8 = vld [vmem:[%s2085_s1 + $0x30] ss:$8 sps:$4 sm:$0xff]   ;;  %v1517_v9 = vld [vmem:[%s2085_s1 + $0x44] ss:$8 sps:$4 sm:$0xff]  }
   0x4   :  { %381 = vmatprep.subr.bf16.mxu0 %v1508_v3  ;;  %1489 = vmatprep.subr.bf16.mxu1 %v1508_v3  ;;  %v1519_v10 = vld [vmem:[%s2085_s1 + $0x40] ss:$8 sps:$4 sm:$0xff]   ;;  %v1520_v11 = vld [vmem:[%s2085_s1 + $0x54] ss:$8 sps:$4 sm:$0xff]   ;;  %v1522_v12 = vld [vmem:[%s2085_s1 + $0x50] ss:$8 sps:$4 sm:$0xff]  }
   0x5   :  { %v1523_v13 = vld [vmem:[%s2085_s1 + $0x64] ss:$8 sps:$4 sm:$0xff]   ;;  %v1525_v14 = vld [vmem:[%s2085_s1 + $0x60] ss:$8 sps:$4 sm:$0xff]   ;;  %v1526_v15 = vld [vmem:[%s2085_s1 + $0x74] ss:$8 sps:$4 sm:$0xff]  }
   0x6   :  { %v1528_v16 = vld [vmem:[%s2085_s1 + $0x70] ss:$8 sps:$4 sm:$0xff]   ;;  %v1529_v17 = vld [vmem:[%s2086_s0] sm:$0xff]   ;;  %v1531_v19 = vld [vmem:[%s2086_s0 + $0x8] sm:$0xff]   ;;  %v98_v50 = vshrl.u32 %v97_v49, 7 }
   0x7   :  { %382 = vmatpush1.bf16.msra.mxu0 %v1510_v4  ;;  %1497 = vmatpush1.bf16.msra.mxu1 %v1510_v4  ;;  %v1530_v18 = vld [vmem:[%s2086_s0 + $0x80] sm:$0xff]   ;;  %v1532_v20 = vld [vmem:[%s2086_s0 + $0x88] sm:$0xff]   ;;  %v1533_v21 = vld [vmem:[%s2086_s0 + $0x10] sm:$0xff]  }
   0x8   :  { %383 = vmatprep.subr.bf16.mxu0 %v1511_v5  ;;  %1490 = vmatprep.subr.bf16.mxu1 %v1511_v5  ;;  %v1534_v22 = vld [vmem:[%s2086_s0 + $0x90] sm:$0xff]   ;;  %v1535_v23 = vld [vmem:[%s2086_s0 + $0x18] sm:$0xff]   ;;  %v1537_v25 = vld [vmem:[%s2086_s0 + $0x20] sm:$0xff]   ;;  %v99_v51 = vsub.s32 0, %v98_v50  ;;  %v103_v53 = vsub.s32 1, %v98_v50 }
   0x9   :  { %v1536_v24 = vld [vmem:[%s2086_s0 + $0x98] sm:$0xff]   ;;  %v1538_v26 = vld [vmem:[%s2086_s0 + $0xa0] sm:$0xff]   ;;  %v1539_v27 = vld [vmem:[%s2086_s0 + $0x28] sm:$0xff]  }
   0xa   :  { %v1540_v28 = vld [vmem:[%s2086_s0 + $0xa8] sm:$0xff]   ;;  %v1541_v29 = vld [vmem:[%s2086_s0 + $0x30] sm:$0xff]   ;;  %v1543_v31 = vld [vmem:[%s2086_s0 + $0x38] sm:$0xff]  }
   0xb   :  { %384 = vmatpush1.bf16.msra.mxu0 %v1513_v6  ;;  %1498 = vmatpush1.bf16.msra.mxu1 %v1513_v6  ;;  %v1542_v30 = vld [vmem:[%s2086_s0 + $0xb0] sm:$0xff]   ;;  %v1544_v32 = vld [vmem:[%s2086_s0 + $0xb8] sm:$0xff]   ;;  %v1545_v33 = vld [vmem:[%s2086_s0 + $0x40] sm:$0xff]  }
   0xc   :  { %385 = vmatprep.subr.bf16.mxu0 %v1514_v7  ;;  %1491 = vmatprep.subr.bf16.mxu1 %v1514_v7  ;;  %v1546_v34 = vld [vmem:[%s2086_s0 + $0xc0] sm:$0xff]   ;;  %v1547_v35 = vld [vmem:[%s2086_s0 + $0x48] sm:$0xff]   ;;  %v1549_v37 = vld [vmem:[%s2086_s0 + $0x50] sm:$0xff]  }
   0xd   :  { %v1548_v36 = vld [vmem:[%s2086_s0 + $0xc8] sm:$0xff]   ;;  %v1550_v38 = vld [vmem:[%s2086_s0 + $0xd0] sm:$0xff]   ;;  %v1551_v39 = vld [vmem:[%s2086_s0 + $0x58] sm:$0xff]  }
   0xe   :  { %v1552_v40 = vld [vmem:[%s2086_s0 + $0xd8] sm:$0xff]   ;;  %v1553_v41 = vld [vmem:[%s2086_s0 + $0x60] sm:$0xff]   ;;  %v1555_v43 = vld [vmem:[%s2086_s0 + $0x68] sm:$0xff]  }
   0xf   :  { %386 = vmatpush1.bf16.msra.mxu0 %v1516_v8  ;;  %1499 = vmatpush1.bf16.msra.mxu1 %v1516_v8  ;;  %v1554_v42 = vld [vmem:[%s2086_s0 + $0xe0] sm:$0xff]   ;;  %v1556_v44 = vld [vmem:[%s2086_s0 + $0xe8] sm:$0xff]   ;;  %v1557_v45 = vld [vmem:[%s2086_s0 + $0x70] sm:$0xff]  }
  0x10   :  { %387 = vmatprep.subr.bf16.mxu0 %v1517_v9  ;;  %1492 = vmatprep.subr.bf16.mxu1 %v1517_v9  ;;  %v1558_v46 = vld [vmem:[%s2086_s0 + $0xf0] sm:$0xff]   ;;  %v1559_v47 = vld [vmem:[%s2086_s0 + $0x78] sm:$0xff]   ;;  %v95_v52 = vld [vmem:[%s2087_s2] sm:$0x3] }
  0x11   :  { %v1560_v48 = vld [vmem:[%s2086_s0 + $0xf8] sm:$0xff]   ;;  %v1761_v54 = vrot.slane %v95_v52, %v99_v51  ;;  %v1763_v55 = vrot.slane %v95_v52, %v103_v53 }
  0x13   :  { %388 = vmatpush1.bf16.msra.mxu0 %v1519_v10  ;;  %1500 = vmatpush1.bf16.msra.mxu1 %v1519_v10 }
  0x14   :  { %389 = vmatprep.subr.bf16.mxu0 %v1520_v11  ;;  %1493 = vmatprep.subr.bf16.mxu1 %v1520_v11 }
  0x17   :  { %390 = vmatpush1.bf16.msra.mxu0 %v1522_v12  ;;  %1501 = vmatpush1.bf16.msra.mxu1 %v1522_v12 }
  0x18   :  { %391 = vmatprep.subr.bf16.mxu0 %v1523_v13  ;;  %1494 = vmatprep.subr.bf16.mxu1 %v1523_v13 }
  0x1b   :  { %392 = vmatpush1.bf16.msra.mxu0 %v1525_v14  ;;  %1502 = vmatpush1.bf16.msra.mxu1 %v1525_v14 }
  0x1c   :  { %393 = vmatprep.subr.bf16.mxu0 %v1526_v15  ;;  %1495 = vmatprep.subr.bf16.mxu1 %v1526_v15 }
  0x1f   :  { %394 = vmatpush1.bf16.msra.mxu0 %v1528_v16  ;;  %1503 = vmatpush1.bf16.msra.mxu1 %v1528_v16 }
  0x22   :  { %412 = vmatmul.mubr.bf16.vlgmr.msra.gmra.mrb[0].mxu0 %v1529_v17  ;;  %572 = vmatmul.mubr.bf16.vlgmr.msra.gmra.mrb[0].mxu1 %v1530_v18 }
  0x23   :  { %421 = vmatprep.mubr.bf16.mxu0 %v1561_v1  ;;  %581 = vmatprep.mubr.bf16.mxu1 %v1561_v1 }
  0x2a   :  { %422 = vmatmul.mubr.bf16.gmra.mrb[4].mxu0 %v1531_v19  ;;  %582 = vmatmul.mubr.bf16.gmra.mrb[4].mxu1 %v1532_v20 }
  0x2b   :  { %431 = vmatprep.mubr.bf16.mxu0 %v1561_v1  ;;  %591 = vmatprep.mubr.bf16.mxu1 %v1561_v1 }
  0x32   :  { %432 = vmatmul.mubr.bf16.gmra.mrb[8].mxu0 %v1533_v21  ;;  %592 = vmatmul.mubr.bf16.gmra.mrb[8].mxu1 %v1534_v22 }
  0x33   :  { %441 = vmatprep.mubr.bf16.mxu0 %v1561_v1  ;;  %601 = vmatprep.mubr.bf16.mxu1 %v1561_v1 }
  0x3a   :  { %442 = vmatmul.mubr.bf16.gmra.mrb[12].mxu0 %v1535_v23  ;;  %602 = vmatmul.mubr.bf16.gmra.mrb[12].mxu1 %v1536_v24 }
  0x3b   :  { %451 = vmatprep.mubr.bf16.mxu0 %v1561_v1  ;;  %611 = vmatprep.mubr.bf16.mxu1 %v1561_v1 }
  0x42   :  { %452 = vmatmul.mubr.bf16.gmra.mrb[16].mxu0 %v1537_v25  ;;  %612 = vmatmul.mubr.bf16.gmra.mrb[16].mxu1 %v1538_v26 }
  0x43   :  { %461 = vmatprep.mubr.bf16.mxu0 %v1561_v1  ;;  %621 = vmatprep.mubr.bf16.mxu1 %v1561_v1 }
  0x4a   :  { %462 = vmatmul.mubr.bf16.gmra.mrb[20].mxu0 %v1539_v27  ;;  %622 = vmatmul.mubr.bf16.gmra.mrb[20].mxu1 %v1540_v28 }
  0x4b   :  { %471 = vmatprep.mubr.bf16.mxu0 %v1561_v1  ;;  %631 = vmatprep.mubr.bf16.mxu1 %v1561_v1 }
  0x52   :  { %472 = vmatmul.mubr.bf16.gmra.mrb[24].mxu0 %v1541_v29  ;;  %632 = vmatmul.mubr.bf16.gmra.mrb[24].mxu1 %v1542_v30 }
  0x53   :  { %481 = vmatprep.mubr.bf16.mxu0 %v1561_v1  ;;  %641 = vmatprep.mubr.bf16.mxu1 %v1561_v1 }
  0x5a   :  { %482 = vmatmul.mubr.bf16.gmra.mrb[28].mxu0 %v1543_v31  ;;  %642 = vmatmul.mubr.bf16.gmra.mrb[28].mxu1 %v1544_v32 }
  0x5b   :  { %491 = vmatprep.mubr.bf16.mxu0 %v1561_v1  ;;  %651 = vmatprep.mubr.bf16.mxu1 %v1561_v1 }
  0x62   :  { %492 = vmatmul.mubr.bf16.gmra.mrb[32].mxu0 %v1545_v33  ;;  %652 = vmatmul.mubr.bf16.gmra.mrb[32].mxu1 %v1546_v34 }
  0x63   :  { %501 = vmatprep.mubr.bf16.mxu0 %v1561_v1  ;;  %661 = vmatprep.mubr.bf16.mxu1 %v1561_v1 }
  0x6a   :  { %502 = vmatmul.mubr.bf16.gmra.mrb[36].mxu0 %v1547_v35  ;;  %662 = vmatmul.mubr.bf16.gmra.mrb[36].mxu1 %v1548_v36 }
  0x6b   :  { %511 = vmatprep.mubr.bf16.mxu0 %v1561_v1  ;;  %671 = vmatprep.mubr.bf16.mxu1 %v1561_v1 }
  0x72   :  { %512 = vmatmul.mubr.bf16.gmra.mrb[40].mxu0 %v1549_v37  ;;  %672 = vmatmul.mubr.bf16.gmra.mrb[40].mxu1 %v1550_v38 }
  0x73   :  { %521 = vmatprep.mubr.bf16.mxu0 %v1561_v1  ;;  %681 = vmatprep.mubr.bf16.mxu1 %v1561_v1 }
  0x7a   :  { %522 = vmatmul.mubr.bf16.gmra.mrb[44].mxu0 %v1551_v39  ;;  %682 = vmatmul.mubr.bf16.gmra.mrb[44].mxu1 %v1552_v40 }
  0x7b   :  { %531 = vmatprep.mubr.bf16.mxu0 %v1561_v1  ;;  %691 = vmatprep.mubr.bf16.mxu1 %v1561_v1 }
  0x82   :  { %532 = vmatmul.mubr.bf16.gmra.mrb[48].mxu0 %v1553_v41  ;;  %692 = vmatmul.mubr.bf16.gmra.mrb[48].mxu1 %v1554_v42 }
  0x83   :  { %541 = vmatprep.mubr.bf16.mxu0 %v1561_v1  ;;  %701 = vmatprep.mubr.bf16.mxu1 %v1561_v1 }
  0x8a   :  { %542 = vmatmul.mubr.bf16.gmra.mrb[52].mxu0 %v1555_v43  ;;  %702 = vmatmul.mubr.bf16.gmra.mrb[52].mxu1 %v1556_v44 }
  0x8b   :  { %551 = vmatprep.mubr.bf16.mxu0 %v1561_v1  ;;  %711 = vmatprep.mubr.bf16.mxu1 %v1561_v1 }
  0x92   :  { %552 = vmatmul.mubr.bf16.gmra.mrb[56].mxu0 %v1557_v45  ;;  %712 = vmatmul.mubr.bf16.gmra.mrb[56].mxu1 %v1558_v46 }
  0x93   :  { %561 = vmatprep.mubr.bf16.mxu0 %v1561_v1  ;;  %721 = vmatprep.mubr.bf16.mxu1 %v1561_v1 }
  0x9a   :  { %562 = vmatmul.mubr.bf16.gmra.mrb[60].mxu0 %v1559_v47  ;;  %722 = vmatmul.mubr.bf16.gmra.mrb[60].mxu1 %v1560_v48 }
  0xf5   :  { %v413_v56 = vpop.f32.mrb[0].mxu0  ;;  %v573_v57 = vpop.f32.mrb[0].mxu1 }
  0xf6   :  { %v414_v58 = vadd.f32 %v413_v56, %v1761_v54  ;;  %v574_v59 = vadd.f32 %v573_v57, %v1761_v54  ;;  %v415_v60 = vpop.f32.mrb[1].mxu0  ;;  %v575_v61 = vpop.f32.mrb[1].mxu1 }
  0xf7   :  { %v416_v62 = vadd.f32 %v415_v60, %v1763_v55  ;;  %v576_v63 = vadd.f32 %v575_v61, %v1763_v55  ;;  %v417_v0 = vpop.f32.mrb[2].mxu0  ;;  %v577_v1 = vpop.f32.mrb[2].mxu1 }
  0xf8   :  { %v732_v2 = vmax.f32 %v414_v58, 0.0  ;;  %v796_v3 = vmax.f32 %v574_v59, 0.0  ;;  %v418_v4 = vadd.f32 %v417_v0, %v1761_v54  ;;  %v578_v5 = vadd.f32 %v577_v1, %v1761_v54  ;;  %v419_v6 = vpop.f32.mrb[3].mxu0  ;;  %v579_v7 = vpop.f32.mrb[3].mxu1 }
  0xf9   :  { %v733_v8 = vmax.f32 %v416_v62, 0.0  ;;  %v797_v9 = vmax.f32 %v576_v63, 0.0  ;;  %v420_v10 = vadd.f32 %v419_v6, %v1763_v55  ;;  %v580_v11 = vadd.f32 %v579_v7, %v1763_v55 }
  0xfa   :  { %v734_v12 = vmax.f32 %v418_v4, 0.0  ;;  %v798_v13 = vmax.f32 %v578_v5, 0.0 }
  0xfb   :  { %v1424_v14 = vpack.c.bf16 %v733_v8, %v732_v2  ;;  %v1456_v15 = vpack.c.bf16 %v797_v9, %v796_v3  ;;  %v735_v16 = vmax.f32 %v420_v10, 0.0  ;;  %v799_v17 = vmax.f32 %v580_v11, 0.0 }
  0xfd   :  { %1244 = vst [vmem:[%s2088_s3] sm:$0xff] %v1424_v14  ;;  %1276 = vst [vmem:[%s2088_s3 + $0x100] sm:$0xff] %v1456_v15  ;;  %v1425_v18 = vpack.c.bf16 %v735_v16, %v734_v12  ;;  %v1457_v19 = vpack.c.bf16 %v799_v17, %v798_v13  ;;  %v423_v20 = vpop.f32.mrb[4].mxu0  ;;  %v583_v21 = vpop.f32.mrb[4].mxu1 }
  0xfe   :  { %v424_v22 = vadd.f32 %v423_v20, %v1761_v54  ;;  %v584_v23 = vadd.f32 %v583_v21, %v1761_v54  ;;  %v425_v24 = vpop.f32.mrb[5].mxu0  ;;  %v585_v25 = vpop.f32.mrb[5].mxu1 }
  0xff   :  { %1245 = vst [vmem:[%s2088_s3 + $0x8] sm:$0xff] %v1425_v18  ;;  %1277 = vst [vmem:[%s2088_s3 + $0x108] sm:$0xff] %v1457_v19  ;;  %v426_v26 = vadd.f32 %v425_v24, %v1763_v55  ;;  %v586_v27 = vadd.f32 %v585_v25, %v1763_v55  ;;  %v427_v28 = vpop.f32.mrb[6].mxu0  ;;  %v587_v29 = vpop.f32.mrb[6].mxu1 }
 0x100   :  { %v736_v30 = vmax.f32 %v424_v22, 0.0  ;;  %v800_v31 = vmax.f32 %v584_v23, 0.0  ;;  %v428_v32 = vadd.f32 %v427_v28, %v1761_v54  ;;  %v588_v33 = vadd.f32 %v587_v29, %v1761_v54  ;;  %v429_v34 = vpop.f32.mrb[7].mxu0  ;;  %v589_v35 = vpop.f32.mrb[7].mxu1 }
 0x101   :  { %v737_v36 = vmax.f32 %v426_v26, 0.0  ;;  %v801_v37 = vmax.f32 %v586_v27, 0.0  ;;  %v430_v38 = vadd.f32 %v429_v34, %v1763_v55  ;;  %v590_v39 = vadd.f32 %v589_v35, %v1763_v55 }
 0x102   :  { %v738_v40 = vmax.f32 %v428_v32, 0.0  ;;  %v802_v41 = vmax.f32 %v588_v33, 0.0 }
 0x103   :  { %v1426_v42 = vpack.c.bf16 %v737_v36, %v736_v30  ;;  %v1458_v43 = vpack.c.bf16 %v801_v37, %v800_v31  ;;  %v739_v44 = vmax.f32 %v430_v38, 0.0  ;;  %v803_v45 = vmax.f32 %v590_v39, 0.0 }
 0x105   :  { %1246 = vst [vmem:[%s2088_s3 + $0x10] sm:$0xff] %v1426_v42  ;;  %1278 = vst [vmem:[%s2088_s3 + $0x110] sm:$0xff] %v1458_v43  ;;  %v1427_v46 = vpack.c.bf16 %v739_v44, %v738_v40  ;;  %v1459_v47 = vpack.c.bf16 %v803_v45, %v802_v41  ;;  %v433_v48 = vpop.f32.mrb[8].mxu0  ;;  %v593_v49 = vpop.f32.mrb[8].mxu1 }
 0x106   :  { %v434_v50 = vadd.f32 %v433_v48, %v1761_v54  ;;  %v594_v51 = vadd.f32 %v593_v49, %v1761_v54  ;;  %v435_v52 = vpop.f32.mrb[9].mxu0  ;;  %v595_v53 = vpop.f32.mrb[9].mxu1 }
 0x107   :  { %1247 = vst [vmem:[%s2088_s3 + $0x18] sm:$0xff] %v1427_v46  ;;  %1279 = vst [vmem:[%s2088_s3 + $0x118] sm:$0xff] %v1459_v47  ;;  %v436_v56 = vadd.f32 %v435_v52, %v1763_v55  ;;  %v596_v57 = vadd.f32 %v595_v53, %v1763_v55  ;;  %v437_v58 = vpop.f32.mrb[10].mxu0  ;;  %v597_v59 = vpop.f32.mrb[10].mxu1 }
 0x108   :  { %v740_v60 = vmax.f32 %v434_v50, 0.0  ;;  %v804_v61 = vmax.f32 %v594_v51, 0.0  ;;  %v438_v62 = vadd.f32 %v437_v58, %v1761_v54  ;;  %v598_v63 = vadd.f32 %v597_v59, %v1761_v54  ;;  %v439_v0 = vpop.f32.mrb[11].mxu0  ;;  %v599_v1 = vpop.f32.mrb[11].mxu1 }
 0x109   :  { %v741_v2 = vmax.f32 %v436_v56, 0.0  ;;  %v805_v3 = vmax.f32 %v596_v57, 0.0  ;;  %v440_v4 = vadd.f32 %v439_v0, %v1763_v55  ;;  %v600_v5 = vadd.f32 %v599_v1, %v1763_v55 }
 0x10a   :  { %v742_v6 = vmax.f32 %v438_v62, 0.0  ;;  %v806_v7 = vmax.f32 %v598_v63, 0.0 }
 0x10b   :  { %v1428_v8 = vpack.c.bf16 %v741_v2, %v740_v60  ;;  %v1460_v9 = vpack.c.bf16 %v805_v3, %v804_v61  ;;  %v743_v10 = vmax.f32 %v440_v4, 0.0  ;;  %v807_v11 = vmax.f32 %v600_v5, 0.0 }
 0x10d   :  { %1248 = vst [vmem:[%s2088_s3 + $0x20] sm:$0xff] %v1428_v8  ;;  %1280 = vst [vmem:[%s2088_s3 + $0x120] sm:$0xff] %v1460_v9  ;;  %v1429_v12 = vpack.c.bf16 %v743_v10, %v742_v6  ;;  %v1461_v13 = vpack.c.bf16 %v807_v11, %v806_v7  ;;  %v443_v14 = vpop.f32.mrb[12].mxu0  ;;  %v603_v15 = vpop.f32.mrb[12].mxu1 }
 0x10e   :  { %v444_v16 = vadd.f32 %v443_v14, %v1761_v54  ;;  %v604_v17 = vadd.f32 %v603_v15, %v1761_v54  ;;  %v445_v18 = vpop.f32.mrb[13].mxu0  ;;  %v605_v19 = vpop.f32.mrb[13].mxu1 }
 0x10f   :  { %1249 = vst [vmem:[%s2088_s3 + $0x28] sm:$0xff] %v1429_v12  ;;  %1281 = vst [vmem:[%s2088_s3 + $0x128] sm:$0xff] %v1461_v13  ;;  %v446_v20 = vadd.f32 %v445_v18, %v1763_v55  ;;  %v606_v21 = vadd.f32 %v605_v19, %v1763_v55  ;;  %v447_v22 = vpop.f32.mrb[14].mxu0  ;;  %v607_v23 = vpop.f32.mrb[14].mxu1 }
 0x110   :  { %v744_v24 = vmax.f32 %v444_v16, 0.0  ;;  %v808_v25 = vmax.f32 %v604_v17, 0.0  ;;  %v448_v26 = vadd.f32 %v447_v22, %v1761_v54  ;;  %v608_v27 = vadd.f32 %v607_v23, %v1761_v54  ;;  %v449_v28 = vpop.f32.mrb[15].mxu0  ;;  %v609_v29 = vpop.f32.mrb[15].mxu1 }
 0x111   :  { %v745_v30 = vmax.f32 %v446_v20, 0.0  ;;  %v809_v31 = vmax.f32 %v606_v21, 0.0  ;;  %v450_v32 = vadd.f32 %v449_v28, %v1763_v55  ;;  %v610_v33 = vadd.f32 %v609_v29, %v1763_v55 }
 0x112   :  { %v746_v34 = vmax.f32 %v448_v26, 0.0  ;;  %v810_v35 = vmax.f32 %v608_v27, 0.0 }
 0x113   :  { %v1430_v36 = vpack.c.bf16 %v745_v30, %v744_v24  ;;  %v1462_v37 = vpack.c.bf16 %v809_v31, %v808_v25  ;;  %v747_v38 = vmax.f32 %v450_v32, 0.0  ;;  %v811_v39 = vmax.f32 %v610_v33, 0.0 }
 0x115   :  { %1250 = vst [vmem:[%s2088_s3 + $0x30] sm:$0xff] %v1430_v36  ;;  %1282 = vst [vmem:[%s2088_s3 + $0x130] sm:$0xff] %v1462_v37  ;;  %v1431_v40 = vpack.c.bf16 %v747_v38, %v746_v34  ;;  %v1463_v41 = vpack.c.bf16 %v811_v39, %v810_v35  ;;  %v453_v42 = vpop.f32.mrb[16].mxu0  ;;  %v613_v43 = vpop.f32.mrb[16].mxu1 }
 0x116   :  { %v454_v44 = vadd.f32 %v453_v42, %v1761_v54  ;;  %v614_v45 = vadd.f32 %v613_v43, %v1761_v54  ;;  %v455_v46 = vpop.f32.mrb[17].mxu0  ;;  %v615_v47 = vpop.f32.mrb[17].mxu1 }
 0x117   :  { %1251 = vst [vmem:[%s2088_s3 + $0x38] sm:$0xff] %v1431_v40  ;;  %1283 = vst [vmem:[%s2088_s3 + $0x138] sm:$0xff] %v1463_v41  ;;  %v456_v48 = vadd.f32 %v455_v46, %v1763_v55  ;;  %v616_v49 = vadd.f32 %v615_v47, %v1763_v55  ;;  %v457_v50 = vpop.f32.mrb[18].mxu0  ;;  %v617_v51 = vpop.f32.mrb[18].mxu1 }
 0x118   :  { %v748_v52 = vmax.f32 %v454_v44, 0.0  ;;  %v812_v53 = vmax.f32 %v614_v45, 0.0  ;;  %v458_v56 = vadd.f32 %v457_v50, %v1761_v54  ;;  %v618_v57 = vadd.f32 %v617_v51, %v1761_v54  ;;  %v459_v58 = vpop.f32.mrb[19].mxu0  ;;  %v619_v59 = vpop.f32.mrb[19].mxu1 }
 0x119   :  { %v749_v60 = vmax.f32 %v456_v48, 0.0  ;;  %v813_v61 = vmax.f32 %v616_v49, 0.0  ;;  %v460_v62 = vadd.f32 %v459_v58, %v1763_v55  ;;  %v620_v63 = vadd.f32 %v619_v59, %v1763_v55 }
 0x11a   :  { %v750_v0 = vmax.f32 %v458_v56, 0.0  ;;  %v814_v1 = vmax.f32 %v618_v57, 0.0 }
 0x11b   :  { %v1432_v2 = vpack.c.bf16 %v749_v60, %v748_v52  ;;  %v1464_v3 = vpack.c.bf16 %v813_v61, %v812_v53  ;;  %v751_v4 = vmax.f32 %v460_v62, 0.0  ;;  %v815_v5 = vmax.f32 %v620_v63, 0.0 }
 0x11d   :  { %1252 = vst [vmem:[%s2088_s3 + $0x40] sm:$0xff] %v1432_v2  ;;  %1284 = vst [vmem:[%s2088_s3 + $0x140] sm:$0xff] %v1464_v3  ;;  %v1433_v6 = vpack.c.bf16 %v751_v4, %v750_v0  ;;  %v1465_v7 = vpack.c.bf16 %v815_v5, %v814_v1  ;;  %v463_v8 = vpop.f32.mrb[20].mxu0  ;;  %v623_v9 = vpop.f32.mrb[20].mxu1 }
 0x11e   :  { %v464_v10 = vadd.f32 %v463_v8, %v1761_v54  ;;  %v624_v11 = vadd.f32 %v623_v9, %v1761_v54  ;;  %v465_v12 = vpop.f32.mrb[21].mxu0  ;;  %v625_v13 = vpop.f32.mrb[21].mxu1 }
 0x11f   :  { %1253 = vst [vmem:[%s2088_s3 + $0x48] sm:$0xff] %v1433_v6  ;;  %1285 = vst [vmem:[%s2088_s3 + $0x148] sm:$0xff] %v1465_v7  ;;  %v466_v14 = vadd.f32 %v465_v12, %v1763_v55  ;;  %v626_v15 = vadd.f32 %v625_v13, %v1763_v55  ;;  %v467_v16 = vpop.f32.mrb[22].mxu0  ;;  %v627_v17 = vpop.f32.mrb[22].mxu1 }
 0x120   :  { %v752_v18 = vmax.f32 %v464_v10, 0.0  ;;  %v816_v19 = vmax.f32 %v624_v11, 0.0  ;;  %v468_v20 = vadd.f32 %v467_v16, %v1761_v54  ;;  %v628_v21 = vadd.f32 %v627_v17, %v1761_v54  ;;  %v469_v22 = vpop.f32.mrb[23].mxu0  ;;  %v629_v23 = vpop.f32.mrb[23].mxu1 }
 0x121   :  { %v753_v24 = vmax.f32 %v466_v14, 0.0  ;;  %v817_v25 = vmax.f32 %v626_v15, 0.0  ;;  %v470_v26 = vadd.f32 %v469_v22, %v1763_v55  ;;  %v630_v27 = vadd.f32 %v629_v23, %v1763_v55 }
 0x122   :  { %v754_v28 = vmax.f32 %v468_v20, 0.0  ;;  %v818_v29 = vmax.f32 %v628_v21, 0.0 }
 0x123   :  { %v1434_v30 = vpack.c.bf16 %v753_v24, %v752_v18  ;;  %v1466_v31 = vpack.c.bf16 %v817_v25, %v816_v19  ;;  %v755_v32 = vmax.f32 %v470_v26, 0.0  ;;  %v819_v33 = vmax.f32 %v630_v27, 0.0 }
 0x125   :  { %1254 = vst [vmem:[%s2088_s3 + $0x50] sm:$0xff] %v1434_v30  ;;  %1286 = vst [vmem:[%s2088_s3 + $0x150] sm:$0xff] %v1466_v31  ;;  %v1435_v34 = vpack.c.bf16 %v755_v32, %v754_v28  ;;  %v1467_v35 = vpack.c.bf16 %v819_v33, %v818_v29  ;;  %v473_v36 = vpop.f32.mrb[24].mxu0  ;;  %v633_v37 = vpop.f32.mrb[24].mxu1 }
 0x126   :  { %v474_v38 = vadd.f32 %v473_v36, %v1761_v54  ;;  %v634_v39 = vadd.f32 %v633_v37, %v1761_v54  ;;  %v475_v40 = vpop.f32.mrb[25].mxu0  ;;  %v635_v41 = vpop.f32.mrb[25].mxu1 }
 0x127   :  { %1255 = vst [vmem:[%s2088_s3 + $0x58] sm:$0xff] %v1435_v34  ;;  %1287 = vst [vmem:[%s2088_s3 + $0x158] sm:$0xff] %v1467_v35  ;;  %v476_v42 = vadd.f32 %v475_v40, %v1763_v55  ;;  %v636_v43 = vadd.f32 %v635_v41, %v1763_v55  ;;  %v477_v44 = vpop.f32.mrb[26].mxu0  ;;  %v637_v45 = vpop.f32.mrb[26].mxu1 }
 0x128   :  { %v756_v46 = vmax.f32 %v474_v38, 0.0  ;;  %v820_v47 = vmax.f32 %v634_v39, 0.0  ;;  %v478_v48 = vadd.f32 %v477_v44, %v1761_v54  ;;  %v638_v49 = vadd.f32 %v637_v45, %v1761_v54  ;;  %v479_v50 = vpop.f32.mrb[27].mxu0  ;;  %v639_v51 = vpop.f32.mrb[27].mxu1 }
 0x129   :  { %v757_v52 = vmax.f32 %v476_v42, 0.0  ;;  %v821_v53 = vmax.f32 %v636_v43, 0.0  ;;  %v480_v56 = vadd.f32 %v479_v50, %v1763_v55  ;;  %v640_v57 = vadd.f32 %v639_v51, %v1763_v55 }
 0x12a   :  { %v758_v58 = vmax.f32 %v478_v48, 0.0  ;;  %v822_v59 = vmax.f32 %v638_v49, 0.0 }
 0x12b   :  { %v1436_v60 = vpack.c.bf16 %v757_v52, %v756_v46  ;;  %v1468_v61 = vpack.c.bf16 %v821_v53, %v820_v47  ;;  %v759_v62 = vmax.f32 %v480_v56, 0.0  ;;  %v823_v63 = vmax.f32 %v640_v57, 0.0 }
 0x12d   :  { %1256 = vst [vmem:[%s2088_s3 + $0x60] sm:$0xff] %v1436_v60  ;;  %1288 = vst [vmem:[%s2088_s3 + $0x160] sm:$0xff] %v1468_v61  ;;  %v1437_v0 = vpack.c.bf16 %v759_v62, %v758_v58  ;;  %v1469_v1 = vpack.c.bf16 %v823_v63, %v822_v59  ;;  %v483_v2 = vpop.f32.mrb[28].mxu0  ;;  %v643_v3 = vpop.f32.mrb[28].mxu1 }
 0x12e   :  { %v484_v4 = vadd.f32 %v483_v2, %v1761_v54  ;;  %v644_v5 = vadd.f32 %v643_v3, %v1761_v54  ;;  %v485_v6 = vpop.f32.mrb[29].mxu0  ;;  %v645_v7 = vpop.f32.mrb[29].mxu1 }
 0x12f   :  { %1257 = vst [vmem:[%s2088_s3 + $0x68] sm:$0xff] %v1437_v0  ;;  %1289 = vst [vmem:[%s2088_s3 + $0x168] sm:$0xff] %v1469_v1  ;;  %v486_v8 = vadd.f32 %v485_v6, %v1763_v55  ;;  %v646_v9 = vadd.f32 %v645_v7, %v1763_v55  ;;  %v487_v10 = vpop.f32.mrb[30].mxu0  ;;  %v647_v11 = vpop.f32.mrb[30].mxu1 }
 0x130   :  { %v760_v12 = vmax.f32 %v484_v4, 0.0  ;;  %v824_v13 = vmax.f32 %v644_v5, 0.0  ;;  %v488_v14 = vadd.f32 %v487_v10, %v1761_v54  ;;  %v648_v15 = vadd.f32 %v647_v11, %v1761_v54  ;;  %v489_v16 = vpop.f32.mrb[31].mxu0  ;;  %v649_v17 = vpop.f32.mrb[31].mxu1 }
 0x131   :  { %v761_v18 = vmax.f32 %v486_v8, 0.0  ;;  %v825_v19 = vmax.f32 %v646_v9, 0.0  ;;  %v490_v20 = vadd.f32 %v489_v16, %v1763_v55  ;;  %v650_v21 = vadd.f32 %v649_v17, %v1763_v55 }
 0x132   :  { %v762_v22 = vmax.f32 %v488_v14, 0.0  ;;  %v826_v23 = vmax.f32 %v648_v15, 0.0 }
 0x133   :  { %v1438_v24 = vpack.c.bf16 %v761_v18, %v760_v12  ;;  %v1470_v25 = vpack.c.bf16 %v825_v19, %v824_v13  ;;  %v763_v26 = vmax.f32 %v490_v20, 0.0  ;;  %v827_v27 = vmax.f32 %v650_v21, 0.0 }
 0x135   :  { %1258 = vst [vmem:[%s2088_s3 + $0x70] sm:$0xff] %v1438_v24  ;;  %1290 = vst [vmem:[%s2088_s3 + $0x170] sm:$0xff] %v1470_v25  ;;  %v1439_v28 = vpack.c.bf16 %v763_v26, %v762_v22  ;;  %v1471_v29 = vpack.c.bf16 %v827_v27, %v826_v23  ;;  %v493_v30 = vpop.f32.mrb[32].mxu0  ;;  %v653_v31 = vpop.f32.mrb[32].mxu1 }
 0x136   :  { %v494_v32 = vadd.f32 %v493_v30, %v1761_v54  ;;  %v654_v33 = vadd.f32 %v653_v31, %v1761_v54  ;;  %v495_v34 = vpop.f32.mrb[33].mxu0  ;;  %v655_v35 = vpop.f32.mrb[33].mxu1 }
 0x137   :  { %1259 = vst [vmem:[%s2088_s3 + $0x78] sm:$0xff] %v1439_v28  ;;  %1291 = vst [vmem:[%s2088_s3 + $0x178] sm:$0xff] %v1471_v29  ;;  %v496_v36 = vadd.f32 %v495_v34, %v1763_v55  ;;  %v656_v37 = vadd.f32 %v655_v35, %v1763_v55  ;;  %v497_v38 = vpop.f32.mrb[34].mxu0  ;;  %v657_v39 = vpop.f32.mrb[34].mxu1 }
 0x138   :  { %v764_v40 = vmax.f32 %v494_v32, 0.0  ;;  %v828_v41 = vmax.f32 %v654_v33, 0.0  ;;  %v498_v42 = vadd.f32 %v497_v38, %v1761_v54  ;;  %v658_v43 = vadd.f32 %v657_v39, %v1761_v54  ;;  %v499_v44 = vpop.f32.mrb[35].mxu0  ;;  %v659_v45 = vpop.f32.mrb[35].mxu1 }
 0x139   :  { %v765_v46 = vmax.f32 %v496_v36, 0.0  ;;  %v829_v47 = vmax.f32 %v656_v37, 0.0  ;;  %v500_v48 = vadd.f32 %v499_v44, %v1763_v55  ;;  %v660_v49 = vadd.f32 %v659_v45, %v1763_v55 }
 0x13a   :  { %v766_v50 = vmax.f32 %v498_v42, 0.0  ;;  %v830_v51 = vmax.f32 %v658_v43, 0.0 }
 0x13b   :  { %v1440_v52 = vpack.c.bf16 %v765_v46, %v764_v40  ;;  %v1472_v53 = vpack.c.bf16 %v829_v47, %v828_v41  ;;  %v767_v56 = vmax.f32 %v500_v48, 0.0  ;;  %v831_v57 = vmax.f32 %v660_v49, 0.0 }
 0x13d   :  { %1260 = vst [vmem:[%s2088_s3 + $0x80] sm:$0xff] %v1440_v52  ;;  %1292 = vst [vmem:[%s2088_s3 + $0x180] sm:$0xff] %v1472_v53  ;;  %v1441_v58 = vpack.c.bf16 %v767_v56, %v766_v50  ;;  %v1473_v59 = vpack.c.bf16 %v831_v57, %v830_v51  ;;  %v503_v60 = vpop.f32.mrb[36].mxu0  ;;  %v663_v61 = vpop.f32.mrb[36].mxu1 }
 0x13e   :  { %v504_v62 = vadd.f32 %v503_v60, %v1761_v54  ;;  %v664_v63 = vadd.f32 %v663_v61, %v1761_v54  ;;  %v505_v0 = vpop.f32.mrb[37].mxu0  ;;  %v665_v1 = vpop.f32.mrb[37].mxu1 }
 0x13f   :  { %1261 = vst [vmem:[%s2088_s3 + $0x88] sm:$0xff] %v1441_v58  ;;  %1293 = vst [vmem:[%s2088_s3 + $0x188] sm:$0xff] %v1473_v59  ;;  %v506_v2 = vadd.f32 %v505_v0, %v1763_v55  ;;  %v666_v3 = vadd.f32 %v665_v1, %v1763_v55  ;;  %v507_v4 = vpop.f32.mrb[38].mxu0  ;;  %v667_v5 = vpop.f32.mrb[38].mxu1 }
 0x140   :  { %v768_v6 = vmax.f32 %v504_v62, 0.0  ;;  %v832_v7 = vmax.f32 %v664_v63, 0.0  ;;  %v508_v8 = vadd.f32 %v507_v4, %v1761_v54  ;;  %v668_v9 = vadd.f32 %v667_v5, %v1761_v54  ;;  %v509_v10 = vpop.f32.mrb[39].mxu0  ;;  %v669_v11 = vpop.f32.mrb[39].mxu1 }
 0x141   :  { %v769_v12 = vmax.f32 %v506_v2, 0.0  ;;  %v833_v13 = vmax.f32 %v666_v3, 0.0  ;;  %v510_v14 = vadd.f32 %v509_v10, %v1763_v55  ;;  %v670_v15 = vadd.f32 %v669_v11, %v1763_v55 }
 0x142   :  { %v770_v16 = vmax.f32 %v508_v8, 0.0  ;;  %v834_v17 = vmax.f32 %v668_v9, 0.0 }
 0x143   :  { %v1442_v18 = vpack.c.bf16 %v769_v12, %v768_v6  ;;  %v1474_v19 = vpack.c.bf16 %v833_v13, %v832_v7  ;;  %v771_v20 = vmax.f32 %v510_v14, 0.0  ;;  %v835_v21 = vmax.f32 %v670_v15, 0.0 }
 0x145   :  { %1262 = vst [vmem:[%s2088_s3 + $0x90] sm:$0xff] %v1442_v18  ;;  %1294 = vst [vmem:[%s2088_s3 + $0x190] sm:$0xff] %v1474_v19  ;;  %v1443_v22 = vpack.c.bf16 %v771_v20, %v770_v16  ;;  %v1475_v23 = vpack.c.bf16 %v835_v21, %v834_v17  ;;  %v513_v24 = vpop.f32.mrb[40].mxu0  ;;  %v673_v25 = vpop.f32.mrb[40].mxu1 }
 0x146   :  { %v514_v26 = vadd.f32 %v513_v24, %v1761_v54  ;;  %v674_v27 = vadd.f32 %v673_v25, %v1761_v54  ;;  %v515_v28 = vpop.f32.mrb[41].mxu0  ;;  %v675_v29 = vpop.f32.mrb[41].mxu1 }
 0x147   :  { %1263 = vst [vmem:[%s2088_s3 + $0x98] sm:$0xff] %v1443_v22  ;;  %1295 = vst [vmem:[%s2088_s3 + $0x198] sm:$0xff] %v1475_v23  ;;  %v516_v30 = vadd.f32 %v515_v28, %v1763_v55  ;;  %v676_v31 = vadd.f32 %v675_v29, %v1763_v55  ;;  %v517_v32 = vpop.f32.mrb[42].mxu0  ;;  %v677_v33 = vpop.f32.mrb[42].mxu1 }
 0x148   :  { %v772_v34 = vmax.f32 %v514_v26, 0.0  ;;  %v836_v35 = vmax.f32 %v674_v27, 0.0  ;;  %v518_v36 = vadd.f32 %v517_v32, %v1761_v54  ;;  %v678_v37 = vadd.f32 %v677_v33, %v1761_v54  ;;  %v519_v38 = vpop.f32.mrb[43].mxu0  ;;  %v679_v39 = vpop.f32.mrb[43].mxu1 }
 0x149   :  { %v773_v40 = vmax.f32 %v516_v30, 0.0  ;;  %v837_v41 = vmax.f32 %v676_v31, 0.0  ;;  %v520_v42 = vadd.f32 %v519_v38, %v1763_v55  ;;  %v680_v43 = vadd.f32 %v679_v39, %v1763_v55 }
 0x14a   :  { %v774_v44 = vmax.f32 %v518_v36, 0.0  ;;  %v838_v45 = vmax.f32 %v678_v37, 0.0 }
 0x14b   :  { %v1444_v46 = vpack.c.bf16 %v773_v40, %v772_v34  ;;  %v1476_v47 = vpack.c.bf16 %v837_v41, %v836_v35  ;;  %v775_v48 = vmax.f32 %v520_v42, 0.0  ;;  %v839_v49 = vmax.f32 %v680_v43, 0.0 }
 0x14d   :  { %1264 = vst [vmem:[%s2088_s3 + $0xa0] sm:$0xff] %v1444_v46  ;;  %1296 = vst [vmem:[%s2088_s3 + $0x1a0] sm:$0xff] %v1476_v47  ;;  %v1445_v50 = vpack.c.bf16 %v775_v48, %v774_v44  ;;  %v1477_v51 = vpack.c.bf16 %v839_v49, %v838_v45  ;;  %v523_v52 = vpop.f32.mrb[44].mxu0  ;;  %v683_v53 = vpop.f32.mrb[44].mxu1 }
 0x14e   :  { %v524_v56 = vadd.f32 %v523_v52, %v1761_v54  ;;  %v684_v57 = vadd.f32 %v683_v53, %v1761_v54  ;;  %v525_v58 = vpop.f32.mrb[45].mxu0  ;;  %v685_v59 = vpop.f32.mrb[45].mxu1 }
 0x14f   :  { %1265 = vst [vmem:[%s2088_s3 + $0xa8] sm:$0xff] %v1445_v50  ;;  %1297 = vst [vmem:[%s2088_s3 + $0x1a8] sm:$0xff] %v1477_v51  ;;  %v526_v60 = vadd.f32 %v525_v58, %v1763_v55  ;;  %v686_v61 = vadd.f32 %v685_v59, %v1763_v55  ;;  %v527_v62 = vpop.f32.mrb[46].mxu0  ;;  %v687_v63 = vpop.f32.mrb[46].mxu1 }
 0x150   :  { %v776_v0 = vmax.f32 %v524_v56, 0.0  ;;  %v840_v1 = vmax.f32 %v684_v57, 0.0  ;;  %v528_v2 = vadd.f32 %v527_v62, %v1761_v54  ;;  %v688_v3 = vadd.f32 %v687_v63, %v1761_v54  ;;  %v529_v4 = vpop.f32.mrb[47].mxu0  ;;  %v689_v5 = vpop.f32.mrb[47].mxu1 }
 0x151   :  { %v777_v6 = vmax.f32 %v526_v60, 0.0  ;;  %v841_v7 = vmax.f32 %v686_v61, 0.0  ;;  %v530_v8 = vadd.f32 %v529_v4, %v1763_v55  ;;  %v690_v9 = vadd.f32 %v689_v5, %v1763_v55 }
 0x152   :  { %v778_v10 = vmax.f32 %v528_v2, 0.0  ;;  %v842_v11 = vmax.f32 %v688_v3, 0.0 }
 0x153   :  { %v1446_v12 = vpack.c.bf16 %v777_v6, %v776_v0  ;;  %v1478_v13 = vpack.c.bf16 %v841_v7, %v840_v1  ;;  %v779_v14 = vmax.f32 %v530_v8, 0.0  ;;  %v843_v15 = vmax.f32 %v690_v9, 0.0 }
 0x155   :  { %1266 = vst [vmem:[%s2088_s3 + $0xb0] sm:$0xff] %v1446_v12  ;;  %1298 = vst [vmem:[%s2088_s3 + $0x1b0] sm:$0xff] %v1478_v13  ;;  %v1447_v16 = vpack.c.bf16 %v779_v14, %v778_v10  ;;  %v1479_v17 = vpack.c.bf16 %v843_v15, %v842_v11  ;;  %v533_v18 = vpop.f32.mrb[48].mxu0  ;;  %v693_v19 = vpop.f32.mrb[48].mxu1 }
 0x156   :  { %v534_v20 = vadd.f32 %v533_v18, %v1761_v54  ;;  %v694_v21 = vadd.f32 %v693_v19, %v1761_v54  ;;  %v535_v22 = vpop.f32.mrb[49].mxu0  ;;  %v695_v23 = vpop.f32.mrb[49].mxu1 }
 0x157   :  { %1267 = vst [vmem:[%s2088_s3 + $0xb8] sm:$0xff] %v1447_v16  ;;  %1299 = vst [vmem:[%s2088_s3 + $0x1b8] sm:$0xff] %v1479_v17  ;;  %v536_v24 = vadd.f32 %v535_v22, %v1763_v55  ;;  %v696_v25 = vadd.f32 %v695_v23, %v1763_v55  ;;  %v537_v26 = vpop.f32.mrb[50].mxu0  ;;  %v697_v27 = vpop.f32.mrb[50].mxu1 }
 0x158   :  { %v780_v28 = vmax.f32 %v534_v20, 0.0  ;;  %v844_v29 = vmax.f32 %v694_v21, 0.0  ;;  %v538_v30 = vadd.f32 %v537_v26, %v1761_v54  ;;  %v698_v31 = vadd.f32 %v697_v27, %v1761_v54  ;;  %v539_v32 = vpop.f32.mrb[51].mxu0  ;;  %v699_v33 = vpop.f32.mrb[51].mxu1 }
 0x159   :  { %v781_v34 = vmax.f32 %v536_v24, 0.0  ;;  %v845_v35 = vmax.f32 %v696_v25, 0.0  ;;  %v540_v36 = vadd.f32 %v539_v32, %v1763_v55  ;;  %v700_v37 = vadd.f32 %v699_v33, %v1763_v55 }
 0x15a   :  { %v782_v38 = vmax.f32 %v538_v30, 0.0  ;;  %v846_v39 = vmax.f32 %v698_v31, 0.0 }
 0x15b   :  { %v1448_v40 = vpack.c.bf16 %v781_v34, %v780_v28  ;;  %v1480_v41 = vpack.c.bf16 %v845_v35, %v844_v29  ;;  %v783_v42 = vmax.f32 %v540_v36, 0.0  ;;  %v847_v43 = vmax.f32 %v700_v37, 0.0 }
 0x15d   :  { %1268 = vst [vmem:[%s2088_s3 + $0xc0] sm:$0xff] %v1448_v40  ;;  %1300 = vst [vmem:[%s2088_s3 + $0x1c0] sm:$0xff] %v1480_v41  ;;  %v1449_v44 = vpack.c.bf16 %v783_v42, %v782_v38  ;;  %v1481_v45 = vpack.c.bf16 %v847_v43, %v846_v39  ;;  %v543_v46 = vpop.f32.mrb[52].mxu0  ;;  %v703_v47 = vpop.f32.mrb[52].mxu1 }
 0x15e   :  { %v544_v48 = vadd.f32 %v543_v46, %v1761_v54  ;;  %v704_v49 = vadd.f32 %v703_v47, %v1761_v54  ;;  %v545_v50 = vpop.f32.mrb[53].mxu0  ;;  %v705_v51 = vpop.f32.mrb[53].mxu1 }
 0x15f   :  { %1269 = vst [vmem:[%s2088_s3 + $0xc8] sm:$0xff] %v1449_v44  ;;  %1301 = vst [vmem:[%s2088_s3 + $0x1c8] sm:$0xff] %v1481_v45  ;;  %v546_v52 = vadd.f32 %v545_v50, %v1763_v55  ;;  %v706_v53 = vadd.f32 %v705_v51, %v1763_v55  ;;  %v547_v56 = vpop.f32.mrb[54].mxu0  ;;  %v707_v57 = vpop.f32.mrb[54].mxu1 }
 0x160   :  { %v784_v58 = vmax.f32 %v544_v48, 0.0  ;;  %v848_v59 = vmax.f32 %v704_v49, 0.0  ;;  %v548_v60 = vadd.f32 %v547_v56, %v1761_v54  ;;  %v708_v61 = vadd.f32 %v707_v57, %v1761_v54  ;;  %v549_v62 = vpop.f32.mrb[55].mxu0  ;;  %v709_v63 = vpop.f32.mrb[55].mxu1 }
 0x161   :  { %v785_v0 = vmax.f32 %v546_v52, 0.0  ;;  %v849_v1 = vmax.f32 %v706_v53, 0.0  ;;  %v550_v2 = vadd.f32 %v549_v62, %v1763_v55  ;;  %v710_v3 = vadd.f32 %v709_v63, %v1763_v55 }
 0x162   :  { %v786_v4 = vmax.f32 %v548_v60, 0.0  ;;  %v850_v5 = vmax.f32 %v708_v61, 0.0 }
 0x163   :  { %v1450_v6 = vpack.c.bf16 %v785_v0, %v784_v58  ;;  %v1482_v7 = vpack.c.bf16 %v849_v1, %v848_v59  ;;  %v787_v8 = vmax.f32 %v550_v2, 0.0  ;;  %v851_v9 = vmax.f32 %v710_v3, 0.0 }
 0x165   :  { %1270 = vst [vmem:[%s2088_s3 + $0xd0] sm:$0xff] %v1450_v6  ;;  %1302 = vst [vmem:[%s2088_s3 + $0x1d0] sm:$0xff] %v1482_v7  ;;  %v1451_v10 = vpack.c.bf16 %v787_v8, %v786_v4  ;;  %v1483_v11 = vpack.c.bf16 %v851_v9, %v850_v5  ;;  %v553_v12 = vpop.f32.mrb[56].mxu0  ;;  %v713_v13 = vpop.f32.mrb[56].mxu1 }
 0x166   :  { %v554_v14 = vadd.f32 %v553_v12, %v1761_v54  ;;  %v714_v15 = vadd.f32 %v713_v13, %v1761_v54  ;;  %v555_v16 = vpop.f32.mrb[57].mxu0  ;;  %v715_v17 = vpop.f32.mrb[57].mxu1 }
 0x167   :  { %1271 = vst [vmem:[%s2088_s3 + $0xd8] sm:$0xff] %v1451_v10  ;;  %1303 = vst [vmem:[%s2088_s3 + $0x1d8] sm:$0xff] %v1483_v11  ;;  %v556_v18 = vadd.f32 %v555_v16, %v1763_v55  ;;  %v716_v19 = vadd.f32 %v715_v17, %v1763_v55  ;;  %v557_v20 = vpop.f32.mrb[58].mxu0  ;;  %v717_v21 = vpop.f32.mrb[58].mxu1 }
 0x168   :  { %v788_v22 = vmax.f32 %v554_v14, 0.0  ;;  %v852_v23 = vmax.f32 %v714_v15, 0.0  ;;  %v558_v24 = vadd.f32 %v557_v20, %v1761_v54  ;;  %v718_v25 = vadd.f32 %v717_v21, %v1761_v54  ;;  %v559_v26 = vpop.f32.mrb[59].mxu0  ;;  %v719_v27 = vpop.f32.mrb[59].mxu1 }
 0x169   :  { %v789_v28 = vmax.f32 %v556_v18, 0.0  ;;  %v853_v29 = vmax.f32 %v716_v19, 0.0  ;;  %v560_v30 = vadd.f32 %v559_v26, %v1763_v55  ;;  %v720_v31 = vadd.f32 %v719_v27, %v1763_v55 }
 0x16a   :  { %v790_v32 = vmax.f32 %v558_v24, 0.0  ;;  %v854_v33 = vmax.f32 %v718_v25, 0.0 }
 0x16b   :  { %v1452_v34 = vpack.c.bf16 %v789_v28, %v788_v22  ;;  %v1484_v35 = vpack.c.bf16 %v853_v29, %v852_v23  ;;  %v791_v36 = vmax.f32 %v560_v30, 0.0  ;;  %v855_v37 = vmax.f32 %v720_v31, 0.0 }
 0x16d   :  { %1272 = vst [vmem:[%s2088_s3 + $0xe0] sm:$0xff] %v1452_v34  ;;  %1304 = vst [vmem:[%s2088_s3 + $0x1e0] sm:$0xff] %v1484_v35  ;;  %v1453_v38 = vpack.c.bf16 %v791_v36, %v790_v32  ;;  %v1485_v39 = vpack.c.bf16 %v855_v37, %v854_v33  ;;  %v563_v40 = vpop.f32.mrb[60].mxu0  ;;  %v723_v41 = vpop.f32.mrb[60].mxu1 }
 0x16e   :  { %v564_v42 = vadd.f32 %v563_v40, %v1761_v54  ;;  %v724_v43 = vadd.f32 %v723_v41, %v1761_v54  ;;  %v565_v44 = vpop.f32.mrb[61].mxu0  ;;  %v725_v45 = vpop.f32.mrb[61].mxu1 }
 0x16f   :  { %1273 = vst [vmem:[%s2088_s3 + $0xe8] sm:$0xff] %v1453_v38  ;;  %1305 = vst [vmem:[%s2088_s3 + $0x1e8] sm:$0xff] %v1485_v39  ;;  %v566_v46 = vadd.f32 %v565_v44, %v1763_v55  ;;  %v726_v47 = vadd.f32 %v725_v45, %v1763_v55  ;;  %v567_v48 = vpop.f32.mrb[62].mxu0  ;;  %v727_v49 = vpop.f32.mrb[62].mxu1 }
 0x170   :  { %v792_v50 = vmax.f32 %v564_v42, 0.0  ;;  %v856_v51 = vmax.f32 %v724_v43, 0.0  ;;  %v568_v52 = vadd.f32 %v567_v48, %v1761_v54  ;;  %v728_v53 = vadd.f32 %v727_v49, %v1761_v54  ;;  %v569_v56 = vpop.f32.mrb[63].mxu0  ;;  %v729_v57 = vpop.f32.mrb[63].mxu1 }
 0x171   :  { %v793_v58 = vmax.f32 %v566_v46, 0.0  ;;  %v857_v59 = vmax.f32 %v726_v47, 0.0  ;;  %v570_v60 = vadd.f32 %v569_v56, %v1763_v55  ;;  %v730_v61 = vadd.f32 %v729_v57, %v1763_v55 }
 0x172   :  { %v794_v62 = vmax.f32 %v568_v52, 0.0  ;;  %v858_v63 = vmax.f32 %v728_v53, 0.0 }
 0x173   :  { %v1454_v0 = vpack.c.bf16 %v793_v58, %v792_v50  ;;  %v1486_v1 = vpack.c.bf16 %v857_v59, %v856_v51  ;;  %v795_v2 = vmax.f32 %v570_v60, 0.0  ;;  %v859_v3 = vmax.f32 %v730_v61, 0.0 }
 0x175   :  { %1274 = vst [vmem:[%s2088_s3 + $0xf0] sm:$0xff] %v1454_v0  ;;  %1306 = vst [vmem:[%s2088_s3 + $0x1f0] sm:$0xff] %v1486_v1  ;;  %v1455_v54 = vpack.c.bf16 %v795_v2, %v794_v62  ;;  %v1487_v4 = vpack.c.bf16 %v859_v3, %v858_v63 }
 0x177   :  { %1275 = vst [vmem:[%s2088_s3 + $0xf8] sm:$0xff] %v1455_v54  ;;  %1307 = vst [vmem:[%s2088_s3 + $0x1f8] sm:$0xff] %v1487_v4 }

// kernel: critic_forward.10
= control target key start
LH: loop header
LB: loop body
LE: loop exit
PB: predicated region body
PF: predicated region fallthrough
CT: control target
= control target key end

     0   :  { %v1370_v9 = vmov 1966171168   ;;  %v94_v11 = vlaneseq  ;;  %s1821_s1 = inlined_call_operand.vmem [shape: bf16[512,256], index: 1, kind: input, shape index: {}]   ;;  %s1822_s0 = inlined_call_operand.vmem [shape: bf16[2,512], index: 0, kind: input, shape index: {}]   ;;  %s1823_s2 = inlined_call_operand.vmem [shape: bf16[256,512], index: 2, kind: input, shape index: {}]   ;;  %s1824_s3 = inlined_call_operand.vmem [shape: f32[1,512], index: 3, kind: input, shape index: {}]   ;;  %s1825_s4 = inlined_call_operand.vmem [shape: bf16[2,512], index: 4, kind: output, shape index: {}]  }
   0x1   :  { %v1178_v0 = vld [vmem:[%s1821_s1 + $0x4] ss:$8 sps:$4 sm:$0xff]   ;;  %v1180_v1 = vld [vmem:[%s1821_s1] ss:$8 sps:$4 sm:$0xff]   ;;  %v1181_v2 = vld [vmem:[%s1821_s1 + $0x14] ss:$8 sps:$4 sm:$0xff]   ;;  %v92_v10 = vunpack.c.l.s4 %v1370_v9 }
   0x2   :  { %431 = vmatprep.subr.bf16.mxu0 %v1178_v0  ;;  %v1183_v3 = vld [vmem:[%s1821_s1 + $0x10] ss:$8 sps:$4 sm:$0xff]   ;;  %v1184_v4 = vld [vmem:[%s1821_s1 + $0x24] ss:$8 sps:$4 sm:$0xff]   ;;  %v1186_v5 = vld [vmem:[%s1821_s1 + $0x20] ss:$8 sps:$4 sm:$0xff]  }
   0x3   :  { %432 = vmatpush1.bf16.msra.mxu0 %v1180_v1  ;;  %v1187_v6 = vld [vmem:[%s1821_s1 + $0x34] ss:$8 sps:$4 sm:$0xff]   ;;  %v1189_v7 = vld [vmem:[%s1821_s1 + $0x30] ss:$8 sps:$4 sm:$0xff]   ;;  %v1190_v8 = vld [vmem:[%s1821_s1 + $0x44] ss:$8 sps:$4 sm:$0xff]   ;;  %v93_v14 = vunpack.c.0.s8 %v92_v10 }
   0x4   :  { %433 = vmatprep.subr.bf16.mxu0 %v1181_v2  ;;  %v1192_v12 = vld [vmem:[%s1821_s1 + $0x40] ss:$8 sps:$4 sm:$0xff]   ;;  %v1193_v13 = vld [vmem:[%s1821_s1 + $0x54] ss:$8 sps:$4 sm:$0xff]   ;;  %v1429_v15 = vshrl.u32 %v94_v11, 7 }
   0x5   :  { %v1195_v16 = vld [vmem:[%s1821_s1 + $0x50] ss:$8 sps:$4 sm:$0xff]   ;;  %v1196_v17 = vld [vmem:[%s1821_s1 + $0x64] ss:$8 sps:$4 sm:$0xff]   ;;  %v1198_v21 = vld [vmem:[%s1821_s1 + $0x60] ss:$8 sps:$4 sm:$0xff]  }
   0x6   :  { %v1438_v18 = vsub.s32 %v93_v14, %v1429_v15  ;;  %v1443_v19 = vld.sshfl [vmem:[%s1822_s0] sm:$0x33 pattern:$0x75316420]  ;;  %v1199_v22 = vld [vmem:[%s1821_s1 + $0x74] ss:$8 sps:$4 sm:$0xff]  }
   0x7   :  { %434 = vmatpush1.bf16.msra.mxu0 %v1183_v3  ;;  %v90_v20 = vcombine.high %v1443_v19, %v1443_v19  ;;  %v1201_v24 = vld [vmem:[%s1821_s1 + $0x70] ss:$8 sps:$4 sm:$0xff]   ;;  %v1202_v25 = vld [vmem:[%s1821_s1 + $0x84] ss:$8 sps:$4 sm:$0xff]   ;;  %v1204_v26 = vld [vmem:[%s1821_s1 + $0x80] ss:$8 sps:$4 sm:$0xff]  }
   0x8   :  { %435 = vmatprep.subr.bf16.mxu0 %v1184_v4  ;;  %v1205_v27 = vld [vmem:[%s1821_s1 + $0x94] ss:$8 sps:$4 sm:$0xff]   ;;  %v1207_v28 = vld [vmem:[%s1821_s1 + $0x90] ss:$8 sps:$4 sm:$0xff]   ;;  %v1208_v29 = vld [vmem:[%s1821_s1 + $0xa4] ss:$8 sps:$4 sm:$0xff]   ;;  %v1549_v54 = vrot.slane %v1443_v19, %v1438_v18 }
   0x9   :  { %v1454_v23 = vrot.slane %v90_v20, %v1438_v18  ;;  %v1210_v30 = vld [vmem:[%s1821_s1 + $0xa0] ss:$8 sps:$4 sm:$0xff]   ;;  %v1211_v31 = vld [vmem:[%s1821_s1 + $0xb4] ss:$8 sps:$4 sm:$0xff]   ;;  %v1213_v32 = vld [vmem:[%s1821_s1 + $0xb0] ss:$8 sps:$4 sm:$0xff]  }
   0xa   :  { %v1214_v33 = vld [vmem:[%s1821_s1 + $0xc4] ss:$8 sps:$4 sm:$0xff]   ;;  %v1276_v35 = vld [vmem:[%s1823_s2] ss:$16 sps:$4 sm:$0xff]   ;;  %v1217_v39 = vld [vmem:[%s1821_s1 + $0xd4] ss:$8 sps:$4 sm:$0xff]  }
   0xb   :  { %436 = vmatpush1.bf16.msra.mxu0 %v1186_v5  ;;  %463 = vmatprep.mubr.bf16.mxu0 %v1454_v23  ;;  %v1274_v34 = vld [vmem:[%s1823_s2 + $0x4] ss:$16 sps:$4 sm:$0xff]   ;;  %v1216_v37 = vld [vmem:[%s1821_s1 + $0xc0] ss:$8 sps:$4 sm:$0xff]   ;;  %v1219_v41 = vld [vmem:[%s1821_s1 + $0xd0] ss:$8 sps:$4 sm:$0xff]   ;;  %v106_v57 = vcombine.high %v1454_v23, %v1454_v23 }
   0xc   :  { %437 = vmatprep.subr.bf16.mxu0 %v1187_v6  ;;  %v1277_v36 = vld [vmem:[%s1823_s2 + $0x24] ss:$16 sps:$4 sm:$0xff]   ;;  %921 = vmatprep.subr.bf16.mxu1 %v1274_v34  ;;  %v1279_v38 = vld [vmem:[%s1823_s2 + $0x20] ss:$16 sps:$4 sm:$0xff]  }
   0xd   :  { %922 = vmatpush1.bf16.msra.mxu1 %v1276_v35  ;;  %v1280_v40 = vld [vmem:[%s1823_s2 + $0x44] ss:$16 sps:$4 sm:$0xff]   ;;  %v1282_v42 = vld [vmem:[%s1823_s2 + $0x40] ss:$16 sps:$4 sm:$0xff]  }
   0xe   :  { %923 = vmatprep.subr.bf16.mxu1 %v1277_v36  ;;  %v1220_v43 = vld [vmem:[%s1821_s1 + $0xe4] ss:$8 sps:$4 sm:$0xff]   ;;  %v1222_v45 = vld [vmem:[%s1821_s1 + $0xe0] ss:$8 sps:$4 sm:$0xff]   ;;  %v1223_v47 = vld [vmem:[%s1821_s1 + $0xf4] ss:$8 sps:$4 sm:$0xff]  }
   0xf   :  { %438 = vmatpush1.bf16.msra.mxu0 %v1189_v7  ;;  %v1283_v44 = vld [vmem:[%s1823_s2 + $0x64] ss:$16 sps:$4 sm:$0xff]   ;;  %v1285_v46 = vld [vmem:[%s1823_s2 + $0x60] ss:$16 sps:$4 sm:$0xff]  }
  0x10   :  { %439 = vmatprep.subr.bf16.mxu0 %v1190_v8  ;;  %v1286_v48 = vld [vmem:[%s1823_s2 + $0x84] ss:$16 sps:$4 sm:$0xff]   ;;  %v1225_v49 = vld [vmem:[%s1821_s1 + $0xf0] ss:$8 sps:$4 sm:$0xff]   ;;  %v1226_v53 = vld [vmem:[%s1821_s1 + $0x100] ss:$8 sps:$4 sm:$0xff]  }
  0x11   :  { %924 = vmatpush1.bf16.msra.mxu1 %v1279_v38  ;;  %v1288_v50 = vld [vmem:[%s1823_s2 + $0x80] ss:$16 sps:$4 sm:$0xff]   ;;  %v1228_v51 = vld [vmem:[%s1821_s1 + $0x104] ss:$8 sps:$4 sm:$0xff]   ;;  %v1231_v55 = vld [vmem:[%s1821_s1 + $0x114] ss:$8 sps:$4 sm:$0xff]  }
  0x12   :  { %925 = vmatprep.subr.bf16.mxu1 %v1280_v40  ;;  %v1289_v52 = vld [vmem:[%s1823_s2 + $0xa4] ss:$16 sps:$4 sm:$0xff]   ;;  %v1291_v56 = vld [vmem:[%s1823_s2 + $0xa0] ss:$16 sps:$4 sm:$0xff]  }
  0x13   :  { %440 = vmatpush1.bf16.msra.mxu0 %v1192_v12  ;;  %v1292_v58 = vld [vmem:[%s1823_s2 + $0xc4] ss:$16 sps:$4 sm:$0xff]   ;;  %v1229_v59 = vld [vmem:[%s1821_s1 + $0x110] ss:$8 sps:$4 sm:$0xff]   ;;  %v1232_v63 = vld [vmem:[%s1821_s1 + $0x120] ss:$8 sps:$4 sm:$0xff]  }
  0x14   :  { %441 = vmatprep.subr.bf16.mxu0 %v1193_v13  ;;  %v1234_v60 = vld [vmem:[%s1821_s1 + $0x124] ss:$8 sps:$4 sm:$0xff]   ;;  %v1294_v61 = vld [vmem:[%s1823_s2 + $0xc0] ss:$16 sps:$4 sm:$0xff]   ;;  %v1237_v0 = vld [vmem:[%s1821_s1 + $0x134] ss:$8 sps:$4 sm:$0xff]  }
  0x15   :  { %926 = vmatpush1.bf16.msra.mxu1 %v1282_v42  ;;  %v1295_v62 = vld [vmem:[%s1823_s2 + $0xe4] ss:$16 sps:$4 sm:$0xff]   ;;  %v1297_v1 = vld [vmem:[%s1823_s2 + $0xe0] ss:$16 sps:$4 sm:$0xff]  }
  0x16   :  { %927 = vmatprep.subr.bf16.mxu1 %v1283_v44  ;;  %v1298_v2 = vld [vmem:[%s1823_s2 + $0x104] ss:$16 sps:$4 sm:$0xff]   ;;  %v1235_v3 = vld [vmem:[%s1821_s1 + $0x130] ss:$8 sps:$4 sm:$0xff]   ;;  %v1238_v7 = vld [vmem:[%s1821_s1 + $0x140] ss:$8 sps:$4 sm:$0xff]  }
  0x17   :  { %442 = vmatpush1.bf16.msra.mxu0 %v1195_v16  ;;  %v1240_v4 = vld [vmem:[%s1821_s1 + $0x144] ss:$8 sps:$4 sm:$0xff]   ;;  %v1300_v5 = vld [vmem:[%s1823_s2 + $0x100] ss:$16 sps:$4 sm:$0xff]   ;;  %v1243_v8 = vld [vmem:[%s1821_s1 + $0x154] ss:$8 sps:$4 sm:$0xff]  }
  0x18   :  { %443 = vmatprep.subr.bf16.mxu0 %v1196_v17  ;;  %v1301_v6 = vld [vmem:[%s1823_s2 + $0x124] ss:$16 sps:$4 sm:$0xff]   ;;  %v1303_v9 = vld [vmem:[%s1823_s2 + $0x120] ss:$16 sps:$4 sm:$0xff]  }
  0x19   :  { %928 = vmatpush1.bf16.msra.mxu1 %v1285_v46  ;;  %v1304_v10 = vld [vmem:[%s1823_s2 + $0x144] ss:$16 sps:$4 sm:$0xff]   ;;  %v1241_v11 = vld [vmem:[%s1821_s1 + $0x150] ss:$8 sps:$4 sm:$0xff]   ;;  %v1244_v16 = vld [vmem:[%s1821_s1 + $0x160] ss:$8 sps:$4 sm:$0xff]  }
  0x1a   :  { %929 = vmatprep.subr.bf16.mxu1 %v1286_v48  ;;  %v1246_v12 = vld [vmem:[%s1821_s1 + $0x164] ss:$8 sps:$4 sm:$0xff]   ;;  %v1306_v13 = vld [vmem:[%s1823_s2 + $0x140] ss:$16 sps:$4 sm:$0xff]   ;;  %v1249_v17 = vld [vmem:[%s1821_s1 + $0x174] ss:$8 sps:$4 sm:$0xff]  }
  0x1b   :  { %444 = vmatpush1.bf16.msra.mxu0 %v1198_v21  ;;  %v1307_v14 = vld [vmem:[%s1823_s2 + $0x164] ss:$16 sps:$4 sm:$0xff]   ;;  %v1309_v19 = vld [vmem:[%s1823_s2 + $0x160] ss:$16 sps:$4 sm:$0xff]   ;;  %v1324_v46 = vld [vmem:[%s1823_s2 + $0xc] ss:$16 sps:$4 sm:$0xff]  }
  0x1c   :  { %445 = vmatprep.subr.bf16.mxu0 %v1199_v22  ;;  %v1310_v20 = vld [vmem:[%s1823_s2 + $0x184] ss:$16 sps:$4 sm:$0xff]   ;;  %v1247_v21 = vld [vmem:[%s1821_s1 + $0x170] ss:$8 sps:$4 sm:$0xff]   ;;  %v1262_v36 = vld [vmem:[%s1821_s1 + $0x1c0] ss:$8 sps:$4 sm:$0xff]  }
  0x1d   :  { %930 = vmatpush1.bf16.msra.mxu1 %v1288_v50  ;;  %v1252_v22 = vld [vmem:[%s1821_s1 + $0x184] ss:$8 sps:$4 sm:$0xff]   ;;  %v1312_v23 = vld [vmem:[%s1823_s2 + $0x180] ss:$16 sps:$4 sm:$0xff]  }
  0x1e   :  { %931 = vmatprep.subr.bf16.mxu1 %v1289_v52  ;;  %v1259_v34 = vld [vmem:[%s1821_s1 + $0x1b0] ss:$8 sps:$4 sm:$0xff]   ;;  %v1264_v35 = vld [vmem:[%s1821_s1 + $0x1c4] ss:$8 sps:$4 sm:$0xff]   ;;  %v1268_v40 = vld [vmem:[%s1821_s1 + $0x1e0] ss:$8 sps:$4 sm:$0xff]  }
  0x1f   :  { %446 = vmatpush1.bf16.msra.mxu0 %v1201_v24  ;;  %v1313_v24 = vld [vmem:[%s1823_s2 + $0x1a4] ss:$16 sps:$4 sm:$0xff]   ;;  %v1265_v38 = vld [vmem:[%s1821_s1 + $0x1d0] ss:$8 sps:$4 sm:$0xff]  }
  0x20   :  { %447 = vmatprep.subr.bf16.mxu0 %v1202_v25  ;;  %v1250_v25 = vld [vmem:[%s1821_s1 + $0x180] ss:$8 sps:$4 sm:$0xff]   ;;  %v1271_v42 = vld [vmem:[%s1821_s1 + $0x1f0] ss:$8 sps:$4 sm:$0xff]   ;;  %v1319_v44 = vld [vmem:[%s1823_s2 + $0x1e4] ss:$16 sps:$4 sm:$0xff]  }
  0x21   :  { %932 = vmatpush1.bf16.msra.mxu1 %v1291_v56  ;;  %v1330_v56 = vld [vmem:[%s1823_s2 + $0x4c] ss:$16 sps:$4 sm:$0xff]  }
  0x22   :  { %933 = vmatprep.subr.bf16.mxu1 %v1292_v58  ;;  %v1333_v58 = vld [vmem:[%s1823_s2 + $0x6c] ss:$16 sps:$4 sm:$0xff]  }
  0x23   :  { %448 = vmatpush1.bf16.msra.mxu0 %v1204_v26  ;;  %v1255_v26 = vld [vmem:[%s1821_s1 + $0x194] ss:$8 sps:$4 sm:$0xff]  }
  0x24   :  { %449 = vmatprep.subr.bf16.mxu0 %v1205_v27  ;;  %v1315_v27 = vld [vmem:[%s1823_s2 + $0x1a0] ss:$16 sps:$4 sm:$0xff]  }
  0x25   :  { %934 = vmatpush1.bf16.msra.mxu1 %v1294_v61  ;;  %v1334_v61 = vld [vmem:[%s1823_s2 + $0x88] ss:$16 sps:$4 sm:$0xff]  }
  0x26   :  { %935 = vmatprep.subr.bf16.mxu1 %v1295_v62  ;;  %v1339_v62 = vld [vmem:[%s1823_s2 + $0xac] ss:$16 sps:$4 sm:$0xff]  }
  0x27   :  { %450 = vmatpush1.bf16.msra.mxu0 %v1207_v28  ;;  %v1316_v28 = vld [vmem:[%s1823_s2 + $0x1c4] ss:$16 sps:$4 sm:$0xff]  }
  0x28   :  { %451 = vmatprep.subr.bf16.mxu0 %v1208_v29  ;;  %v1253_v29 = vld [vmem:[%s1821_s1 + $0x190] ss:$8 sps:$4 sm:$0xff]  }
  0x29   :  { %936 = vmatpush1.bf16.msra.mxu1 %v1297_v1  ;;  %v1340_v1 = vld [vmem:[%s1823_s2 + $0xc8] ss:$16 sps:$4 sm:$0xff]  }
  0x2a   :  { %937 = vmatprep.subr.bf16.mxu1 %v1298_v2  ;;  %v1345_v2 = vld [vmem:[%s1823_s2 + $0xec] ss:$16 sps:$4 sm:$0xff]  }
  0x2b   :  { %452 = vmatpush1.bf16.msra.mxu0 %v1210_v30  ;;  %v1258_v30 = vld [vmem:[%s1821_s1 + $0x1a4] ss:$8 sps:$4 sm:$0xff]  }
  0x2c   :  { %453 = vmatprep.subr.bf16.mxu0 %v1211_v31  ;;  %v1318_v31 = vld [vmem:[%s1823_s2 + $0x1c0] ss:$16 sps:$4 sm:$0xff]  }
  0x2d   :  { %938 = vmatpush1.bf16.msra.mxu1 %v1300_v5  ;;  %v1346_v5 = vld [vmem:[%s1823_s2 + $0x108] ss:$16 sps:$4 sm:$0xff]  }
  0x2e   :  { %939 = vmatprep.subr.bf16.mxu1 %v1301_v6  ;;  %v1351_v6 = vld [vmem:[%s1823_s2 + $0x12c] ss:$16 sps:$4 sm:$0xff]  }
  0x2f   :  { %454 = vmatpush1.bf16.msra.mxu0 %v1213_v32  ;;  %v1256_v32 = vld [vmem:[%s1821_s1 + $0x1a0] ss:$8 sps:$4 sm:$0xff]  }
  0x30   :  { %455 = vmatprep.subr.bf16.mxu0 %v1214_v33  ;;  %v1261_v33 = vld [vmem:[%s1821_s1 + $0x1b4] ss:$8 sps:$4 sm:$0xff]  }
  0x31   :  { %940 = vmatpush1.bf16.msra.mxu1 %v1303_v9  ;;  %v1352_v9 = vld [vmem:[%s1823_s2 + $0x148] ss:$16 sps:$4 sm:$0xff]  }
  0x32   :  { %941 = vmatprep.subr.bf16.mxu1 %v1304_v10  ;;  %v1357_v10 = vld [vmem:[%s1823_s2 + $0x16c] ss:$16 sps:$4 sm:$0xff]  }
  0x33   :  { %456 = vmatpush1.bf16.msra.mxu0 %v1216_v37  ;;  %v1267_v37 = vld [vmem:[%s1821_s1 + $0x1d4] ss:$8 sps:$4 sm:$0xff]  }
  0x34   :  { %457 = vmatprep.subr.bf16.mxu0 %v1217_v39  ;;  %v1270_v39 = vld [vmem:[%s1821_s1 + $0x1e4] ss:$8 sps:$4 sm:$0xff]  }
  0x35   :  { %942 = vmatpush1.bf16.msra.mxu1 %v1306_v13  ;;  %v1358_v13 = vld [vmem:[%s1823_s2 + $0x188] ss:$16 sps:$4 sm:$0xff]  }
  0x36   :  { %943 = vmatprep.subr.bf16.mxu1 %v1307_v14  ;;  %v1363_v14 = vld [vmem:[%s1823_s2 + $0x1ac] ss:$16 sps:$4 sm:$0xff]  }
  0x37   :  { %458 = vmatpush1.bf16.msra.mxu0 %v1219_v41  ;;  %v1273_v41 = vld [vmem:[%s1821_s1 + $0x1f4] ss:$8 sps:$4 sm:$0xff]  }
  0x38   :  { %459 = vmatprep.subr.bf16.mxu0 %v1220_v43  ;;  %v105_v43 = vcombine.high %v1549_v54, %v1549_v54 }
  0x39   :  { %944 = vmatpush1.bf16.msra.mxu1 %v1309_v19  ;;  %v1364_v19 = vld [vmem:[%s1823_s2 + $0x1c8] ss:$16 sps:$4 sm:$0xff]  }
  0x3a   :  { %945 = vmatprep.subr.bf16.mxu1 %v1310_v20  ;;  %v1369_v20 = vld [vmem:[%s1823_s2 + $0x1ec] ss:$16 sps:$4 sm:$0xff]  }
  0x3b   :  { %460 = vmatpush1.bf16.msra.mxu0 %v1222_v45  ;;  %v1321_v45 = vld [vmem:[%s1823_s2 + $0x1e0] ss:$16 sps:$4 sm:$0xff]  }
  0x3c   :  { %461 = vmatprep.subr.bf16.mxu0 %v1223_v47 }
  0x3d   :  { %946 = vmatpush1.bf16.msra.mxu1 %v1312_v23  ;;  %v579_v23 = vld [vmem:[%s1824_s3] sm:$0xf] }
  0x3e   :  { %947 = vmatprep.subr.bf16.mxu1 %v1313_v24  ;;  %v587_v24 = vsub.s32 1, %v1429_v15 }
  0x3f   :  { %462 = vmatpush1.bf16.msra.mxu0 %v1225_v49 }
  0x40   :  { %472 = vmatprep.subr.bf16.mxu0 %v1228_v51  ;;  %v1322_v51 = vld [vmem:[%s1823_s2 + $0x8] ss:$16 sps:$4 sm:$0xff]  }
  0x41   :  { %948 = vmatpush1.bf16.msra.mxu1 %v1315_v27 }
  0x42   :  { %464 = vmatmul.mubr.bf16.vlgmr.msra.gmra.mrb[0].mxu0 %v1549_v54  ;;  %949 = vmatprep.subr.bf16.mxu1 %v1316_v28  ;;  %v1327_v54 = vld [vmem:[%s1823_s2 + $0x2c] ss:$16 sps:$4 sm:$0xff]  }
  0x43   :  { %473 = vmatpush1.bf16.msra.mxu0 %v1226_v53  ;;  %504 = vmatprep.mubr.bf16.mxu0 %v106_v57  ;;  %v1328_v57 = vld [vmem:[%s1823_s2 + $0x48] ss:$16 sps:$4 sm:$0xff]  }
  0x44   :  { %474 = vmatprep.subr.bf16.mxu0 %v1231_v55  ;;  %v1325_v55 = vld [vmem:[%s1823_s2 + $0x28] ss:$16 sps:$4 sm:$0xff]  }
  0x45   :  { %950 = vmatpush1.bf16.msra.mxu1 %v1318_v31 }
  0x46   :  { %951 = vmatprep.subr.bf16.mxu1 %v1319_v44 }
  0x47   :  { %475 = vmatpush1.bf16.msra.mxu0 %v1229_v59  ;;  %v1331_v59 = vld [vmem:[%s1823_s2 + $0x68] ss:$16 sps:$4 sm:$0xff]  }
  0x48   :  { %476 = vmatprep.subr.bf16.mxu0 %v1234_v60  ;;  %v1336_v60 = vld [vmem:[%s1823_s2 + $0x8c] ss:$16 sps:$4 sm:$0xff]  }
  0x49   :  { %952 = vmatpush1.bf16.msra.mxu1 %v1321_v45 }
  0x4a   :  { %962 = vmatprep.subr.bf16.mxu1 %v1324_v46 }
  0x4b   :  { %477 = vmatpush1.bf16.msra.mxu0 %v1232_v63  ;;  %v1337_v63 = vld [vmem:[%s1823_s2 + $0xa8] ss:$16 sps:$4 sm:$0xff]  }
  0x4c   :  { %478 = vmatprep.subr.bf16.mxu0 %v1237_v0  ;;  %v1342_v0 = vld [vmem:[%s1823_s2 + $0xcc] ss:$16 sps:$4 sm:$0xff]  }
  0x4f   :  { %479 = vmatpush1.bf16.msra.mxu0 %v1235_v3  ;;  %v1343_v3 = vld [vmem:[%s1823_s2 + $0xe8] ss:$16 sps:$4 sm:$0xff]  }
  0x50   :  { %480 = vmatprep.subr.bf16.mxu0 %v1240_v4  ;;  %v1348_v4 = vld [vmem:[%s1823_s2 + $0x10c] ss:$16 sps:$4 sm:$0xff]  }
  0x53   :  { %481 = vmatpush1.bf16.msra.mxu0 %v1238_v7  ;;  %v1349_v7 = vld [vmem:[%s1823_s2 + $0x128] ss:$16 sps:$4 sm:$0xff]  }
  0x54   :  { %482 = vmatprep.subr.bf16.mxu0 %v1243_v8  ;;  %v1354_v8 = vld [vmem:[%s1823_s2 + $0x14c] ss:$16 sps:$4 sm:$0xff]  }
  0x57   :  { %483 = vmatpush1.bf16.msra.mxu0 %v1241_v11  ;;  %v1355_v11 = vld [vmem:[%s1823_s2 + $0x168] ss:$16 sps:$4 sm:$0xff]  }
  0x58   :  { %484 = vmatprep.subr.bf16.mxu0 %v1246_v12  ;;  %v1360_v12 = vld [vmem:[%s1823_s2 + $0x18c] ss:$16 sps:$4 sm:$0xff]  }
  0x5b   :  { %485 = vmatpush1.bf16.msra.mxu0 %v1244_v16  ;;  %v1361_v16 = vld [vmem:[%s1823_s2 + $0x1a8] ss:$16 sps:$4 sm:$0xff]  }
  0x5c   :  { %486 = vmatprep.subr.bf16.mxu0 %v1249_v17  ;;  %v1366_v17 = vld [vmem:[%s1823_s2 + $0x1cc] ss:$16 sps:$4 sm:$0xff]  }
  0x5f   :  { %487 = vmatpush1.bf16.msra.mxu0 %v1247_v21  ;;  %v1367_v21 = vld [vmem:[%s1823_s2 + $0x1e8] ss:$16 sps:$4 sm:$0xff]  }
  0x60   :  { %488 = vmatprep.subr.bf16.mxu0 %v1252_v22  ;;  %v583_v22 = vsub.s32 0, %v1429_v15 }
  0x63   :  { %489 = vmatpush1.bf16.msra.mxu0 %v1250_v25  ;;  %v584_v25 = vrot.slane %v579_v23, %v583_v22 }
  0x64   :  { %490 = vmatprep.subr.bf16.mxu0 %v1255_v26  ;;  %v588_v26 = vrot.slane %v579_v23, %v587_v24 }
  0x67   :  { %491 = vmatpush1.bf16.msra.mxu0 %v1253_v29 }
  0x68   :  { %492 = vmatprep.subr.bf16.mxu0 %v1258_v30 }
  0x6b   :  { %493 = vmatpush1.bf16.msra.mxu0 %v1256_v32 }
  0x6c   :  { %494 = vmatprep.subr.bf16.mxu0 %v1261_v33 }
  0x6f   :  { %495 = vmatpush1.bf16.msra.mxu0 %v1259_v34  ;;  %v591_v34 = vsub.s32 2, %v1429_v15 }
  0x70   :  { %496 = vmatprep.subr.bf16.mxu0 %v1264_v35  ;;  %v595_v35 = vsub.s32 3, %v1429_v15 }
  0x73   :  { %497 = vmatpush1.bf16.msra.mxu0 %v1262_v36  ;;  %v592_v36 = vrot.slane %v579_v23, %v591_v34 }
  0x74   :  { %498 = vmatprep.subr.bf16.mxu0 %v1267_v37  ;;  %v596_v37 = vrot.slane %v579_v23, %v595_v35 }
  0x77   :  { %499 = vmatpush1.bf16.msra.mxu0 %v1265_v38 }
  0x78   :  { %500 = vmatprep.subr.bf16.mxu0 %v1270_v39 }
  0x7b   :  { %501 = vmatpush1.bf16.msra.mxu0 %v1268_v40 }
  0x7c   :  { %502 = vmatprep.subr.bf16.mxu0 %v1273_v41 }
  0x7f   :  { %503 = vmatpush1.bf16.msra.mxu0 %v1271_v42 }
  0x82   :  { %505 = vmatmul.mubr.bf16.vlgmr.msra.gmra.mrb[0].mxu0 %v105_v43 }
 0x155   :  { %v506_v47 = vpop.f32.mrb[0].mxu0 }
 0x156   :  { %v508_v48 = vpop.f32.mrb[1].mxu0  ;;  %v1715_v52 = vpack.c.bf16 %v506_v47, %v506_v47 }
 0x157   :  { %v514_v49 = vpack.c.bf16 %v508_v48, %v508_v48  ;;  %v510_v50 = vpop.f32.mrb[2].mxu0 }
 0x158   :  { %v511_v53 = vpop.f32.mrb[3].mxu0 }
 0x159   :  { %953 = vmatprep.mubr.bf16.mxu1 %v514_v49 }
 0x15a   :  { %954 = vmatmul.mubr.bf16.vlgmr.msra.gmra.mrb[0].mxu1 %v1715_v52 }
 0x15b   :  { %963 = vmatpush1.bf16.msra.mxu1 %v1322_v51  ;;  %994 = vmatprep.mubr.bf16.mxu1 %v514_v49 }
 0x15c   :  { %964 = vmatprep.subr.bf16.mxu1 %v1327_v54 }
 0x15f   :  { %965 = vmatpush1.bf16.msra.mxu1 %v1325_v55 }
 0x160   :  { %966 = vmatprep.subr.bf16.mxu1 %v1330_v56 }
 0x163   :  { %967 = vmatpush1.bf16.msra.mxu1 %v1328_v57 }
 0x164   :  { %968 = vmatprep.subr.bf16.mxu1 %v1333_v58 }
 0x167   :  { %969 = vmatpush1.bf16.msra.mxu1 %v1331_v59 }
 0x168   :  { %970 = vmatprep.subr.bf16.mxu1 %v1336_v60 }
 0x16b   :  { %971 = vmatpush1.bf16.msra.mxu1 %v1334_v61 }
 0x16c   :  { %972 = vmatprep.subr.bf16.mxu1 %v1339_v62 }
 0x16f   :  { %973 = vmatpush1.bf16.msra.mxu1 %v1337_v63 }
 0x170   :  { %974 = vmatprep.subr.bf16.mxu1 %v1342_v0 }
 0x173   :  { %975 = vmatpush1.bf16.msra.mxu1 %v1340_v1 }
 0x174   :  { %976 = vmatprep.subr.bf16.mxu1 %v1345_v2 }
 0x177   :  { %977 = vmatpush1.bf16.msra.mxu1 %v1343_v3 }
 0x178   :  { %978 = vmatprep.subr.bf16.mxu1 %v1348_v4 }
 0x17b   :  { %979 = vmatpush1.bf16.msra.mxu1 %v1346_v5 }
 0x17c   :  { %980 = vmatprep.subr.bf16.mxu1 %v1351_v6 }
 0x17f   :  { %981 = vmatpush1.bf16.msra.mxu1 %v1349_v7 }
 0x180   :  { %982 = vmatprep.subr.bf16.mxu1 %v1354_v8 }
 0x183   :  { %983 = vmatpush1.bf16.msra.mxu1 %v1352_v9 }
 0x184   :  { %984 = vmatprep.subr.bf16.mxu1 %v1357_v10 }
 0x187   :  { %985 = vmatpush1.bf16.msra.mxu1 %v1355_v11 }
 0x188   :  { %986 = vmatprep.subr.bf16.mxu1 %v1360_v12 }
 0x18b   :  { %987 = vmatpush1.bf16.msra.mxu1 %v1358_v13 }
 0x18c   :  { %988 = vmatprep.subr.bf16.mxu1 %v1363_v14 }
 0x18f   :  { %989 = vmatpush1.bf16.msra.mxu1 %v1361_v16 }
 0x190   :  { %990 = vmatprep.subr.bf16.mxu1 %v1366_v17 }
 0x193   :  { %991 = vmatpush1.bf16.msra.mxu1 %v1364_v19 }
 0x194   :  { %992 = vmatprep.subr.bf16.mxu1 %v1369_v20 }
 0x197   :  { %993 = vmatpush1.bf16.msra.mxu1 %v1367_v21 }
 0x19a   :  { %995 = vmatmul.mubr.bf16.vlgmr.msra.gmra.mrb[4].mxu1 %v1715_v52 }
 0x22d   :  { %v955_v27 = vpop.f32.mrb[0].mxu1 }
 0x22e   :  { %v956_v28 = vadd.f32 %v955_v27, %v584_v25  ;;  %v957_v29 = vpop.f32.mrb[1].mxu1 }
 0x22f   :  { %v958_v30 = vadd.f32 %v957_v29, %v588_v26  ;;  %v959_v31 = vpop.f32.mrb[2].mxu1 }
 0x230   :  { %v960_v32 = vpop.f32.mrb[3].mxu1 }
 0x231   :  { %v1170_v33 = vpack.c.bf16 %v958_v30, %v956_v28 }
 0x233   :  { %v1019_v45 = vrot.slane %v1170_v33, %v1438_v18 }
 0x26d   :  { %v996_v38 = vpop.f32.mrb[4].mxu1 }
 0x26e   :  { %v997_v39 = vadd.f32 %v996_v38, %v592_v36  ;;  %v998_v40 = vpop.f32.mrb[5].mxu1 }
 0x26f   :  { %v999_v41 = vadd.f32 %v998_v40, %v596_v37  ;;  %v1000_v42 = vpop.f32.mrb[6].mxu1 }
 0x270   :  { %v1001_v43 = vpop.f32.mrb[7].mxu1 }
 0x271   :  { %v1171_v44 = vpack.c.bf16 %v999_v41, %v997_v39 }
 0x273   :  { %v1026_v46 = vrot.slane %v1171_v44, %v1438_v18 }
 0x275   :  { %v1027_v47 = vcombine.low %v1019_v45, %v1026_v46 }
 0x277   :  { %1172 = vst.sshfl [vmem:[%s1825_s4] sm:$0x55 pattern:$0x73625140] %v1027_v47 }

// kernel: critic_forward.11
= control target key start
LH: loop header
LB: loop body
LE: loop exit
PB: predicated region body
PF: predicated region fallthrough
CT: control target
= control target key end

     0   :  { %v6451_v22 = vmov 1966171168   ;;  %v119_v24 = vlaneseq  ;;  %vm5481_vm0 = vcmask 1024   ;;  %s8683_s1 = inlined_call_operand.vmem [shape: bf16[512,128], index: 1, kind: input, shape index: {}]   ;;  %s8684_s0 = inlined_call_operand.vmem [shape: bf16[2,512], index: 0, kind: input, shape index: {}]   ;;  %s8685_s3 = inlined_call_operand.vmem [shape: bf16[128,1024], index: 3, kind: input, shape index: {}]   ;;  %s8686_s2 = inlined_call_operand.vmem [shape: f32[1,128], index: 2, kind: input, shape index: {}]   ;;  %s8687_s5 = inlined_call_operand.vmem [shape: bf16[1024,1024], index: 5, kind: input, shape index: {}]   ;;  %s8688_s4 = inlined_call_operand.vmem [shape: f32[1,1024], index: 4, kind: input, shape index: {}]   ;;  %s8689_s7 = inlined_call_operand.vmem [shape: bf16[1024,1], index: 7, kind: input, shape index: {}]   ;;  %s8690_s6 = inlined_call_operand.vmem [shape: f32[1,1024], index: 6, kind: input, shape index: {}]   ;;  %s8691_s8 = inlined_call_operand.<no memory space> [shape: f32[1,1], index: 8, kind: input, shape index: {}]   ;;  %s8692_s9 = inlined_call_operand.vmem [shape: f32[2,1], index: 9, kind: output, shape index: {}]  }
   0x1   :  { %v6352_v0 = vld [vmem:[%s8683_s1 + $0x40] sm:$0xff]   ;;  %v6356_v4 = vld [vmem:[%s8683_s1 + $0x48] sm:$0xff]   ;;  %v6360_v8 = vld [vmem:[%s8683_s1 + $0x50] sm:$0xff]   ;;  %v117_v23 = vunpack.c.l.s4 %v6451_v22 }
   0x2   :  { %v6353_v1 = vld [vmem:[%s8683_s1 + $0xc0] sm:$0xff]   ;;  %6162 = vmatprep.subr.bf16.mxu0 %v6352_v0  ;;  %v6357_v5 = vld [vmem:[%s8683_s1 + $0xc8] sm:$0xff]   ;;  %v6361_v9 = vld [vmem:[%s8683_s1 + $0xd0] sm:$0xff]   ;;  %v6581_v30 = vshrl.u32 %v119_v24, 7 }
   0x3   :  { %v6354_v2 = vld [vmem:[%s8683_s1] sm:$0xff]   ;;  %6184 = vmatprep.subr.bf16.mxu1 %v6353_v1  ;;  %v6358_v6 = vld [vmem:[%s8683_s1 + $0x8] sm:$0xff]   ;;  %v6362_v10 = vld [vmem:[%s8683_s1 + $0x10] sm:$0xff]   ;;  %v118_v29 = vunpack.c.0.s8 %v117_v23 }
   0x4   :  { %v6355_v3 = vld [vmem:[%s8683_s1 + $0x80] sm:$0xff]   ;;  %6163 = vmatpush3.bf16.msra.mxu0 %v6354_v2  ;;  %v6359_v7 = vld [vmem:[%s8683_s1 + $0x88] sm:$0xff]   ;;  %v6363_v11 = vld [vmem:[%s8683_s1 + $0x90] sm:$0xff]  }
   0x5   :  { %6185 = vmatpush3.bf16.msra.mxu1 %v6355_v3  ;;  %6164 = vmatprep.subr.bf16.mxu0 %v6356_v4  ;;  %v6364_v12 = vld [vmem:[%s8683_s1 + $0x58] sm:$0xff]   ;;  %v6368_v16 = vld [vmem:[%s8683_s1 + $0x60] sm:$0xff]   ;;  %v6372_v20 = vld [vmem:[%s8683_s1 + $0x68] sm:$0xff]   ;;  %v121_v35 = vsub.s32 %v118_v29, %v6581_v30 }
   0x6   :  { %6186 = vmatprep.subr.bf16.mxu1 %v6357_v5  ;;  %v6365_v13 = vld [vmem:[%s8683_s1 + $0xd8] sm:$0xff]   ;;  %v6369_v17 = vld [vmem:[%s8683_s1 + $0xe0] sm:$0xff]   ;;  %v6373_v21 = vld [vmem:[%s8683_s1 + $0xe8] sm:$0xff]  }
   0x7   :  { %v6366_v14 = vld [vmem:[%s8683_s1 + $0x18] sm:$0xff]   ;;  %v6370_v18 = vld [vmem:[%s8683_s1 + $0x20] sm:$0xff]   ;;  %v6374_v25 = vld [vmem:[%s8683_s1 + $0x28] sm:$0xff]  }
   0x8   :  { %6165 = vmatpush3.bf16.msra.mxu0 %v6358_v6  ;;  %v6367_v15 = vld [vmem:[%s8683_s1 + $0x98] sm:$0xff]   ;;  %v6371_v19 = vld [vmem:[%s8683_s1 + $0xa0] sm:$0xff]   ;;  %v6375_v26 = vld [vmem:[%s8683_s1 + $0xa8] sm:$0xff]  }
   0x9   :  { %6187 = vmatpush3.bf16.msra.mxu1 %v6359_v7  ;;  %6166 = vmatprep.subr.bf16.mxu0 %v6360_v8  ;;  %v6376_v27 = vld [vmem:[%s8683_s1 + $0x70] sm:$0xff]   ;;  %v6380_v33 = vld [vmem:[%s8683_s1 + $0x78] sm:$0xff]   ;;  %v5488_v38 = vld.sshfl [vmem:[%s8684_s0] sm:$0x33 pattern:$0x75316420] }
   0xa   :  { %6188 = vmatprep.subr.bf16.mxu1 %v6361_v9  ;;  %v6377_v28 = vld [vmem:[%s8683_s1 + $0xf0] sm:$0xff]   ;;  %v6381_v34 = vld [vmem:[%s8683_s1 + $0xf8] sm:$0xff]   ;;  %v410_v39 = vld [vmem:[%s8685_s3] sm:$0xff]  ;;  %v115_v41 = vcombine.high %v5488_v38, %v5488_v38  ;;  %v122_v42 = vrot.slane %v5488_v38, %v121_v35 }
   0xb   :  { %v6378_v31 = vld [vmem:[%s8683_s1 + $0x30] sm:$0xff]   ;;  %v6382_v36 = vld [vmem:[%s8683_s1 + $0x38] sm:$0xff]   ;;  %v414_v40 = vld [vmem:[%s8685_s3 + $0x20] sm:$0xff] }
   0xc   :  { %6167 = vmatpush3.bf16.msra.mxu0 %v6362_v10  ;;  %v6379_v32 = vld [vmem:[%s8683_s1 + $0xb0] sm:$0xff]   ;;  %v6383_v37 = vld [vmem:[%s8683_s1 + $0xb8] sm:$0xff]   ;;  %v5522_v43 = vcombine.high %v410_v39, %v414_v40  ;;  %v411_v44 = vld [vmem:[%s8685_s3 + $0x8] sm:$0xff]  ;;  %v129_v49 = vrot.slane %v115_v41, %v121_v35  ;;  %v5521_v50 = vcombine.low %v410_v39, %v414_v40  ;;  %v130_v53 = vcombine.high %v122_v42, %v122_v42 }
   0xd   :  { %6189 = vmatpush3.bf16.msra.mxu1 %v6363_v11  ;;  %6168 = vmatprep.subr.bf16.mxu0 %v6364_v12  ;;  %v415_v45 = vld [vmem:[%s8685_s3 + $0x28] sm:$0xff]  ;;  %v418_v46 = vld [vmem:[%s8685_s3 + $0x40] sm:$0xff] }
   0xe   :  { %6190 = vmatprep.subr.bf16.mxu1 %v6365_v13  ;;  %v5524_v47 = vcombine.high %v411_v44, %v415_v45  ;;  %v422_v48 = vld [vmem:[%s8685_s3 + $0x60] sm:$0xff]  ;;  %v419_v51 = vld [vmem:[%s8685_s3 + $0x48] sm:$0xff]  ;;  %360 = vmatprep.mubr.bf16.mxu0 %v129_v49  ;;  %v131_v55 = vcombine.high %v129_v49, %v129_v49  ;;  %v5523_v56 = vcombine.low %v411_v44, %v415_v45  ;;  %v412_v45 = vld [vmem:[%s8685_s3 + $0x10] sm:$0xff] }
   0xf   :  { %v423_v52 = vld [vmem:[%s8685_s3 + $0x68] sm:$0xff]  ;;  %v5530_v54 = vcombine.high %v418_v46, %v422_v48  ;;  %v426_v57 = vld [vmem:[%s8685_s3 + $0x80] sm:$0xff]  ;;  %v5529_v60 = vcombine.low %v418_v46, %v422_v48  ;;  %v416_v46 = vld [vmem:[%s8685_s3 + $0x30] sm:$0xff]  ;;  %v6452_v48 = vmov 0  }
  0x10   :  { %6169 = vmatpush3.bf16.msra.mxu0 %v6366_v14  ;;  %v430_v58 = vld [vmem:[%s8685_s3 + $0xa0] sm:$0xff]  ;;  %v5532_v59 = vcombine.high %v419_v51, %v423_v52  ;;  %400 = vmatprep.mubr.bf16.mxu1 %v131_v55  ;;  %v427_v61 = vld [vmem:[%s8685_s3 + $0x88] sm:$0xff]  ;;  %v5531_v0 = vcombine.low %v419_v51, %v423_v52  ;;  %v5525_v49 = vcombine.low %v412_v45, %v416_v46  ;;  %v417_v51 = vld [vmem:[%s8685_s3 + $0x38] sm:$0xff] }
  0x11   :  { %6191 = vmatpush3.bf16.msra.mxu1 %v6367_v15  ;;  %6170 = vmatprep.subr.bf16.mxu0 %v6368_v16  ;;  %v431_v62 = vld [vmem:[%s8685_s3 + $0xa8] sm:$0xff]  ;;  %v5538_v63 = vcombine.high %v426_v57, %v430_v58  ;;  %v5537_v2 = vcombine.low %v426_v57, %v430_v58  ;;  %v434_v4 = vld [vmem:[%s8685_s3 + $0xc0] sm:$0xff] }
  0x12   :  { %6192 = vmatprep.subr.bf16.mxu1 %v6369_v17  ;;  %v5540_v1 = vcombine.high %v427_v61, %v431_v62  ;;  %v5539_v3 = vcombine.low %v427_v61, %v431_v62  ;;  %v438_v5 = vld [vmem:[%s8685_s3 + $0xe0] sm:$0xff]  ;;  %v435_v6 = vld [vmem:[%s8685_s3 + $0xc8] sm:$0xff] }
  0x13   :  { %v5546_v7 = vcombine.high %v434_v4, %v438_v5  ;;  %v439_v8 = vld [vmem:[%s8685_s3 + $0xe8] sm:$0xff]  ;;  %v5545_v9 = vcombine.low %v434_v4, %v438_v5  ;;  %v442_v12 = vld [vmem:[%s8685_s3 + $0x100] sm:$0xff]  ;;  %v424_v4 = vld [vmem:[%s8685_s3 + $0x70] sm:$0xff] }
  0x14   :  { %6171 = vmatpush3.bf16.msra.mxu0 %v6370_v18  ;;  %v5547_v10 = vcombine.low %v435_v6, %v439_v8  ;;  %v5548_v11 = vcombine.high %v435_v6, %v439_v8  ;;  %v446_v13 = vld [vmem:[%s8685_s3 + $0x120] sm:$0xff]  ;;  %v443_v15 = vld [vmem:[%s8685_s3 + $0x108] sm:$0xff]  ;;  %v421_v5 = vld [vmem:[%s8685_s3 + $0x58] sm:$0xff] }
  0x15   :  { %6193 = vmatpush3.bf16.msra.mxu1 %v6371_v19  ;;  %6172 = vmatprep.subr.bf16.mxu0 %v6372_v20  ;;  %v5554_v14 = vcombine.high %v442_v12, %v446_v13  ;;  %v447_v16 = vld [vmem:[%s8685_s3 + $0x128] sm:$0xff]  ;;  %v5553_v17 = vcombine.low %v442_v12, %v446_v13  ;;  %v450_v20 = vld [vmem:[%s8685_s3 + $0x140] sm:$0xff]  ;;  %v425_v6 = vld [vmem:[%s8685_s3 + $0x78] sm:$0xff] }
  0x16   :  { %6194 = vmatprep.subr.bf16.mxu1 %v6373_v21  ;;  %v5555_v18 = vcombine.low %v443_v15, %v447_v16  ;;  %v5556_v19 = vcombine.high %v443_v15, %v447_v16  ;;  %v454_v21 = vld [vmem:[%s8685_s3 + $0x160] sm:$0xff]  ;;  %v451_v22 = vld [vmem:[%s8685_s3 + $0x148] sm:$0xff]  ;;  %v432_v12 = vld [vmem:[%s8685_s3 + $0xb0] sm:$0xff]  ;;  %v5535_v16 = vcombine.low %v421_v5, %v425_v6 }
  0x17   :  { %v5562_v23 = vcombine.high %v450_v20, %v454_v21  ;;  %v455_v24 = vld [vmem:[%s8685_s3 + $0x168] sm:$0xff]  ;;  %v462_v29 = vld [vmem:[%s8685_s3 + $0x1a0] sm:$0xff]  ;;  %v429_v13 = vld [vmem:[%s8685_s3 + $0x98] sm:$0xff] }
  0x18   :  { %6173 = vmatpush3.bf16.msra.mxu0 %v6374_v25  ;;  %v5561_v25 = vcombine.low %v450_v20, %v454_v21  ;;  %v470_v38 = vld [vmem:[%s8685_s3 + $0x1e0] sm:$0xff]  ;;  %v467_v39 = vld [vmem:[%s8685_s3 + $0x1c8] sm:$0xff]  ;;  %v440_v20 = vld [vmem:[%s8685_s3 + $0xf0] sm:$0xff] }
  0x19   :  { %6195 = vmatpush3.bf16.msra.mxu1 %v6375_v26  ;;  %6174 = vmatprep.subr.bf16.mxu0 %v6376_v27  ;;  %v5563_v26 = vcombine.low %v451_v22, %v455_v24  ;;  %v5564_v27 = vcombine.high %v451_v22, %v455_v24  ;;  %v471_v41 = vld [vmem:[%s8685_s3 + $0x1e8] sm:$0xff]  ;;  %v5487_v55 = vld [vmem:[%s8686_s2] ss:$0 sm:$0xff]  ;;  %v437_v21 = vld [vmem:[%s8685_s3 + $0xd8] sm:$0xff] }
  0x1a   :  { %6196 = vmatprep.subr.bf16.mxu1 %v6377_v28  ;;  %v458_v28 = vld [vmem:[%s8685_s3 + $0x180] sm:$0xff]  ;;  %v5580_v44 = vcombine.high %v467_v39, %v471_v41  ;;  %v441_v22 = vld [vmem:[%s8685_s3 + $0xf8] sm:$0xff] }
  0x1c   :  { %6175 = vmatpush3.bf16.msra.mxu0 %v6378_v31  ;;  %v459_v31 = vld [vmem:[%s8685_s3 + $0x188] sm:$0xff] }
  0x1d   :  { %6197 = vmatpush3.bf16.msra.mxu1 %v6379_v32  ;;  %6176 = vmatprep.subr.bf16.mxu0 %v6380_v33  ;;  %v5570_v32 = vcombine.high %v458_v28, %v462_v29  ;;  %v463_v33 = vld [vmem:[%s8685_s3 + $0x1a8] sm:$0xff] }
  0x1e   :  { %6198 = vmatprep.subr.bf16.mxu1 %v6381_v34  ;;  %v5569_v34 = vcombine.low %v458_v28, %v462_v29  ;;  %v5571_v35 = vcombine.low %v459_v31, %v463_v33  ;;  %v448_v28 = vld [vmem:[%s8685_s3 + $0x130] sm:$0xff]  ;;  %v445_v29 = vld [vmem:[%s8685_s3 + $0x118] sm:$0xff] }
  0x20   :  { %6177 = vmatpush3.bf16.msra.mxu0 %v6382_v36  ;;  %v5572_v36 = vcombine.high %v459_v31, %v463_v33  ;;  %v449_v31 = vld [vmem:[%s8685_s3 + $0x138] sm:$0xff]  ;;  %v5551_v33 = vcombine.low %v437_v21, %v441_v22 }
  0x21   :  { %6199 = vmatpush3.bf16.msra.mxu1 %v6383_v37  ;;  %836 = vmatprep.subr.bf16.mxu0 %v5522_v43  ;;  %v466_v37 = vld [vmem:[%s8685_s3 + $0x1c0] sm:$0xff]  ;;  %v5579_v43 = vcombine.low %v467_v39, %v471_v41  ;;  %v457_v39 = vld [vmem:[%s8685_s3 + $0x178] sm:$0xff]  ;;  %v5559_v41 = vcombine.low %v445_v29, %v449_v31 }
  0x22   :  { %877 = vmatprep.subr.bf16.mxu1 %v5524_v47  ;;  %v5578_v40 = vcombine.high %v466_v37, %v470_v38  ;;  %v413_v47 = vld [vmem:[%s8685_s3 + $0x18] sm:$0xff] }
  0x23   :  { %361 = vmatmul.mubr.bf16.vlgmr.msra.gmra.mrb[0].mxu0 %v122_v42  ;;  %v5577_v42 = vcombine.low %v466_v37, %v470_v38  ;;  %v5527_v52 = vcombine.low %v413_v47, %v417_v51  ;;  %v456_v37 = vld [vmem:[%s8685_s3 + $0x170] sm:$0xff]  ;;  %v453_v38 = vld [vmem:[%s8685_s3 + $0x158] sm:$0xff] }
  0x24   :  { %837 = vmatpush1.bf16.msra.mxu0 %v5521_v50  ;;  %401 = vmatmul.mubr.bf16.vlgmr.msra.gmra.mrb[0].mxu1 %v130_v53  ;;  %v5526_v50 = vcombine.high %v412_v45, %v416_v46  ;;  %v5528_v53 = vcombine.high %v413_v47, %v417_v51  ;;  %v464_v45 = vld [vmem:[%s8685_s3 + $0x1b0] sm:$0xff]  ;;  %v461_v46 = vld [vmem:[%s8685_s3 + $0x198] sm:$0xff] }
  0x25   :  { %838 = vmatprep.subr.bf16.mxu0 %v5530_v54  ;;  %878 = vmatpush1.bf16.msra.mxu1 %v5523_v56  ;;  %v465_v47 = vld [vmem:[%s8685_s3 + $0x1b8] sm:$0xff] }
  0x26   :  { %879 = vmatprep.subr.bf16.mxu1 %v5532_v59  ;;  %868 = vmatprep.mubr.bf16.mxu0 %v6452_v48  ;;  %v5576_v51 = vcombine.high %v461_v46, %v465_v47 }
  0x27   :  { %909 = vmatprep.mubr.bf16.mxu1 %v6452_v48 }
  0x28   :  { %839 = vmatpush1.bf16.msra.mxu0 %v5529_v60 }
  0x29   :  { %840 = vmatprep.subr.bf16.mxu0 %v5538_v63  ;;  %880 = vmatpush1.bf16.msra.mxu1 %v5531_v0 }
  0x2a   :  { %881 = vmatprep.subr.bf16.mxu1 %v5540_v1 }
  0x2c   :  { %841 = vmatpush1.bf16.msra.mxu0 %v5537_v2 }
  0x2d   :  { %882 = vmatpush1.bf16.msra.mxu1 %v5539_v3  ;;  %842 = vmatprep.subr.bf16.mxu0 %v5546_v7  ;;  %v420_v3 = vld [vmem:[%s8685_s3 + $0x50] sm:$0xff] }
  0x2e   :  { %883 = vmatprep.subr.bf16.mxu1 %v5548_v11  ;;  %v428_v11 = vld [vmem:[%s8685_s3 + $0x90] sm:$0xff]  ;;  %v5533_v15 = vcombine.low %v420_v3, %v424_v4 }
  0x30   :  { %843 = vmatpush1.bf16.msra.mxu0 %v5545_v9  ;;  %v5534_v9 = vcombine.high %v420_v3, %v424_v4  ;;  %v1024_v4 = vld [vmem:[%s8687_s5 + $0x40] sm:$0xff] }
  0x31   :  { %884 = vmatpush1.bf16.msra.mxu1 %v5547_v10  ;;  %844 = vmatprep.subr.bf16.mxu0 %v5554_v14  ;;  %v5536_v10 = vcombine.high %v421_v5, %v425_v6  ;;  %v433_v14 = vld [vmem:[%s8685_s3 + $0xb8] sm:$0xff]  ;;  %v1028_v5 = vld [vmem:[%s8687_s5 + $0x60] sm:$0xff]  ;;  %v1025_v6 = vld [vmem:[%s8687_s5 + $0x48] sm:$0xff] }
  0x32   :  { %885 = vmatprep.subr.bf16.mxu1 %v5556_v19  ;;  %v436_v19 = vld [vmem:[%s8685_s3 + $0xd0] sm:$0xff]  ;;  %v5543_v24 = vcombine.low %v429_v13, %v433_v14 }
  0x34   :  { %845 = vmatpush1.bf16.msra.mxu0 %v5553_v17  ;;  %v5542_v17 = vcombine.high %v428_v11, %v432_v12 }
  0x35   :  { %886 = vmatpush1.bf16.msra.mxu1 %v5555_v18  ;;  %846 = vmatprep.subr.bf16.mxu0 %v5562_v23  ;;  %v5544_v18 = vcombine.high %v429_v13, %v433_v14  ;;  %v5541_v23 = vcombine.low %v428_v11, %v432_v12  ;;  %v5594_v11 = vcombine.high %v1024_v4, %v1028_v5  ;;  %v1032_v13 = vld [vmem:[%s8687_s5 + $0x80] sm:$0xff] }
  0x36   :  { %887 = vmatprep.subr.bf16.mxu1 %v5564_v27  ;;  %v444_v27 = vld [vmem:[%s8685_s3 + $0x110] sm:$0xff]  ;;  %v1036_v14 = vld [vmem:[%s8687_s5 + $0xa0] sm:$0xff] }
  0x38   :  { %847 = vmatpush1.bf16.msra.mxu0 %v5561_v25  ;;  %v5550_v25 = vcombine.high %v436_v19, %v440_v20 }
  0x39   :  { %888 = vmatpush1.bf16.msra.mxu1 %v5563_v26  ;;  %848 = vmatprep.subr.bf16.mxu0 %v5570_v32  ;;  %v5552_v26 = vcombine.high %v437_v21, %v441_v22  ;;  %v5549_v32 = vcombine.low %v436_v19, %v440_v20  ;;  %v5602_v19 = vcombine.high %v1032_v13, %v1036_v14  ;;  %v1040_v21 = vld [vmem:[%s8687_s5 + $0xc0] sm:$0xff] }
  0x3a   :  { %889 = vmatprep.subr.bf16.mxu1 %v5572_v36  ;;  %v452_v36 = vld [vmem:[%s8685_s3 + $0x150] sm:$0xff]  ;;  %v1044_v22 = vld [vmem:[%s8687_s5 + $0xe0] sm:$0xff] }
  0x3c   :  { %849 = vmatpush1.bf16.msra.mxu0 %v5569_v34  ;;  %v5558_v34 = vcombine.high %v444_v27, %v448_v28 }
  0x3d   :  { %890 = vmatpush1.bf16.msra.mxu1 %v5571_v35  ;;  %850 = vmatprep.subr.bf16.mxu0 %v5578_v40  ;;  %v5560_v35 = vcombine.high %v445_v29, %v449_v31  ;;  %v5557_v40 = vcombine.low %v444_v27, %v448_v28  ;;  %v1048_v28 = vld [vmem:[%s8687_s5 + $0x100] sm:$0xff]  ;;  %v1049_v31 = vld [vmem:[%s8687_s5 + $0x108] sm:$0xff] }
  0x3e   :  { %891 = vmatprep.subr.bf16.mxu1 %v5580_v44  ;;  %v460_v44 = vld [vmem:[%s8685_s3 + $0x190] sm:$0xff]  ;;  %v1052_v29 = vld [vmem:[%s8687_s5 + $0x120] sm:$0xff] }
  0x40   :  { %851 = vmatpush1.bf16.msra.mxu0 %v5577_v42  ;;  %v5566_v42 = vcombine.high %v452_v36, %v456_v37 }
  0x41   :  { %892 = vmatpush1.bf16.msra.mxu1 %v5579_v43  ;;  %918 = vmatprep.subr.bf16.mxu0 %v5526_v50  ;;  %v5568_v43 = vcombine.high %v453_v38, %v457_v39  ;;  %v5574_v50 = vcombine.high %v460_v44, %v464_v45 }
  0x42   :  { %959 = vmatprep.subr.bf16.mxu1 %v5528_v53  ;;  %v472_v53 = vld [vmem:[%s8685_s3 + $0x1f0] sm:$0xff] }
  0xf6   :  { %v6178_v54 = vpop.f32.mrb[0].mxu0 }
  0xf7   :  { %v6179_v56 = vpop.f32.mrb[1].mxu0  ;;  %v6200_v57 = vpop.f32.mrb[0].mxu1 }
  0xf8   :  { %v6180_v58 = vadd.f32 %v6179_v56, %v6178_v54  ;;  %v6181_v59 = vpop.f32.mrb[2].mxu0  ;;  %v6201_v60 = vpop.f32.mrb[1].mxu1  ;;  %v469_v54 = vld [vmem:[%s8685_s3 + $0x1d8] sm:$0xff]  ;;  %v5573_v56 = vcombine.low %v460_v44, %v464_v45  ;;  %v1064_v45 = vld [vmem:[%s8687_s5 + $0x180] sm:$0xff] }
  0xf9   :  { %v6182_v61 = vpop.f32.mrb[3].mxu0  ;;  %v6202_v63 = vadd.f32 %v6201_v60, %v6200_v57  ;;  %v6203_v0 = vpop.f32.mrb[2].mxu1  ;;  %v5575_v57 = vcombine.low %v461_v46, %v465_v47  ;;  %v1016_v60 = vld [vmem:[%s8687_s5] sm:$0xff]  ;;  %v1065_v47 = vld [vmem:[%s8687_s5 + $0x188] sm:$0xff] }
  0xfa   :  { %v363_v62 = vadd.f32 %v6180_v58, %v5487_v55  ;;  %v6204_v1 = vpop.f32.mrb[3].mxu1  ;;  %v473_v55 = vld [vmem:[%s8685_s3 + $0x1f8] sm:$0xff]  ;;  %v1020_v61 = vld [vmem:[%s8687_s5 + $0x20] sm:$0xff] }
  0xfb   :  { %v5584_v59 = vcombine.high %v469_v54, %v473_v55  ;;  %v5583_v1 = vcombine.low %v469_v54, %v473_v55  ;;  %v1068_v46 = vld [vmem:[%s8687_s5 + $0x1a0] sm:$0xff]  ;;  %v1073_v55 = vld [vmem:[%s8687_s5 + $0x1c8] sm:$0xff] }
  0xfc   :  { %v403_v2 = vadd.f32 %v6202_v63, %v363_v62  ;;  %v1017_v62 = vld [vmem:[%s8687_s5 + $0x8] sm:$0xff]  ;;  %v1076_v54 = vld [vmem:[%s8687_s5 + $0x1e0] sm:$0xff] }
  0xfd   :  { %v1021_v63 = vld [vmem:[%s8687_s5 + $0x28] sm:$0xff] }
  0xfe   :  { %6448 = vtanh.f32 %v403_v2  ;;  %v5586_v2 = vcombine.high %v1016_v60, %v1020_v61  ;;  %v5588_v3 = vcombine.high %v1017_v62, %v1021_v63 }
 0x108   :  { %v6449_v7 = vpop.eup %6448 }
 0x109   :  { %v6728_v8 = vpack.c.bf16 %v6449_v7, %v6449_v7  ;;  %v1029_v7 = vld [vmem:[%s8687_s5 + $0x68] sm:$0xff] }
 0x10a   :  { %v5596_v12 = vcombine.high %v1025_v6, %v1029_v7 }
 0x10b   :  { %869 = vmatmul.mubr.bf16.vlgmr.msra.gmra.mrb[4].mxu0 %v6728_v8  ;;  %910 = vmatmul.mubr.bf16.vlgmr.msra.gmra.mrb[4].mxu1 %v6728_v8 }
 0x10c   :  { %919 = vmatpush1.bf16.msra.mxu0 %v5525_v49  ;;  %960 = vmatpush1.bf16.msra.mxu1 %v5527_v52  ;;  %v5567_v49 = vcombine.low %v453_v38, %v457_v39  ;;  %v468_v52 = vld [vmem:[%s8685_s3 + $0x1d0] sm:$0xff]  ;;  %v1060_v38 = vld [vmem:[%s8687_s5 + $0x160] sm:$0xff]  ;;  %v1057_v39 = vld [vmem:[%s8687_s5 + $0x148] sm:$0xff] }
 0x10d   :  { %920 = vmatprep.subr.bf16.mxu0 %v5534_v9  ;;  %961 = vmatprep.subr.bf16.mxu1 %v5536_v10  ;;  %v5582_v58 = vcombine.high %v468_v52, %v472_v53  ;;  %v5581_v0 = vcombine.low %v468_v52, %v472_v53  ;;  %v5585_v9 = vcombine.low %v1016_v60, %v1020_v61  ;;  %v1072_v53 = vld [vmem:[%s8687_s5 + $0x1c0] sm:$0xff] }
 0x10e   :  { %950 = vmatprep.mubr.bf16.mxu0 %v6452_v48  ;;  %991 = vmatprep.mubr.bf16.mxu1 %v6452_v48  ;;  %v5565_v48 = vcombine.low %v452_v36, %v456_v37  ;;  %v5587_v10 = vcombine.low %v1017_v62, %v1021_v63  ;;  %v1056_v37 = vld [vmem:[%s8687_s5 + $0x140] sm:$0xff]  ;;  %v1081_v63 = vld [vmem:[%s8687_s5 + $0x208] sm:$0xff] }
 0x10f   :  { %v1080_v61 = vld [vmem:[%s8687_s5 + $0x200] sm:$0xff] }
 0x110   :  { %921 = vmatpush1.bf16.msra.mxu0 %v5533_v15  ;;  %962 = vmatpush1.bf16.msra.mxu1 %v5535_v16  ;;  %v1033_v15 = vld [vmem:[%s8687_s5 + $0x88] sm:$0xff]  ;;  %v1084_v62 = vld [vmem:[%s8687_s5 + $0x220] sm:$0xff] }
 0x111   :  { %922 = vmatprep.subr.bf16.mxu0 %v5542_v17  ;;  %963 = vmatprep.subr.bf16.mxu1 %v5544_v18  ;;  %v1037_v16 = vld [vmem:[%s8687_s5 + $0xa8] sm:$0xff]  ;;  %v5593_v17 = vcombine.low %v1024_v4, %v1028_v5  ;;  %v5595_v18 = vcombine.low %v1025_v6, %v1029_v7  ;;  %v1088_v5 = vld [vmem:[%s8687_s5 + $0x240] sm:$0xff] }
 0x112   :  { %v5604_v20 = vcombine.high %v1033_v15, %v1037_v16  ;;  %v1092_v6 = vld [vmem:[%s8687_s5 + $0x260] sm:$0xff]  ;;  %v1089_v7 = vld [vmem:[%s8687_s5 + $0x248] sm:$0xff] }
 0x114   :  { %923 = vmatpush1.bf16.msra.mxu0 %v5541_v23  ;;  %964 = vmatpush1.bf16.msra.mxu1 %v5543_v24  ;;  %v1045_v23 = vld [vmem:[%s8687_s5 + $0xe8] sm:$0xff]  ;;  %v5601_v24 = vcombine.low %v1032_v13, %v1036_v14  ;;  %v1096_v14 = vld [vmem:[%s8687_s5 + $0x280] sm:$0xff] }
 0x115   :  { %924 = vmatprep.subr.bf16.mxu0 %v5550_v25  ;;  %965 = vmatprep.subr.bf16.mxu1 %v5552_v26  ;;  %v5603_v25 = vcombine.low %v1033_v15, %v1037_v16  ;;  %v5610_v26 = vcombine.high %v1040_v21, %v1044_v22  ;;  %v1100_v15 = vld [vmem:[%s8687_s5 + $0x2a0] sm:$0xff]  ;;  %v1097_v16 = vld [vmem:[%s8687_s5 + $0x288] sm:$0xff] }
 0x118   :  { %925 = vmatpush1.bf16.msra.mxu0 %v5549_v32  ;;  %966 = vmatpush1.bf16.msra.mxu1 %v5551_v33  ;;  %v1053_v32 = vld [vmem:[%s8687_s5 + $0x128] sm:$0xff]  ;;  %v5609_v33 = vcombine.low %v1040_v21, %v1044_v22  ;;  %v1104_v22 = vld [vmem:[%s8687_s5 + $0x2c0] sm:$0xff] }
 0x119   :  { %926 = vmatprep.subr.bf16.mxu0 %v5558_v34  ;;  %967 = vmatprep.subr.bf16.mxu1 %v5560_v35  ;;  %v5618_v35 = vcombine.high %v1048_v28, %v1052_v29  ;;  %v5620_v36 = vcombine.high %v1049_v31, %v1053_v32 }
 0x11c   :  { %927 = vmatpush1.bf16.msra.mxu0 %v5557_v40  ;;  %968 = vmatpush1.bf16.msra.mxu1 %v5559_v41  ;;  %v1061_v40 = vld [vmem:[%s8687_s5 + $0x168] sm:$0xff]  ;;  %v5617_v41 = vcombine.low %v1048_v28, %v1052_v29  ;;  %v1112_v29 = vld [vmem:[%s8687_s5 + $0x300] sm:$0xff] }
 0x11d   :  { %928 = vmatprep.subr.bf16.mxu0 %v5566_v42  ;;  %969 = vmatprep.subr.bf16.mxu1 %v5568_v43  ;;  %v5619_v42 = vcombine.low %v1049_v31, %v1053_v32  ;;  %v5626_v43 = vcombine.high %v1056_v37, %v1060_v38  ;;  %v5628_v44 = vcombine.high %v1057_v39, %v1061_v40  ;;  %v1116_v31 = vld [vmem:[%s8687_s5 + $0x320] sm:$0xff]  ;;  %v1113_v32 = vld [vmem:[%s8687_s5 + $0x308] sm:$0xff] }
 0x120   :  { %929 = vmatpush1.bf16.msra.mxu0 %v5565_v48  ;;  %970 = vmatpush1.bf16.msra.mxu1 %v5567_v49  ;;  %v1069_v48 = vld [vmem:[%s8687_s5 + $0x1a8] sm:$0xff]  ;;  %v5625_v49 = vcombine.low %v1056_v37, %v1060_v38  ;;  %v1120_v38 = vld [vmem:[%s8687_s5 + $0x340] sm:$0xff] }
 0x121   :  { %930 = vmatprep.subr.bf16.mxu0 %v5574_v50  ;;  %971 = vmatprep.subr.bf16.mxu1 %v5576_v51  ;;  %v5627_v50 = vcombine.low %v1057_v39, %v1061_v40  ;;  %v5634_v51 = vcombine.high %v1064_v45, %v1068_v46  ;;  %v5636_v52 = vcombine.high %v1065_v47, %v1069_v48  ;;  %v1124_v39 = vld [vmem:[%s8687_s5 + $0x360] sm:$0xff]  ;;  %v1121_v40 = vld [vmem:[%s8687_s5 + $0x348] sm:$0xff] }
 0x124   :  { %931 = vmatpush1.bf16.msra.mxu0 %v5573_v56  ;;  %972 = vmatpush1.bf16.msra.mxu1 %v5575_v57  ;;  %v1077_v56 = vld [vmem:[%s8687_s5 + $0x1e8] sm:$0xff]  ;;  %v5633_v57 = vcombine.low %v1064_v45, %v1068_v46  ;;  %v5689_v46 = vcombine.low %v1120_v38, %v1124_v39 }
 0x125   :  { %932 = vmatprep.subr.bf16.mxu0 %v5582_v58  ;;  %973 = vmatprep.subr.bf16.mxu1 %v5584_v59  ;;  %v5635_v58 = vcombine.low %v1065_v47, %v1069_v48  ;;  %v5642_v59 = vcombine.high %v1072_v53, %v1076_v54  ;;  %v5644_v60 = vcombine.high %v1073_v55, %v1077_v56  ;;  %v1128_v48 = vld [vmem:[%s8687_s5 + $0x380] sm:$0xff] }
 0x128   :  { %933 = vmatpush1.bf16.msra.mxu0 %v5581_v0  ;;  %974 = vmatpush1.bf16.msra.mxu1 %v5583_v1  ;;  %v1085_v0 = vld [vmem:[%s8687_s5 + $0x228] sm:$0xff]  ;;  %v5641_v1 = vcombine.low %v1072_v53, %v1076_v54 }
 0x129   :  { %4130 = vmatprep.subr.bf16.mxu0 %v5586_v2  ;;  %4294 = vmatprep.subr.bf16.mxu1 %v5588_v3  ;;  %v5643_v2 = vcombine.low %v1073_v55, %v1077_v56  ;;  %v5650_v3 = vcombine.high %v1080_v61, %v1084_v62  ;;  %v5652_v4 = vcombine.high %v1081_v63, %v1085_v0  ;;  %v1136_v56 = vld [vmem:[%s8687_s5 + $0x3c0] sm:$0xff] }
 0x12b   :  { %951 = vmatmul.mubr.bf16.vlgmr.msra.gmra.mrb[8].mxu0 %v6728_v8  ;;  %992 = vmatmul.mubr.bf16.vlgmr.msra.gmra.mrb[8].mxu1 %v6728_v8  ;;  %v1041_v8 = vld [vmem:[%s8687_s5 + $0xc8] sm:$0xff] }
 0x12c   :  { %4131 = vmatpush1.bf16.msra.mxu0 %v5585_v9  ;;  %4295 = vmatpush1.bf16.msra.mxu1 %v5587_v10  ;;  %v5612_v27 = vcombine.high %v1041_v8, %v1045_v23  ;;  %v5611_v34 = vcombine.low %v1041_v8, %v1045_v23  ;;  %v1093_v9 = vld [vmem:[%s8687_s5 + $0x268] sm:$0xff]  ;;  %v5649_v10 = vcombine.low %v1080_v61, %v1084_v62  ;;  %v1108_v8 = vld [vmem:[%s8687_s5 + $0x2e0] sm:$0xff] }
 0x12d   :  { %4132 = vmatprep.subr.bf16.mxu0 %v5594_v11  ;;  %4296 = vmatprep.subr.bf16.mxu1 %v5596_v12  ;;  %v5651_v11 = vcombine.low %v1081_v63, %v1085_v0  ;;  %v5658_v12 = vcombine.high %v1088_v5, %v1092_v6  ;;  %v5660_v13 = vcombine.high %v1089_v7, %v1093_v9  ;;  %v1105_v23 = vld [vmem:[%s8687_s5 + $0x2c8] sm:$0xff]  ;;  %v1144_v0 = vld [vmem:[%s8687_s5 + $0x400] sm:$0xff] }
 0x130   :  { %4133 = vmatpush1.bf16.msra.mxu0 %v5593_v17  ;;  %4297 = vmatpush1.bf16.msra.mxu1 %v5595_v18  ;;  %v1101_v17 = vld [vmem:[%s8687_s5 + $0x2a8] sm:$0xff]  ;;  %v5657_v18 = vcombine.low %v1088_v5, %v1092_v6 }
 0x131   :  { %4134 = vmatprep.subr.bf16.mxu0 %v5602_v19  ;;  %4298 = vmatprep.subr.bf16.mxu1 %v5604_v20  ;;  %v5659_v19 = vcombine.low %v1089_v7, %v1093_v9  ;;  %v5666_v20 = vcombine.high %v1096_v14, %v1100_v15  ;;  %v5668_v21 = vcombine.high %v1097_v16, %v1101_v17  ;;  %v1149_v5 = vld [vmem:[%s8687_s5 + $0x428] sm:$0xff]  ;;  %v478_v9 = vsub.s32 0, %v6581_v30 }
 0x134   :  { %4135 = vmatpush1.bf16.msra.mxu0 %v5601_v24  ;;  %4299 = vmatpush1.bf16.msra.mxu1 %v5603_v25  ;;  %v1109_v24 = vld [vmem:[%s8687_s5 + $0x2e8] sm:$0xff]  ;;  %v5665_v25 = vcombine.low %v1096_v14, %v1100_v15 }
 0x135   :  { %4136 = vmatprep.subr.bf16.mxu0 %v5610_v26  ;;  %4300 = vmatprep.subr.bf16.mxu1 %v5612_v27  ;;  %v5667_v26 = vcombine.low %v1097_v16, %v1101_v17  ;;  %v5674_v27 = vcombine.high %v1104_v22, %v1108_v8  ;;  %v5676_v28 = vcombine.high %v1105_v23, %v1109_v24 }
 0x138   :  { %4137 = vmatpush1.bf16.msra.mxu0 %v5609_v33  ;;  %4301 = vmatpush1.bf16.msra.mxu1 %v5611_v34  ;;  %v1117_v33 = vld [vmem:[%s8687_s5 + $0x328] sm:$0xff]  ;;  %v5673_v34 = vcombine.low %v1104_v22, %v1108_v8 }
 0x139   :  { %4138 = vmatprep.subr.bf16.mxu0 %v5618_v35  ;;  %4302 = vmatprep.subr.bf16.mxu1 %v5620_v36  ;;  %v5675_v35 = vcombine.low %v1105_v23, %v1109_v24  ;;  %v5682_v36 = vcombine.high %v1112_v29, %v1116_v31  ;;  %v5684_v37 = vcombine.high %v1113_v32, %v1117_v33 }
 0x13c   :  { %4139 = vmatpush1.bf16.msra.mxu0 %v5617_v41  ;;  %4303 = vmatpush1.bf16.msra.mxu1 %v5619_v42  ;;  %v1125_v41 = vld [vmem:[%s8687_s5 + $0x368] sm:$0xff]  ;;  %v5681_v42 = vcombine.low %v1112_v29, %v1116_v31  ;;  %v1156_v31 = vld [vmem:[%s8687_s5 + $0x460] sm:$0xff] }
 0x13d   :  { %4140 = vmatprep.subr.bf16.mxu0 %v5626_v43  ;;  %4304 = vmatprep.subr.bf16.mxu1 %v5628_v44  ;;  %v5683_v43 = vcombine.low %v1113_v32, %v1117_v33  ;;  %v5690_v44 = vcombine.high %v1120_v38, %v1124_v39  ;;  %v5692_v45 = vcombine.high %v1121_v40, %v1125_v41  ;;  %v1153_v32 = vld [vmem:[%s8687_s5 + $0x448] sm:$0xff]  ;;  %v1164_v39 = vld [vmem:[%s8687_s5 + $0x4a0] sm:$0xff] }
 0x13e   :  { %v5691_v47 = vcombine.low %v1121_v40, %v1125_v41  ;;  %v1157_v33 = vld [vmem:[%s8687_s5 + $0x468] sm:$0xff] }
 0x13f   :  { %v5724_v38 = vcombine.high %v1153_v32, %v1157_v33  ;;  %v1161_v40 = vld [vmem:[%s8687_s5 + $0x488] sm:$0xff] }
 0x140   :  { %4141 = vmatpush1.bf16.msra.mxu0 %v5625_v49  ;;  %4305 = vmatpush1.bf16.msra.mxu1 %v5627_v50  ;;  %v1132_v49 = vld [vmem:[%s8687_s5 + $0x3a0] sm:$0xff]  ;;  %v1129_v50 = vld [vmem:[%s8687_s5 + $0x388] sm:$0xff] }
 0x141   :  { %4142 = vmatprep.subr.bf16.mxu0 %v5634_v51  ;;  %4306 = vmatprep.subr.bf16.mxu1 %v5636_v52  ;;  %v5698_v51 = vcombine.high %v1128_v48, %v1132_v49  ;;  %v1133_v52 = vld [vmem:[%s8687_s5 + $0x3a8] sm:$0xff]  ;;  %v5697_v54 = vcombine.low %v1128_v48, %v1132_v49  ;;  %v1172_v48 = vld [vmem:[%s8687_s5 + $0x4e0] sm:$0xff] }
 0x142   :  { %v5700_v53 = vcombine.high %v1129_v50, %v1133_v52  ;;  %v5699_v55 = vcombine.low %v1129_v50, %v1133_v52  ;;  %v1165_v41 = vld [vmem:[%s8687_s5 + $0x4a8] sm:$0xff] }
 0x143   :  { %v1169_v49 = vld [vmem:[%s8687_s5 + $0x4c8] sm:$0xff]  ;;  %v5731_v52 = vcombine.low %v1161_v40, %v1165_v41 }
 0x144   :  { %4143 = vmatpush1.bf16.msra.mxu0 %v5633_v57  ;;  %4307 = vmatpush1.bf16.msra.mxu1 %v5635_v58  ;;  %v1140_v57 = vld [vmem:[%s8687_s5 + $0x3e0] sm:$0xff]  ;;  %v1137_v58 = vld [vmem:[%s8687_s5 + $0x3c8] sm:$0xff] }
 0x145   :  { %4144 = vmatprep.subr.bf16.mxu0 %v5642_v59  ;;  %4308 = vmatprep.subr.bf16.mxu1 %v5644_v60  ;;  %v5706_v59 = vcombine.high %v1136_v56, %v1140_v57  ;;  %v1141_v60 = vld [vmem:[%s8687_s5 + $0x3e8] sm:$0xff]  ;;  %v5705_v62 = vcombine.low %v1136_v56, %v1140_v57  ;;  %v1180_v56 = vld [vmem:[%s8687_s5 + $0x520] sm:$0xff] }
 0x146   :  { %v5708_v61 = vcombine.high %v1137_v58, %v1141_v60  ;;  %v5707_v63 = vcombine.low %v1137_v58, %v1141_v60  ;;  %v1173_v50 = vld [vmem:[%s8687_s5 + $0x4e8] sm:$0xff] }
 0x147   :  { %v1177_v57 = vld [vmem:[%s8687_s5 + $0x508] sm:$0xff]  ;;  %v5739_v60 = vcombine.low %v1169_v49, %v1173_v50 }
 0x148   :  { %4145 = vmatpush1.bf16.msra.mxu0 %v5641_v1  ;;  %4309 = vmatpush1.bf16.msra.mxu1 %v5643_v2  ;;  %v1148_v1 = vld [vmem:[%s8687_s5 + $0x420] sm:$0xff]  ;;  %v1145_v2 = vld [vmem:[%s8687_s5 + $0x408] sm:$0xff] }
 0x149   :  { %4146 = vmatprep.subr.bf16.mxu0 %v5650_v3  ;;  %4310 = vmatprep.subr.bf16.mxu1 %v5652_v4  ;;  %v5713_v3 = vcombine.low %v1144_v0, %v1148_v1  ;;  %v5714_v4 = vcombine.high %v1144_v0, %v1148_v1  ;;  %v5715_v6 = vcombine.low %v1145_v2, %v1149_v5  ;;  %v1181_v58 = vld [vmem:[%s8687_s5 + $0x528] sm:$0xff]  ;;  %v1188_v0 = vld [vmem:[%s8687_s5 + $0x560] sm:$0xff] }
 0x14a   :  { %v5716_v7 = vcombine.high %v1145_v2, %v1149_v5  ;;  %v1185_v1 = vld [vmem:[%s8687_s5 + $0x548] sm:$0xff] }
 0x14b   :  { %v1189_v2 = vld [vmem:[%s8687_s5 + $0x568] sm:$0xff] }
 0x14c   :  { %4147 = vmatpush1.bf16.msra.mxu0 %v5649_v10  ;;  %4311 = vmatpush1.bf16.msra.mxu1 %v5651_v11  ;;  %v7014_v10 = vld [vmem:[%s8688_s4] sm:$0xff]  ;;  %v482_v11 = vsub.s32 1, %v6581_v30 }
 0x14d   :  { %4148 = vmatprep.subr.bf16.mxu0 %v5658_v12  ;;  %4312 = vmatprep.subr.bf16.mxu1 %v5660_v13  ;;  %v490_v12 = vsub.s32 3, %v6581_v30  ;;  %v479_v13 = vrot.slane %v7014_v10, %v478_v9 }
 0x14e   :  { %v483_v14 = vrot.slane %v7014_v10, %v482_v11 }
 0x14f   :  { %v491_v15 = vrot.slane %v7014_v10, %v490_v12 }
 0x150   :  { %4149 = vmatpush1.bf16.msra.mxu0 %v5657_v18  ;;  %4313 = vmatpush1.bf16.msra.mxu1 %v5659_v19 }
 0x151   :  { %4150 = vmatprep.subr.bf16.mxu0 %v5666_v20  ;;  %4314 = vmatprep.subr.bf16.mxu1 %v5668_v21 }
 0x154   :  { %4151 = vmatpush1.bf16.msra.mxu0 %v5665_v25  ;;  %4315 = vmatpush1.bf16.msra.mxu1 %v5667_v26 }
 0x155   :  { %4152 = vmatprep.subr.bf16.mxu0 %v5674_v27  ;;  %4316 = vmatprep.subr.bf16.mxu1 %v5676_v28  ;;  %v1152_v28 = vld [vmem:[%s8687_s5 + $0x440] sm:$0xff] }
 0x158   :  { %4153 = vmatpush1.bf16.msra.mxu0 %v5673_v34  ;;  %4317 = vmatpush1.bf16.msra.mxu1 %v5675_v35 }
 0x159   :  { %4154 = vmatprep.subr.bf16.mxu0 %v5682_v36  ;;  %4318 = vmatprep.subr.bf16.mxu1 %v5684_v37  ;;  %v1160_v36 = vld [vmem:[%s8687_s5 + $0x480] sm:$0xff]  ;;  %v5722_v37 = vcombine.high %v1152_v28, %v1156_v31 }
 0x15c   :  { %4155 = vmatpush1.bf16.msra.mxu0 %v5681_v42  ;;  %4319 = vmatpush1.bf16.msra.mxu1 %v5683_v43  ;;  %v5721_v43 = vcombine.low %v1152_v28, %v1156_v31  ;;  %v1208_v28 = vld [vmem:[%s8687_s5 + $0x600] sm:$0xff] }
 0x15d   :  { %4156 = vmatprep.subr.bf16.mxu0 %v5690_v44  ;;  %4320 = vmatprep.subr.bf16.mxu1 %v5692_v45  ;;  %v5723_v44 = vcombine.low %v1153_v32, %v1157_v33  ;;  %v5730_v45 = vcombine.high %v1160_v36, %v1164_v39  ;;  %v1212_v32 = vld [vmem:[%s8687_s5 + $0x620] sm:$0xff]  ;;  %v1209_v33 = vld [vmem:[%s8687_s5 + $0x608] sm:$0xff] }
 0x160   :  { %4157 = vmatpush1.bf16.msra.mxu0 %v5689_v46  ;;  %4321 = vmatpush1.bf16.msra.mxu1 %v5691_v47  ;;  %v5732_v46 = vcombine.high %v1161_v40, %v1165_v41  ;;  %v1168_v47 = vld [vmem:[%s8687_s5 + $0x4c0] sm:$0xff] }
 0x161   :  { %4158 = vmatprep.subr.bf16.mxu0 %v5698_v51  ;;  %4322 = vmatprep.subr.bf16.mxu1 %v5700_v53  ;;  %v5729_v51 = vcombine.low %v1160_v36, %v1164_v39  ;;  %v5738_v53 = vcombine.high %v1168_v47, %v1172_v48  ;;  %v1213_v36 = vld [vmem:[%s8687_s5 + $0x628] sm:$0xff] }
 0x164   :  { %4159 = vmatpush1.bf16.msra.mxu0 %v5697_v54  ;;  %4323 = vmatpush1.bf16.msra.mxu1 %v5699_v55  ;;  %v5740_v54 = vcombine.high %v1169_v49, %v1173_v50  ;;  %v1176_v55 = vld [vmem:[%s8687_s5 + $0x500] sm:$0xff]  ;;  %v1217_v50 = vld [vmem:[%s8687_s5 + $0x648] sm:$0xff] }
 0x165   :  { %4160 = vmatprep.subr.bf16.mxu0 %v5706_v59  ;;  %4324 = vmatprep.subr.bf16.mxu1 %v5708_v61  ;;  %v5737_v59 = vcombine.low %v1168_v47, %v1172_v48  ;;  %v5746_v61 = vcombine.high %v1176_v55, %v1180_v56  ;;  %v5780_v47 = vcombine.high %v1209_v33, %v1213_v36  ;;  %v1216_v48 = vld [vmem:[%s8687_s5 + $0x640] sm:$0xff] }
 0x166   :  { %v1220_v49 = vld [vmem:[%s8687_s5 + $0x660] sm:$0xff] }
 0x168   :  { %4161 = vmatpush1.bf16.msra.mxu0 %v5705_v62  ;;  %4325 = vmatpush1.bf16.msra.mxu1 %v5707_v63  ;;  %v5748_v62 = vcombine.high %v1177_v57, %v1181_v58  ;;  %v1184_v63 = vld [vmem:[%s8687_s5 + $0x540] sm:$0xff] }
 0x169   :  { %4171 = vmatprep.subr.bf16.mxu0 %v5714_v4  ;;  %4335 = vmatprep.subr.bf16.mxu1 %v5716_v7  ;;  %v5747_v4 = vcombine.low %v1177_v57, %v1181_v58  ;;  %v5754_v5 = vcombine.high %v1184_v63, %v1188_v0  ;;  %v1192_v7 = vld [vmem:[%s8687_s5 + $0x580] sm:$0xff]  ;;  %v1225_v58 = vld [vmem:[%s8687_s5 + $0x688] sm:$0xff] }
 0x16a   :  { %v1228_v57 = vld [vmem:[%s8687_s5 + $0x6a0] sm:$0xff] }
 0x1de   :  { %v870_v16 = vpop.f32.mrb[4].mxu0  ;;  %v7027_v17 = vpop.f32.mrb[4].mxu1 }
 0x1df   :  { %v871_v18 = vadd.f32 %v870_v16, %v479_v13  ;;  %v872_v19 = vpop.f32.mrb[5].mxu0  ;;  %v913_v20 = vpop.f32.mrb[5].mxu1  ;;  %v1196_v13 = vld [vmem:[%s8687_s5 + $0x5a0] sm:$0xff]  ;;  %v5753_v16 = vcombine.low %v1184_v63, %v1188_v0 }
 0x1e0   :  { %v873_v21 = vadd.f32 %v872_v19, %v483_v14  ;;  %v914_v22 = vadd.f32 %v913_v20, %v491_v15  ;;  %v874_v8 = vpop.f32.mrb[6].mxu0  ;;  %v915_v23 = vpop.f32.mrb[6].mxu1  ;;  %v1193_v14 = vld [vmem:[%s8687_s5 + $0x588] sm:$0xff]  ;;  %v5762_v19 = vcombine.high %v1192_v7, %v1196_v13  ;;  %v1232_v0 = vld [vmem:[%s8687_s5 + $0x6c0] sm:$0xff] }
 0x1e1   :  { %v1000_v24 = vmax.f32 %v871_v18, 0.0  ;;  %v875_v25 = vpop.f32.mrb[7].mxu0  ;;  %v916_v26 = vpop.f32.mrb[7].mxu1  ;;  %v1197_v15 = vld [vmem:[%s8687_s5 + $0x5a8] sm:$0xff]  ;;  %v5755_v18 = vcombine.low %v1185_v1, %v1189_v2 }
 0x1e2   :  { %v1001_v27 = vmax.f32 %v873_v21, 0.0  ;;  %v1003_v29 = vmax.f32 %v914_v22, 0.0  ;;  %v5764_v20 = vcombine.high %v1193_v14, %v1197_v15  ;;  %v1200_v21 = vld [vmem:[%s8687_s5 + $0x5c0] sm:$0xff]  ;;  %v1201_v8 = vld [vmem:[%s8687_s5 + $0x5c8] sm:$0xff]  ;;  %v5763_v25 = vcombine.low %v1193_v14, %v1197_v15 }
 0x1e3   :  { %v7043_v35 = vpack.c.bf16 %v1000_v24, %v1000_v24  ;;  %v1204_v22 = vld [vmem:[%s8687_s5 + $0x5e0] sm:$0xff]  ;;  %v1205_v23 = vld [vmem:[%s8687_s5 + $0x5e8] sm:$0xff]  ;;  %v5761_v24 = vcombine.low %v1192_v7, %v1196_v13 }
 0x1e4   :  { %v7041_v34 = vpack.c.bf16 %v1001_v27, %v1001_v27  ;;  %v7059_v42 = vpack.c.bf16 %v1003_v29, %v1003_v29  ;;  %v5770_v26 = vcombine.high %v1200_v21, %v1204_v22  ;;  %v5772_v27 = vcombine.high %v1201_v8, %v1205_v23  ;;  %v1240_v13 = vld [vmem:[%s8687_s5 + $0x700] sm:$0xff]  ;;  %v1241_v15 = vld [vmem:[%s8687_s5 + $0x708] sm:$0xff] }
 0x1e5   :  { %v5769_v41 = vcombine.low %v1200_v21, %v1204_v22  ;;  %v1244_v14 = vld [vmem:[%s8687_s5 + $0x720] sm:$0xff] }
 0x1e6   :  { %4162 = vmatprep.mubr.bf16.mxu0 %v7041_v34  ;;  %4326 = vmatprep.mubr.bf16.mxu1 %v7041_v34  ;;  %v1248_v22 = vld [vmem:[%s8687_s5 + $0x740] sm:$0xff] }
 0x1e7   :  { %4163 = vmatmul.mubr.bf16.vlgmr.msra.gmra.mrb[12].mxu0 %v7043_v35  ;;  %4327 = vmatmul.mubr.bf16.vlgmr.msra.gmra.mrb[12].mxu1 %v7043_v35 }
 0x1e8   :  { %4172 = vmatpush1.bf16.msra.mxu0 %v5713_v3  ;;  %4336 = vmatpush1.bf16.msra.mxu1 %v5715_v6  ;;  %v5745_v3 = vcombine.low %v1176_v55, %v1180_v56  ;;  %v5756_v6 = vcombine.high %v1185_v1, %v1189_v2  ;;  %v1224_v56 = vld [vmem:[%s8687_s5 + $0x680] sm:$0xff]  ;;  %v1233_v2 = vld [vmem:[%s8687_s5 + $0x6c8] sm:$0xff] }
 0x1e9   :  { %4203 = vmatprep.mubr.bf16.mxu0 %v7059_v42  ;;  %4367 = vmatprep.mubr.bf16.mxu1 %v7059_v42  ;;  %v1236_v1 = vld [vmem:[%s8687_s5 + $0x6e0] sm:$0xff] }
 0x1ea   :  { %4173 = vmatprep.subr.bf16.mxu0 %v5722_v37  ;;  %4337 = vmatprep.subr.bf16.mxu1 %v5724_v38 }
 0x1ec   :  { %4174 = vmatpush1.bf16.msra.mxu0 %v5721_v43  ;;  %4338 = vmatpush1.bf16.msra.mxu1 %v5723_v44  ;;  %v5771_v43 = vcombine.low %v1201_v8, %v1205_v23  ;;  %v1252_v8 = vld [vmem:[%s8687_s5 + $0x760] sm:$0xff]  ;;  %v1249_v23 = vld [vmem:[%s8687_s5 + $0x748] sm:$0xff] }
 0x1ed   :  { %4175 = vmatprep.subr.bf16.mxu0 %v5730_v45  ;;  %4339 = vmatprep.subr.bf16.mxu1 %v5732_v46  ;;  %v5778_v46 = vcombine.high %v1208_v28, %v1212_v32 }
 0x1f0   :  { %4176 = vmatpush1.bf16.msra.mxu0 %v5729_v51  ;;  %4340 = vmatpush1.bf16.msra.mxu1 %v5731_v52  ;;  %v1221_v51 = vld [vmem:[%s8687_s5 + $0x668] sm:$0xff]  ;;  %v5777_v52 = vcombine.low %v1208_v28, %v1212_v32  ;;  %v5818_v28 = vcombine.high %v1248_v22, %v1252_v8 }
 0x1f1   :  { %4177 = vmatprep.subr.bf16.mxu0 %v5738_v53  ;;  %4341 = vmatprep.subr.bf16.mxu1 %v5740_v54  ;;  %v5779_v53 = vcombine.low %v1209_v33, %v1213_v36  ;;  %v5786_v54 = vcombine.high %v1216_v48, %v1220_v49  ;;  %v5788_v55 = vcombine.high %v1217_v50, %v1221_v51  ;;  %v1256_v33 = vld [vmem:[%s8687_s5 + $0x780] sm:$0xff]  ;;  %v498_v36 = vsub.s32 5, %v6581_v30 }
 0x1f4   :  { %4178 = vmatpush1.bf16.msra.mxu0 %v5737_v59  ;;  %4342 = vmatpush1.bf16.msra.mxu1 %v5739_v60  ;;  %v1229_v59 = vld [vmem:[%s8687_s5 + $0x6a8] sm:$0xff]  ;;  %v5785_v60 = vcombine.low %v1216_v48, %v1220_v49  ;;  %v1264_v48 = vld [vmem:[%s8687_s5 + $0x7c0] sm:$0xff]  ;;  %v499_v49 = vrot.slane %v7014_v10, %v498_v36 }
 0x1f5   :  { %4179 = vmatprep.subr.bf16.mxu0 %v5746_v61  ;;  %4343 = vmatprep.subr.bf16.mxu1 %v5748_v62  ;;  %v5787_v61 = vcombine.low %v1217_v50, %v1221_v51  ;;  %v5794_v62 = vcombine.high %v1224_v56, %v1228_v57  ;;  %v5796_v63 = vcombine.high %v1225_v58, %v1229_v59  ;;  %v1268_v50 = vld [vmem:[%s8687_s5 + $0x7e0] sm:$0xff]  ;;  %v1265_v51 = vld [vmem:[%s8687_s5 + $0x7c8] sm:$0xff] }
 0x1f8   :  { %4180 = vmatpush1.bf16.msra.mxu0 %v5745_v3  ;;  %4344 = vmatpush1.bf16.msra.mxu1 %v5747_v4  ;;  %v1237_v3 = vld [vmem:[%s8687_s5 + $0x6e8] sm:$0xff]  ;;  %v5793_v4 = vcombine.low %v1224_v56, %v1228_v57  ;;  %v5834_v56 = vcombine.high %v1264_v48, %v1268_v50 }
 0x1f9   :  { %4181 = vmatprep.subr.bf16.mxu0 %v5754_v5  ;;  %4345 = vmatprep.subr.bf16.mxu1 %v5756_v6  ;;  %v5795_v5 = vcombine.low %v1225_v58, %v1229_v59  ;;  %v5802_v6 = vcombine.high %v1232_v0, %v1236_v1  ;;  %v5804_v7 = vcombine.high %v1233_v2, %v1237_v3  ;;  %v1272_v58 = vld [vmem:[%s8687_s5 + $0x800] sm:$0xff] }
 0x1fc   :  { %4182 = vmatpush1.bf16.msra.mxu0 %v5753_v16  ;;  %4346 = vmatpush1.bf16.msra.mxu1 %v5755_v18  ;;  %v1245_v16 = vld [vmem:[%s8687_s5 + $0x728] sm:$0xff]  ;;  %v5801_v18 = vcombine.low %v1232_v0, %v1236_v1 }
 0x1fd   :  { %4183 = vmatprep.subr.bf16.mxu0 %v5762_v19  ;;  %4347 = vmatprep.subr.bf16.mxu1 %v5764_v20  ;;  %v5803_v19 = vcombine.low %v1233_v2, %v1237_v3  ;;  %v5810_v20 = vcombine.high %v1240_v13, %v1244_v14  ;;  %v5812_v21 = vcombine.high %v1241_v15, %v1245_v16  ;;  %v1280_v3 = vld [vmem:[%s8687_s5 + $0x840] sm:$0xff] }
 0x1fe   :  { %v7128_v29 = vpop.f32.mrb[8].mxu0  ;;  %v7130_v31 = vpop.f32.mrb[8].mxu1 }
 0x1ff   :  { %v7141_v37 = vpop.f32.mrb[9].mxu0  ;;  %v7143_v38 = vpop.f32.mrb[9].mxu1 }
 0x200   :  { %v956_v39 = vpop.f32.mrb[10].mxu0  ;;  %v997_v40 = vpop.f32.mrb[10].mxu1  ;;  %4184 = vmatpush1.bf16.msra.mxu0 %v5761_v24  ;;  %4348 = vmatpush1.bf16.msra.mxu1 %v5763_v25  ;;  %v1253_v24 = vld [vmem:[%s8687_s5 + $0x768] sm:$0xff]  ;;  %v5809_v25 = vcombine.low %v1240_v13, %v1244_v14  ;;  %v955_v59 = vadd.f32 %v7141_v37, %v499_v49 }
 0x201   :  { %v957_v44 = vpop.f32.mrb[11].mxu0  ;;  %v998_v45 = vpop.f32.mrb[11].mxu1  ;;  %4185 = vmatprep.subr.bf16.mxu0 %v5770_v26  ;;  %4349 = vmatprep.subr.bf16.mxu1 %v5772_v27  ;;  %v5811_v26 = vcombine.low %v1241_v15, %v1245_v16  ;;  %v486_v27 = vsub.s32 2, %v6581_v30  ;;  %v5820_v32 = vcombine.high %v1249_v23, %v1253_v24  ;;  %v1260_v39 = vld [vmem:[%s8687_s5 + $0x7a0] sm:$0xff]  ;;  %v1257_v40 = vld [vmem:[%s8687_s5 + $0x788] sm:$0xff] }
 0x202   :  { %v5819_v44 = vcombine.low %v1249_v23, %v1253_v24  ;;  %v1005_v2 = vmax.f32 %v955_v59, 0.0 }
 0x203   :  { %v487_v45 = vrot.slane %v7014_v10, %v486_v27 }
 0x204   :  { %4186 = vmatpush1.bf16.msra.mxu0 %v5769_v41  ;;  %4350 = vmatpush1.bf16.msra.mxu1 %v5771_v43  ;;  %v1261_v41 = vld [vmem:[%s8687_s5 + $0x7a8] sm:$0xff]  ;;  %v5817_v43 = vcombine.low %v1248_v22, %v1252_v8  ;;  %v7265_v15 = vpack.c.bf16 %v1005_v2, %v1005_v2  ;;  %v1328_v2 = vld [vmem:[%s8687_s5 + $0x9c0] sm:$0xff] }
 0x205   :  { %4187 = vmatprep.subr.bf16.mxu0 %v5778_v46  ;;  %4351 = vmatprep.subr.bf16.mxu1 %v5780_v47  ;;  %v5826_v46 = vcombine.high %v1256_v33, %v1260_v39  ;;  %v5828_v47 = vcombine.high %v1257_v40, %v1261_v41  ;;  %v1293_v22 = vld [vmem:[%s8687_s5 + $0x8a8] sm:$0xff] }
 0x208   :  { %4188 = vmatpush1.bf16.msra.mxu0 %v5777_v52  ;;  %4352 = vmatpush1.bf16.msra.mxu1 %v5779_v53  ;;  %v1269_v52 = vld [vmem:[%s8687_s5 + $0x7e8] sm:$0xff]  ;;  %v5825_v53 = vcombine.low %v1256_v33, %v1260_v39 }
 0x209   :  { %4189 = vmatprep.subr.bf16.mxu0 %v5786_v54  ;;  %4353 = vmatprep.subr.bf16.mxu1 %v5788_v55  ;;  %v5827_v54 = vcombine.low %v1257_v40, %v1261_v41  ;;  %v912_v55 = vadd.f32 %v7027_v17, %v487_v45  ;;  %v5836_v57 = vcombine.high %v1265_v51, %v1269_v52  ;;  %v1277_v17 = vld [vmem:[%s8687_s5 + $0x828] sm:$0xff]  ;;  %v1308_v45 = vld [vmem:[%s8687_s5 + $0x920] sm:$0xff] }
 0x20a   :  { %v1301_v33 = vld [vmem:[%s8687_s5 + $0x8e8] sm:$0xff] }
 0x20b   :  { %v1002_v0 = vmax.f32 %v912_v55, 0.0  ;;  %v1317_v55 = vld [vmem:[%s8687_s5 + $0x968] sm:$0xff] }
 0x20c   :  { %4190 = vmatpush1.bf16.msra.mxu0 %v5785_v60  ;;  %4354 = vmatpush1.bf16.msra.mxu1 %v5787_v61  ;;  %v1276_v60 = vld [vmem:[%s8687_s5 + $0x820] sm:$0xff]  ;;  %v1273_v61 = vld [vmem:[%s8687_s5 + $0x808] sm:$0xff] }
 0x20d   :  { %4191 = vmatprep.subr.bf16.mxu0 %v5794_v62  ;;  %4355 = vmatprep.subr.bf16.mxu1 %v5796_v63  ;;  %v5833_v62 = vcombine.low %v1264_v48, %v1268_v50  ;;  %v5835_v63 = vcombine.low %v1265_v51, %v1269_v52  ;;  %v5842_v37 = vcombine.high %v1272_v58, %v1276_v60  ;;  %v1312_v52 = vld [vmem:[%s8687_s5 + $0x940] sm:$0xff] }
 0x20e   :  { %v5844_v1 = vcombine.high %v1273_v61, %v1277_v17  ;;  %v7263_v13 = vpack.c.bf16 %v1002_v0, %v1002_v0  ;;  %v5843_v14 = vcombine.low %v1273_v61, %v1277_v17  ;;  %v1324_v61 = vld [vmem:[%s8687_s5 + $0x9a0] sm:$0xff]  ;;  %v1321_v17 = vld [vmem:[%s8687_s5 + $0x988] sm:$0xff] }
 0x210   :  { %4192 = vmatpush1.bf16.msra.mxu0 %v5793_v4  ;;  %4356 = vmatpush1.bf16.msra.mxu1 %v5795_v5  ;;  %v1284_v4 = vld [vmem:[%s8687_s5 + $0x860] sm:$0xff]  ;;  %v1281_v5 = vld [vmem:[%s8687_s5 + $0x848] sm:$0xff] }
 0x211   :  { %4193 = vmatprep.subr.bf16.mxu0 %v5802_v6  ;;  %4357 = vmatprep.subr.bf16.mxu1 %v5804_v7  ;;  %v1285_v6 = vld [vmem:[%s8687_s5 + $0x868] sm:$0xff]  ;;  %v5841_v7 = vcombine.low %v1272_v58, %v1276_v60  ;;  %v5850_v16 = vcombine.high %v1280_v3, %v1284_v4  ;;  %v5849_v8 = vcombine.low %v1280_v3, %v1284_v4  ;;  %v1320_v60 = vld [vmem:[%s8687_s5 + $0x980] sm:$0xff] }
 0x212   :  { %v5851_v23 = vcombine.low %v1281_v5, %v1285_v6  ;;  %v1332_v3 = vld [vmem:[%s8687_s5 + $0x9e0] sm:$0xff]  ;;  %v1329_v4 = vld [vmem:[%s8687_s5 + $0x9c8] sm:$0xff] }
 0x214   :  { %4194 = vmatpush1.bf16.msra.mxu0 %v5801_v18  ;;  %4358 = vmatpush1.bf16.msra.mxu1 %v5803_v19  ;;  %v5852_v18 = vcombine.high %v1281_v5, %v1285_v6  ;;  %v1288_v19 = vld [vmem:[%s8687_s5 + $0x880] sm:$0xff]  ;;  %v1333_v5 = vld [vmem:[%s8687_s5 + $0x9e8] sm:$0xff]  ;;  %v5889_v6 = vcombine.low %v1320_v60, %v1324_v61 }
 0x215   :  { %4195 = vmatprep.subr.bf16.mxu0 %v5810_v20  ;;  %4359 = vmatprep.subr.bf16.mxu1 %v5812_v21  ;;  %v1292_v20 = vld [vmem:[%s8687_s5 + $0x8a0] sm:$0xff]  ;;  %v1289_v21 = vld [vmem:[%s8687_s5 + $0x888] sm:$0xff] }
 0x216   :  { %v5858_v24 = vcombine.high %v1288_v19, %v1292_v20  ;;  %v5857_v39 = vcombine.low %v1288_v19, %v1292_v20  ;;  %v5859_v40 = vcombine.low %v1289_v21, %v1293_v22  ;;  %v1340_v19 = vld [vmem:[%s8687_s5 + $0xa20] sm:$0xff]  ;;  %v1337_v20 = vld [vmem:[%s8687_s5 + $0xa08] sm:$0xff] }
 0x218   :  { %4196 = vmatpush1.bf16.msra.mxu0 %v5809_v25  ;;  %4360 = vmatpush1.bf16.msra.mxu1 %v5811_v26  ;;  %v5860_v25 = vcombine.high %v1289_v21, %v1293_v22  ;;  %v1296_v26 = vld [vmem:[%s8687_s5 + $0x8c0] sm:$0xff]  ;;  %v1341_v21 = vld [vmem:[%s8687_s5 + $0xa28] sm:$0xff]  ;;  %v5897_v22 = vcombine.low %v1328_v2, %v1332_v3 }
 0x219   :  { %4197 = vmatprep.subr.bf16.mxu0 %v5818_v28  ;;  %4361 = vmatprep.subr.bf16.mxu1 %v5820_v32  ;;  %v1300_v28 = vld [vmem:[%s8687_s5 + $0x8e0] sm:$0xff]  ;;  %v1297_v32 = vld [vmem:[%s8687_s5 + $0x8c8] sm:$0xff] }
 0x21a   :  { %v5866_v41 = vcombine.high %v1296_v26, %v1300_v28  ;;  %v5865_v48 = vcombine.low %v1296_v26, %v1300_v28  ;;  %v5867_v49 = vcombine.low %v1297_v32, %v1301_v33  ;;  %v1348_v26 = vld [vmem:[%s8687_s5 + $0xa60] sm:$0xff]  ;;  %v1345_v28 = vld [vmem:[%s8687_s5 + $0xa48] sm:$0xff] }
 0x21c   :  { %4198 = vmatpush1.bf16.msra.mxu0 %v5817_v43  ;;  %4362 = vmatpush1.bf16.msra.mxu1 %v5819_v44  ;;  %v5868_v43 = vcombine.high %v1297_v32, %v1301_v33  ;;  %v1304_v44 = vld [vmem:[%s8687_s5 + $0x900] sm:$0xff]  ;;  %v1349_v32 = vld [vmem:[%s8687_s5 + $0xa68] sm:$0xff] }
 0x21d   :  { %4199 = vmatprep.subr.bf16.mxu0 %v5826_v46  ;;  %4363 = vmatprep.subr.bf16.mxu1 %v5828_v47  ;;  %v1305_v46 = vld [vmem:[%s8687_s5 + $0x908] sm:$0xff]  ;;  %v5874_v50 = vcombine.high %v1304_v44, %v1308_v45 }
 0x21e   :  { %v1309_v47 = vld [vmem:[%s8687_s5 + $0x928] sm:$0xff] }
 0x21f   :  { %v5876_v51 = vcombine.high %v1305_v46, %v1309_v47 }
 0x220   :  { %4200 = vmatpush1.bf16.msra.mxu0 %v5825_v53  ;;  %4364 = vmatpush1.bf16.msra.mxu1 %v5827_v54  ;;  %v1316_v53 = vld [vmem:[%s8687_s5 + $0x960] sm:$0xff]  ;;  %v1313_v54 = vld [vmem:[%s8687_s5 + $0x948] sm:$0xff] }
 0x221   :  { %4201 = vmatprep.subr.bf16.mxu0 %v5834_v56  ;;  %4365 = vmatprep.subr.bf16.mxu1 %v5836_v57  ;;  %v5873_v56 = vcombine.low %v1304_v44, %v1308_v45  ;;  %v5875_v57 = vcombine.low %v1305_v46, %v1309_v47  ;;  %v5882_v58 = vcombine.high %v1312_v52, %v1316_v53  ;;  %v1356_v44 = vld [vmem:[%s8687_s5 + $0xaa0] sm:$0xff]  ;;  %v1353_v45 = vld [vmem:[%s8687_s5 + $0xa88] sm:$0xff] }
 0x222   :  { %v5884_v59 = vcombine.high %v1313_v54, %v1317_v55  ;;  %v5883_v0 = vcombine.low %v1313_v54, %v1317_v55  ;;  %v1357_v46 = vld [vmem:[%s8687_s5 + $0xaa8] sm:$0xff] }
 0x223   :  { %v1365_v54 = vld [vmem:[%s8687_s5 + $0xae8] sm:$0xff] }
 0x224   :  { %4202 = vmatpush1.bf16.msra.mxu0 %v5833_v62  ;;  %4366 = vmatpush1.bf16.msra.mxu1 %v5835_v63  ;;  %v1325_v62 = vld [vmem:[%s8687_s5 + $0x9a8] sm:$0xff]  ;;  %v5881_v63 = vcombine.low %v1312_v52, %v1316_v53  ;;  %v1364_v52 = vld [vmem:[%s8687_s5 + $0xae0] sm:$0xff] }
 0x225   :  { %4212 = vmatprep.subr.bf16.mxu0 %v5842_v37  ;;  %4376 = vmatprep.subr.bf16.mxu1 %v5844_v1  ;;  %v5890_v37 = vcombine.high %v1320_v60, %v1324_v61  ;;  %v5892_v1 = vcombine.high %v1321_v17, %v1325_v62  ;;  %v1361_v53 = vld [vmem:[%s8687_s5 + $0xac8] sm:$0xff]  ;;  %v1372_v60 = vld [vmem:[%s8687_s5 + $0xb20] sm:$0xff] }
 0x226   :  { %v1369_v61 = vld [vmem:[%s8687_s5 + $0xb08] sm:$0xff] }
 0x227   :  { %4204 = vmatmul.mubr.bf16.vlgmr.msra.gmra.mrb[12].mxu0 %v7263_v13  ;;  %4368 = vmatmul.mubr.bf16.vlgmr.msra.gmra.mrb[12].mxu1 %v7263_v13 }
 0x228   :  { %4213 = vmatpush1.bf16.msra.mxu0 %v5841_v7  ;;  %4244 = vmatprep.mubr.bf16.mxu0 %v7265_v15  ;;  %v5891_v7 = vcombine.low %v1321_v17, %v1325_v62  ;;  %v1373_v17 = vld [vmem:[%s8687_s5 + $0xb28] sm:$0xff] }
 0x229   :  { %4377 = vmatpush1.bf16.msra.mxu1 %v5843_v14  ;;  %4408 = vmatprep.mubr.bf16.mxu1 %v7265_v15  ;;  %v5898_v14 = vcombine.high %v1328_v2, %v1332_v3  ;;  %v1380_v2 = vld [vmem:[%s8687_s5 + $0xb60] sm:$0xff]  ;;  %v1377_v3 = vld [vmem:[%s8687_s5 + $0xb48] sm:$0xff] }
 0x22a   :  { %4214 = vmatprep.subr.bf16.mxu0 %v5850_v16  ;;  %4378 = vmatprep.subr.bf16.mxu1 %v5852_v18  ;;  %v5900_v16 = vcombine.high %v1329_v4, %v1333_v5  ;;  %v1336_v18 = vld [vmem:[%s8687_s5 + $0xa00] sm:$0xff] }
 0x22b   :  { %v5905_v33 = vcombine.low %v1336_v18, %v1340_v19 }
 0x22c   :  { %4215 = vmatpush1.bf16.msra.mxu0 %v5849_v8  ;;  %v5899_v8 = vcombine.low %v1329_v4, %v1333_v5  ;;  %v1381_v4 = vld [vmem:[%s8687_s5 + $0xb68] sm:$0xff] }
 0x22d   :  { %4379 = vmatpush1.bf16.msra.mxu1 %v5851_v23  ;;  %4216 = vmatprep.subr.bf16.mxu0 %v5858_v24  ;;  %v5906_v23 = vcombine.high %v1336_v18, %v1340_v19  ;;  %v5908_v24 = vcombine.high %v1337_v20, %v1341_v21  ;;  %v1384_v18 = vld [vmem:[%s8687_s5 + $0xb80] sm:$0xff] }
 0x22e   :  { %4380 = vmatprep.subr.bf16.mxu1 %v5860_v25  ;;  %v1344_v25 = vld [vmem:[%s8687_s5 + $0xa40] sm:$0xff] }
 0x22f   :  { %v5913_v47 = vcombine.low %v1344_v25, %v1348_v26  ;;  %v1388_v19 = vld [vmem:[%s8687_s5 + $0xba0] sm:$0xff] }
 0x230   :  { %4217 = vmatpush1.bf16.msra.mxu0 %v5857_v39  ;;  %v5907_v39 = vcombine.low %v1337_v20, %v1341_v21  ;;  %v506_v20 = vsub.s32 7, %v6581_v30  ;;  %v1385_v21 = vld [vmem:[%s8687_s5 + $0xb88] sm:$0xff] }
 0x231   :  { %4381 = vmatpush1.bf16.msra.mxu1 %v5859_v40  ;;  %4218 = vmatprep.subr.bf16.mxu0 %v5866_v41  ;;  %v5914_v40 = vcombine.high %v1344_v25, %v1348_v26  ;;  %v5916_v41 = vcombine.high %v1345_v28, %v1349_v32  ;;  %v5954_v25 = vcombine.high %v1384_v18, %v1388_v19 }
 0x232   :  { %4382 = vmatprep.subr.bf16.mxu1 %v5868_v43  ;;  %v1352_v43 = vld [vmem:[%s8687_s5 + $0xa80] sm:$0xff] }
 0x233   :  { %v5921_v55 = vcombine.low %v1352_v43, %v1356_v44 }
 0x234   :  { %4219 = vmatpush1.bf16.msra.mxu0 %v5865_v48  ;;  %v5915_v48 = vcombine.low %v1345_v28, %v1349_v32  ;;  %v1392_v28 = vld [vmem:[%s8687_s5 + $0xbc0] sm:$0xff] }
 0x235   :  { %4383 = vmatpush1.bf16.msra.mxu1 %v5867_v49  ;;  %4220 = vmatprep.subr.bf16.mxu0 %v5874_v50  ;;  %v5922_v49 = vcombine.high %v1352_v43, %v1356_v44  ;;  %v5924_v50 = vcombine.high %v1353_v45, %v1357_v46  ;;  %v1396_v32 = vld [vmem:[%s8687_s5 + $0xbe0] sm:$0xff] }
 0x236   :  { %4384 = vmatprep.subr.bf16.mxu1 %v5876_v51  ;;  %v1360_v51 = vld [vmem:[%s8687_s5 + $0xac0] sm:$0xff] }
 0x237   :  { %v5929_v62 = vcombine.low %v1360_v51, %v1364_v52 }
 0x238   :  { %4221 = vmatpush1.bf16.msra.mxu0 %v5873_v56  ;;  %v5923_v56 = vcombine.low %v1353_v45, %v1357_v46  ;;  %v5962_v45 = vcombine.high %v1392_v28, %v1396_v32 }
 0x239   :  { %4385 = vmatpush1.bf16.msra.mxu1 %v5875_v57  ;;  %4222 = vmatprep.subr.bf16.mxu0 %v5882_v58  ;;  %v5930_v57 = vcombine.high %v1360_v51, %v1364_v52  ;;  %v5932_v58 = vcombine.high %v1361_v53, %v1365_v54 }
 0x23a   :  { %4386 = vmatprep.subr.bf16.mxu1 %v5884_v59  ;;  %v1368_v59 = vld [vmem:[%s8687_s5 + $0xb00] sm:$0xff] }
 0x23b   :  { %v5937_v5 = vcombine.low %v1368_v59, %v1372_v60 }
 0x23c   :  { %4223 = vmatpush1.bf16.msra.mxu0 %v5881_v63  ;;  %v5931_v63 = vcombine.low %v1361_v53, %v1365_v54 }
 0x23d   :  { %4387 = vmatpush1.bf16.msra.mxu1 %v5883_v0  ;;  %4224 = vmatprep.subr.bf16.mxu0 %v5890_v37  ;;  %v5938_v0 = vcombine.high %v1368_v59, %v1372_v60  ;;  %v5940_v37 = vcombine.high %v1369_v61, %v1373_v17  ;;  %v1413_v59 = vld [vmem:[%s8687_s5 + $0xc68] sm:$0xff] }
 0x23e   :  { %4388 = vmatprep.subr.bf16.mxu1 %v5892_v1  ;;  %v1376_v1 = vld [vmem:[%s8687_s5 + $0xb40] sm:$0xff] }
 0x240   :  { %4225 = vmatpush1.bf16.msra.mxu0 %v5889_v6  ;;  %v494_v6 = vsub.s32 4, %v6581_v30 }
 0x241   :  { %4389 = vmatpush1.bf16.msra.mxu1 %v5891_v7  ;;  %4226 = vmatprep.subr.bf16.mxu0 %v5898_v14  ;;  %v5939_v7 = vcombine.low %v1369_v61, %v1373_v17  ;;  %v5946_v14 = vcombine.high %v1376_v1, %v1380_v2 }
 0x242   :  { %4390 = vmatprep.subr.bf16.mxu1 %v5900_v16  ;;  %v5948_v16 = vcombine.high %v1377_v3, %v1381_v4 }
 0x244   :  { %4227 = vmatpush1.bf16.msra.mxu0 %v5897_v22  ;;  %v1389_v22 = vld [vmem:[%s8687_s5 + $0xba8] sm:$0xff] }
 0x245   :  { %4391 = vmatpush1.bf16.msra.mxu1 %v5899_v8  ;;  %4228 = vmatprep.subr.bf16.mxu0 %v5906_v23  ;;  %v5945_v8 = vcombine.low %v1376_v1, %v1380_v2  ;;  %v495_v23 = vrot.slane %v7014_v10, %v494_v6  ;;  %v5956_v26 = vcombine.high %v1385_v21, %v1389_v22  ;;  %v1417_v1 = vld [vmem:[%s8687_s5 + $0xc88] sm:$0xff] }
 0x246   :  { %4392 = vmatprep.subr.bf16.mxu1 %v5908_v24  ;;  %v5947_v24 = vcombine.low %v1377_v3, %v1381_v4  ;;  %v5955_v44 = vcombine.low %v1385_v21, %v1389_v22  ;;  %v1421_v2 = vld [vmem:[%s8687_s5 + $0xca8] sm:$0xff] }
 0x247   :  { %v953_v43 = vadd.f32 %v7128_v29, %v495_v23  ;;  %v1401_v29 = vld [vmem:[%s8687_s5 + $0xc08] sm:$0xff]  ;;  %v5987_v22 = vcombine.low %v1417_v1, %v1421_v2 }
 0x248   :  { %4229 = vmatpush1.bf16.msra.mxu0 %v5905_v33  ;;  %v507_v33 = vrot.slane %v7014_v10, %v506_v20  ;;  %v1400_v10 = vld [vmem:[%s8687_s5 + $0xc00] sm:$0xff] }
 0x249   :  { %4393 = vmatpush1.bf16.msra.mxu1 %v5907_v39  ;;  %4230 = vmatprep.subr.bf16.mxu0 %v5914_v40  ;;  %v1393_v39 = vld [vmem:[%s8687_s5 + $0xbc8] sm:$0xff]  ;;  %v1004_v51 = vmax.f32 %v953_v43, 0.0  ;;  %v1444_v43 = vld [vmem:[%s8687_s5 + $0xd60] sm:$0xff] }
 0x24a   :  { %4394 = vmatprep.subr.bf16.mxu1 %v5916_v41  ;;  %v1397_v40 = vld [vmem:[%s8687_s5 + $0xbe8] sm:$0xff]  ;;  %v5953_v41 = vcombine.low %v1384_v18, %v1388_v19 }
 0x24b   :  { %v5964_v46 = vcombine.high %v1393_v39, %v1397_v40  ;;  %v5963_v52 = vcombine.low %v1393_v39, %v1397_v40  ;;  %v7473_v60 = vpack.c.bf16 %v1004_v51, %v1004_v51  ;;  %v1425_v18 = vld [vmem:[%s8687_s5 + $0xcc8] sm:$0xff] }
 0x24c   :  { %4231 = vmatpush1.bf16.msra.mxu0 %v5913_v47  ;;  %v1404_v47 = vld [vmem:[%s8687_s5 + $0xc20] sm:$0xff]  ;;  %v1429_v19 = vld [vmem:[%s8687_s5 + $0xce8] sm:$0xff] }
 0x24d   :  { %4395 = vmatpush1.bf16.msra.mxu1 %v5915_v48  ;;  %4232 = vmatprep.subr.bf16.mxu0 %v5922_v49  ;;  %v996_v48 = vadd.f32 %v7143_v38, %v507_v33  ;;  %v1405_v49 = vld [vmem:[%s8687_s5 + $0xc28] sm:$0xff]  ;;  %v5970_v53 = vcombine.high %v1400_v10, %v1404_v47  ;;  %v1408_v38 = vld [vmem:[%s8687_s5 + $0xc40] sm:$0xff]  ;;  %v5996_v23 = vcombine.high %v1425_v18, %v1429_v19 }
 0x24e   :  { %4396 = vmatprep.subr.bf16.mxu1 %v5924_v50  ;;  %v5961_v50 = vcombine.low %v1392_v28, %v1396_v32  ;;  %v5972_v54 = vcombine.high %v1401_v29, %v1405_v49  ;;  %v5971_v61 = vcombine.low %v1401_v29, %v1405_v49  ;;  %v1437_v28 = vld [vmem:[%s8687_s5 + $0xd28] sm:$0xff]  ;;  %v5995_v33 = vcombine.low %v1425_v18, %v1429_v19  ;;  %v1448_v29 = vld [vmem:[%s8687_s5 + $0xd80] sm:$0xff] }
 0x24f   :  { %v1452_v49 = vld [vmem:[%s8687_s5 + $0xda0] sm:$0xff]  ;;  %v1453_v51 = vld [vmem:[%s8687_s5 + $0xda8] sm:$0xff] }
 0x250   :  { %4233 = vmatpush1.bf16.msra.mxu0 %v5921_v55  ;;  %v1007_v55 = vmax.f32 %v996_v48, 0.0  ;;  %v1473_v18 = vld [vmem:[%s8687_s5 + $0xe48] sm:$0xff] }
 0x251   :  { %4397 = vmatpush1.bf16.msra.mxu1 %v5923_v56  ;;  %4234 = vmatprep.subr.bf16.mxu0 %v5930_v57  ;;  %v1412_v56 = vld [vmem:[%s8687_s5 + $0xc60] sm:$0xff]  ;;  %v5969_v57 = vcombine.low %v1400_v10, %v1404_v47  ;;  %v1477_v19 = vld [vmem:[%s8687_s5 + $0xe68] sm:$0xff] }
 0x252   :  { %4398 = vmatprep.subr.bf16.mxu1 %v5932_v58  ;;  %v1409_v58 = vld [vmem:[%s8687_s5 + $0xc48] sm:$0xff]  ;;  %v5978_v17 = vcombine.high %v1408_v38, %v1412_v56  ;;  %v5977_v3 = vcombine.low %v1408_v38, %v1412_v56  ;;  %v1456_v38 = vld [vmem:[%s8687_s5 + $0xdc0] sm:$0xff] }
 0x253   :  { %v5979_v4 = vcombine.low %v1409_v58, %v1413_v59  ;;  %v1460_v56 = vld [vmem:[%s8687_s5 + $0xde0] sm:$0xff] }
 0x254   :  { %4235 = vmatpush1.bf16.msra.mxu0 %v5929_v62  ;;  %v1416_v62 = vld [vmem:[%s8687_s5 + $0xc80] sm:$0xff] }
 0x255   :  { %4399 = vmatpush1.bf16.msra.mxu1 %v5931_v63  ;;  %4236 = vmatprep.subr.bf16.mxu0 %v5938_v0  ;;  %v1420_v63 = vld [vmem:[%s8687_s5 + $0xca0] sm:$0xff]  ;;  %v7481_v0 = vpack.c.bf16 %v1007_v55, %v1007_v55 }
 0x256   :  { %4400 = vmatprep.subr.bf16.mxu1 %v5940_v37  ;;  %v5980_v37 = vcombine.high %v1409_v58, %v1413_v59  ;;  %v5985_v21 = vcombine.low %v1416_v62, %v1420_v63  ;;  %v1461_v58 = vld [vmem:[%s8687_s5 + $0xde8] sm:$0xff]  ;;  %v6017_v59 = vcombine.low %v1448_v29, %v1452_v49 }
 0x258   :  { %4237 = vmatpush1.bf16.msra.mxu0 %v5937_v5  ;;  %v5986_v5 = vcombine.high %v1416_v62, %v1420_v63  ;;  %v1464_v63 = vld [vmem:[%s8687_s5 + $0xe00] sm:$0xff] }
 0x259   :  { %4401 = vmatpush1.bf16.msra.mxu1 %v5939_v7  ;;  %4238 = vmatprep.subr.bf16.mxu0 %v5946_v14  ;;  %v5988_v7 = vcombine.high %v1417_v1, %v1421_v2  ;;  %v1424_v14 = vld [vmem:[%s8687_s5 + $0xcc0] sm:$0xff]  ;;  %v1465_v1 = vld [vmem:[%s8687_s5 + $0xe08] sm:$0xff] }
 0x25a   :  { %4402 = vmatprep.subr.bf16.mxu1 %v5948_v16  ;;  %v1428_v16 = vld [vmem:[%s8687_s5 + $0xce0] sm:$0xff]  ;;  %v1469_v2 = vld [vmem:[%s8687_s5 + $0xe28] sm:$0xff] }
 0x25b   :  { %v5993_v32 = vcombine.low %v1424_v14, %v1428_v16 }
 0x25c   :  { %4239 = vmatpush1.bf16.msra.mxu0 %v5945_v8  ;;  %v5994_v8 = vcombine.high %v1424_v14, %v1428_v16  ;;  %v1472_v14 = vld [vmem:[%s8687_s5 + $0xe40] sm:$0xff] }
 0x25d   :  { %4403 = vmatpush1.bf16.msra.mxu1 %v5947_v24  ;;  %4240 = vmatprep.subr.bf16.mxu0 %v5954_v25  ;;  %v1432_v24 = vld [vmem:[%s8687_s5 + $0xd00] sm:$0xff] }
 0x25e   :  { %4404 = vmatprep.subr.bf16.mxu1 %v5956_v26  ;;  %v1436_v25 = vld [vmem:[%s8687_s5 + $0xd20] sm:$0xff]  ;;  %v1433_v26 = vld [vmem:[%s8687_s5 + $0xd08] sm:$0xff] }
 0x25f   :  { %v6002_v39 = vcombine.high %v1432_v24, %v1436_v25  ;;  %v6004_v40 = vcombine.high %v1433_v26, %v1437_v28  ;;  %v6003_v10 = vcombine.low %v1433_v26, %v1437_v28  ;;  %v1476_v16 = vld [vmem:[%s8687_s5 + $0xe60] sm:$0xff]  ;;  %v1481_v26 = vld [vmem:[%s8687_s5 + $0xe88] sm:$0xff] }
 0x260   :  { %4241 = vmatpush1.bf16.msra.mxu0 %v5953_v41  ;;  %v1440_v41 = vld [vmem:[%s8687_s5 + $0xd40] sm:$0xff]  ;;  %v1485_v28 = vld [vmem:[%s8687_s5 + $0xea8] sm:$0xff] }
 0x261   :  { %4405 = vmatpush1.bf16.msra.mxu1 %v5955_v44  ;;  %4242 = vmatprep.subr.bf16.mxu0 %v5962_v45  ;;  %v1441_v44 = vld [vmem:[%s8687_s5 + $0xd48] sm:$0xff]  ;;  %v6010_v47 = vcombine.high %v1440_v41, %v1444_v43 }
 0x262   :  { %4406 = vmatprep.subr.bf16.mxu1 %v5964_v46  ;;  %v1445_v45 = vld [vmem:[%s8687_s5 + $0xd68] sm:$0xff]  ;;  %v6001_v46 = vcombine.low %v1432_v24, %v1436_v25  ;;  %v1480_v24 = vld [vmem:[%s8687_s5 + $0xe80] sm:$0xff] }
 0x263   :  { %v6012_v48 = vcombine.high %v1441_v44, %v1445_v45  ;;  %v1484_v25 = vld [vmem:[%s8687_s5 + $0xea0] sm:$0xff] }
 0x264   :  { %4243 = vmatpush1.bf16.msra.mxu0 %v5961_v50  ;;  %v1449_v50 = vld [vmem:[%s8687_s5 + $0xd88] sm:$0xff] }
 0x265   :  { %4407 = vmatpush1.bf16.msra.mxu1 %v5963_v52  ;;  %4253 = vmatprep.subr.bf16.mxu0 %v5970_v53  ;;  %v6009_v52 = vcombine.low %v1440_v41, %v1444_v43  ;;  %v6011_v53 = vcombine.low %v1441_v44, %v1445_v45  ;;  %v6020_v55 = vcombine.high %v1449_v50, %v1453_v51  ;;  %v1488_v41 = vld [vmem:[%s8687_s5 + $0xec0] sm:$0xff]  ;;  %v1489_v44 = vld [vmem:[%s8687_s5 + $0xec8] sm:$0xff] }
 0x266   :  { %4417 = vmatprep.subr.bf16.mxu1 %v5972_v54  ;;  %v6018_v54 = vcombine.high %v1448_v29, %v1452_v49  ;;  %v1492_v43 = vld [vmem:[%s8687_s5 + $0xee0] sm:$0xff]  ;;  %v1493_v45 = vld [vmem:[%s8687_s5 + $0xee8] sm:$0xff] }
 0x267   :  { %4245 = vmatmul.mubr.bf16.vlgmr.msra.gmra.mrb[12].mxu0 %v7473_v60  ;;  %v1496_v29 = vld [vmem:[%s8687_s5 + $0xf00] sm:$0xff] }
 0x268   :  { %4409 = vmatmul.mubr.bf16.vlgmr.msra.gmra.mrb[12].mxu1 %v7473_v60  ;;  %4254 = vmatpush1.bf16.msra.mxu0 %v5969_v57  ;;  %v1457_v57 = vld [vmem:[%s8687_s5 + $0xdc8] sm:$0xff]  ;;  %v1500_v49 = vld [vmem:[%s8687_s5 + $0xf20] sm:$0xff] }
 0x269   :  { %4285 = vmatprep.mubr.bf16.mxu0 %v7481_v0  ;;  %4418 = vmatpush1.bf16.msra.mxu1 %v5971_v61  ;;  %v6019_v61 = vcombine.low %v1449_v50, %v1453_v51  ;;  %v6028_v62 = vcombine.high %v1457_v57, %v1461_v58  ;;  %v1497_v50 = vld [vmem:[%s8687_s5 + $0xf08] sm:$0xff] }
 0x26a   :  { %4449 = vmatprep.mubr.bf16.mxu1 %v7481_v0  ;;  %4255 = vmatprep.subr.bf16.mxu0 %v5978_v17  ;;  %v6026_v17 = vcombine.high %v1456_v38, %v1460_v56  ;;  %v1501_v51 = vld [vmem:[%s8687_s5 + $0xf28] sm:$0xff] }
 0x26b   :  { %4419 = vmatprep.subr.bf16.mxu1 %v5980_v37  ;;  %v1468_v37 = vld [vmem:[%s8687_s5 + $0xe20] sm:$0xff] }
 0x26c   :  { %4256 = vmatpush1.bf16.msra.mxu0 %v5977_v3  ;;  %v6025_v3 = vcombine.low %v1456_v38, %v1460_v56  ;;  %v1504_v38 = vld [vmem:[%s8687_s5 + $0xf40] sm:$0xff] }
 0x26d   :  { %4420 = vmatpush1.bf16.msra.mxu1 %v5979_v4  ;;  %4257 = vmatprep.subr.bf16.mxu0 %v5986_v5  ;;  %v6027_v4 = vcombine.low %v1457_v57, %v1461_v58  ;;  %v6034_v5 = vcombine.high %v1464_v63, %v1468_v37  ;;  %v1508_v56 = vld [vmem:[%s8687_s5 + $0xf60] sm:$0xff]  ;;  %v1505_v57 = vld [vmem:[%s8687_s5 + $0xf48] sm:$0xff] }
 0x26e   :  { %4421 = vmatprep.subr.bf16.mxu1 %v5988_v7  ;;  %v6036_v7 = vcombine.high %v1465_v1, %v1469_v2  ;;  %v1509_v58 = vld [vmem:[%s8687_s5 + $0xf68] sm:$0xff] }
 0x270   :  { %4258 = vmatpush1.bf16.msra.mxu0 %v5985_v21  ;;  %v6033_v21 = vcombine.low %v1464_v63, %v1468_v37  ;;  %v6076_v63 = vcombine.high %v1505_v57, %v1509_v58  ;;  %v1512_v37 = vld [vmem:[%s8687_s5 + $0xf80] sm:$0xff] }
 0x271   :  { %4422 = vmatpush1.bf16.msra.mxu1 %v5987_v22  ;;  %4259 = vmatprep.subr.bf16.mxu0 %v5994_v8  ;;  %v6035_v22 = vcombine.low %v1465_v1, %v1469_v2  ;;  %v6042_v8 = vcombine.high %v1472_v14, %v1476_v16  ;;  %v1516_v1 = vld [vmem:[%s8687_s5 + $0xfa0] sm:$0xff]  ;;  %v1513_v2 = vld [vmem:[%s8687_s5 + $0xf88] sm:$0xff] }
 0x272   :  { %4423 = vmatprep.subr.bf16.mxu1 %v5996_v23  ;;  %v6044_v23 = vcombine.high %v1473_v18, %v1477_v19 }
 0x274   :  { %4260 = vmatpush1.bf16.msra.mxu0 %v5993_v32  ;;  %v6041_v32 = vcombine.low %v1472_v14, %v1476_v16  ;;  %v6075_v14 = vcombine.low %v1505_v57, %v1509_v58  ;;  %v6082_v16 = vcombine.high %v1512_v37, %v1516_v1 }
 0x275   :  { %4424 = vmatpush1.bf16.msra.mxu1 %v5995_v33  ;;  %4261 = vmatprep.subr.bf16.mxu0 %v6002_v39  ;;  %v6043_v33 = vcombine.low %v1473_v18, %v1477_v19  ;;  %v6050_v39 = vcombine.high %v1480_v24, %v1484_v25  ;;  %v1520_v19 = vld [vmem:[%s8687_s5 + $0xfc0] sm:$0xff] }
 0x276   :  { %4425 = vmatprep.subr.bf16.mxu1 %v6004_v40  ;;  %v6052_v40 = vcombine.high %v1481_v26, %v1485_v28 }
 0x278   :  { %4262 = vmatpush1.bf16.msra.mxu0 %v6001_v46  ;;  %v6049_v46 = vcombine.low %v1480_v24, %v1484_v25 }
 0x279   :  { %4426 = vmatpush1.bf16.msra.mxu1 %v6003_v10  ;;  %4263 = vmatprep.subr.bf16.mxu0 %v6010_v47  ;;  %v6051_v10 = vcombine.low %v1481_v26, %v1485_v28  ;;  %v6058_v47 = vcombine.high %v1488_v41, %v1492_v43 }
 0x27a   :  { %4427 = vmatprep.subr.bf16.mxu1 %v6012_v48  ;;  %v6060_v48 = vcombine.high %v1489_v44, %v1493_v45 }
 0x27c   :  { %4264 = vmatpush1.bf16.msra.mxu0 %v6009_v52  ;;  %v6057_v52 = vcombine.low %v1488_v41, %v1492_v43 }
 0x27d   :  { %4428 = vmatpush1.bf16.msra.mxu1 %v6011_v53  ;;  %4265 = vmatprep.subr.bf16.mxu0 %v6018_v54  ;;  %v6059_v53 = vcombine.low %v1489_v44, %v1493_v45  ;;  %v6066_v54 = vcombine.high %v1496_v29, %v1500_v49 }
 0x27e   :  { %4429 = vmatprep.subr.bf16.mxu1 %v6020_v55  ;;  %v6068_v55 = vcombine.high %v1497_v50, %v1501_v51 }
 0x280   :  { %4266 = vmatpush1.bf16.msra.mxu0 %v6017_v59  ;;  %v6065_v59 = vcombine.low %v1496_v29, %v1500_v49  ;;  %v1031_v29 = vld [vmem:[%s8687_s5 + $0x78] sm:$0xff] }
 0x281   :  { %4430 = vmatpush1.bf16.msra.mxu1 %v6019_v61  ;;  %4267 = vmatprep.subr.bf16.mxu0 %v6026_v17  ;;  %v502_v61 = vsub.s32 6, %v6581_v30  ;;  %v6067_v17 = vcombine.low %v1497_v50, %v1501_v51 }
 0x282   :  { %4431 = vmatprep.subr.bf16.mxu1 %v6028_v62  ;;  %v6074_v62 = vcombine.high %v1504_v38, %v1508_v56 }
 0x284   :  { %4268 = vmatpush1.bf16.msra.mxu0 %v6025_v3  ;;  %v1517_v3 = vld [vmem:[%s8687_s5 + $0xfa8] sm:$0xff] }
 0x285   :  { %4432 = vmatpush1.bf16.msra.mxu1 %v6027_v4  ;;  %4269 = vmatprep.subr.bf16.mxu0 %v6034_v5  ;;  %v6073_v4 = vcombine.low %v1504_v38, %v1508_v56  ;;  %v6450_v5 = vld [vmem:[%s8688_s4] sm:$0xff]  ;;  %v6084_v18 = vcombine.high %v1513_v2, %v1517_v3  ;;  %v6083_v25 = vcombine.low %v1513_v2, %v1517_v3  ;;  %v1039_v38 = vld [vmem:[%s8687_s5 + $0xb8] sm:$0xff] }
 0x286   :  { %4433 = vmatprep.subr.bf16.mxu1 %v6036_v7  ;;  %v503_v7 = vrot.slane %v6450_v5, %v502_v61  ;;  %v1054_v5 = vld [vmem:[%s8687_s5 + $0x130] sm:$0xff] }
 0x288   :  { %4270 = vmatpush1.bf16.msra.mxu0 %v6033_v21  ;;  %v1524_v21 = vld [vmem:[%s8687_s5 + $0xfe0] sm:$0xff]  ;;  %v994_v24 = vadd.f32 %v7130_v31, %v503_v7  ;;  %v1023_v31 = vld [vmem:[%s8687_s5 + $0x38] sm:$0xff] }
 0x289   :  { %4434 = vmatpush1.bf16.msra.mxu1 %v6035_v22  ;;  %4271 = vmatprep.subr.bf16.mxu0 %v6042_v8  ;;  %v1521_v22 = vld [vmem:[%s8687_s5 + $0xfc8] sm:$0xff]  ;;  %v6090_v26 = vcombine.high %v1520_v19, %v1524_v21  ;;  %v1051_v7 = vld [vmem:[%s8687_s5 + $0x118] sm:$0xff] }
 0x28a   :  { %4435 = vmatprep.subr.bf16.mxu1 %v6044_v23  ;;  %v1525_v8 = vld [vmem:[%s8687_s5 + $0xfe8] sm:$0xff]  ;;  %v6081_v23 = vcombine.low %v1512_v37, %v1516_v1  ;;  %v1006_v41 = vmax.f32 %v994_v24, 0.0  ;;  %v1047_v37 = vld [vmem:[%s8687_s5 + $0xf8] sm:$0xff] }
 0x28b   :  { %v6092_v28 = vcombine.high %v1521_v22, %v1525_v8  ;;  %v6091_v43 = vcombine.low %v1521_v22, %v1525_v8  ;;  %v1058_v22 = vld [vmem:[%s8687_s5 + $0x150] sm:$0xff]  ;;  %v1063_v24 = vld [vmem:[%s8687_s5 + $0x178] sm:$0xff] }
 0x28c   :  { %4272 = vmatpush1.bf16.msra.mxu0 %v6041_v32  ;;  %v1018_v32 = vld [vmem:[%s8687_s5 + $0x10] sm:$0xff]  ;;  %v7680_v49 = vpack.c.bf16 %v1006_v41, %v1006_v41 }
 0x28d   :  { %4436 = vmatpush1.bf16.msra.mxu1 %v6043_v33  ;;  %4273 = vmatprep.subr.bf16.mxu0 %v6050_v39  ;;  %v1022_v33 = vld [vmem:[%s8687_s5 + $0x30] sm:$0xff]  ;;  %v1019_v39 = vld [vmem:[%s8687_s5 + $0x18] sm:$0xff] }
 0x28e   :  { %4437 = vmatprep.subr.bf16.mxu1 %v6052_v40  ;;  %v6089_v40 = vcombine.low %v1520_v19, %v1524_v21  ;;  %v5590_v44 = vcombine.high %v1018_v32, %v1022_v33  ;;  %v5592_v45 = vcombine.high %v1019_v39, %v1023_v31  ;;  %v5591_v50 = vcombine.low %v1019_v39, %v1023_v31  ;;  %v1062_v8 = vld [vmem:[%s8687_s5 + $0x170] sm:$0xff]  ;;  %v1067_v31 = vld [vmem:[%s8687_s5 + $0x198] sm:$0xff] }
 0x28f   :  { %v1070_v39 = vld [vmem:[%s8687_s5 + $0x1b0] sm:$0xff]  ;;  %v5629_v41 = vcombine.low %v1058_v22, %v1062_v8 }
 0x290   :  { %4274 = vmatpush1.bf16.msra.mxu0 %v6049_v46  ;;  %v1026_v46 = vld [vmem:[%s8687_s5 + $0x50] sm:$0xff] }
 0x291   :  { %4438 = vmatpush1.bf16.msra.mxu1 %v6051_v10  ;;  %4275 = vmatprep.subr.bf16.mxu0 %v6058_v47  ;;  %v1030_v10 = vld [vmem:[%s8687_s5 + $0x70] sm:$0xff]  ;;  %v5589_v47 = vcombine.low %v1018_v32, %v1022_v33 }
 0x292   :  { %4439 = vmatprep.subr.bf16.mxu1 %v6060_v48  ;;  %v1027_v48 = vld [vmem:[%s8687_s5 + $0x58] sm:$0xff]  ;;  %v5598_v51 = vcombine.high %v1026_v46, %v1030_v10  ;;  %v5597_v56 = vcombine.low %v1026_v46, %v1030_v10  ;;  %v1066_v33 = vld [vmem:[%s8687_s5 + $0x190] sm:$0xff] }
 0x293   :  { %v5599_v57 = vcombine.low %v1027_v48, %v1031_v29  ;;  %v1074_v46 = vld [vmem:[%s8687_s5 + $0x1d0] sm:$0xff] }
 0x294   :  { %4276 = vmatpush1.bf16.msra.mxu0 %v6057_v52  ;;  %v1034_v52 = vld [vmem:[%s8687_s5 + $0x90] sm:$0xff] }
 0x295   :  { %4440 = vmatpush1.bf16.msra.mxu1 %v6059_v53  ;;  %4277 = vmatprep.subr.bf16.mxu0 %v6066_v54  ;;  %v1038_v53 = vld [vmem:[%s8687_s5 + $0xb0] sm:$0xff]  ;;  %v5600_v54 = vcombine.high %v1027_v48, %v1031_v29  ;;  %v1079_v48 = vld [vmem:[%s8687_s5 + $0x1f8] sm:$0xff]  ;;  %v5637_v29 = vcombine.low %v1066_v33, %v1070_v39 }
 0x296   :  { %4441 = vmatprep.subr.bf16.mxu1 %v6068_v55  ;;  %v1035_v55 = vld [vmem:[%s8687_s5 + $0x98] sm:$0xff]  ;;  %v5606_v58 = vcombine.high %v1034_v52, %v1038_v53  ;;  %v1078_v10 = vld [vmem:[%s8687_s5 + $0x1f0] sm:$0xff] }
 0x297   :  { %v5607_v1 = vcombine.low %v1035_v55, %v1039_v38 }
 0x298   :  { %4278 = vmatpush1.bf16.msra.mxu0 %v6065_v59  ;;  %v5608_v59 = vcombine.high %v1035_v55, %v1039_v38  ;;  %v1083_v55 = vld [vmem:[%s8687_s5 + $0x218] sm:$0xff] }
 0x299   :  { %4442 = vmatpush1.bf16.msra.mxu1 %v6067_v17  ;;  %4279 = vmatprep.subr.bf16.mxu0 %v6074_v62  ;;  %v1042_v17 = vld [vmem:[%s8687_s5 + $0xd0] sm:$0xff]  ;;  %v1087_v38 = vld [vmem:[%s8687_s5 + $0x238] sm:$0xff] }
 0x29a   :  { %4443 = vmatprep.subr.bf16.mxu1 %v6076_v63  ;;  %v1046_v62 = vld [vmem:[%s8687_s5 + $0xf0] sm:$0xff]  ;;  %v1043_v63 = vld [vmem:[%s8687_s5 + $0xd8] sm:$0xff] }
 0x29b   :  { %v5614_v2 = vcombine.high %v1042_v17, %v1046_v62  ;;  %v5616_v3 = vcombine.high %v1043_v63, %v1047_v37 }
 0x29c   :  { %4280 = vmatpush1.bf16.msra.mxu0 %v6073_v4  ;;  %v1050_v4 = vld [vmem:[%s8687_s5 + $0x110] sm:$0xff] }
 0x29d   :  { %4444 = vmatpush1.bf16.msra.mxu1 %v6075_v14  ;;  %4281 = vmatprep.subr.bf16.mxu0 %v6082_v16  ;;  %v1055_v14 = vld [vmem:[%s8687_s5 + $0x138] sm:$0xff]  ;;  %v5613_v16 = vcombine.low %v1042_v17, %v1046_v62  ;;  %v5622_v19 = vcombine.high %v1050_v4, %v1054_v5  ;;  %v1090_v17 = vld [vmem:[%s8687_s5 + $0x250] sm:$0xff] }
 0x29e   :  { %4445 = vmatprep.subr.bf16.mxu1 %v6084_v18  ;;  %v5615_v18 = vcombine.low %v1043_v63, %v1047_v37  ;;  %v5624_v21 = vcombine.high %v1051_v7, %v1055_v14  ;;  %v1094_v62 = vld [vmem:[%s8687_s5 + $0x270] sm:$0xff]  ;;  %v1091_v63 = vld [vmem:[%s8687_s5 + $0x258] sm:$0xff] }
 0x29f   :  { %v1095_v37 = vld [vmem:[%s8687_s5 + $0x278] sm:$0xff] }
 0x2a0   :  { %4282 = vmatpush1.bf16.msra.mxu0 %v6081_v23  ;;  %v1059_v23 = vld [vmem:[%s8687_s5 + $0x158] sm:$0xff] }
 0x2a1   :  { %4446 = vmatpush1.bf16.msra.mxu1 %v6083_v25  ;;  %4283 = vmatprep.subr.bf16.mxu0 %v6090_v26  ;;  %v5621_v25 = vcombine.low %v1050_v4, %v1054_v5  ;;  %v5623_v26 = vcombine.low %v1051_v7, %v1055_v14  ;;  %v5632_v32 = vcombine.high %v1059_v23, %v1063_v24  ;;  %v1098_v4 = vld [vmem:[%s8687_s5 + $0x290] sm:$0xff]  ;;  %v1099_v7 = vld [vmem:[%s8687_s5 + $0x298] sm:$0xff] }
 0x2a2   :  { %4447 = vmatprep.subr.bf16.mxu1 %v6092_v28  ;;  %v5630_v28 = vcombine.high %v1058_v22, %v1062_v8  ;;  %v1102_v5 = vld [vmem:[%s8687_s5 + $0x2b0] sm:$0xff]  ;;  %v1103_v14 = vld [vmem:[%s8687_s5 + $0x2b8] sm:$0xff] }
 0x2a3   :  { %v1106_v22 = vld [vmem:[%s8687_s5 + $0x2d0] sm:$0xff] }
 0x2a4   :  { %4284 = vmatpush1.bf16.msra.mxu0 %v6089_v40  ;;  %v1071_v40 = vld [vmem:[%s8687_s5 + $0x1b8] sm:$0xff]  ;;  %v1110_v8 = vld [vmem:[%s8687_s5 + $0x2f0] sm:$0xff] }
 0x2a5   :  { %4448 = vmatpush1.bf16.msra.mxu1 %v6091_v43  ;;  %4458 = vmatprep.subr.bf16.mxu0 %v5590_v44  ;;  %v5631_v43 = vcombine.low %v1059_v23, %v1063_v24  ;;  %v5638_v44 = vcombine.high %v1066_v33, %v1070_v39  ;;  %v1107_v23 = vld [vmem:[%s8687_s5 + $0x2d8] sm:$0xff]  ;;  %v1114_v33 = vld [vmem:[%s8687_s5 + $0x310] sm:$0xff] }
 0x2a6   :  { %4622 = vmatprep.subr.bf16.mxu1 %v5592_v45  ;;  %v5640_v45 = vcombine.high %v1067_v31, %v1071_v40  ;;  %v1111_v24 = vld [vmem:[%s8687_s5 + $0x2f8] sm:$0xff]  ;;  %v1118_v39 = vld [vmem:[%s8687_s5 + $0x330] sm:$0xff] }
 0x2a7   :  { %4286 = vmatmul.mubr.bf16.vlgmr.msra.gmra.mrb[12].mxu0 %v7680_v49 }
 0x2a8   :  { %4450 = vmatmul.mubr.bf16.vlgmr.msra.gmra.mrb[12].mxu1 %v7680_v49  ;;  %4459 = vmatpush1.bf16.msra.mxu0 %v5589_v47  ;;  %v1075_v47 = vld [vmem:[%s8687_s5 + $0x1d8] sm:$0xff] }
 0x2a9   :  { %4490 = vmatprep.mubr.bf16.mxu0 %v7041_v34  ;;  %4623 = vmatpush1.bf16.msra.mxu1 %v5591_v50  ;;  %v5639_v50 = vcombine.low %v1067_v31, %v1071_v40  ;;  %v1115_v31 = vld [vmem:[%s8687_s5 + $0x318] sm:$0xff] }
 0x2aa   :  { %4654 = vmatprep.mubr.bf16.mxu1 %v7041_v34  ;;  %4460 = vmatprep.subr.bf16.mxu0 %v5598_v51  ;;  %v5605_v34 = vcombine.low %v1034_v52, %v1038_v53  ;;  %v5646_v51 = vcombine.high %v1074_v46, %v1078_v10  ;;  %v5648_v52 = vcombine.high %v1075_v47, %v1079_v48  ;;  %v1082_v53 = vld [vmem:[%s8687_s5 + $0x210] sm:$0xff]  ;;  %v1119_v40 = vld [vmem:[%s8687_s5 + $0x338] sm:$0xff] }
 0x2ab   :  { %4624 = vmatprep.subr.bf16.mxu1 %v5600_v54  ;;  %v1086_v54 = vld [vmem:[%s8687_s5 + $0x230] sm:$0xff] }
 0x2ac   :  { %4461 = vmatpush1.bf16.msra.mxu0 %v5597_v56  ;;  %v5645_v56 = vcombine.low %v1074_v46, %v1078_v10  ;;  %v1122_v46 = vld [vmem:[%s8687_s5 + $0x350] sm:$0xff] }
 0x2ad   :  { %4625 = vmatpush1.bf16.msra.mxu1 %v5599_v57  ;;  %4462 = vmatprep.subr.bf16.mxu0 %v5606_v58  ;;  %v5647_v57 = vcombine.low %v1075_v47, %v1079_v48  ;;  %v5654_v58 = vcombine.high %v1082_v53, %v1086_v54  ;;  %v1126_v10 = vld [vmem:[%s8687_s5 + $0x370] sm:$0xff]  ;;  %v1123_v47 = vld [vmem:[%s8687_s5 + $0x358] sm:$0xff] }
 0x2ae   :  { %4626 = vmatprep.subr.bf16.mxu1 %v5608_v59  ;;  %v5656_v59 = vcombine.high %v1083_v55, %v1087_v38  ;;  %v1127_v48 = vld [vmem:[%s8687_s5 + $0x378] sm:$0xff] }
 0x2b0   :  { %4463 = vmatpush1.bf16.msra.mxu0 %v5605_v34  ;;  %v5653_v34 = vcombine.low %v1082_v53, %v1086_v54  ;;  %v1130_v53 = vld [vmem:[%s8687_s5 + $0x390] sm:$0xff] }
 0x2b1   :  { %4627 = vmatpush1.bf16.msra.mxu1 %v5607_v1  ;;  %4464 = vmatprep.subr.bf16.mxu0 %v5614_v2  ;;  %v5655_v1 = vcombine.low %v1083_v55, %v1087_v38  ;;  %v5662_v2 = vcombine.high %v1090_v17, %v1094_v62  ;;  %v1134_v54 = vld [vmem:[%s8687_s5 + $0x3b0] sm:$0xff]  ;;  %v1131_v55 = vld [vmem:[%s8687_s5 + $0x398] sm:$0xff] }
 0x2b2   :  { %4628 = vmatprep.subr.bf16.mxu1 %v5616_v3  ;;  %v5664_v3 = vcombine.high %v1091_v63, %v1095_v37  ;;  %v1135_v38 = vld [vmem:[%s8687_s5 + $0x3b8] sm:$0xff] }
 0x2b4   :  { %4465 = vmatpush1.bf16.msra.mxu0 %v5613_v16  ;;  %v5661_v16 = vcombine.low %v1090_v17, %v1094_v62  ;;  %v1138_v17 = vld [vmem:[%s8687_s5 + $0x3d0] sm:$0xff] }
 0x2b5   :  { %4629 = vmatpush1.bf16.msra.mxu1 %v5615_v18  ;;  %4466 = vmatprep.subr.bf16.mxu0 %v5622_v19  ;;  %v5663_v18 = vcombine.low %v1091_v63, %v1095_v37  ;;  %v5670_v19 = vcombine.high %v1098_v4, %v1102_v5  ;;  %v1142_v62 = vld [vmem:[%s8687_s5 + $0x3f0] sm:$0xff]  ;;  %v1139_v63 = vld [vmem:[%s8687_s5 + $0x3d8] sm:$0xff] }
 0x2b6   :  { %4630 = vmatprep.subr.bf16.mxu1 %v5624_v21  ;;  %v5672_v21 = vcombine.high %v1099_v7, %v1103_v14  ;;  %v1143_v37 = vld [vmem:[%s8687_s5 + $0x3f8] sm:$0xff] }
 0x2b8   :  { %4467 = vmatpush1.bf16.msra.mxu0 %v5621_v25  ;;  %v5669_v25 = vcombine.low %v1098_v4, %v1102_v5  ;;  %v1146_v4 = vld [vmem:[%s8687_s5 + $0x410] sm:$0xff] }
 0x2b9   :  { %4631 = vmatpush1.bf16.msra.mxu1 %v5623_v26  ;;  %4468 = vmatprep.subr.bf16.mxu0 %v5630_v28  ;;  %v5671_v26 = vcombine.low %v1099_v7, %v1103_v14  ;;  %v5678_v28 = vcombine.high %v1106_v22, %v1110_v8  ;;  %v1150_v5 = vld [vmem:[%s8687_s5 + $0x430] sm:$0xff]  ;;  %v1147_v7 = vld [vmem:[%s8687_s5 + $0x418] sm:$0xff] }
 0x2ba   :  { %4632 = vmatprep.subr.bf16.mxu1 %v5632_v32  ;;  %v5680_v32 = vcombine.high %v1107_v23, %v1111_v24  ;;  %v1151_v14 = vld [vmem:[%s8687_s5 + $0x438] sm:$0xff] }
 0x2bc   :  { %4469 = vmatpush1.bf16.msra.mxu0 %v5629_v41  ;;  %v5677_v41 = vcombine.low %v1106_v22, %v1110_v8  ;;  %v1154_v22 = vld [vmem:[%s8687_s5 + $0x450] sm:$0xff] }
 0x2bd   :  { %4633 = vmatpush1.bf16.msra.mxu1 %v5631_v43  ;;  %4470 = vmatprep.subr.bf16.mxu0 %v5638_v44  ;;  %v5679_v43 = vcombine.low %v1107_v23, %v1111_v24  ;;  %v5686_v44 = vcombine.high %v1114_v33, %v1118_v39  ;;  %v1158_v8 = vld [vmem:[%s8687_s5 + $0x470] sm:$0xff]  ;;  %v5717_v23 = vcombine.low %v1146_v4, %v1150_v5  ;;  %v1155_v24 = vld [vmem:[%s8687_s5 + $0x458] sm:$0xff] }
 0x2be   :  { %4634 = vmatprep.subr.bf16.mxu1 %v5640_v45  ;;  %v5688_v45 = vcombine.high %v1115_v31, %v1119_v40 }
 0x2c0   :  { %4471 = vmatpush1.bf16.msra.mxu0 %v5637_v29  ;;  %v5685_v29 = vcombine.low %v1114_v33, %v1118_v39  ;;  %v1166_v33 = vld [vmem:[%s8687_s5 + $0x4b0] sm:$0xff] }
 0x2c1   :  { %4635 = vmatpush1.bf16.msra.mxu1 %v5639_v50  ;;  %4472 = vmatprep.subr.bf16.mxu0 %v5646_v51  ;;  %v5687_v50 = vcombine.low %v1115_v31, %v1119_v40  ;;  %v5694_v51 = vcombine.high %v1122_v46, %v1126_v10  ;;  %v1163_v31 = vld [vmem:[%s8687_s5 + $0x498] sm:$0xff] }
 0x2c2   :  { %4636 = vmatprep.subr.bf16.mxu1 %v5648_v52  ;;  %v5696_v52 = vcombine.high %v1123_v47, %v1127_v48  ;;  %v1167_v40 = vld [vmem:[%s8687_s5 + $0x4b8] sm:$0xff] }
 0x2c4   :  { %4473 = vmatpush1.bf16.msra.mxu0 %v5645_v56  ;;  %v5693_v56 = vcombine.low %v1122_v46, %v1126_v10  ;;  %v1170_v46 = vld [vmem:[%s8687_s5 + $0x4d0] sm:$0xff] }
 0x2c5   :  { %4637 = vmatpush1.bf16.msra.mxu1 %v5647_v57  ;;  %4474 = vmatprep.subr.bf16.mxu0 %v5654_v58  ;;  %v5695_v57 = vcombine.low %v1123_v47, %v1127_v48  ;;  %v5702_v58 = vcombine.high %v1130_v53, %v1134_v54  ;;  %v1174_v10 = vld [vmem:[%s8687_s5 + $0x4f0] sm:$0xff]  ;;  %v1175_v47 = vld [vmem:[%s8687_s5 + $0x4f8] sm:$0xff]  ;;  %v5735_v48 = vcombine.low %v1163_v31, %v1167_v40 }
 0x2c6   :  { %4638 = vmatprep.subr.bf16.mxu1 %v5656_v59  ;;  %v5704_v59 = vcombine.high %v1131_v55, %v1135_v38 }
 0x2c8   :  { %4475 = vmatpush1.bf16.msra.mxu0 %v5653_v34  ;;  %v5701_v34 = vcombine.low %v1130_v53, %v1134_v54  ;;  %v1179_v53 = vld [vmem:[%s8687_s5 + $0x518] sm:$0xff] }
 0x2c9   :  { %4639 = vmatpush1.bf16.msra.mxu1 %v5655_v1  ;;  %4476 = vmatprep.subr.bf16.mxu0 %v5662_v2  ;;  %v5703_v1 = vcombine.low %v1131_v55, %v1135_v38  ;;  %v5710_v2 = vcombine.high %v1138_v17, %v1142_v62  ;;  %v1183_v54 = vld [vmem:[%s8687_s5 + $0x538] sm:$0xff]  ;;  %v5741_v55 = vcombine.low %v1170_v46, %v1174_v10 }
 0x2ca   :  { %4640 = vmatprep.subr.bf16.mxu1 %v5664_v3  ;;  %v5712_v3 = vcombine.high %v1139_v63, %v1143_v37 }
 0x2cc   :  { %4477 = vmatpush1.bf16.msra.mxu0 %v5661_v16  ;;  %v5709_v16 = vcombine.low %v1138_v17, %v1142_v62  ;;  %v1187_v17 = vld [vmem:[%s8687_s5 + $0x558] sm:$0xff] }
 0x2cd   :  { %4641 = vmatpush1.bf16.msra.mxu1 %v5663_v18  ;;  %4478 = vmatprep.subr.bf16.mxu0 %v5670_v19  ;;  %v5711_v18 = vcombine.low %v1139_v63, %v1143_v37  ;;  %v5718_v19 = vcombine.high %v1146_v4, %v1150_v5  ;;  %v1191_v62 = vld [vmem:[%s8687_s5 + $0x578] sm:$0xff]  ;;  %v5751_v37 = vcombine.low %v1179_v53, %v1183_v54 }
 0x2ce   :  { %4642 = vmatprep.subr.bf16.mxu1 %v5672_v21  ;;  %v5720_v21 = vcombine.high %v1147_v7, %v1151_v14  ;;  %v1195_v4 = vld [vmem:[%s8687_s5 + $0x598] sm:$0xff] }
 0x2cf   :  { %v1199_v5 = vld [vmem:[%s8687_s5 + $0x5b8] sm:$0xff] }
 0x2d0   :  { %4479 = vmatpush1.bf16.msra.mxu0 %v5669_v25  ;;  %v1159_v25 = vld [vmem:[%s8687_s5 + $0x478] sm:$0xff] }
 0x2d1   :  { %4643 = vmatpush1.bf16.msra.mxu1 %v5671_v26  ;;  %4480 = vmatprep.subr.bf16.mxu0 %v5678_v28  ;;  %v5719_v26 = vcombine.low %v1147_v7, %v1151_v14  ;;  %v5726_v28 = vcombine.high %v1154_v22, %v1158_v8  ;;  %v5728_v39 = vcombine.high %v1155_v24, %v1159_v25 }
 0x2d2   :  { %4644 = vmatprep.subr.bf16.mxu1 %v5680_v32  ;;  %v1162_v32 = vld [vmem:[%s8687_s5 + $0x490] sm:$0xff]  ;;  %v5759_v14 = vcombine.low %v1187_v17, %v1191_v62 }
 0x2d4   :  { %4481 = vmatpush1.bf16.msra.mxu0 %v5677_v41  ;;  %v5725_v41 = vcombine.low %v1154_v22, %v1158_v8  ;;  %v1203_v22 = vld [vmem:[%s8687_s5 + $0x5d8] sm:$0xff] }
 0x2d5   :  { %4645 = vmatpush1.bf16.msra.mxu1 %v5679_v43  ;;  %4482 = vmatprep.subr.bf16.mxu0 %v5686_v44  ;;  %v5727_v43 = vcombine.low %v1155_v24, %v1159_v25  ;;  %v5734_v44 = vcombine.high %v1162_v32, %v1166_v33  ;;  %v1207_v8 = vld [vmem:[%s8687_s5 + $0x5f8] sm:$0xff]  ;;  %v5767_v24 = vcombine.low %v1195_v4, %v1199_v5 }
 0x2d6   :  { %4646 = vmatprep.subr.bf16.mxu1 %v5688_v45  ;;  %v5736_v45 = vcombine.high %v1163_v31, %v1167_v40  ;;  %v5775_v40 = vcombine.low %v1203_v22, %v1207_v8 }
 0x2d8   :  { %4483 = vmatpush1.bf16.msra.mxu0 %v5685_v29  ;;  %v5742_v29 = vcombine.high %v1170_v46, %v1174_v10  ;;  %v1219_v46 = vld [vmem:[%s8687_s5 + $0x658] sm:$0xff] }
 0x2d9   :  { %4647 = vmatpush1.bf16.msra.mxu1 %v5687_v50  ;;  %4484 = vmatprep.subr.bf16.mxu0 %v5694_v51  ;;  %v1178_v51 = vld [vmem:[%s8687_s5 + $0x510] sm:$0xff]  ;;  %v1223_v10 = vld [vmem:[%s8687_s5 + $0x678] sm:$0xff] }
 0x2da   :  { %4648 = vmatprep.subr.bf16.mxu1 %v5696_v52  ;;  %v1182_v52 = vld [vmem:[%s8687_s5 + $0x530] sm:$0xff] }
 0x2db   :  { %v5749_v63 = vcombine.low %v1178_v51, %v1182_v52 }
 0x2dc   :  { %4485 = vmatpush1.bf16.msra.mxu0 %v5693_v56  ;;  %v5750_v56 = vcombine.high %v1178_v51, %v1182_v52  ;;  %v1227_v51 = vld [vmem:[%s8687_s5 + $0x698] sm:$0xff] }
 0x2dd   :  { %4649 = vmatpush1.bf16.msra.mxu1 %v5695_v57  ;;  %4486 = vmatprep.subr.bf16.mxu0 %v5702_v58  ;;  %v5752_v57 = vcombine.high %v1179_v53, %v1183_v54  ;;  %v1186_v58 = vld [vmem:[%s8687_s5 + $0x550] sm:$0xff]  ;;  %v1231_v52 = vld [vmem:[%s8687_s5 + $0x6b8] sm:$0xff]  ;;  %v5791_v54 = vcombine.low %v1219_v46, %v1223_v10 }
 0x2de   :  { %4650 = vmatprep.subr.bf16.mxu1 %v5704_v59  ;;  %v1190_v59 = vld [vmem:[%s8687_s5 + $0x570] sm:$0xff] }
 0x2df   :  { %v5757_v7 = vcombine.low %v1186_v58, %v1190_v59 }
 0x2e0   :  { %4487 = vmatpush1.bf16.msra.mxu0 %v5701_v34  ;;  %v5758_v34 = vcombine.high %v1186_v58, %v1190_v59  ;;  %v1235_v58 = vld [vmem:[%s8687_s5 + $0x6d8] sm:$0xff] }
 0x2e1   :  { %4651 = vmatpush1.bf16.msra.mxu1 %v5703_v1  ;;  %4488 = vmatprep.subr.bf16.mxu0 %v5710_v2  ;;  %v5760_v1 = vcombine.high %v1187_v17, %v1191_v62  ;;  %v1194_v2 = vld [vmem:[%s8687_s5 + $0x590] sm:$0xff]  ;;  %v1239_v59 = vld [vmem:[%s8687_s5 + $0x6f8] sm:$0xff]  ;;  %v5799_v62 = vcombine.low %v1227_v51, %v1231_v52 }
 0x2e2   :  { %4652 = vmatprep.subr.bf16.mxu1 %v5712_v3  ;;  %v1198_v3 = vld [vmem:[%s8687_s5 + $0x5b0] sm:$0xff] }
 0x2e4   :  { %4489 = vmatpush1.bf16.msra.mxu0 %v5709_v16  ;;  %v5766_v16 = vcombine.high %v1194_v2, %v1198_v3 }
 0x2e5   :  { %4653 = vmatpush1.bf16.msra.mxu1 %v5711_v18  ;;  %4499 = vmatprep.subr.bf16.mxu0 %v5718_v19  ;;  %v5768_v18 = vcombine.high %v1195_v4, %v1199_v5  ;;  %v1202_v19 = vld [vmem:[%s8687_s5 + $0x5d0] sm:$0xff]  ;;  %v5807_v5 = vcombine.low %v1235_v58, %v1239_v59 }
 0x2e6   :  { %4663 = vmatprep.subr.bf16.mxu1 %v5720_v21  ;;  %v1206_v21 = vld [vmem:[%s8687_s5 + $0x5f0] sm:$0xff] }
 0x2e7   :  { %4491 = vmatmul.mubr.bf16.vlgmr.msra.gmra.mrb[16].mxu0 %v7043_v35  ;;  %v5774_v25 = vcombine.high %v1202_v19, %v1206_v21  ;;  %v5773_v31 = vcombine.low %v1202_v19, %v1206_v21  ;;  %v1251_v19 = vld [vmem:[%s8687_s5 + $0x758] sm:$0xff] }
 0x2e8   :  { %4655 = vmatmul.mubr.bf16.vlgmr.msra.gmra.mrb[16].mxu1 %v7043_v35  ;;  %4500 = vmatpush1.bf16.msra.mxu0 %v5717_v23  ;;  %v1171_v35 = vld [vmem:[%s8687_s5 + $0x4d8] sm:$0xff]  ;;  %v5765_v23 = vcombine.low %v1194_v2, %v1198_v3 }
 0x2e9   :  { %4531 = vmatprep.mubr.bf16.mxu0 %v7059_v42  ;;  %4664 = vmatpush1.bf16.msra.mxu1 %v5719_v26  ;;  %v5744_v50 = vcombine.high %v1171_v35, %v1175_v47  ;;  %v5743_v38 = vcombine.low %v1171_v35, %v1175_v47  ;;  %v5776_v26 = vcombine.high %v1203_v22, %v1207_v8  ;;  %v1243_v2 = vld [vmem:[%s8687_s5 + $0x718] sm:$0xff] }
 0x2ea   :  { %4695 = vmatprep.mubr.bf16.mxu1 %v7059_v42  ;;  %4501 = vmatprep.subr.bf16.mxu0 %v5726_v28  ;;  %v5733_v42 = vcombine.low %v1162_v32, %v1166_v33  ;;  %v1210_v28 = vld [vmem:[%s8687_s5 + $0x610] sm:$0xff]  ;;  %v1211_v33 = vld [vmem:[%s8687_s5 + $0x618] sm:$0xff] }
 0x2eb   :  { %4665 = vmatprep.subr.bf16.mxu1 %v5728_v39  ;;  %v1214_v32 = vld [vmem:[%s8687_s5 + $0x630] sm:$0xff]  ;;  %v1215_v39 = vld [vmem:[%s8687_s5 + $0x638] sm:$0xff] }
 0x2ec   :  { %4502 = vmatpush1.bf16.msra.mxu0 %v5725_v41  ;;  %v5782_v41 = vcombine.high %v1210_v28, %v1214_v32  ;;  %v5781_v35 = vcombine.low %v1210_v28, %v1214_v32  ;;  %v5783_v47 = vcombine.low %v1211_v33, %v1215_v39  ;;  %v1247_v3 = vld [vmem:[%s8687_s5 + $0x738] sm:$0xff] }
 0x2ed   :  { %4666 = vmatpush1.bf16.msra.mxu1 %v5727_v43  ;;  %4503 = vmatprep.subr.bf16.mxu0 %v5734_v44  ;;  %v5784_v43 = vcombine.high %v1211_v33, %v1215_v39  ;;  %v1218_v44 = vld [vmem:[%s8687_s5 + $0x650] sm:$0xff]  ;;  %v1255_v21 = vld [vmem:[%s8687_s5 + $0x778] sm:$0xff]  ;;  %v5815_v8 = vcombine.low %v1243_v2, %v1247_v3 }
 0x2ee   :  { %4667 = vmatprep.subr.bf16.mxu1 %v5736_v45  ;;  %v1222_v45 = vld [vmem:[%s8687_s5 + $0x670] sm:$0xff]  ;;  %v1259_v28 = vld [vmem:[%s8687_s5 + $0x798] sm:$0xff]  ;;  %v5823_v39 = vcombine.low %v1251_v19, %v1255_v21 }
 0x2ef   :  { %v5789_v53 = vcombine.low %v1218_v44, %v1222_v45  ;;  %v1263_v32 = vld [vmem:[%s8687_s5 + $0x7b8] sm:$0xff] }
 0x2f0   :  { %4504 = vmatpush1.bf16.msra.mxu0 %v5733_v42  ;;  %v5790_v42 = vcombine.high %v1218_v44, %v1222_v45  ;;  %v1267_v44 = vld [vmem:[%s8687_s5 + $0x7d8] sm:$0xff] }
 0x2f1   :  { %4668 = vmatpush1.bf16.msra.mxu1 %v5735_v48  ;;  %4505 = vmatprep.subr.bf16.mxu0 %v5742_v29  ;;  %v5792_v48 = vcombine.high %v1219_v46, %v1223_v10  ;;  %v1226_v29 = vld [vmem:[%s8687_s5 + $0x690] sm:$0xff]  ;;  %v1271_v45 = vld [vmem:[%s8687_s5 + $0x7f8] sm:$0xff]  ;;  %v5831_v10 = vcombine.low %v1259_v28, %v1263_v32 }
 0x2f2   :  { %4669 = vmatprep.subr.bf16.mxu1 %v5744_v50  ;;  %v1230_v50 = vld [vmem:[%s8687_s5 + $0x6b0] sm:$0xff] }
 0x2f3   :  { %v5797_v17 = vcombine.low %v1226_v29, %v1230_v50 }
 0x2f4   :  { %4506 = vmatpush1.bf16.msra.mxu0 %v5741_v55  ;;  %v5798_v55 = vcombine.high %v1226_v29, %v1230_v50  ;;  %v1275_v29 = vld [vmem:[%s8687_s5 + $0x818] sm:$0xff] }
 0x2f5   :  { %4670 = vmatpush1.bf16.msra.mxu1 %v5743_v38  ;;  %4507 = vmatprep.subr.bf16.mxu0 %v5750_v56  ;;  %v5800_v38 = vcombine.high %v1227_v51, %v1231_v52  ;;  %v1234_v56 = vld [vmem:[%s8687_s5 + $0x6d0] sm:$0xff]  ;;  %v1279_v50 = vld [vmem:[%s8687_s5 + $0x838] sm:$0xff]  ;;  %v5839_v52 = vcombine.low %v1267_v44, %v1271_v45 }
 0x2f6   :  { %4671 = vmatprep.subr.bf16.mxu1 %v5752_v57  ;;  %v1238_v57 = vld [vmem:[%s8687_s5 + $0x6f0] sm:$0xff] }
 0x2f7   :  { %v5805_v4 = vcombine.low %v1234_v56, %v1238_v57 }
 0x2f8   :  { %4508 = vmatpush1.bf16.msra.mxu0 %v5749_v63  ;;  %v5806_v63 = vcombine.high %v1234_v56, %v1238_v57  ;;  %v1283_v57 = vld [vmem:[%s8687_s5 + $0x858] sm:$0xff] }
 0x2f9   :  { %4672 = vmatpush1.bf16.msra.mxu1 %v5751_v37  ;;  %4509 = vmatprep.subr.bf16.mxu0 %v5758_v34  ;;  %v5808_v37 = vcombine.high %v1235_v58, %v1239_v59  ;;  %v1242_v34 = vld [vmem:[%s8687_s5 + $0x710] sm:$0xff]  ;;  %v1287_v58 = vld [vmem:[%s8687_s5 + $0x878] sm:$0xff]  ;;  %v5847_v59 = vcombine.low %v1275_v29, %v1279_v50 }
 0x2fa   :  { %4673 = vmatprep.subr.bf16.mxu1 %v5760_v1  ;;  %v1246_v1 = vld [vmem:[%s8687_s5 + $0x730] sm:$0xff] }
 0x2fb   :  { %v5813_v22 = vcombine.low %v1242_v34, %v1246_v1 }
 0x2fc   :  { %4510 = vmatpush1.bf16.msra.mxu0 %v5757_v7  ;;  %v5814_v7 = vcombine.high %v1242_v34, %v1246_v1  ;;  %v5856_v34 = vcombine.high %v1283_v57, %v1287_v58  ;;  %v1295_v1 = vld [vmem:[%s8687_s5 + $0x8b8] sm:$0xff] }
 0x2fd   :  { %4674 = vmatpush1.bf16.msra.mxu1 %v5759_v14  ;;  %4511 = vmatprep.subr.bf16.mxu0 %v5766_v16  ;;  %v5816_v14 = vcombine.high %v1243_v2, %v1247_v3  ;;  %v1250_v16 = vld [vmem:[%s8687_s5 + $0x750] sm:$0xff] }
 0x2fe   :  { %4675 = vmatprep.subr.bf16.mxu1 %v5768_v18  ;;  %v1254_v18 = vld [vmem:[%s8687_s5 + $0x770] sm:$0xff] }
 0x2ff   :  { %v5821_v33 = vcombine.low %v1250_v16, %v1254_v18  ;;  %v1298_v3 = vld [vmem:[%s8687_s5 + $0x8d0] sm:$0xff] }
 0x300   :  { %4512 = vmatpush1.bf16.msra.mxu0 %v5765_v23  ;;  %v5822_v23 = vcombine.high %v1250_v16, %v1254_v18  ;;  %v1303_v16 = vld [vmem:[%s8687_s5 + $0x8f8] sm:$0xff] }
 0x301   :  { %4676 = vmatpush1.bf16.msra.mxu1 %v5767_v24  ;;  %4513 = vmatprep.subr.bf16.mxu0 %v5774_v25  ;;  %v5824_v24 = vcombine.high %v1251_v19, %v1255_v21  ;;  %v1258_v25 = vld [vmem:[%s8687_s5 + $0x790] sm:$0xff] }
 0x302   :  { %4677 = vmatprep.subr.bf16.mxu1 %v5776_v26  ;;  %v1262_v26 = vld [vmem:[%s8687_s5 + $0x7b0] sm:$0xff] }
 0x303   :  { %v5829_v46 = vcombine.low %v1258_v25, %v1262_v26  ;;  %v1306_v19 = vld [vmem:[%s8687_s5 + $0x910] sm:$0xff] }
 0x304   :  { %4514 = vmatpush1.bf16.msra.mxu0 %v5773_v31  ;;  %v5830_v31 = vcombine.high %v1258_v25, %v1262_v26  ;;  %v1314_v26 = vld [vmem:[%s8687_s5 + $0x950] sm:$0xff] }
 0x305   :  { %4678 = vmatpush1.bf16.msra.mxu1 %v5775_v40  ;;  %4515 = vmatprep.subr.bf16.mxu0 %v5782_v41  ;;  %v5832_v40 = vcombine.high %v1259_v28, %v1263_v32  ;;  %v1266_v41 = vld [vmem:[%s8687_s5 + $0x7d0] sm:$0xff] }
 0x306   :  { %4679 = vmatprep.subr.bf16.mxu1 %v5784_v43  ;;  %v1270_v43 = vld [vmem:[%s8687_s5 + $0x7f0] sm:$0xff] }
 0x307   :  { %v5837_v51 = vcombine.low %v1266_v41, %v1270_v43 }
 0x308   :  { %4516 = vmatpush1.bf16.msra.mxu0 %v5781_v35  ;;  %v5838_v35 = vcombine.high %v1266_v41, %v1270_v43  ;;  %v1322_v43 = vld [vmem:[%s8687_s5 + $0x990] sm:$0xff] }
 0x309   :  { %4680 = vmatpush1.bf16.msra.mxu1 %v5783_v47  ;;  %4517 = vmatprep.subr.bf16.mxu0 %v5790_v42  ;;  %v5840_v47 = vcombine.high %v1267_v44, %v1271_v45  ;;  %v1274_v42 = vld [vmem:[%s8687_s5 + $0x810] sm:$0xff] }
 0x30a   :  { %4681 = vmatprep.subr.bf16.mxu1 %v5792_v48  ;;  %v1278_v48 = vld [vmem:[%s8687_s5 + $0x830] sm:$0xff] }
 0x30b   :  { %v5845_v56 = vcombine.low %v1274_v42, %v1278_v48 }
 0x30c   :  { %4518 = vmatpush1.bf16.msra.mxu0 %v5789_v53  ;;  %v5846_v53 = vcombine.high %v1274_v42, %v1278_v48  ;;  %v1330_v48 = vld [vmem:[%s8687_s5 + $0x9d0] sm:$0xff] }
 0x30d   :  { %4682 = vmatpush1.bf16.msra.mxu1 %v5791_v54  ;;  %4519 = vmatprep.subr.bf16.mxu0 %v5798_v55  ;;  %v5848_v54 = vcombine.high %v1275_v29, %v1279_v50  ;;  %v1282_v55 = vld [vmem:[%s8687_s5 + $0x850] sm:$0xff] }
 0x30e   :  { %4683 = vmatprep.subr.bf16.mxu1 %v5800_v38  ;;  %v1286_v38 = vld [vmem:[%s8687_s5 + $0x870] sm:$0xff] }
 0x30f   :  { %v5853_v2 = vcombine.low %v1282_v55, %v1286_v38 }
 0x310   :  { %4520 = vmatpush1.bf16.msra.mxu0 %v5797_v17  ;;  %v5854_v17 = vcombine.high %v1282_v55, %v1286_v38  ;;  %v1338_v38 = vld [vmem:[%s8687_s5 + $0xa10] sm:$0xff] }
 0x311   :  { %4684 = vmatpush1.bf16.msra.mxu1 %v5799_v62  ;;  %4521 = vmatprep.subr.bf16.mxu0 %v5806_v63  ;;  %v1290_v62 = vld [vmem:[%s8687_s5 + $0x890] sm:$0xff] }
 0x312   :  { %4685 = vmatprep.subr.bf16.mxu1 %v5808_v37  ;;  %v1294_v63 = vld [vmem:[%s8687_s5 + $0x8b0] sm:$0xff]  ;;  %v1291_v37 = vld [vmem:[%s8687_s5 + $0x898] sm:$0xff] }
 0x313   :  { %v5861_v18 = vcombine.low %v1290_v62, %v1294_v63 }
 0x314   :  { %4522 = vmatpush1.bf16.msra.mxu0 %v5805_v4  ;;  %v5855_v4 = vcombine.low %v1283_v57, %v1287_v58  ;;  %v1342_v58 = vld [vmem:[%s8687_s5 + $0xa30] sm:$0xff] }
 0x315   :  { %4686 = vmatpush1.bf16.msra.mxu1 %v5807_v5  ;;  %4523 = vmatprep.subr.bf16.mxu0 %v5814_v7  ;;  %v5862_v5 = vcombine.high %v1290_v62, %v1294_v63  ;;  %v1302_v7 = vld [vmem:[%s8687_s5 + $0x8f0] sm:$0xff]  ;;  %v1343_v62 = vld [vmem:[%s8687_s5 + $0xa38] sm:$0xff] }
 0x316   :  { %4687 = vmatprep.subr.bf16.mxu1 %v5816_v14  ;;  %v5864_v14 = vcombine.high %v1291_v37, %v1295_v1  ;;  %v5870_v21 = vcombine.high %v1298_v3, %v1302_v7  ;;  %v5869_v25 = vcombine.low %v1298_v3, %v1302_v7  ;;  %v5909_v7 = vcombine.low %v1338_v38, %v1342_v58 }
 0x318   :  { %4524 = vmatpush1.bf16.msra.mxu0 %v5813_v22  ;;  %v1310_v22 = vld [vmem:[%s8687_s5 + $0x930] sm:$0xff] }
 0x319   :  { %4688 = vmatpush1.bf16.msra.mxu1 %v5815_v8  ;;  %4525 = vmatprep.subr.bf16.mxu0 %v5822_v23  ;;  %v1307_v23 = vld [vmem:[%s8687_s5 + $0x918] sm:$0xff]  ;;  %v5878_v32 = vcombine.high %v1306_v19, %v1310_v22  ;;  %v5877_v41 = vcombine.low %v1306_v19, %v1310_v22 }
 0x31a   :  { %4689 = vmatprep.subr.bf16.mxu1 %v5824_v24  ;;  %v1311_v24 = vld [vmem:[%s8687_s5 + $0x938] sm:$0xff] }
 0x31b   :  { %v5879_v44 = vcombine.low %v1307_v23, %v1311_v24  ;;  %v1355_v19 = vld [vmem:[%s8687_s5 + $0xa98] sm:$0xff] }
 0x31c   :  { %4526 = vmatpush1.bf16.msra.mxu0 %v5821_v33  ;;  %v1318_v33 = vld [vmem:[%s8687_s5 + $0x970] sm:$0xff] }
 0x31d   :  { %4690 = vmatpush1.bf16.msra.mxu1 %v5823_v39  ;;  %4527 = vmatprep.subr.bf16.mxu0 %v5830_v31  ;;  %v5880_v39 = vcombine.high %v1307_v23, %v1311_v24  ;;  %v1315_v31 = vld [vmem:[%s8687_s5 + $0x958] sm:$0xff]  ;;  %v5886_v45 = vcombine.high %v1314_v26, %v1318_v33  ;;  %v5885_v42 = vcombine.low %v1314_v26, %v1318_v33 }
 0x31e   :  { %4691 = vmatprep.subr.bf16.mxu1 %v5832_v40  ;;  %v1319_v40 = vld [vmem:[%s8687_s5 + $0x978] sm:$0xff] }
 0x31f   :  { %v5887_v29 = vcombine.low %v1315_v31, %v1319_v40 }
 0x320   :  { %4528 = vmatpush1.bf16.msra.mxu0 %v5829_v46  ;;  %v1326_v46 = vld [vmem:[%s8687_s5 + $0x9b0] sm:$0xff] }
 0x321   :  { %4692 = vmatpush1.bf16.msra.mxu1 %v5831_v10  ;;  %4529 = vmatprep.subr.bf16.mxu0 %v5838_v35  ;;  %v5888_v10 = vcombine.high %v1315_v31, %v1319_v40  ;;  %v1323_v35 = vld [vmem:[%s8687_s5 + $0x998] sm:$0xff]  ;;  %v5894_v50 = vcombine.high %v1322_v43, %v1326_v46  ;;  %v5893_v55 = vcombine.low %v1322_v43, %v1326_v46 }
 0x322   :  { %4693 = vmatprep.subr.bf16.mxu1 %v5840_v47  ;;  %v1327_v47 = vld [vmem:[%s8687_s5 + $0x9b8] sm:$0xff] }
 0x324   :  { %4530 = vmatpush1.bf16.msra.mxu0 %v5837_v51  ;;  %v1334_v51 = vld [vmem:[%s8687_s5 + $0x9f0] sm:$0xff] }
 0x325   :  { %4694 = vmatpush1.bf16.msra.mxu1 %v5839_v52  ;;  %4540 = vmatprep.subr.bf16.mxu0 %v5846_v53  ;;  %v5896_v52 = vcombine.high %v1323_v35, %v1327_v47  ;;  %v1331_v53 = vld [vmem:[%s8687_s5 + $0x9d8] sm:$0xff]  ;;  %v5902_v57 = vcombine.high %v1330_v48, %v1334_v51  ;;  %v5901_v63 = vcombine.low %v1330_v48, %v1334_v51 }
 0x326   :  { %4704 = vmatprep.subr.bf16.mxu1 %v5848_v54  ;;  %v1335_v54 = vld [vmem:[%s8687_s5 + $0x9f8] sm:$0xff] }
 0x327   :  { %4532 = vmatmul.mubr.bf16.vlgmr.msra.gmra.mrb[16].mxu0 %v7263_v13 }
 0x328   :  { %4696 = vmatmul.mubr.bf16.vlgmr.msra.gmra.mrb[16].mxu1 %v7263_v13  ;;  %4541 = vmatpush1.bf16.msra.mxu0 %v5845_v56  ;;  %v1299_v13 = vld [vmem:[%s8687_s5 + $0x8d8] sm:$0xff]  ;;  %v5895_v56 = vcombine.low %v1323_v35, %v1327_v47 }
 0x329   :  { %4572 = vmatprep.mubr.bf16.mxu0 %v7265_v15  ;;  %4705 = vmatpush1.bf16.msra.mxu1 %v5847_v59  ;;  %v5872_v8 = vcombine.high %v1299_v13, %v1303_v16  ;;  %v5871_v28 = vcombine.low %v1299_v13, %v1303_v16  ;;  %v5904_v59 = vcombine.high %v1331_v53, %v1335_v54  ;;  %v1358_v13 = vld [vmem:[%s8687_s5 + $0xab0] sm:$0xff] }
 0x32a   :  { %4736 = vmatprep.mubr.bf16.mxu1 %v7265_v15  ;;  %4542 = vmatprep.subr.bf16.mxu0 %v5854_v17  ;;  %v5863_v15 = vcombine.low %v1291_v37, %v1295_v1  ;;  %v1339_v17 = vld [vmem:[%s8687_s5 + $0xa18] sm:$0xff]  ;;  %v1346_v37 = vld [vmem:[%s8687_s5 + $0xa50] sm:$0xff]  ;;  %v5910_v1 = vcombine.high %v1338_v38, %v1342_v58 }
 0x32b   :  { %4706 = vmatprep.subr.bf16.mxu1 %v5856_v34  ;;  %v5903_v34 = vcombine.low %v1331_v53, %v1335_v54  ;;  %v5912_v3 = vcombine.high %v1339_v17, %v1343_v62  ;;  %v5911_v16 = vcombine.low %v1339_v17, %v1343_v62 }
 0x32c   :  { %4543 = vmatpush1.bf16.msra.mxu0 %v5853_v2  ;;  %v1350_v2 = vld [vmem:[%s8687_s5 + $0xa70] sm:$0xff] }
 0x32d   :  { %4707 = vmatpush1.bf16.msra.mxu1 %v5855_v4  ;;  %4544 = vmatprep.subr.bf16.mxu0 %v5862_v5  ;;  %v1347_v4 = vld [vmem:[%s8687_s5 + $0xa58] sm:$0xff]  ;;  %v5917_v22 = vcombine.low %v1346_v37, %v1350_v2 }
 0x32e   :  { %4708 = vmatprep.subr.bf16.mxu1 %v5864_v14  ;;  %v1351_v5 = vld [vmem:[%s8687_s5 + $0xa78] sm:$0xff]  ;;  %v1354_v14 = vld [vmem:[%s8687_s5 + $0xa90] sm:$0xff] }
 0x32f   :  { %v5919_v23 = vcombine.low %v1347_v4, %v1351_v5  ;;  %v5926_v24 = vcombine.high %v1354_v14, %v1358_v13  ;;  %v5925_v33 = vcombine.low %v1354_v14, %v1358_v13  ;;  %v1403_v14 = vld [vmem:[%s8687_s5 + $0xc18] sm:$0xff] }
 0x330   :  { %4545 = vmatpush1.bf16.msra.mxu0 %v5861_v18  ;;  %v5918_v18 = vcombine.high %v1346_v37, %v1350_v2 }
 0x331   :  { %4709 = vmatpush1.bf16.msra.mxu1 %v5863_v15  ;;  %4546 = vmatprep.subr.bf16.mxu0 %v5870_v21  ;;  %v5920_v15 = vcombine.high %v1347_v4, %v1351_v5  ;;  %v1359_v21 = vld [vmem:[%s8687_s5 + $0xab8] sm:$0xff]  ;;  %v1406_v4 = vld [vmem:[%s8687_s5 + $0xc30] sm:$0xff] }
 0x332   :  { %4710 = vmatprep.subr.bf16.mxu1 %v5872_v8  ;;  %v1362_v8 = vld [vmem:[%s8687_s5 + $0xad0] sm:$0xff]  ;;  %v5928_v26 = vcombine.high %v1355_v19, %v1359_v21  ;;  %v5927_v31 = vcombine.low %v1355_v19, %v1359_v21 }
 0x333   :  { %v1410_v21 = vld [vmem:[%s8687_s5 + $0xc50] sm:$0xff] }
 0x334   :  { %4547 = vmatpush1.bf16.msra.mxu0 %v5869_v25  ;;  %v1366_v25 = vld [vmem:[%s8687_s5 + $0xaf0] sm:$0xff] }
 0x335   :  { %4711 = vmatpush1.bf16.msra.mxu1 %v5871_v28  ;;  %4548 = vmatprep.subr.bf16.mxu0 %v5878_v32  ;;  %v1363_v28 = vld [vmem:[%s8687_s5 + $0xad8] sm:$0xff]  ;;  %v5934_v40 = vcombine.high %v1362_v8, %v1366_v25  ;;  %v5933_v46 = vcombine.low %v1362_v8, %v1366_v25 }
 0x336   :  { %4712 = vmatprep.subr.bf16.mxu1 %v5880_v39  ;;  %v1367_v32 = vld [vmem:[%s8687_s5 + $0xaf8] sm:$0xff]  ;;  %v1370_v39 = vld [vmem:[%s8687_s5 + $0xb10] sm:$0xff] }
 0x337   :  { %v5936_v43 = vcombine.high %v1363_v28, %v1367_v32  ;;  %v5935_v35 = vcombine.low %v1363_v28, %v1367_v32  ;;  %v1415_v25 = vld [vmem:[%s8687_s5 + $0xc78] sm:$0xff]  ;;  %v1418_v32 = vld [vmem:[%s8687_s5 + $0xc90] sm:$0xff] }
 0x338   :  { %4549 = vmatpush1.bf16.msra.mxu0 %v5877_v41  ;;  %v1374_v41 = vld [vmem:[%s8687_s5 + $0xb30] sm:$0xff] }
 0x339   :  { %4713 = vmatpush1.bf16.msra.mxu1 %v5879_v44  ;;  %4550 = vmatprep.subr.bf16.mxu0 %v5886_v45  ;;  %v1371_v44 = vld [vmem:[%s8687_s5 + $0xb18] sm:$0xff]  ;;  %v5942_v47 = vcombine.high %v1370_v39, %v1374_v41  ;;  %v5941_v51 = vcombine.low %v1370_v39, %v1374_v41 }
 0x33a   :  { %4714 = vmatprep.subr.bf16.mxu1 %v5888_v10  ;;  %v1375_v45 = vld [vmem:[%s8687_s5 + $0xb38] sm:$0xff]  ;;  %v1378_v10 = vld [vmem:[%s8687_s5 + $0xb50] sm:$0xff] }
 0x33b   :  { %v5944_v48 = vcombine.high %v1371_v44, %v1375_v45  ;;  %v5943_v53 = vcombine.low %v1371_v44, %v1375_v45 }
 0x33c   :  { %4551 = vmatpush1.bf16.msra.mxu0 %v5885_v42  ;;  %v1382_v42 = vld [vmem:[%s8687_s5 + $0xb70] sm:$0xff] }
 0x33d   :  { %4715 = vmatpush1.bf16.msra.mxu1 %v5887_v29  ;;  %4552 = vmatprep.subr.bf16.mxu0 %v5894_v50  ;;  %v1379_v29 = vld [vmem:[%s8687_s5 + $0xb58] sm:$0xff]  ;;  %v5950_v54 = vcombine.high %v1378_v10, %v1382_v42  ;;  %v5949_v58 = vcombine.low %v1378_v10, %v1382_v42  ;;  %v1430_v10 = vld [vmem:[%s8687_s5 + $0xcf0] sm:$0xff] }
 0x33e   :  { %4716 = vmatprep.subr.bf16.mxu1 %v5896_v52  ;;  %v1383_v50 = vld [vmem:[%s8687_s5 + $0xb78] sm:$0xff]  ;;  %v1386_v52 = vld [vmem:[%s8687_s5 + $0xb90] sm:$0xff] }
 0x33f   :  { %v5952_v38 = vcombine.high %v1379_v29, %v1383_v50  ;;  %v5951_v17 = vcombine.low %v1379_v29, %v1383_v50  ;;  %v1434_v29 = vld [vmem:[%s8687_s5 + $0xd10] sm:$0xff] }
 0x340   :  { %4553 = vmatpush1.bf16.msra.mxu0 %v5893_v55  ;;  %v1390_v55 = vld [vmem:[%s8687_s5 + $0xbb0] sm:$0xff] }
 0x341   :  { %4717 = vmatpush1.bf16.msra.mxu1 %v5895_v56  ;;  %4554 = vmatprep.subr.bf16.mxu0 %v5902_v57  ;;  %v1387_v56 = vld [vmem:[%s8687_s5 + $0xb98] sm:$0xff]  ;;  %v5958_v62 = vcombine.high %v1386_v52, %v1390_v55  ;;  %v5957_v2 = vcombine.low %v1386_v52, %v1390_v55  ;;  %v1438_v50 = vld [vmem:[%s8687_s5 + $0xd30] sm:$0xff] }
 0x342   :  { %4718 = vmatprep.subr.bf16.mxu1 %v5904_v59  ;;  %v1391_v57 = vld [vmem:[%s8687_s5 + $0xbb8] sm:$0xff]  ;;  %v1394_v59 = vld [vmem:[%s8687_s5 + $0xbd0] sm:$0xff]  ;;  %v6006_v55 = vcombine.high %v1434_v29, %v1438_v50 }
 0x343   :  { %v5960_v37 = vcombine.high %v1387_v56, %v1391_v57  ;;  %v5959_v5 = vcombine.low %v1387_v56, %v1391_v57  ;;  %v1439_v52 = vld [vmem:[%s8687_s5 + $0xd38] sm:$0xff]  ;;  %v1442_v56 = vld [vmem:[%s8687_s5 + $0xd50] sm:$0xff] }
 0x344   :  { %4555 = vmatpush1.bf16.msra.mxu0 %v5901_v63  ;;  %v1398_v63 = vld [vmem:[%s8687_s5 + $0xbf0] sm:$0xff] }
 0x345   :  { %4719 = vmatpush1.bf16.msra.mxu1 %v5903_v34  ;;  %4556 = vmatprep.subr.bf16.mxu0 %v5910_v1  ;;  %v1395_v34 = vld [vmem:[%s8687_s5 + $0xbd8] sm:$0xff]  ;;  %v1446_v57 = vld [vmem:[%s8687_s5 + $0xd70] sm:$0xff] }
 0x346   :  { %4720 = vmatprep.subr.bf16.mxu1 %v5912_v3  ;;  %v1399_v1 = vld [vmem:[%s8687_s5 + $0xbf8] sm:$0xff]  ;;  %v1402_v3 = vld [vmem:[%s8687_s5 + $0xc10] sm:$0xff] }
 0x347   :  { %v5968_v13 = vcombine.high %v1395_v34, %v1399_v1  ;;  %v5967_v19 = vcombine.low %v1395_v34, %v1399_v1  ;;  %v1450_v34 = vld [vmem:[%s8687_s5 + $0xd90] sm:$0xff] }
 0x348   :  { %4557 = vmatpush1.bf16.msra.mxu0 %v5909_v7  ;;  %v5966_v7 = vcombine.high %v1394_v59, %v1398_v63  ;;  %v1454_v1 = vld [vmem:[%s8687_s5 + $0xdb0] sm:$0xff] }
 0x349   :  { %4721 = vmatpush1.bf16.msra.mxu1 %v5911_v16  ;;  %4558 = vmatprep.subr.bf16.mxu0 %v5918_v18  ;;  %v1407_v16 = vld [vmem:[%s8687_s5 + $0xc38] sm:$0xff]  ;;  %v5965_v18 = vcombine.low %v1394_v59, %v1398_v63  ;;  %v6014_v63 = vcombine.high %v1442_v56, %v1446_v57 }
 0x34a   :  { %4722 = vmatprep.subr.bf16.mxu1 %v5920_v15  ;;  %v5974_v15 = vcombine.high %v1402_v3, %v1406_v4  ;;  %v5976_v8 = vcombine.high %v1403_v14, %v1407_v16  ;;  %v1447_v59 = vld [vmem:[%s8687_s5 + $0xd78] sm:$0xff] }
 0x34c   :  { %4559 = vmatpush1.bf16.msra.mxu0 %v5917_v22  ;;  %v1414_v22 = vld [vmem:[%s8687_s5 + $0xc70] sm:$0xff] }
 0x34d   :  { %4723 = vmatpush1.bf16.msra.mxu1 %v5919_v23  ;;  %4560 = vmatprep.subr.bf16.mxu0 %v5926_v24  ;;  %v5973_v23 = vcombine.low %v1402_v3, %v1406_v4  ;;  %v1411_v24 = vld [vmem:[%s8687_s5 + $0xc58] sm:$0xff]  ;;  %v5982_v28 = vcombine.high %v1410_v21, %v1414_v22  ;;  %v5981_v41 = vcombine.low %v1410_v21, %v1414_v22 }
 0x34e   :  { %4724 = vmatprep.subr.bf16.mxu1 %v5928_v26  ;;  %v5975_v26 = vcombine.low %v1403_v14, %v1407_v16  ;;  %v5984_v39 = vcombine.high %v1411_v24, %v1415_v25  ;;  %v1455_v3 = vld [vmem:[%s8687_s5 + $0xdb8] sm:$0xff]  ;;  %v6013_v4 = vcombine.low %v1442_v56, %v1446_v57  ;;  %v1458_v16 = vld [vmem:[%s8687_s5 + $0xdd0] sm:$0xff] }
 0x34f   :  { %v1459_v21 = vld [vmem:[%s8687_s5 + $0xdd8] sm:$0xff] }
 0x350   :  { %4561 = vmatpush1.bf16.msra.mxu0 %v5925_v33  ;;  %v1422_v33 = vld [vmem:[%s8687_s5 + $0xcb0] sm:$0xff]  ;;  %v1463_v22 = vld [vmem:[%s8687_s5 + $0xdf8] sm:$0xff] }
 0x351   :  { %4725 = vmatpush1.bf16.msra.mxu1 %v5927_v31  ;;  %4562 = vmatprep.subr.bf16.mxu0 %v5934_v40  ;;  %v1419_v31 = vld [vmem:[%s8687_s5 + $0xc98] sm:$0xff]  ;;  %v5990_v44 = vcombine.high %v1418_v32, %v1422_v33 }
 0x352   :  { %4726 = vmatprep.subr.bf16.mxu1 %v5936_v43  ;;  %v1423_v40 = vld [vmem:[%s8687_s5 + $0xcb8] sm:$0xff]  ;;  %v5983_v43 = vcombine.low %v1411_v24, %v1415_v25  ;;  %v6021_v24 = vcombine.low %v1450_v34, %v1454_v1 }
 0x353   :  { %v5992_v45 = vcombine.high %v1419_v31, %v1423_v40 }
 0x354   :  { %4563 = vmatpush1.bf16.msra.mxu0 %v5933_v46  ;;  %v1426_v46 = vld [vmem:[%s8687_s5 + $0xcd0] sm:$0xff] }
 0x355   :  { %4727 = vmatpush1.bf16.msra.mxu1 %v5935_v35  ;;  %4564 = vmatprep.subr.bf16.mxu0 %v5942_v47  ;;  %v1431_v35 = vld [vmem:[%s8687_s5 + $0xcf8] sm:$0xff]  ;;  %v5991_v47 = vcombine.low %v1419_v31, %v1423_v40  ;;  %v5998_v42 = vcombine.high %v1426_v46, %v1430_v10  ;;  %v1466_v31 = vld [vmem:[%s8687_s5 + $0xe10] sm:$0xff] }
 0x356   :  { %4728 = vmatprep.subr.bf16.mxu1 %v5944_v48  ;;  %v1470_v40 = vld [vmem:[%s8687_s5 + $0xe30] sm:$0xff] }
 0x358   :  { %4565 = vmatpush1.bf16.msra.mxu0 %v5941_v51  ;;  %v1435_v51 = vld [vmem:[%s8687_s5 + $0xd18] sm:$0xff] }
 0x359   :  { %4729 = vmatpush1.bf16.msra.mxu1 %v5943_v53  ;;  %4566 = vmatprep.subr.bf16.mxu0 %v5950_v54  ;;  %v5997_v53 = vcombine.low %v1426_v46, %v1430_v10  ;;  %v6038_v46 = vcombine.high %v1466_v31, %v1470_v40 }
 0x35a   :  { %4730 = vmatprep.subr.bf16.mxu1 %v5952_v38  ;;  %v6008_v38 = vcombine.high %v1435_v51, %v1439_v52 }
 0x35c   :  { %4567 = vmatpush1.bf16.msra.mxu0 %v5949_v58  ;;  %v1443_v58 = vld [vmem:[%s8687_s5 + $0xd58] sm:$0xff] }
 0x35d   :  { %4731 = vmatpush1.bf16.msra.mxu1 %v5951_v17  ;;  %4568 = vmatprep.subr.bf16.mxu0 %v5958_v62  ;;  %v6005_v17 = vcombine.low %v1434_v29, %v1438_v50  ;;  %v6007_v62 = vcombine.low %v1435_v51, %v1439_v52  ;;  %v1482_v51 = vld [vmem:[%s8687_s5 + $0xe90] sm:$0xff] }
 0x35e   :  { %4732 = vmatprep.subr.bf16.mxu1 %v5960_v37  ;;  %v6016_v37 = vcombine.high %v1443_v58, %v1447_v59  ;;  %v1486_v52 = vld [vmem:[%s8687_s5 + $0xeb0] sm:$0xff] }
 0x35f   :  { %v6054_v56 = vcombine.high %v1482_v51, %v1486_v52 }
 0x360   :  { %4569 = vmatpush1.bf16.msra.mxu0 %v5957_v2  ;;  %v1451_v2 = vld [vmem:[%s8687_s5 + $0xd98] sm:$0xff] }
 0x361   :  { %4733 = vmatpush1.bf16.msra.mxu1 %v5959_v5  ;;  %4570 = vmatprep.subr.bf16.mxu0 %v5966_v7  ;;  %v6015_v5 = vcombine.low %v1443_v58, %v1447_v59  ;;  %v6022_v7 = vcombine.high %v1450_v34, %v1454_v1  ;;  %v1490_v58 = vld [vmem:[%s8687_s5 + $0xed0] sm:$0xff] }
 0x362   :  { %4734 = vmatprep.subr.bf16.mxu1 %v5968_v13  ;;  %v6024_v13 = vcombine.high %v1451_v2, %v1455_v3  ;;  %v1494_v59 = vld [vmem:[%s8687_s5 + $0xef0] sm:$0xff] }
 0x363   :  { %v6062_v34 = vcombine.high %v1490_v58, %v1494_v59 }
 0x364   :  { %4571 = vmatpush1.bf16.msra.mxu0 %v5965_v18  ;;  %v1462_v18 = vld [vmem:[%s8687_s5 + $0xdf0] sm:$0xff] }
 0x365   :  { %4735 = vmatpush1.bf16.msra.mxu1 %v5967_v19  ;;  %4581 = vmatprep.subr.bf16.mxu0 %v5974_v15 }
 0x366   :  { %4745 = vmatprep.subr.bf16.mxu1 %v5976_v8 }
 0x367   :  { %4573 = vmatmul.mubr.bf16.vlgmr.msra.gmra.mrb[16].mxu0 %v7473_v60 }
 0x368   :  { %4737 = vmatmul.mubr.bf16.vlgmr.msra.gmra.mrb[16].mxu1 %v7473_v60  ;;  %4582 = vmatpush1.bf16.msra.mxu0 %v5973_v23  ;;  %v1427_v60 = vld [vmem:[%s8687_s5 + $0xcd8] sm:$0xff] }
 0x369   :  { %4613 = vmatprep.mubr.bf16.mxu0 %v7481_v0  ;;  %4746 = vmatpush1.bf16.msra.mxu1 %v5975_v26  ;;  %v6000_v48 = vcombine.high %v1427_v60, %v1431_v35  ;;  %v5999_v54 = vcombine.low %v1427_v60, %v1431_v35  ;;  %v1474_v60 = vld [vmem:[%s8687_s5 + $0xe50] sm:$0xff] }
 0x36a   :  { %4777 = vmatprep.mubr.bf16.mxu1 %v7481_v0  ;;  %4583 = vmatprep.subr.bf16.mxu0 %v5982_v28  ;;  %v5989_v0 = vcombine.low %v1418_v32, %v1422_v33  ;;  %v6023_v28 = vcombine.low %v1451_v2, %v1455_v3  ;;  %v6030_v32 = vcombine.high %v1458_v16, %v1462_v18  ;;  %v1478_v35 = vld [vmem:[%s8687_s5 + $0xe70] sm:$0xff] }
 0x36b   :  { %4747 = vmatprep.subr.bf16.mxu1 %v5984_v39  ;;  %v6032_v39 = vcombine.high %v1459_v21, %v1463_v22  ;;  %v6046_v29 = vcombine.high %v1474_v60, %v1478_v35  ;;  %v1498_v2 = vld [vmem:[%s8687_s5 + $0xf10] sm:$0xff] }
 0x36c   :  { %4584 = vmatpush1.bf16.msra.mxu0 %v5981_v41  ;;  %v1467_v41 = vld [vmem:[%s8687_s5 + $0xe18] sm:$0xff]  ;;  %v1502_v3 = vld [vmem:[%s8687_s5 + $0xf30] sm:$0xff] }
 0x36d   :  { %4748 = vmatpush1.bf16.msra.mxu1 %v5983_v43  ;;  %4585 = vmatprep.subr.bf16.mxu0 %v5990_v44  ;;  %v1471_v43 = vld [vmem:[%s8687_s5 + $0xe38] sm:$0xff]  ;;  %v6029_v44 = vcombine.low %v1458_v16, %v1462_v18  ;;  %v6070_v16 = vcombine.high %v1498_v2, %v1502_v3 }
 0x36e   :  { %4749 = vmatprep.subr.bf16.mxu1 %v5992_v45  ;;  %v6031_v45 = vcombine.low %v1459_v21, %v1463_v22  ;;  %v6040_v10 = vcombine.high %v1467_v41, %v1471_v43  ;;  %v1506_v21 = vld [vmem:[%s8687_s5 + $0xf50] sm:$0xff] }
 0x36f   :  { %v1510_v22 = vld [vmem:[%s8687_s5 + $0xf70] sm:$0xff] }
 0x370   :  { %4586 = vmatpush1.bf16.msra.mxu0 %v5989_v0  ;;  %v1475_v0 = vld [vmem:[%s8687_s5 + $0xe58] sm:$0xff] }
 0x371   :  { %4750 = vmatpush1.bf16.msra.mxu1 %v5991_v47  ;;  %4587 = vmatprep.subr.bf16.mxu0 %v5998_v42  ;;  %v1479_v47 = vld [vmem:[%s8687_s5 + $0xe78] sm:$0xff]  ;;  %v6037_v42 = vcombine.low %v1466_v31, %v1470_v40 }
 0x372   :  { %4751 = vmatprep.subr.bf16.mxu1 %v6000_v48  ;;  %v6039_v48 = vcombine.low %v1467_v41, %v1471_v43  ;;  %v6048_v50 = vcombine.high %v1475_v0, %v1479_v47  ;;  %v1515_v31 = vld [vmem:[%s8687_s5 + $0xf98] sm:$0xff]  ;;  %v8441_v41 = vld [vmem:[%s8690_s6] sm:$0xff]  ;;  %v6077_v43 = vcombine.low %v1506_v21, %v1510_v22 }
 0x373   :  { %v1519_v40 = vld [vmem:[%s8687_s5 + $0xfb8] sm:$0xff] }
 0x374   :  { %4588 = vmatpush1.bf16.msra.mxu0 %v5997_v53  ;;  %v1483_v53 = vld [vmem:[%s8687_s5 + $0xe98] sm:$0xff] }
 0x375   :  { %4752 = vmatpush1.bf16.msra.mxu1 %v5999_v54  ;;  %4589 = vmatprep.subr.bf16.mxu0 %v6006_v55  ;;  %v1487_v54 = vld [vmem:[%s8687_s5 + $0xeb8] sm:$0xff]  ;;  %v6045_v55 = vcombine.low %v1474_v60, %v1478_v35  ;;  %v1526_v60 = vld [vmem:[%s8687_s5 + $0xff0] sm:$0xff]  ;;  %v1537_v35 = vrot.slane %v8441_v41, %v482_v11 }
 0x376   :  { %4753 = vmatprep.subr.bf16.mxu1 %v6008_v38  ;;  %v6047_v38 = vcombine.low %v1475_v0, %v1479_v47  ;;  %v6056_v57 = vcombine.high %v1483_v53, %v1487_v54  ;;  %v1523_v0 = vld [vmem:[%s8687_s5 + $0xfd8] sm:$0xff] }
 0x377   :  { %v1527_v47 = vld [vmem:[%s8687_s5 + $0xff8] sm:$0xff] }
 0x378   :  { %4590 = vmatpush1.bf16.msra.mxu0 %v6005_v17  ;;  %v1491_v17 = vld [vmem:[%s8687_s5 + $0xed8] sm:$0xff]  ;;  %v6096_v11 = vcombine.high %v1523_v0, %v1527_v47 }
 0x379   :  { %4754 = vmatpush1.bf16.msra.mxu1 %v6007_v62  ;;  %4591 = vmatprep.subr.bf16.mxu0 %v6014_v63  ;;  %v1495_v62 = vld [vmem:[%s8687_s5 + $0xef8] sm:$0xff]  ;;  %v6053_v63 = vcombine.low %v1482_v51, %v1486_v52 }
 0x37a   :  { %v8334_v14 = vpop.f32.mrb[12].mxu0  ;;  %4755 = vmatprep.subr.bf16.mxu1 %v6016_v37  ;;  %v6055_v37 = vcombine.low %v1483_v53, %v1487_v54  ;;  %v6064_v1 = vcombine.high %v1491_v17, %v1495_v62  ;;  %v6095_v54 = vcombine.low %v1523_v0, %v1527_v47  ;;  %v6420_v0 = vld [vmem:[%s8689_s7 + $0x148] sm:$0xff]  }
 0x37b   :  { %v8342_v19 = vpop.f32.mrb[12].mxu1  ;;  %v8344_v15 = vpop.f32.mrb[13].mxu0 }
 0x37c   :  { %v8352_v8 = vpop.f32.mrb[13].mxu1  ;;  %v4291_v23 = vpop.f32.mrb[14].mxu0  ;;  %4592 = vmatpush1.bf16.msra.mxu0 %v6013_v4  ;;  %v1499_v4 = vld [vmem:[%s8687_s5 + $0xf18] sm:$0xff]  ;;  %v6295_v51 = vadd.f32 %v8344_v15, %v1537_v35  ;;  %v6386_v15 = vld [vmem:[%s8689_s7] sm:$0xff]  }
 0x37d   :  { %v4455_v25 = vpop.f32.mrb[14].mxu1  ;;  %4756 = vmatpush1.bf16.msra.mxu1 %v6015_v5  ;;  %v4292_v26 = vpop.f32.mrb[15].mxu0  ;;  %4593 = vmatprep.subr.bf16.mxu0 %v6022_v7  ;;  %v1503_v5 = vld [vmem:[%s8687_s5 + $0xf38] sm:$0xff]  ;;  %v6061_v7 = vcombine.low %v1490_v58, %v1494_v59  ;;  %v6389_v59 = vld [vmem:[%s8689_s7 + $0xc8] sm:$0xff]   ;;  %v6419_v35 = vld [vmem:[%s8689_s7 + $0x180] sm:$0xff]  }
 0x37e   :  { %v4456_v33 = vpop.f32.mrb[15].mxu1  ;;  %4757 = vmatprep.subr.bf16.mxu1 %v6024_v13  ;;  %v6063_v13 = vcombine.low %v1491_v17, %v1495_v62  ;;  %v6072_v18 = vcombine.high %v1499_v4, %v1503_v5  ;;  %v1507_v23 = vld [vmem:[%s8687_s5 + $0xf58] sm:$0xff]  ;;  %v6069_v25 = vcombine.low %v1498_v2, %v1502_v3  ;;  %v6071_v26 = vcombine.low %v1499_v4, %v1503_v5  ;;  %v6390_v62 = vld [vmem:[%s8689_s7 + $0x8] sm:$0xff]  }
 0x37f   :  { %v1514_v33 = vld [vmem:[%s8687_s5 + $0xf90] sm:$0xff]  ;;  %v6396_v2 = vld [vmem:[%s8689_s7 + $0x58] sm:$0xff]  }
 0x380   :  { %4594 = vmatpush1.bf16.msra.mxu0 %v6021_v24  ;;  %v1511_v24 = vld [vmem:[%s8687_s5 + $0xf78] sm:$0xff] }
 0x381   :  { %4758 = vmatpush1.bf16.msra.mxu1 %v6023_v28  ;;  %4595 = vmatprep.subr.bf16.mxu0 %v6030_v32  ;;  %v6078_v28 = vcombine.high %v1506_v21, %v1510_v22  ;;  %v6080_v32 = vcombine.high %v1507_v23, %v1511_v24  ;;  %v6397_v3 = vld [vmem:[%s8689_s7 + $0xd8] sm:$0xff]   ;;  %v6404_v21 = vld [vmem:[%s8689_s7 + $0x68] sm:$0xff]  }
 0x382   :  { %4759 = vmatprep.subr.bf16.mxu1 %v6032_v39  ;;  %v1518_v39 = vld [vmem:[%s8687_s5 + $0xfb0] sm:$0xff]  ;;  %v6398_v4 = vld [vmem:[%s8689_s7 + $0x18] sm:$0xff]   ;;  %v6405_v22 = vld [vmem:[%s8689_s7 + $0xe8] sm:$0xff]  }
 0x383   :  { %v6399_v5 = vld [vmem:[%s8689_s7 + $0x98] sm:$0xff]  }
 0x384   :  { %4596 = vmatpush1.bf16.msra.mxu0 %v6029_v44  ;;  %v6079_v44 = vcombine.low %v1507_v23, %v1511_v24  ;;  %v6406_v23 = vld [vmem:[%s8689_s7 + $0x28] sm:$0xff]   ;;  %v1533_v24 = vrot.slane %v8441_v41, %v478_v9  ;;  %v6410_v9 = vld [vmem:[%s8689_s7 + $0x30] sm:$0xff]  }
 0x385   :  { %4760 = vmatpush1.bf16.msra.mxu1 %v6031_v45  ;;  %4597 = vmatprep.subr.bf16.mxu0 %v6038_v46  ;;  %v6086_v45 = vcombine.high %v1514_v33, %v1518_v39  ;;  %v6088_v46 = vcombine.high %v1515_v31, %v1519_v40 }
 0x386   :  { %4761 = vmatprep.subr.bf16.mxu1 %v6040_v10  ;;  %v1522_v10 = vld [vmem:[%s8687_s5 + $0xfd0] sm:$0xff] }
 0x387   :  { %v6093_v53 = vcombine.low %v1522_v10, %v1526_v60 }
 0x388   :  { %4598 = vmatpush1.bf16.msra.mxu0 %v6037_v42  ;;  %v1545_v42 = vrot.slane %v8441_v41, %v490_v12  ;;  %v6384_v12 = vld [vmem:[%s8689_s7 + $0x40] sm:$0xff]  }
 0x389   :  { %4762 = vmatpush1.bf16.msra.mxu1 %v6039_v48  ;;  %4599 = vmatprep.subr.bf16.mxu0 %v6046_v29  ;;  %v6085_v48 = vcombine.low %v1514_v33, %v1518_v39  ;;  %v6087_v29 = vcombine.low %v1515_v31, %v1519_v40  ;;  %v6294_v33 = vadd.f32 %v8334_v14, %v1533_v24  ;;  %v6411_v39 = vld [vmem:[%s8689_s7 + $0xb0] sm:$0xff]   ;;  %v6413_v40 = vld [vmem:[%s8689_s7 + $0xf8] sm:$0xff]  }
 0x38a   :  { %4763 = vmatprep.subr.bf16.mxu1 %v6048_v50  ;;  %v6094_v50 = vcombine.high %v1522_v10, %v1526_v60  ;;  %v6297_v52 = vadd.f32 %v8352_v8, %v1545_v42  ;;  %v6387_v8 = vld [vmem:[%s8689_s7 + $0x80] sm:$0xff]   ;;  %v6414_v14 = vld [vmem:[%s8689_s7 + $0x38] sm:$0xff]   ;;  %v6421_v42 = vld [vmem:[%s8689_s7 + $0x1c8] sm:$0xff]  }
 0x38b   :  { %v6418_v10 = vld [vmem:[%s8689_s7 + $0x100] sm:$0xff]  }
 0x38c   :  { %4600 = vmatpush1.bf16.msra.mxu0 %v6045_v55  ;;  %v6385_v55 = vld [vmem:[%s8689_s7 + $0xc0] sm:$0xff]  }
 0x38d   :  { %4764 = vmatpush1.bf16.msra.mxu1 %v6047_v38  ;;  %4601 = vmatprep.subr.bf16.mxu0 %v6054_v56  ;;  %v4787_v38 = vmax.f32 %v6295_v51, 0.0  ;;  %v4789_v56 = vmax.f32 %v6297_v52, 0.0  ;;  %v6426_v51 = vld [vmem:[%s8689_s7 + $0x110] sm:$0xff]  }
 0x38e   :  { %4765 = vmatprep.subr.bf16.mxu1 %v6056_v57  ;;  %v6388_v57 = vld [vmem:[%s8689_s7 + $0x48] sm:$0xff]   ;;  %v6427_v52 = vld [vmem:[%s8689_s7 + $0x190] sm:$0xff]  }
 0x38f   :  { %v4795_v58 = vpack.c.bf16 %v4787_v38, %v4787_v38  ;;  %v4797_v17 = vpack.c.bf16 %v4789_v56, %v4789_v56  ;;  %v6432_v38 = vld [vmem:[%s8689_s7 + $0x160] sm:$0xff]  }
 0x390   :  { %4602 = vmatpush1.bf16.msra.mxu0 %v6053_v63  ;;  %v6391_v63 = vld [vmem:[%s8689_s7 + $0x88] sm:$0xff]   ;;  %v6433_v56 = vld [vmem:[%s8689_s7 + $0x1e0] sm:$0xff]  }
 0x391   :  { %4766 = vmatpush1.bf16.msra.mxu1 %v6055_v37  ;;  %4603 = vmatprep.subr.bf16.mxu0 %v6062_v34  ;;  %v6392_v37 = vld [vmem:[%s8689_s7 + $0x50] sm:$0xff]  }
 0x392   :  { %4767 = vmatprep.subr.bf16.mxu1 %v6064_v1  ;;  %v6394_v34 = vld [vmem:[%s8689_s7 + $0x10] sm:$0xff]  }
 0x393   :  { %v6395_v1 = vld [vmem:[%s8689_s7 + $0x90] sm:$0xff]  }
 0x394   :  { %4604 = vmatpush1.bf16.msra.mxu0 %v6061_v7  ;;  %v6400_v7 = vld [vmem:[%s8689_s7 + $0x60] sm:$0xff]  }
 0x395   :  { %4768 = vmatpush1.bf16.msra.mxu1 %v6063_v13  ;;  %4605 = vmatprep.subr.bf16.mxu0 %v6070_v16  ;;  %v6401_v13 = vld [vmem:[%s8689_s7 + $0xe0] sm:$0xff]  }
 0x396   :  { %4769 = vmatprep.subr.bf16.mxu1 %v6072_v18  ;;  %v6402_v16 = vld [vmem:[%s8689_s7 + $0x20] sm:$0xff]  }
 0x397   :  { %v6403_v18 = vld [vmem:[%s8689_s7 + $0xa0] sm:$0xff]  }
 0x398   :  { %4606 = vmatpush1.bf16.msra.mxu0 %v6069_v25  ;;  %v6407_v25 = vld [vmem:[%s8689_s7 + $0xa8] sm:$0xff]  }
 0x399   :  { %4770 = vmatpush1.bf16.msra.mxu1 %v6071_v26  ;;  %4607 = vmatprep.subr.bf16.mxu0 %v6078_v28  ;;  %v6408_v26 = vld [vmem:[%s8689_s7 + $0x70] sm:$0xff]   ;;  %v1541_v28 = vrot.slane %v8441_v41, %v486_v27  ;;  %v6412_v27 = vld [vmem:[%s8689_s7 + $0x78] sm:$0xff]  }
 0x39a   :  { %4771 = vmatprep.subr.bf16.mxu1 %v6080_v32  ;;  %v6409_v32 = vld [vmem:[%s8689_s7 + $0xf0] sm:$0xff]  }
 0x39b   :  { %v6296_v31 = vadd.f32 %v8342_v19, %v1541_v28  ;;  %v6416_v19 = vld [vmem:[%s8689_s7 + $0x140] sm:$0xff]  }
 0x39c   :  { %4608 = vmatpush1.bf16.msra.mxu0 %v6077_v43  ;;  %v4786_v43 = vmax.f32 %v6294_v33, 0.0 }
 0x39d   :  { %4772 = vmatpush1.bf16.msra.mxu1 %v6079_v44  ;;  %4609 = vmatprep.subr.bf16.mxu0 %v6086_v45  ;;  %v6415_v44 = vld [vmem:[%s8689_s7 + $0xb8] sm:$0xff]   ;;  %v4788_v45 = vmax.f32 %v6296_v31, 0.0 }
 0x39e   :  { %4773 = vmatprep.subr.bf16.mxu1 %v6088_v46  ;;  %v6417_v46 = vld [vmem:[%s8689_s7 + $0x1c0] sm:$0xff]   ;;  %v4794_v60 = vpack.c.bf16 %v4786_v43, %v4786_v43 }
 0x39f   :  { %v4796_v47 = vpack.c.bf16 %v4788_v45, %v4788_v45 }
 0x3a0   :  { %4610 = vmatpush1.bf16.msra.mxu0 %v6085_v48  ;;  %v6422_v48 = vld [vmem:[%s8689_s7 + $0x108] sm:$0xff]  }
 0x3a1   :  { %4774 = vmatpush1.bf16.msra.mxu1 %v6087_v29  ;;  %4611 = vmatprep.subr.bf16.mxu0 %v6094_v50  ;;  %v6423_v29 = vld [vmem:[%s8689_s7 + $0x188] sm:$0xff]   ;;  %v6424_v50 = vld [vmem:[%s8689_s7 + $0x150] sm:$0xff]  }
 0x3a2   :  { %4775 = vmatprep.subr.bf16.mxu1 %v6096_v11  ;;  %v6425_v11 = vld [vmem:[%s8689_s7 + $0x1d0] sm:$0xff]  }
 0x3a4   :  { %4612 = vmatpush1.bf16.msra.mxu0 %v6093_v53  ;;  %v6428_v53 = vld [vmem:[%s8689_s7 + $0x158] sm:$0xff]  }
 0x3a5   :  { %4776 = vmatpush1.bf16.msra.mxu1 %v6095_v54  ;;  %6206 = vmatprep.subr.bf16.mxu0 %v6384_v12  ;;  %v6429_v54 = vld [vmem:[%s8689_s7 + $0x1d8] sm:$0xff]  }
 0x3a6   :  { %6228 = vmatprep.subr.bf16.mxu1 %v6385_v55  ;;  %v6430_v12 = vld [vmem:[%s8689_s7 + $0x118] sm:$0xff]  }
 0x3a7   :  { %4614 = vmatmul.mubr.bf16.vlgmr.msra.gmra.mrb[16].mxu0 %v7680_v49  ;;  %v6431_v55 = vld [vmem:[%s8689_s7 + $0x198] sm:$0xff]  }
 0x3a8   :  { %4778 = vmatmul.mubr.bf16.vlgmr.msra.gmra.mrb[16].mxu1 %v7680_v49  ;;  %6207 = vmatpush3.bf16.msra.mxu0 %v6386_v15  ;;  %v6393_v49 = vld [vmem:[%s8689_s7 + $0xd0] sm:$0xff]   ;;  %v6434_v15 = vld [vmem:[%s8689_s7 + $0x120] sm:$0xff]  }
 0x3a9   :  { %5353 = vmatprep.mubr.bf16.mxu0 %v4795_v58  ;;  %6229 = vmatpush3.bf16.msra.mxu1 %v6387_v8  ;;  %v6435_v8 = vld [vmem:[%s8689_s7 + $0x1a0] sm:$0xff]   ;;  %v6437_v58 = vld [vmem:[%s8689_s7 + $0x1e8] sm:$0xff]  }
 0x3aa   :  { %5393 = vmatprep.mubr.bf16.mxu1 %v4797_v17  ;;  %6208 = vmatprep.subr.bf16.mxu0 %v6388_v57  ;;  %v6436_v57 = vld [vmem:[%s8689_s7 + $0x168] sm:$0xff]  }
 0x3ab   :  { %6230 = vmatprep.subr.bf16.mxu1 %v6389_v59  ;;  %v6438_v59 = vld [vmem:[%s8689_s7 + $0x128] sm:$0xff]  }
 0x3ac   :  { %6209 = vmatpush3.bf16.msra.mxu0 %v6390_v62  ;;  %v6439_v17 = vld [vmem:[%s8689_s7 + $0x1a8] sm:$0xff]   ;;  %v6440_v62 = vld [vmem:[%s8689_s7 + $0x170] sm:$0xff]  }
 0x3ad   :  { %6231 = vmatpush3.bf16.msra.mxu1 %v6391_v63  ;;  %6210 = vmatprep.subr.bf16.mxu0 %v6392_v37  ;;  %v6441_v63 = vld [vmem:[%s8689_s7 + $0x1f0] sm:$0xff]  }
 0x3ae   :  { %6232 = vmatprep.subr.bf16.mxu1 %v6393_v49  ;;  %v6442_v37 = vld [vmem:[%s8689_s7 + $0x130] sm:$0xff]  }
 0x3af   :  { %v6443_v49 = vld [vmem:[%s8689_s7 + $0x1b0] sm:$0xff]  }
 0x3b0   :  { %6211 = vmatpush3.bf16.msra.mxu0 %v6394_v34  ;;  %v6444_v34 = vld [vmem:[%s8689_s7 + $0x178] sm:$0xff]  }
 0x3b1   :  { %6233 = vmatpush3.bf16.msra.mxu1 %v6395_v1  ;;  %6212 = vmatprep.subr.bf16.mxu0 %v6396_v2  ;;  %v6445_v1 = vld [vmem:[%s8689_s7 + $0x1f8] sm:$0xff]  }
 0x3b2   :  { %6234 = vmatprep.subr.bf16.mxu1 %v6397_v3  ;;  %v6446_v2 = vld [vmem:[%s8689_s7 + $0x138] sm:$0xff]  }
 0x3b3   :  { %v6447_v3 = vld [vmem:[%s8689_s7 + $0x1b8] sm:$0xff]  }
 0x3b4   :  { %6213 = vmatpush3.bf16.msra.mxu0 %v6398_v4  ;;  %v14_v4 = vstv %s8691_s8 }
 0x3b5   :  { %6235 = vmatpush3.bf16.msra.mxu1 %v6399_v5  ;;  %6214 = vmatprep.subr.bf16.mxu0 %v6400_v7  ;;  %15 = vst [vmem:[#allocation2] sm:$0x1] %v14_v4  ;;  %v1549_v5 = vrot.slane %v8441_v41, %v494_v6  ;;  %v1557_v7 = vrot.slane %v8441_v41, %v502_v61 }
 0x3b6   :  { %6236 = vmatprep.subr.bf16.mxu1 %v6401_v13  ;;  %v1553_v13 = vrot.slane %v8441_v41, %v498_v36 }
 0x3b8   :  { %6215 = vmatpush3.bf16.msra.mxu0 %v6402_v16  ;;  %v1561_v16 = vrot.slane %v8441_v41, %v506_v20 }
 0x3b9   :  { %6237 = vmatpush3.bf16.msra.mxu1 %v6403_v18  ;;  %6216 = vmatprep.subr.bf16.mxu0 %v6404_v21 }
 0x3ba   :  { %6238 = vmatprep.subr.bf16.mxu1 %v6405_v22 }
 0x3bc   :  { %6217 = vmatpush3.bf16.msra.mxu0 %v6406_v23  ;;  %v6097_v43 = vld [vmem:[#allocation2] ss:$0 sm:$0xff] }
 0x3bd   :  { %6239 = vmatpush3.bf16.msra.mxu1 %v6407_v25  ;;  %6218 = vmatprep.subr.bf16.mxu0 %v6408_v26 }
 0x3be   :  { %6240 = vmatprep.subr.bf16.mxu1 %v6409_v32 }
 0x3c0   :  { %6219 = vmatpush3.bf16.msra.mxu0 %v6410_v9 }
 0x3c1   :  { %6241 = vmatpush3.bf16.msra.mxu1 %v6411_v39  ;;  %6220 = vmatprep.subr.bf16.mxu0 %v6412_v27 }
 0x3c2   :  { %6242 = vmatprep.subr.bf16.mxu1 %v6413_v40 }
 0x3c4   :  { %6221 = vmatpush3.bf16.msra.mxu0 %v6414_v14 }
 0x3c5   :  { %6243 = vmatpush3.bf16.msra.mxu1 %v6415_v44  ;;  %6250 = vmatprep.subr.bf16.mxu0 %v6416_v19 }
 0x3c6   :  { %6272 = vmatprep.subr.bf16.mxu1 %v6417_v46 }
 0x3c7   :  { %5354 = vmatmul.mubr.bf16.vlgmr.msra.gmra.mrb[20].mxu0 %v4794_v60 }
 0x3c8   :  { %5394 = vmatmul.mubr.bf16.vlgmr.msra.gmra.mrb[20].mxu1 %v4796_v47  ;;  %6251 = vmatpush3.bf16.msra.mxu0 %v6418_v10 }
 0x3c9   :  { %6273 = vmatpush3.bf16.msra.mxu1 %v6419_v35  ;;  %6252 = vmatprep.subr.bf16.mxu0 %v6420_v0 }
 0x3ca   :  { %6274 = vmatprep.subr.bf16.mxu1 %v6421_v42 }
 0x3cc   :  { %6253 = vmatpush3.bf16.msra.mxu0 %v6422_v48 }
 0x3cd   :  { %6275 = vmatpush3.bf16.msra.mxu1 %v6423_v29  ;;  %6254 = vmatprep.subr.bf16.mxu0 %v6424_v50 }
 0x3ce   :  { %6276 = vmatprep.subr.bf16.mxu1 %v6425_v11 }
 0x3d0   :  { %6255 = vmatpush3.bf16.msra.mxu0 %v6426_v51 }
 0x3d1   :  { %6277 = vmatpush3.bf16.msra.mxu1 %v6427_v52  ;;  %6256 = vmatprep.subr.bf16.mxu0 %v6428_v53 }
 0x3d2   :  { %6278 = vmatprep.subr.bf16.mxu1 %v6429_v54 }
 0x3d4   :  { %6257 = vmatpush3.bf16.msra.mxu0 %v6430_v12 }
 0x3d5   :  { %6279 = vmatpush3.bf16.msra.mxu1 %v6431_v55  ;;  %6258 = vmatprep.subr.bf16.mxu0 %v6432_v38 }
 0x3d6   :  { %6280 = vmatprep.subr.bf16.mxu1 %v6433_v56 }
 0x3d8   :  { %6259 = vmatpush3.bf16.msra.mxu0 %v6434_v15 }
 0x3d9   :  { %6281 = vmatpush3.bf16.msra.mxu1 %v6435_v8  ;;  %6260 = vmatprep.subr.bf16.mxu0 %v6436_v57 }
 0x3da   :  { %6282 = vmatprep.subr.bf16.mxu1 %v6437_v58 }
 0x3dc   :  { %6261 = vmatpush3.bf16.msra.mxu0 %v6438_v59 }
 0x3dd   :  { %6283 = vmatpush3.bf16.msra.mxu1 %v6439_v17  ;;  %6262 = vmatprep.subr.bf16.mxu0 %v6440_v62 }
 0x3de   :  { %6284 = vmatprep.subr.bf16.mxu1 %v6441_v63 }
 0x3e0   :  { %6263 = vmatpush3.bf16.msra.mxu0 %v6442_v37 }
 0x3e1   :  { %6285 = vmatpush3.bf16.msra.mxu1 %v6443_v49  ;;  %6264 = vmatprep.subr.bf16.mxu0 %v6444_v34 }
 0x3e2   :  { %6286 = vmatprep.subr.bf16.mxu1 %v6445_v1 }
 0x3e4   :  { %6265 = vmatpush3.bf16.msra.mxu0 %v6446_v2 }
 0x3e5   :  { %6287 = vmatpush3.bf16.msra.mxu1 %v6447_v3 }
 0x47a   :  { %v4615_v18 = vpop.f32.mrb[16].mxu0 }
 0x47b   :  { %v6298_v21 = vadd.f32 %v4615_v18, %v1549_v5  ;;  %v4779_v22 = vpop.f32.mrb[16].mxu1  ;;  %v4617_v23 = vpop.f32.mrb[17].mxu0 }
 0x47c   :  { %v6300_v24 = vadd.f32 %v4779_v22, %v1557_v7  ;;  %v6299_v25 = vadd.f32 %v4617_v23, %v1553_v13  ;;  %v4781_v26 = vpop.f32.mrb[17].mxu1  ;;  %v4619_v6 = vpop.f32.mrb[18].mxu0 }
 0x47d   :  { %v4790_v28 = vmax.f32 %v6298_v21, 0.0  ;;  %v6301_v32 = vadd.f32 %v4781_v26, %v1561_v16  ;;  %v4783_v9 = vpop.f32.mrb[18].mxu1  ;;  %v4620_v61 = vpop.f32.mrb[19].mxu0 }
 0x47e   :  { %v4792_v33 = vmax.f32 %v6300_v24, 0.0  ;;  %v4791_v39 = vmax.f32 %v6299_v25, 0.0  ;;  %v4784_v27 = vpop.f32.mrb[19].mxu1 }
 0x47f   :  { %v4793_v36 = vmax.f32 %v6301_v32, 0.0  ;;  %v4798_v30 = vpack.c.bf16 %v4790_v28, %v4790_v28 }
 0x480   :  { %v4799_v31 = vpack.c.bf16 %v4791_v39, %v4791_v39  ;;  %v4800_v20 = vpack.c.bf16 %v4792_v33, %v4792_v33 }
 0x481   :  { %v4801_v40 = vpack.c.bf16 %v4793_v36, %v4793_v36 }
 0x482   :  { %5433 = vmatprep.mubr.bf16.mxu0 %v4799_v31 }
 0x483   :  { %5473 = vmatprep.mubr.bf16.mxu1 %v4801_v40  ;;  %5434 = vmatmul.mubr.bf16.vlgmr.msra.gmra.mrb[24].mxu0 %v4798_v30 }
 0x484   :  { %5474 = vmatmul.mubr.bf16.vlgmr.msra.gmra.mrb[24].mxu1 %v4800_v20 }
 0x49a   :  { %v6222_v41 = vpop.f32.mrb[20].mxu0 }
 0x49b   :  { %v6244_v14 = vpop.f32.mrb[20].mxu1  ;;  %v6223_v44 = vpop.f32.mrb[21].mxu0 }
 0x49c   :  { %v6224_v19 = vadd.f32 %v6223_v44, %v6222_v41  ;;  %v6245_v45 = vpop.f32.mrb[21].mxu1  ;;  %v6225_v46 = vpop.f32.mrb[22].mxu0 }
 0x49d   :  { %v6246_v10 = vadd.f32 %v6245_v45, %v6244_v14  ;;  %v6247_v60 = vpop.f32.mrb[22].mxu1  ;;  %v6226_v35 = vpop.f32.mrb[23].mxu0 }
 0x49e   :  { %v5356_v0 = vadd.f32 %v6224_v19, %v6097_v43  ;;  %v6248_v47 = vpop.f32.mrb[23].mxu1 }
 0x4a0   :  { %v5396_v42 = vadd.f32 %v6246_v10, %v5356_v0 }
 0x556   :  { %v6266_v48 = vpop.f32.mrb[24].mxu0 }
 0x557   :  { %v6288_v29 = vpop.f32.mrb[24].mxu1  ;;  %v6267_v50 = vpop.f32.mrb[25].mxu0 }
 0x558   :  { %v6268_v11 = vadd.f32 %v6267_v50, %v6266_v48  ;;  %v6289_v51 = vpop.f32.mrb[25].mxu1  ;;  %v6269_v52 = vpop.f32.mrb[26].mxu0 }
 0x559   :  { %v6290_v53 = vadd.f32 %v6289_v51, %v6288_v29  ;;  %v6291_v54 = vpop.f32.mrb[26].mxu1  ;;  %v6270_v12 = vpop.f32.mrb[27].mxu0 }
 0x55a   :  { %v5436_v55 = vadd.f32 %v6268_v11, %v5396_v42  ;;  %v6292_v38 = vpop.f32.mrb[27].mxu1 }
 0x55c   :  { %v5476_v56 = vadd.f32 %v6290_v53, %v5436_v55 }
 0x55e   :  { %5482 = vst.msk [vmem:[%s8692_s9] sm:$0x3] %vm5481_vm0, %v5476_v56 }

</bundles_post_ra>
